<compile_context>
chip_gen: v7x
topology: tpu7x:2x2x1
jax: 0.10.0
libtpu: 0.0.40
codegen_flags: <defaults>
</compile_context>

<pallas_src>
import functools

import jax
import jax.numpy as jnp
from jax import lax
from jax.experimental import pallas as pl
from jax.experimental.pallas import tpu as pltpu

F32 = jnp.float32

# Model hyper-parameters (CDN defaults).
EMB = 128           # embedding_dim
VOCAB = 56          # len(_SMILES_CHARS)
T = 50              # max_mol_length
KS = [3, 4, 5, 6]   # kernel_sizes
OC = 128            # out_channels per conv
FC = 450
GAUSS = 300         # gaussian_samples
HID = 150           # lstm / decode_layer hidden

# Lane/sublane-padded sizes used inside kernels.
HID_P = 256                 # padded hidden (LSTM / decode_layer)
V_P = 128                   # padded vocab for per-step logits
G_P = 384                   # padded gaussian_samples (3 * 128)
KMAX = max(KS)              # conv im2col K padded to KMAX * EMB = 768
FC_P = 512                  # padded fc output width
IN_DIM = OC * sum(T - k + 1 for k in KS)   # 128 * 186 = 23808
FC_TK = 2048                # fc K-tile (12 grid steps)


def _round_up(x, m):
    return (x + m - 1) // m * m


IN_DIM_P = _round_up(IN_DIM, FC_TK)        # 24576


# ---------------------------------------------------------------------------
# Kernel 1: tiled linear  y = x @ w + b  (optional ReLU)
# grid = (nt, kt): N blocks in parallel (v7x both TCs), K reduction innermost.
# Accumulates directly into the resident output block (no scratch).
# ---------------------------------------------------------------------------
def _linear_kernel(x_ref, w_ref, b_ref, o_ref, *, relu):
    k = pl.program_id(1)

    @pl.when(k == 0)
    def _():
        o_ref[...] = jnp.zeros_like(o_ref)

    o_ref[...] += jnp.dot(x_ref[...], w_ref[...], preferred_element_type=F32)

    @pl.when(k == pl.num_programs(1) - 1)
    def _():
        y = o_ref[...] + b_ref[...]
        if relu:
            y = jnp.maximum(y, 0.0)
        o_ref[...] = y


def pallas_linear(x_p, w_p, b_p, *, relu=False, tk=None, tn=None):
    """Pre-padded linear: x_p (M_p,K_p) @ w_p (K_p,N_p) + b_p (1,N_p) -> (M_p,N_p)."""
    M_p, K_p = x_p.shape
    K_w, N_p = w_p.shape
    assert K_p == K_w and M_p % 8 == 0 and N_p % 128 == 0
    tk = K_p if tk is None else min(tk, K_p)
    tn = N_p if tn is None else min(tn, N_p)
    assert K_p % tk == 0 and N_p % tn == 0
    nt, kt = N_p // tn, K_p // tk
    return pl.pallas_call(
        functools.partial(_linear_kernel, relu=relu),
        out_shape=jax.ShapeDtypeStruct((M_p, N_p), F32),
        grid_spec=pltpu.PrefetchScalarGridSpec(
            num_scalar_prefetch=0,
            grid=(nt, kt),
            in_specs=[
                pl.BlockSpec((M_p, tk), lambda n, k: (0, k)),
                pl.BlockSpec((tk, tn), lambda n, k: (k, n)),
                pl.BlockSpec((1, tn), lambda n, k: (0, n)),
            ],
            out_specs=pl.BlockSpec((M_p, tn), lambda n, k: (0, n)),
        ),
        compiler_params=pltpu.CompilerParams(
            dimension_semantics=("parallel", "arbitrary")),
    )(x_p, w_p, b_p)


# ---------------------------------------------------------------------------
# Kernel 2: fused conv bank.  grid=(4,) selects per-conv (K-padded) weights.
# ---------------------------------------------------------------------------
def _conv_kernel(x_ref, w_ref, b_ref, o_ref):
    y = jnp.dot(x_ref[0], w_ref[0], preferred_element_type=F32) + b_ref[0]
    o_ref[0] = jnp.maximum(y, 0.0)


def pallas_conv_bank(patches, weights, biases):
    """patches (C,M_p,K_p), weights (C,K_p,OC), biases (C,1,OC) -> (C,M_p,OC)."""
    C, M_p, K_p = patches.shape
    N_p = weights.shape[2]
    return pl.pallas_call(
        _conv_kernel,
        out_shape=jax.ShapeDtypeStruct((C, M_p, N_p), F32),
        grid_spec=pltpu.PrefetchScalarGridSpec(
            num_scalar_prefetch=0,
            grid=(C,),
            in_specs=[
                pl.BlockSpec((1, M_p, K_p), lambda c: (c, 0, 0)),
                pl.BlockSpec((1, K_p, N_p), lambda c: (c, 0, 0)),
                pl.BlockSpec((1, 1, N_p), lambda c: (c, 0, 0)),
            ],
            out_specs=pl.BlockSpec((1, M_p, N_p), lambda c: (c, 0, 0)),
        ),
        compiler_params=pltpu.CompilerParams(dimension_semantics=("parallel",)),
    )(patches, weights, biases)


# ---------------------------------------------------------------------------
# Kernel 3: VAE latent loss + "reparameterization" on the fused [mean|std] output.
# Input ms is (M_p, 2*G_P): cols [0:G_P) hold z_mean, [G_P:2*G_P) hold z_stddev
# (pad cols/rows masked out of the loss).  Output z is kept G_P-padded so it feeds
# the decode_layer matmul without re-padding.
# ---------------------------------------------------------------------------
def _latent_kernel(ms_ref, loss_ref, z_ref, *, b, g, gp, gs):
    ms = ms_ref[...]
    m = ms[:, :gp]
    s = ms[:, gp:]
    row = lax.broadcasted_iota(jnp.int32, m.shape, 0)
    col = lax.broadcasted_iota(jnp.int32, m.shape, 1)
    valid = (row < b) & (col < g)
    s2 = s * s
    term = m * m + s2 - jnp.log(jnp.where(valid, s2, 1.0)) - 1.0
    per_row = 0.5 * jnp.sum(jnp.where(valid, term, 0.0), axis=1, keepdims=True)
    loss_ref[...] = jnp.sum(per_row, axis=0, keepdims=True) / b
    z_ref[...] = m + s * gs


def pallas_latent(ms, *, b, g, gp, gs):
    M_p = ms.shape[0]
    loss, z = pl.pallas_call(
        functools.partial(_latent_kernel, b=b, g=g, gp=gp, gs=float(gs)),
        out_shape=(
            jax.ShapeDtypeStruct((1, 1), F32),
            jax.ShapeDtypeStruct((M_p, gp), F32),
        ),
        in_specs=[pl.BlockSpec(memory_space=pltpu.MemorySpace.VMEM)],
        out_specs=(
            pl.BlockSpec(memory_space=pltpu.MemorySpace.VMEM),
            pl.BlockSpec(memory_space=pltpu.MemorySpace.VMEM),
        ),
    )(ms)
    return loss[0, 0], z


# ---------------------------------------------------------------------------
# Kernel 4: fused 50-step LSTM decoder + fc_output logits in ONE pallas_call.
# Weights use constant index_maps (resident in VMEM, DMA'd once); the cell-state
# carry is a VMEM scratch initialized from s0 at t == 0.
# NOTE: the original code calls lstm_cell(inp, (state, state)) where `state` is the
# previous CELL output, i.e. both h and c are fed the previous c.  We reproduce that:
# the single carry acts as both h and c.
# ---------------------------------------------------------------------------
def _lstm_decode_kernel(x_ref, s0_ref, wih_ref, whh_ref, bg_ref, wout_ref, bout_ref,
                        logit_ref, carry_ref, *, hp):
    t = pl.program_id(0)

    @pl.when(t == 0)
    def _():
        carry_ref[...] = s0_ref[...]

    x = x_ref[0]                                    # (B, EMB)
    s = carry_ref[...]                              # (B, hp)   h = c = s
    gates = (jnp.dot(x, wih_ref[...], preferred_element_type=F32)
             + jnp.dot(s, whh_ref[...], preferred_element_type=F32)
             + bg_ref[...])                         # (B, 4*hp), gate order i, f, g, o
    i = jax.nn.sigmoid(gates[:, 0:hp])
    f = jax.nn.sigmoid(gates[:, hp:2 * hp])
    g = jnp.tanh(gates[:, 2 * hp:3 * hp])
    o = jax.nn.sigmoid(gates[:, 3 * hp:4 * hp])
    c = f * s + i * g
    h = o * jnp.tanh(c)
    carry_ref[...] = c
    logit_ref[0] = (jnp.dot(h, wout_ref[...], preferred_element_type=F32)
                    + bout_ref[...])


def pallas_lstm_decode(dec_inputs, s0, wih, whh, bg, wout, bout):
    Tn, B, E = dec_inputs.shape
    hp = s0.shape[1]
    vp = wout.shape[1]
    return pl.pallas_call(
        functools.partial(_lstm_decode_kernel, hp=hp),
        out_shape=jax.ShapeDtypeStruct((Tn, B, vp), F32),
        grid_spec=pltpu.PrefetchScalarGridSpec(
            num_scalar_prefetch=0,
            grid=(Tn,),
            in_specs=[
                pl.BlockSpec((1, B, E), lambda t: (t, 0, 0)),     # per-step input
                pl.BlockSpec((B, hp), lambda t: (0, 0)),          # s0 (resident)
                pl.BlockSpec((E, 4 * hp), lambda t: (0, 0)),      # w_ih (resident)
                pl.BlockSpec((hp, 4 * hp), lambda t: (0, 0)),     # w_hh (resident)
                pl.BlockSpec((1, 4 * hp), lambda t: (0, 0)),      # gate bias
                pl.BlockSpec((hp, vp), lambda t: (0, 0)),         # fc_output weight
                pl.BlockSpec((1, vp), lambda t: (0, 0)),          # fc_output bias
            ],
            out_specs=pl.BlockSpec((1, B, vp), lambda t: (t, 0, 0)),
            scratch_shapes=[pltpu.VMEM((B, hp), F32)],            # cell-state carry
        ),
        compiler_params=pltpu.CompilerParams(dimension_semantics=("arbitrary",)),
    )(dec_inputs, s0, wih, whh, bg, wout, bout)


# ---------------------------------------------------------------------------
# Parameters (deterministic, synthetic) — PyTorch layout.
# ---------------------------------------------------------------------------
def init_params(key):
    keys = iter(jax.random.split(key, 40))

    def w(shape, scale=0.05):
        return jax.random.normal(next(keys), shape, F32) * scale

    p = {
        "embed": w((VOCAB, EMB), 0.1),
        "dec_embed": w((VOCAB, EMB), 0.1),
        "conv_w": [w((OC, k * EMB)) for k in KS],   # Conv2d weight (oc, 1, k, E) flattened
        "conv_b": [w((OC,)) for _ in KS],
        "fc_w": w((FC, IN_DIM), 0.01),
        "fc_b": w((FC,)),
        "fc_mean_w": w((GAUSS, FC)),
        "fc_mean_b": w((GAUSS,)),
        "fc_std_w": w((GAUSS, FC)),
        "fc_std_b": w((GAUSS,)),
        "dec_w": w((HID, GAUSS)),
        "dec_b": w((HID,)),
        "w_ih": w((4 * HID, EMB)),
        "w_hh": w((4 * HID, HID)),
        "b_ih": w((4 * HID,)),
        "b_hh": w((4 * HID,)),
        "out_w": w((VOCAB, HID)),
        "out_b": w((VOCAB,)),
    }
    return p


def prepare_params(p):
    """One-time (outside the jitted forward) transpose + lane padding of every weight
    so cdn_forward never copies weights per call."""
    prep = {"embed": p["embed"], "dec_embed": p["dec_embed"]}

    # conv bank: per-conv im2col weight (k*EMB, OC) zero-padded to (KMAX*EMB, OC).
    KC = KMAX * EMB
    conv_w = jnp.zeros((len(KS), KC, OC), F32)
    conv_b = jnp.zeros((len(KS), 1, OC), F32)
    for i, k in enumerate(KS):
        conv_w = conv_w.at[i, :k * EMB, :].set(p["conv_w"][i].T)
        conv_b = conv_b.at[i, 0, :].set(p["conv_b"][i])
    prep["conv_w"], prep["conv_b"] = conv_w, conv_b

    # fc
    prep["fc_w"] = jnp.zeros((IN_DIM_P, FC_P), F32).at[:IN_DIM, :FC].set(p["fc_w"].T)
    prep["fc_b"] = jnp.zeros((1, FC_P), F32).at[0, :FC].set(p["fc_b"])

    # fused fc_mean | fc_stddev: mean in cols [0:GAUSS), std in cols [G_P:G_P+GAUSS)
    ms_w = jnp.zeros((FC_P, 2 * G_P), F32)
    ms_w = ms_w.at[:FC, :GAUSS].set(p["fc_mean_w"].T)
    ms_w = ms_w.at[:FC, G_P:G_P + GAUSS].set(p["fc_std_w"].T)
    ms_b = jnp.zeros((1, 2 * G_P), F32)
    ms_b = ms_b.at[0, :GAUSS].set(p["fc_mean_b"])
    ms_b = ms_b.at[0, G_P:G_P + GAUSS].set(p["fc_std_b"])
    prep["ms_w"], prep["ms_b"] = ms_w, ms_b

    # decode_layer
    prep["dec_w"] = jnp.zeros((G_P, HID_P), F32).at[:GAUSS, :HID].set(p["dec_w"].T)
    prep["dec_b"] = jnp.zeros((1, HID_P), F32).at[0, :HID].set(p["dec_b"])

    # LSTMCell weights repacked into HID_P-padded gate blocks [i | f | g | o].
    # Pad columns of s0 / w_ih / w_hh / bias are all zero => i=f=0.5, g=0 => padded
    # carry lanes stay exactly 0 (required for correctness).
    bsum = p["b_ih"] + p["b_hh"]
    wih = jnp.zeros((EMB, 4 * HID_P), F32)
    whh = jnp.zeros((HID_P, 4 * HID_P), F32)
    bg = jnp.zeros((1, 4 * HID_P), F32)
    for j in range(4):
        wih = wih.at[:, j * HID_P:j * HID_P + HID].set(p["w_ih"][j * HID:(j + 1) * HID, :].T)
        whh = whh.at[:HID, j * HID_P:j * HID_P + HID].set(p["w_hh"][j * HID:(j + 1) * HID, :].T)
        bg = bg.at[0, j * HID_P:j * HID_P + HID].set(bsum[j * HID:(j + 1) * HID])
    prep["wih"], prep["whh"], prep["bg"] = wih, whh, bg
    prep["wout"] = jnp.zeros((HID_P, V_P), F32).at[:HID, :VOCAB].set(p["out_w"].T)
    prep["bout"] = jnp.zeros((1, V_P), F32).at[0, :VOCAB].set(p["out_b"])
    return prep


# ---------------------------------------------------------------------------
# Forward pass == CDN.forward
# ---------------------------------------------------------------------------
def cdn_forward(prep, x):
    B = x.shape[0]
    M_p = _round_up(B, 8)

    # ---------------- encode ----------------
    emb = prep["embed"][x]                           # (B, T, EMB) gather (glue)
    L_max = T - min(KS) + 1
    M_c = _round_up(B * L_max, 8)
    KC = KMAX * EMB
    patch_list = []
    for k in KS:
        L = T - k + 1
        # im2col: patches[:, p, kh*E:(kh+1)*E] = emb[:, p+kh, :]
        patches = jnp.concatenate([emb[:, kh:kh + L, :] for kh in range(k)], axis=2)
        patches = patches.reshape(B * L, k * EMB)
        patch_list.append(jnp.zeros((M_c, KC), F32).at[:B * L, :k * EMB].set(patches))
    patches_all = jnp.stack(patch_list)              # (4, M_c, 768)
    conv_out = pallas_conv_bank(patches_all, prep["conv_w"], prep["conv_b"])  # (4, M_c, OC)

    flat_parts = []
    for i, k in enumerate(KS):
        L = T - k + 1
        # PyTorch x.view(B, -1) of (B, OC, L, 1) flattens channel-major:
        y = conv_out[i, :B * L, :].reshape(B, L, OC).transpose(0, 2, 1).reshape(B, OC * L)
        flat_parts.append(y)
    flat = jnp.concatenate(flat_parts, axis=1)       # (B, 23808)

    x_fc = jnp.zeros((M_p, IN_DIM_P), F32).at[:B, :IN_DIM].set(flat)
    h_fc = pallas_linear(x_fc, prep["fc_w"], prep["fc_b"], relu=True,
                         tk=FC_TK, tn=256)           # (M_p, 512)

    ms = pallas_linear(h_fc, prep["ms_w"], prep["ms_b"])   # (M_p, 768) = [mean | std]
    mean_latent_loss, z_p = pallas_latent(ms, b=B, g=GAUSS, gp=G_P, gs=GAUSS)

    # ---------------- decode ----------------
    s0_full = pallas_linear(z_p, prep["dec_w"], prep["dec_b"], relu=True)  # (M_p, HID_P)
    s0 = s0_full[:B]                                 # (B, HID_P), pad lanes exactly 0

    dec_emb = prep["dec_embed"][x]                   # (B, T, EMB)
    dec_inputs = dec_emb.transpose(1, 0, 2)          # (T, B, EMB)

    logits_seq = pallas_lstm_decode(dec_inputs, s0, prep["wih"], prep["whh"],
                                    prep["bg"], prep["wout"], prep["bout"])  # (T, B, V_P)

    # torch.t(torch.stack(temp_logits)) on a (T, B, V) stack:
    # TODO(synk): torch.t rejects 3-D tensors in modern PyTorch; implemented as the
    # intended dim-0/1 transpose so shapes line up with loss_acc's one-hot target.
    decoder_logits = logits_seq[:, :, :VOCAB].transpose(1, 0, 2)  # (B, T, VOCAB)

    return mean_latent_loss, decoder_logits


if __name__ == "__main__":
    key = jax.random.PRNGKey(0)
    pkey, xkey = jax.random.split(key)
    params = init_params(pkey)
    prep = prepare_params(params)    # one-time weight transpose/pad, outside the jit

    B = 2
    x = jax.random.randint(xkey, (B, T), 0, VOCAB, dtype=jnp.int32)  # token ids, (2, 50)

    fwd = jax.jit(cdn_forward)
    loss, logits = fwd(prep, x)
    jax.block_until_ready((loss, logits))

    assert logits.shape == (B, T, VOCAB), logits.shape
    assert bool(jnp.isfinite(loss)) and bool(jnp.all(jnp.isfinite(logits)))
    print("KERNEL_OK")
</pallas_src>

<mosaic_0001>
module attributes {stable_mosaic.version = 11 : i64} {
  func.func @_conv_kernel(%arg0: i32, %arg1: memref<1x96x768xf32, #tpu.memory_space<vmem>>, %arg2: memref<1x768x128xf32, #tpu.memory_space<vmem>>, %arg3: memref<1x1x128xf32, #tpu.memory_space<vmem>>, %arg4: memref<1x96x128xf32, #tpu.memory_space<vmem>>) attributes {dimension_semantics = [#tpu.dimension_semantics<parallel>], iteration_bounds = array<i64: 4>, scalar_prefetch = 0 : i64, scratch_operands = 0 : i64, tpu.core_type = #tpu.core_type<tc>, window_params = [{transform_indices = @transform_0, window_bounds = array<i64: 1, 96, 768>}, {transform_indices = @transform_1, window_bounds = array<i64: 1, 768, 128>}, {transform_indices = @transform_2, window_bounds = array<i64: 1, 1, 128>}, {transform_indices = @transform_3, window_bounds = array<i64: 1, 96, 128>}]} {
    %c0 = arith.constant 0 : index
    %c0_0 = arith.constant 0 : index
    %c0_1 = arith.constant 0 : index
    %0 = vector.load %arg1[%c0, %c0_0, %c0_1] : memref<1x96x768xf32, #tpu.memory_space<vmem>>, vector<1x96x768xf32>
    %1 = vector.shape_cast %0 : vector<1x96x768xf32> to vector<96x768xf32>
    %c0_2 = arith.constant 0 : index
    %c0_3 = arith.constant 0 : index
    %c0_4 = arith.constant 0 : index
    %2 = vector.load %arg2[%c0_2, %c0_3, %c0_4] : memref<1x768x128xf32, #tpu.memory_space<vmem>>, vector<1x768x128xf32>
    %3 = vector.shape_cast %2 : vector<1x768x128xf32> to vector<768x128xf32>
    %cst = arith.constant dense<0.000000e+00> : vector<96x128xf32>
    %4 = tpu.matmul %1, %3, %cst {dimension_numbers = #tpu.dot_dimension_numbers<[1], [0], [0], [1], [0, 0, 1, 1], [], []>} : vector<96x768xf32>, vector<768x128xf32>, vector<96x128xf32> -> vector<96x128xf32>
    %c0_5 = arith.constant 0 : index
    %c0_6 = arith.constant 0 : index
    %c0_7 = arith.constant 0 : index
    %5 = vector.load %arg3[%c0_5, %c0_6, %c0_7] : memref<1x1x128xf32, #tpu.memory_space<vmem>>, vector<1x1x128xf32>
    %6 = vector.shape_cast %5 : vector<1x1x128xf32> to vector<1x128xf32>
    %7 = vector.broadcast %6 : vector<1x128xf32> to vector<96x128xf32>
    %8 = arith.addf %4, %7 : vector<96x128xf32>
    %cst_8 = arith.constant 0.000000e+00 : f32
    %9 = vector.broadcast %cst_8 : f32 to vector<96x128xf32>
    %10 = arith.maximumf %8, %9 : vector<96x128xf32>
    %c0_9 = arith.constant 0 : index
    %c0_10 = arith.constant 0 : index
    %c0_11 = arith.constant 0 : index
    %11 = vector.load %arg4[%c0_9, %c0_10, %c0_11] : memref<1x96x128xf32, #tpu.memory_space<vmem>>, vector<1x96x128xf32>
    %12 = vector.shape_cast %11 : vector<1x96x128xf32> to vector<96x128xf32>
    %13 = vector.shape_cast %10 : vector<96x128xf32> to vector<1x96x128xf32>
    tpu.vector_store %arg4[%c0_9, %c0_10, %c0_11], %13 {strides = array<i32>} : memref<1x96x128xf32, #tpu.memory_space<vmem>>, vector<1x96x128xf32>,
    return
  }
  func.func @transform_0(%arg0: i32) -> (i32, i32, i32) {
    %c0_i32 = arith.constant 0 : i32
    %c0_i32_0 = arith.constant 0 : i32
    %c0_i32_1 = arith.constant 0 : i32
    return %arg0, %c0_i32, %c0_i32_0 : i32, i32, i32
  }
  func.func @transform_1(%arg0: i32) -> (i32, i32, i32) {
    %c0_i32 = arith.constant 0 : i32
    %c0_i32_0 = arith.constant 0 : i32
    %c0_i32_1 = arith.constant 0 : i32
    return %arg0, %c0_i32, %c0_i32_0 : i32, i32, i32
  }
  func.func @transform_2(%arg0: i32) -> (i32, i32, i32) {
    %c0_i32 = arith.constant 0 : i32
    %c0_i32_0 = arith.constant 0 : i32
    %c0_i32_1 = arith.constant 0 : i32
    return %arg0, %c0_i32, %c0_i32_0 : i32, i32, i32
  }
  func.func @transform_3(%arg0: i32) -> (i32, i32, i32) {
    %c0_i32 = arith.constant 0 : i32
    %c0_i32_0 = arith.constant 0 : i32
    %c0_i32_1 = arith.constant 0 : i32
    return %arg0, %c0_i32, %c0_i32_0 : i32, i32, i32
  }
}

module attributes {stable_mosaic.version = 11 : i64} {
  func.func @_linear_kernel(%arg0: i32, %arg1: i32, %arg2: memref<8x2048xf32, #tpu.memory_space<vmem>>, %arg3: memref<2048x256xf32, #tpu.memory_space<vmem>>, %arg4: memref<1x256xf32, #tpu.memory_space<vmem>>, %arg5: memref<8x256xf32, #tpu.memory_space<vmem>>) attributes {dimension_semantics = [#tpu.dimension_semantics<parallel>, #tpu.dimension_semantics<arbitrary>], iteration_bounds = array<i64: 2, 12>, scalar_prefetch = 0 : i64, scratch_operands = 0 : i64, tpu.core_type = #tpu.core_type<tc>, window_params = [{transform_indices = @transform_0, window_bounds = array<i64: 8, 2048>}, {transform_indices = @transform_1, window_bounds = array<i64: 2048, 256>}, {transform_indices = @transform_2, window_bounds = array<i64: 1, 256>}, {transform_indices = @transform_3, window_bounds = array<i64: 8, 256>}]} {
    %c0_i32 = arith.constant 0 : i32
    %0 = arith.cmpi eq, %arg1, %c0_i32 : i32
    %1 = arith.extui %0 : i1 to i32
    %c0_i32_0 = arith.constant 0 : i32
    %2 = arith.cmpi ne, %1, %c0_i32_0 : i32
    scf.if %2 {
      %cst_9 = arith.constant 0.000000e+00 : f32
      %12 = vector.broadcast %cst_9 : f32 to vector<8x256xf32>
      %c0_10 = arith.constant 0 : index
      %c0_11 = arith.constant 0 : index
      %13 = vector.load %arg5[%c0_10, %c0_11] : memref<8x256xf32, #tpu.memory_space<vmem>>, vector<8x256xf32>
      tpu.vector_store %arg5[%c0_10, %c0_11], %12 {strides = array<i32>} : memref<8x256xf32, #tpu.memory_space<vmem>>, vector<8x256xf32>,
    } else {
    }
    %c0 = arith.constant 0 : index
    %c0_1 = arith.constant 0 : index
    %3 = vector.load %arg5[%c0, %c0_1] : memref<8x256xf32, #tpu.memory_space<vmem>>, vector<8x256xf32>
    %c0_2 = arith.constant 0 : index
    %c0_3 = arith.constant 0 : index
    %4 = vector.load %arg2[%c0_2, %c0_3] : memref<8x2048xf32, #tpu.memory_space<vmem>>, vector<8x2048xf32>
    %c0_4 = arith.constant 0 : index
    %c0_5 = arith.constant 0 : index
    %5 = vector.load %arg3[%c0_4, %c0_5] : memref<2048x256xf32, #tpu.memory_space<vmem>>, vector<2048x256xf32>
    %cst = arith.constant dense<0.000000e+00> : vector<8x256xf32>
    %6 = tpu.matmul %4, %5, %cst {dimension_numbers = #tpu.dot_dimension_numbers<[1], [0], [0], [1], [0, 0, 1, 1], [], []>} : vector<8x2048xf32>, vector<2048x256xf32>, vector<8x256xf32> -> vector<8x256xf32>
    %7 = arith.addf %3, %6 : vector<8x256xf32>
    %c0_6 = arith.constant 0 : index
    %c0_7 = arith.constant 0 : index
    %8 = vector.load %arg5[%c0_6, %c0_7] : memref<8x256xf32, #tpu.memory_space<vmem>>, vector<8x256xf32>
    tpu.vector_store %arg5[%c0_6, %c0_7], %7 {strides = array<i32>} : memref<8x256xf32, #tpu.memory_space<vmem>>, vector<8x256xf32>,
    %c11_i32 = arith.constant 11 : i32
    %9 = arith.cmpi eq, %arg1, %c11_i32 : i32
    %10 = arith.extui %9 : i1 to i32
    %c0_i32_8 = arith.constant 0 : i32
    %11 = arith.cmpi ne, %10, %c0_i32_8 : i32
    scf.if %11 {
      %c0_9 = arith.constant 0 : index
      %c0_10 = arith.constant 0 : index
      %12 = vector.load %arg5[%c0_9, %c0_10] : memref<8x256xf32, #tpu.memory_space<vmem>>, vector<8x256xf32>
      %c0_11 = arith.constant 0 : index
      %c0_12 = arith.constant 0 : index
      %13 = vector.load %arg4[%c0_11, %c0_12] : memref<1x256xf32, #tpu.memory_space<vmem>>, vector<1x256xf32>
      %14 = vector.broadcast %13 : vector<1x256xf32> to vector<8x256xf32>
      %15 = arith.addf %12, %14 : vector<8x256xf32>
      %cst_13 = arith.constant 0.000000e+00 : f32
      %16 = vector.broadcast %cst_13 : f32 to vector<8x256xf32>
      %17 = arith.maximumf %15, %16 : vector<8x256xf32>
      %c0_14 = arith.constant 0 : index
      %c0_15 = arith.constant 0 : index
      %18 = vector.load %arg5[%c0_14, %c0_15] : memref<8x256xf32, #tpu.memory_space<vmem>>, vector<8x256xf32>
      tpu.vector_store %arg5[%c0_14, %c0_15], %17 {strides = array<i32>} : memref<8x256xf32, #tpu.memory_space<vmem>>, vector<8x256xf32>,
    } else {
    }
    return
  }
  func.func @transform_0(%arg0: i32, %arg1: i32) -> (i32, i32) {
    %c0_i32 = arith.constant 0 : i32
    %c0_i32_0 = arith.constant 0 : i32
    return %c0_i32, %arg1 : i32, i32
  }
  func.func @transform_1(%arg0: i32, %arg1: i32) -> (i32, i32) {
    %c0_i32 = arith.constant 0 : i32
    return %arg1, %arg0 : i32, i32
  }
  func.func @transform_2(%arg0: i32, %arg1: i32) -> (i32, i32) {
    %c0_i32 = arith.constant 0 : i32
    %c0_i32_0 = arith.constant 0 : i32
    return %c0_i32, %arg0 : i32, i32
  }
  func.func @transform_3(%arg0: i32, %arg1: i32) -> (i32, i32) {
    %c0_i32 = arith.constant 0 : i32
    %c0_i32_0 = arith.constant 0 : i32
    return %c0_i32, %arg0 : i32, i32
  }
}

module attributes {stable_mosaic.version = 11 : i64} {
  func.func @_linear_kernel(%arg0: i32, %arg1: i32, %arg2: memref<8x512xf32, #tpu.memory_space<vmem>>, %arg3: memref<512x768xf32, #tpu.memory_space<vmem>>, %arg4: memref<1x768xf32, #tpu.memory_space<vmem>>, %arg5: memref<8x768xf32, #tpu.memory_space<vmem>>) attributes {dimension_semantics = [#tpu.dimension_semantics<parallel>, #tpu.dimension_semantics<arbitrary>], iteration_bounds = array<i64: 1, 1>, scalar_prefetch = 0 : i64, scratch_operands = 0 : i64, tpu.core_type = #tpu.core_type<tc>, window_params = [{transform_indices = @transform_0, window_bounds = array<i64: 8, 512>}, {transform_indices = @transform_1, window_bounds = array<i64: 512, 768>}, {transform_indices = @transform_2, window_bounds = array<i64: 1, 768>}, {transform_indices = @transform_3, window_bounds = array<i64: 8, 768>}]} {
    %c0_i32 = arith.constant 0 : i32
    %0 = arith.cmpi eq, %arg1, %c0_i32 : i32
    %1 = arith.extui %0 : i1 to i32
    %c0_i32_0 = arith.constant 0 : i32
    %2 = arith.cmpi ne, %1, %c0_i32_0 : i32
    scf.if %2 {
      %cst_10 = arith.constant 0.000000e+00 : f32
      %12 = vector.broadcast %cst_10 : f32 to vector<8x768xf32>
      %c0_11 = arith.constant 0 : index
      %c0_12 = arith.constant 0 : index
      %13 = vector.load %arg5[%c0_11, %c0_12] : memref<8x768xf32, #tpu.memory_space<vmem>>, vector<8x768xf32>
      tpu.vector_store %arg5[%c0_11, %c0_12], %12 {strides = array<i32>} : memref<8x768xf32, #tpu.memory_space<vmem>>, vector<8x768xf32>,
    } else {
    }
    %c0 = arith.constant 0 : index
    %c0_1 = arith.constant 0 : index
    %3 = vector.load %arg5[%c0, %c0_1] : memref<8x768xf32, #tpu.memory_space<vmem>>, vector<8x768xf32>
    %c0_2 = arith.constant 0 : index
    %c0_3 = arith.constant 0 : index
    %4 = vector.load %arg2[%c0_2, %c0_3] : memref<8x512xf32, #tpu.memory_space<vmem>>, vector<8x512xf32>
    %c0_4 = arith.constant 0 : index
    %c0_5 = arith.constant 0 : index
    %5 = vector.load %arg3[%c0_4, %c0_5] : memref<512x768xf32, #tpu.memory_space<vmem>>, vector<512x768xf32>
    %cst = arith.constant dense<0.000000e+00> : vector<8x768xf32>
    %6 = tpu.matmul %4, %5, %cst {dimension_numbers = #tpu.dot_dimension_numbers<[1], [0], [0], [1], [0, 0, 1, 1], [], []>} : vector<8x512xf32>, vector<512x768xf32>, vector<8x768xf32> -> vector<8x768xf32>
    %7 = arith.addf %3, %6 : vector<8x768xf32>
    %c0_6 = arith.constant 0 : index
    %c0_7 = arith.constant 0 : index
    %8 = vector.load %arg5[%c0_6, %c0_7] : memref<8x768xf32, #tpu.memory_space<vmem>>, vector<8x768xf32>
    tpu.vector_store %arg5[%c0_6, %c0_7], %7 {strides = array<i32>} : memref<8x768xf32, #tpu.memory_space<vmem>>, vector<8x768xf32>,
    %c0_i32_8 = arith.constant 0 : i32
    %9 = arith.cmpi eq, %arg1, %c0_i32_8 : i32
    %10 = arith.extui %9 : i1 to i32
    %c0_i32_9 = arith.constant 0 : i32
    %11 = arith.cmpi ne, %10, %c0_i32_9 : i32
    scf.if %11 {
      %c0_10 = arith.constant 0 : index
      %c0_11 = arith.constant 0 : index
      %12 = vector.load %arg5[%c0_10, %c0_11] : memref<8x768xf32, #tpu.memory_space<vmem>>, vector<8x768xf32>
      %c0_12 = arith.constant 0 : index
      %c0_13 = arith.constant 0 : index
      %13 = vector.load %arg4[%c0_12, %c0_13] : memref<1x768xf32, #tpu.memory_space<vmem>>, vector<1x768xf32>
      %14 = vector.broadcast %13 : vector<1x768xf32> to vector<8x768xf32>
      %15 = arith.addf %12, %14 : vector<8x768xf32>
      %c0_14 = arith.constant 0 : index
      %c0_15 = arith.constant 0 : index
      %16 = vector.load %arg5[%c0_14, %c0_15] : memref<8x768xf32, #tpu.memory_space<vmem>>, vector<8x768xf32>
      tpu.vector_store %arg5[%c0_14, %c0_15], %15 {strides = array<i32>} : memref<8x768xf32, #tpu.memory_space<vmem>>, vector<8x768xf32>,
    } else {
    }
    return
  }
  func.func @transform_0(%arg0: i32, %arg1: i32) -> (i32, i32) {
    %c0_i32 = arith.constant 0 : i32
    %c0_i32_0 = arith.constant 0 : i32
    return %c0_i32, %arg1 : i32, i32
  }
  func.func @transform_1(%arg0: i32, %arg1: i32) -> (i32, i32) {
    %c0_i32 = arith.constant 0 : i32
    return %arg1, %arg0 : i32, i32
  }
  func.func @transform_2(%arg0: i32, %arg1: i32) -> (i32, i32) {
    %c0_i32 = arith.constant 0 : i32
    %c0_i32_0 = arith.constant 0 : i32
    return %c0_i32, %arg0 : i32, i32
  }
  func.func @transform_3(%arg0: i32, %arg1: i32) -> (i32, i32) {
    %c0_i32 = arith.constant 0 : i32
    %c0_i32_0 = arith.constant 0 : i32
    return %c0_i32, %arg0 : i32, i32
  }
}

module attributes {stable_mosaic.version = 11 : i64} {
  func.func @_latent_kernel(%arg0: memref<8x768xf32, #tpu.memory_space<vmem>>, %arg1: memref<1x1xf32, #tpu.memory_space<vmem>>, %arg2: memref<8x384xf32, #tpu.memory_space<vmem>>) attributes {dimension_semantics = [], scalar_prefetch = 0 : i64, scratch_operands = 0 : i64, tpu.core_type = #tpu.core_type<tc>} {
    %c0 = arith.constant 0 : index
    %c0_0 = arith.constant 0 : index
    %0 = vector.load %arg0[%c0, %c0_0] : memref<8x768xf32, #tpu.memory_space<vmem>>, vector<8x768xf32>
    %1 = vector.extract_strided_slice %0 {offsets = [0, 0], sizes = [8, 384], strides = [1, 1]} : vector<8x768xf32> to vector<8x384xf32>
    %2 = vector.extract_strided_slice %0 {offsets = [0, 384], sizes = [8, 384], strides = [1, 1]} : vector<8x768xf32> to vector<8x384xf32>
    %3 = tpu.iota {dimensions = array<i32: 0>} : vector<8x384xi32>
    %4 = tpu.iota {dimensions = array<i32: 1>} : vector<8x384xi32>
    %c2_i32 = arith.constant 2 : i32
    %5 = vector.broadcast %c2_i32 : i32 to vector<8x384xi32>
    %6 = arith.cmpi slt, %3, %5 : vector<8x384xi32>
    %c300_i32 = arith.constant 300 : i32
    %7 = vector.broadcast %c300_i32 : i32 to vector<8x384xi32>
    %8 = arith.cmpi slt, %4, %7 : vector<8x384xi32>
    %9 = arith.andi %6, %8 : vector<8x384xi1>
    %10 = arith.mulf %2, %2 : vector<8x384xf32>
    %11 = arith.mulf %1, %1 : vector<8x384xf32>
    %12 = arith.addf %11, %10 : vector<8x384xf32>
    %cst = arith.constant 1.000000e+00 : f32
    %13 = vector.broadcast %cst : f32 to vector<8x384xf32>
    %14 = arith.select %9, %10, %13 : vector<8x384xi1>, vector<8x384xf32>
    %15 = math.log %14 : vector<8x384xf32>
    %16 = arith.subf %12, %15 : vector<8x384xf32>
    %cst_1 = arith.constant 1.000000e+00 : f32
    %17 = vector.broadcast %cst_1 : f32 to vector<8x384xf32>
    %18 = arith.subf %16, %17 : vector<8x384xf32>
    %cst_2 = arith.constant 0.000000e+00 : f32
    %19 = vector.broadcast %cst_2 : f32 to vector<8x384xf32>
    %20 = arith.select %9, %18, %19 : vector<8x384xi1>, vector<8x384xf32>
    %cst_3 = arith.constant dense<0.000000e+00> : vector<8xf32>
    %21 = vector.multi_reduction <add>, %20, %cst_3 [1] : vector<8x384xf32> to vector<8xf32>
    %22 = vector.shape_cast %21 : vector<8xf32> to vector<8x1xf32>
    %cst_4 = arith.constant 5.000000e-01 : f32
    %23 = vector.broadcast %cst_4 : f32 to vector<8x1xf32>
    %24 = arith.mulf %23, %22 : vector<8x1xf32>
    %cst_5 = arith.constant dense<0.000000e+00> : vector<1xf32>
    %25 = vector.multi_reduction <add>, %24, %cst_5 [0] : vector<8x1xf32> to vector<1xf32>
    %26 = vector.shape_cast %25 : vector<1xf32> to vector<1x1xf32>
    %cst_6 = arith.constant 2.000000e+00 : f32
    %27 = vector.broadcast %cst_6 : f32 to vector<1x1xf32>
    %28 = arith.divf %26, %27 : vector<1x1xf32>
    %c0_7 = arith.constant 0 : index
    %c0_8 = arith.constant 0 : index
    %29 = vector.load %arg1[%c0_7, %c0_8] : memref<1x1xf32, #tpu.memory_space<vmem>>, vector<1x1xf32>
    tpu.vector_store %arg1[%c0_7, %c0_8], %28 {strides = array<i32>} : memref<1x1xf32, #tpu.memory_space<vmem>>, vector<1x1xf32>,
    %cst_9 = arith.constant 3.000000e+02 : f32
    %30 = vector.broadcast %cst_9 : f32 to vector<8x384xf32>
    %31 = arith.mulf %2, %30 : vector<8x384xf32>
    %32 = arith.addf %1, %31 : vector<8x384xf32>
    %c0_10 = arith.constant 0 : index
    %c0_11 = arith.constant 0 : index
    %33 = vector.load %arg2[%c0_10, %c0_11] : memref<8x384xf32, #tpu.memory_space<vmem>>, vector<8x384xf32>
    tpu.vector_store %arg2[%c0_10, %c0_11], %32 {strides = array<i32>} : memref<8x384xf32, #tpu.memory_space<vmem>>, vector<8x384xf32>,
    return
  }
}

module attributes {stable_mosaic.version = 11 : i64} {
  func.func @_linear_kernel(%arg0: i32, %arg1: i32, %arg2: memref<8x384xf32, #tpu.memory_space<vmem>>, %arg3: memref<384x256xf32, #tpu.memory_space<vmem>>, %arg4: memref<1x256xf32, #tpu.memory_space<vmem>>, %arg5: memref<8x256xf32, #tpu.memory_space<vmem>>) attributes {dimension_semantics = [#tpu.dimension_semantics<parallel>, #tpu.dimension_semantics<arbitrary>], iteration_bounds = array<i64: 1, 1>, scalar_prefetch = 0 : i64, scratch_operands = 0 : i64, tpu.core_type = #tpu.core_type<tc>, window_params = [{transform_indices = @transform_0, window_bounds = array<i64: 8, 384>}, {transform_indices = @transform_1, window_bounds = array<i64: 384, 256>}, {transform_indices = @transform_2, window_bounds = array<i64: 1, 256>}, {transform_indices = @transform_3, window_bounds = array<i64: 8, 256>}]} {
    %c0_i32 = arith.constant 0 : i32
    %0 = arith.cmpi eq, %arg1, %c0_i32 : i32
    %1 = arith.extui %0 : i1 to i32
    %c0_i32_0 = arith.constant 0 : i32
    %2 = arith.cmpi ne, %1, %c0_i32_0 : i32
    scf.if %2 {
      %cst_10 = arith.constant 0.000000e+00 : f32
      %12 = vector.broadcast %cst_10 : f32 to vector<8x256xf32>
      %c0_11 = arith.constant 0 : index
      %c0_12 = arith.constant 0 : index
      %13 = vector.load %arg5[%c0_11, %c0_12] : memref<8x256xf32, #tpu.memory_space<vmem>>, vector<8x256xf32>
      tpu.vector_store %arg5[%c0_11, %c0_12], %12 {strides = array<i32>} : memref<8x256xf32, #tpu.memory_space<vmem>>, vector<8x256xf32>,
    } else {
    }
    %c0 = arith.constant 0 : index
    %c0_1 = arith.constant 0 : index
    %3 = vector.load %arg5[%c0, %c0_1] : memref<8x256xf32, #tpu.memory_space<vmem>>, vector<8x256xf32>
    %c0_2 = arith.constant 0 : index
    %c0_3 = arith.constant 0 : index
    %4 = vector.load %arg2[%c0_2, %c0_3] : memref<8x384xf32, #tpu.memory_space<vmem>>, vector<8x384xf32>
    %c0_4 = arith.constant 0 : index
    %c0_5 = arith.constant 0 : index
    %5 = vector.load %arg3[%c0_4, %c0_5] : memref<384x256xf32, #tpu.memory_space<vmem>>, vector<384x256xf32>
    %cst = arith.constant dense<0.000000e+00> : vector<8x256xf32>
    %6 = tpu.matmul %4, %5, %cst {dimension_numbers = #tpu.dot_dimension_numbers<[1], [0], [0], [1], [0, 0, 1, 1], [], []>} : vector<8x384xf32>, vector<384x256xf32>, vector<8x256xf32> -> vector<8x256xf32>
    %7 = arith.addf %3, %6 : vector<8x256xf32>
    %c0_6 = arith.constant 0 : index
    %c0_7 = arith.constant 0 : index
    %8 = vector.load %arg5[%c0_6, %c0_7] : memref<8x256xf32, #tpu.memory_space<vmem>>, vector<8x256xf32>
    tpu.vector_store %arg5[%c0_6, %c0_7], %7 {strides = array<i32>} : memref<8x256xf32, #tpu.memory_space<vmem>>, vector<8x256xf32>,
    %c0_i32_8 = arith.constant 0 : i32
    %9 = arith.cmpi eq, %arg1, %c0_i32_8 : i32
    %10 = arith.extui %9 : i1 to i32
    %c0_i32_9 = arith.constant 0 : i32
    %11 = arith.cmpi ne, %10, %c0_i32_9 : i32
    scf.if %11 {
      %c0_10 = arith.constant 0 : index
      %c0_11 = arith.constant 0 : index
      %12 = vector.load %arg5[%c0_10, %c0_11] : memref<8x256xf32, #tpu.memory_space<vmem>>, vector<8x256xf32>
      %c0_12 = arith.constant 0 : index
      %c0_13 = arith.constant 0 : index
      %13 = vector.load %arg4[%c0_12, %c0_13] : memref<1x256xf32, #tpu.memory_space<vmem>>, vector<1x256xf32>
      %14 = vector.broadcast %13 : vector<1x256xf32> to vector<8x256xf32>
      %15 = arith.addf %12, %14 : vector<8x256xf32>
      %cst_14 = arith.constant 0.000000e+00 : f32
      %16 = vector.broadcast %cst_14 : f32 to vector<8x256xf32>
      %17 = arith.maximumf %15, %16 : vector<8x256xf32>
      %c0_15 = arith.constant 0 : index
      %c0_16 = arith.constant 0 : index
      %18 = vector.load %arg5[%c0_15, %c0_16] : memref<8x256xf32, #tpu.memory_space<vmem>>, vector<8x256xf32>
      tpu.vector_store %arg5[%c0_15, %c0_16], %17 {strides = array<i32>} : memref<8x256xf32, #tpu.memory_space<vmem>>, vector<8x256xf32>,
    } else {
    }
    return
  }
  func.func @transform_0(%arg0: i32, %arg1: i32) -> (i32, i32) {
    %c0_i32 = arith.constant 0 : i32
    %c0_i32_0 = arith.constant 0 : i32
    return %c0_i32, %arg1 : i32, i32
  }
  func.func @transform_1(%arg0: i32, %arg1: i32) -> (i32, i32) {
    %c0_i32 = arith.constant 0 : i32
    return %arg1, %arg0 : i32, i32
  }
  func.func @transform_2(%arg0: i32, %arg1: i32) -> (i32, i32) {
    %c0_i32 = arith.constant 0 : i32
    %c0_i32_0 = arith.constant 0 : i32
    return %c0_i32, %arg0 : i32, i32
  }
  func.func @transform_3(%arg0: i32, %arg1: i32) -> (i32, i32) {
    %c0_i32 = arith.constant 0 : i32
    %c0_i32_0 = arith.constant 0 : i32
    return %c0_i32, %arg0 : i32, i32
  }
}

module attributes {stable_mosaic.version = 11 : i64} {
  func.func @_lstm_decode_kernel(%arg0: i32, %arg1: memref<1x2x128xf32, #tpu.memory_space<vmem>>, %arg2: memref<2x256xf32, #tpu.memory_space<vmem>>, %arg3: memref<128x1024xf32, #tpu.memory_space<vmem>>, %arg4: memref<256x1024xf32, #tpu.memory_space<vmem>>, %arg5: memref<1x1024xf32, #tpu.memory_space<vmem>>, %arg6: memref<256x128xf32, #tpu.memory_space<vmem>>, %arg7: memref<1x128xf32, #tpu.memory_space<vmem>>, %arg8: memref<1x2x128xf32, #tpu.memory_space<vmem>>, %arg9: memref<2x256xf32, #tpu.memory_space<vmem>>) attributes {dimension_semantics = [#tpu.dimension_semantics<arbitrary>], iteration_bounds = array<i64: 50>, scalar_prefetch = 0 : i64, scratch_operands = 1 : i64, tpu.core_type = #tpu.core_type<tc>, window_params = [{transform_indices = @transform_0, window_bounds = array<i64: 1, 2, 128>}, {pipeline_mode = #tpu.pipeline_mode<synchronous>, transform_indices = @transform_1, window_bounds = array<i64: 2, 256>}, {pipeline_mode = #tpu.pipeline_mode<synchronous>, transform_indices = @transform_2, window_bounds = array<i64: 128, 1024>}, {pipeline_mode = #tpu.pipeline_mode<synchronous>, transform_indices = @transform_3, window_bounds = array<i64: 256, 1024>}, {pipeline_mode = #tpu.pipeline_mode<synchronous>, transform_indices = @transform_4, window_bounds = array<i64: 1, 1024>}, {pipeline_mode = #tpu.pipeline_mode<synchronous>, transform_indices = @transform_5, window_bounds = array<i64: 256, 128>}, {pipeline_mode = #tpu.pipeline_mode<synchronous>, transform_indices = @transform_6, window_bounds = array<i64: 1, 128>}, {transform_indices = @transform_7, window_bounds = array<i64: 1, 2, 128>}]} {
    %c0_i32 = arith.constant 0 : i32
    %0 = arith.cmpi eq, %arg0, %c0_i32 : i32
    %1 = arith.extui %0 : i1 to i32
    %c0_i32_0 = arith.constant 0 : i32
    %2 = arith.cmpi ne, %1, %c0_i32_0 : i32
    scf.if %2 {
      %c0_25 = arith.constant 0 : index
      %c0_26 = arith.constant 0 : index
      %48 = vector.load %arg2[%c0_25, %c0_26] : memref<2x256xf32, #tpu.memory_space<vmem>>, vector<2x256xf32>
      %c0_27 = arith.constant 0 : index
      %c0_28 = arith.constant 0 : index
      %49 = vector.load %arg9[%c0_27, %c0_28] : memref<2x256xf32, #tpu.memory_space<vmem>>, vector<2x256xf32>
      tpu.vector_store %arg9[%c0_27, %c0_28], %48 {strides = array<i32>} : memref<2x256xf32, #tpu.memory_space<vmem>>, vector<2x256xf32>,
    } else {
    }
    %c0 = arith.constant 0 : index
    %c0_1 = arith.constant 0 : index
    %c0_2 = arith.constant 0 : index
    %3 = vector.load %arg1[%c0, %c0_1, %c0_2] : memref<1x2x128xf32, #tpu.memory_space<vmem>>, vector<1x2x128xf32>
    %4 = vector.shape_cast %3 : vector<1x2x128xf32> to vector<2x128xf32>
    %c0_3 = arith.constant 0 : index
    %c0_4 = arith.constant 0 : index
    %5 = vector.load %arg9[%c0_3, %c0_4] : memref<2x256xf32, #tpu.memory_space<vmem>>, vector<2x256xf32>
    %c0_5 = arith.constant 0 : index
    %c0_6 = arith.constant 0 : index
    %6 = vector.load %arg3[%c0_5, %c0_6] : memref<128x1024xf32, #tpu.memory_space<vmem>>, vector<128x1024xf32>
    %cst = arith.constant dense<0.000000e+00> : vector<2x1024xf32>
    %7 = tpu.matmul %4, %6, %cst {dimension_numbers = #tpu.dot_dimension_numbers<[1], [0], [0], [1], [0, 0, 1, 1], [], []>} : vector<2x128xf32>, vector<128x1024xf32>, vector<2x1024xf32> -> vector<2x1024xf32>
    %c0_7 = arith.constant 0 : index
    %c0_8 = arith.constant 0 : index
    %8 = vector.load %arg4[%c0_7, %c0_8] : memref<256x1024xf32, #tpu.memory_space<vmem>>, vector<256x1024xf32>
    %cst_9 = arith.constant dense<0.000000e+00> : vector<2x1024xf32>
    %9 = tpu.matmul %5, %8, %cst_9 {dimension_numbers = #tpu.dot_dimension_numbers<[1], [0], [0], [1], [0, 0, 1, 1], [], []>} : vector<2x256xf32>, vector<256x1024xf32>, vector<2x1024xf32> -> vector<2x1024xf32>
    %10 = arith.addf %7, %9 : vector<2x1024xf32>
    %c0_10 = arith.constant 0 : index
    %c0_11 = arith.constant 0 : index
    %11 = vector.load %arg5[%c0_10, %c0_11] : memref<1x1024xf32, #tpu.memory_space<vmem>>, vector<1x1024xf32>
    %12 = vector.broadcast %11 : vector<1x1024xf32> to vector<2x1024xf32>
    %13 = arith.addf %10, %12 : vector<2x1024xf32>
    %14 = vector.extract_strided_slice %13 {offsets = [0, 0], sizes = [2, 256], strides = [1, 1]} : vector<2x1024xf32> to vector<2x256xf32>
    %15 = arith.negf %14 : vector<2x256xf32>
    %16 = math.exp %15 : vector<2x256xf32>
    %cst_12 = arith.constant 1.000000e+00 : f32
    %17 = vector.broadcast %cst_12 : f32 to vector<2x256xf32>
    %18 = arith.addf %17, %16 : vector<2x256xf32>
    %19 = arith.divf %17, %18 : vector<2x256xf32>
    %20 = vector.extract_strided_slice %13 {offsets = [0, 256], sizes = [2, 256], strides = [1, 1]} : vector<2x1024xf32> to vector<2x256xf32>
    %21 = arith.negf %20 : vector<2x256xf32>
    %22 = math.exp %21 : vector<2x256xf32>
    %cst_13 = arith.constant 1.000000e+00 : f32
    %23 = vector.broadcast %cst_13 : f32 to vector<2x256xf32>
    %24 = arith.addf %23, %22 : vector<2x256xf32>
    %25 = arith.divf %23, %24 : vector<2x256xf32>
    %26 = vector.extract_strided_slice %13 {offsets = [0, 512], sizes = [2, 256], strides = [1, 1]} : vector<2x1024xf32> to vector<2x256xf32>
    %27 = math.tanh %26 : vector<2x256xf32>
    %28 = vector.extract_strided_slice %13 {offsets = [0, 768], sizes = [2, 256], strides = [1, 1]} : vector<2x1024xf32> to vector<2x256xf32>
    %29 = arith.negf %28 : vector<2x256xf32>
    %30 = math.exp %29 : vector<2x256xf32>
    %cst_14 = arith.constant 1.000000e+00 : f32
    %31 = vector.broadcast %cst_14 : f32 to vector<2x256xf32>
    %32 = arith.addf %31, %30 : vector<2x256xf32>
    %33 = arith.divf %31, %32 : vector<2x256xf32>
    %34 = arith.mulf %25, %5 : vector<2x256xf32>
    %35 = arith.mulf %19, %27 : vector<2x256xf32>
    %36 = arith.addf %34, %35 : vector<2x256xf32>
    %37 = math.tanh %36 : vector<2x256xf32>
    %38 = arith.mulf %33, %37 : vector<2x256xf32>
    %c0_15 = arith.constant 0 : index
    %c0_16 = arith.constant 0 : index
    %39 = vector.load %arg9[%c0_15, %c0_16] : memref<2x256xf32, #tpu.memory_space<vmem>>, vector<2x256xf32>
    tpu.vector_store %arg9[%c0_15, %c0_16], %36 {strides = array<i32>} : memref<2x256xf32, #tpu.memory_space<vmem>>, vector<2x256xf32>,
    %c0_17 = arith.constant 0 : index
    %c0_18 = arith.constant 0 : index
    %40 = vector.load %arg6[%c0_17, %c0_18] : memref<256x128xf32, #tpu.memory_space<vmem>>, vector<256x128xf32>
    %cst_19 = arith.constant dense<0.000000e+00> : vector<2x128xf32>
    %41 = tpu.matmul %38, %40, %cst_19 {dimension_numbers = #tpu.dot_dimension_numbers<[1], [0], [0], [1], [0, 0, 1, 1], [], []>} : vector<2x256xf32>, vector<256x128xf32>, vector<2x128xf32> -> vector<2x128xf32>
    %c0_20 = arith.constant 0 : index
    %c0_21 = arith.constant 0 : index
    %42 = vector.load %arg7[%c0_20, %c0_21] : memref<1x128xf32, #tpu.memory_space<vmem>>, vector<1x128xf32>
    %43 = vector.broadcast %42 : vector<1x128xf32> to vector<2x128xf32>
    %44 = arith.addf %41, %43 : vector<2x128xf32>
    %c0_22 = arith.constant 0 : index
    %c0_23 = arith.constant 0 : index
    %c0_24 = arith.constant 0 : index
    %45 = vector.load %arg8[%c0_22, %c0_23, %c0_24] : memref<1x2x128xf32, #tpu.memory_space<vmem>>, vector<1x2x128xf32>
    %46 = vector.shape_cast %45 : vector<1x2x128xf32> to vector<2x128xf32>
    %47 = vector.shape_cast %44 : vector<2x128xf32> to vector<1x2x128xf32>
    tpu.vector_store %arg8[%c0_22, %c0_23, %c0_24], %47 {strides = array<i32>} : memref<1x2x128xf32, #tpu.memory_space<vmem>>, vector<1x2x128xf32>,
    return
  }
  func.func @transform_0(%arg0: i32) -> (i32, i32, i32) {
    %c0_i32 = arith.constant 0 : i32
    %c0_i32_0 = arith.constant 0 : i32
    %c0_i32_1 = arith.constant 0 : i32
    return %arg0, %c0_i32, %c0_i32_0 : i32, i32, i32
  }
  func.func @transform_1(%arg0: i32) -> (i32, i32) {
    %c0_i32 = arith.constant 0 : i32
    %c0_i32_0 = arith.constant 0 : i32
    %c0_i32_1 = arith.constant 0 : i32
    return %c0_i32, %c0_i32_0 : i32, i32
  }
  func.func @transform_2(%arg0: i32) -> (i32, i32) {
    %c0_i32 = arith.constant 0 : i32
    %c0_i32_0 = arith.constant 0 : i32
    %c0_i32_1 = arith.constant 0 : i32
    return %c0_i32, %c0_i32_0 : i32, i32
  }
  func.func @transform_3(%arg0: i32) -> (i32, i32) {
    %c0_i32 = arith.constant 0 : i32
    %c0_i32_0 = arith.constant 0 : i32
    %c0_i32_1 = arith.constant 0 : i32
    return %c0_i32, %c0_i32_0 : i32, i32
  }
  func.func @transform_4(%arg0: i32) -> (i32, i32) {
    %c0_i32 = arith.constant 0 : i32
    %c0_i32_0 = arith.constant 0 : i32
    %c0_i32_1 = arith.constant 0 : i32
    return %c0_i32, %c0_i32_0 : i32, i32
  }
  func.func @transform_5(%arg0: i32) -> (i32, i32) {
    %c0_i32 = arith.constant 0 : i32
    %c0_i32_0 = arith.constant 0 : i32
    %c0_i32_1 = arith.constant 0 : i32
    return %c0_i32, %c0_i32_0 : i32, i32
  }
  func.func @transform_6(%arg0: i32) -> (i32, i32) {
    %c0_i32 = arith.constant 0 : i32
    %c0_i32_0 = arith.constant 0 : i32
    %c0_i32_1 = arith.constant 0 : i32
    return %c0_i32, %c0_i32_0 : i32, i32
  }
  func.func @transform_7(%arg0: i32) -> (i32, i32, i32) {
    %c0_i32 = arith.constant 0 : i32
    %c0_i32_0 = arith.constant 0 : i32
    %c0_i32_1 = arith.constant 0 : i32
    return %arg0, %c0_i32, %c0_i32_0 : i32, i32, i32
  }
}

</mosaic_0001>

<bundles_post_ra>
// kernel: squeeze.6
= control target key start
LH: loop header
LB: loop body
LE: loop exit
PB: predicated region body
PF: predicated region fallthrough
CT: control target
= control target key end

     0   :  { %s158_s0 = inlined_call_operand.vmem [shape: f32[1,94,128], index: 0, kind: input, shape index: {}]   ;;  %s159_s1 = inlined_call_operand.vmem [shape: f32[2,47,128], index: 1, kind: output, shape index: {}]  }
   0x1   :  { %v2_v0 = vld [vmem:[%s158_s0] sm:$0xff]   ;;  %v50_v1 = vld [vmem:[%s158_s0 + $0x8] sm:$0xff]   ;;  %v52_v2 = vld [vmem:[%s158_s0 + $0x10] sm:$0xff]  }
   0x2   :  { %3 = vst [vmem:[%s159_s1] sm:$0xff] %v2_v0   ;;  %51 = vst [vmem:[%s159_s1 + $0x8] sm:$0xff] %v50_v1   ;;  %v54_v3 = vld [vmem:[%s158_s0 + $0x18] sm:$0xff]   ;;  %v56_v4 = vld [vmem:[%s158_s0 + $0x20] sm:$0xff]  }
   0x3   :  { %53 = vst [vmem:[%s159_s1 + $0x10] sm:$0xff] %v52_v2   ;;  %v58_v5 = vld [vmem:[%s158_s0 + $0x28] sm:$0xff]   ;;  %55 = vst [vmem:[%s159_s1 + $0x18] sm:$0xff] %v54_v3   ;;  %v61_v6 = vld [vmem:[%s158_s0 + $0x30] sm:$0xff]  }
   0x4   :  { %57 = vst [vmem:[%s159_s1 + $0x20] sm:$0xff] %v56_v4   ;;  %59 = vst [vmem:[%s159_s1 + $0x28] sm:$0x7f] %v58_v5   ;;  %v63_v7 = vld [vmem:[%s158_s0 + $0x38] sm:$0xff]   ;;  %v65_v8 = vld [vmem:[%s158_s0 + $0x40] sm:$0xff]  }
   0x5   :  { %60 = vst [vmem:[%s159_s1 + $0x29] sm:$0x80] %v58_v5   ;;  %62 = vst [vmem:[%s159_s1 + $0x31] sm:$0xff] %v61_v6   ;;  %v67_v9 = vld [vmem:[%s158_s0 + $0x48] sm:$0xff]   ;;  %v69_v10 = vld [vmem:[%s158_s0 + $0x50] sm:$0xff]  }
   0x6   :  { %64 = vst [vmem:[%s159_s1 + $0x39] sm:$0xff] %v63_v7   ;;  %66 = vst [vmem:[%s159_s1 + $0x41] sm:$0xff] %v65_v8   ;;  %v71_v11 = vld [vmem:[%s158_s0 + $0x58] sm:$0x3f]  }
   0x7   :  { %68 = vst [vmem:[%s159_s1 + $0x49] sm:$0xff] %v67_v9   ;;  %70 = vst [vmem:[%s159_s1 + $0x51] sm:$0xff] %v69_v10  }
   0x8   :  { %72 = vst [vmem:[%s159_s1 + $0x59] sm:$0x3f] %v71_v11  }

// kernel: squeeze.7
= control target key start
LH: loop header
LB: loop body
LE: loop exit
PB: predicated region body
PF: predicated region fallthrough
CT: control target
= control target key end

     0   :  { %s158_s0 = inlined_call_operand.vmem [shape: f32[1,92,128], index: 0, kind: input, shape index: {}]   ;;  %s159_s1 = inlined_call_operand.vmem [shape: f32[2,46,128], index: 1, kind: output, shape index: {}]  }
   0x1   :  { %v2_v0 = vld [vmem:[%s158_s0] sm:$0xff]   ;;  %v50_v1 = vld [vmem:[%s158_s0 + $0x8] sm:$0xff]   ;;  %v52_v2 = vld [vmem:[%s158_s0 + $0x10] sm:$0xff]  }
   0x2   :  { %3 = vst [vmem:[%s159_s1] sm:$0xff] %v2_v0   ;;  %51 = vst [vmem:[%s159_s1 + $0x8] sm:$0xff] %v50_v1   ;;  %v54_v3 = vld [vmem:[%s158_s0 + $0x18] sm:$0xff]   ;;  %v56_v4 = vld [vmem:[%s158_s0 + $0x20] sm:$0xff]  }
   0x3   :  { %53 = vst [vmem:[%s159_s1 + $0x10] sm:$0xff] %v52_v2   ;;  %v58_v5 = vld [vmem:[%s158_s0 + $0x28] sm:$0xff]   ;;  %55 = vst [vmem:[%s159_s1 + $0x18] sm:$0xff] %v54_v3   ;;  %v61_v6 = vld [vmem:[%s158_s0 + $0x30] sm:$0xff]  }
   0x4   :  { %57 = vst [vmem:[%s159_s1 + $0x20] sm:$0xff] %v56_v4   ;;  %59 = vst [vmem:[%s159_s1 + $0x28] sm:$0x3f] %v58_v5   ;;  %v63_v7 = vld [vmem:[%s158_s0 + $0x38] sm:$0xff]   ;;  %v65_v8 = vld [vmem:[%s158_s0 + $0x40] sm:$0xff]  }
   0x5   :  { %60 = vst [vmem:[%s159_s1 + $0x2a] sm:$0xc0] %v58_v5   ;;  %62 = vst [vmem:[%s159_s1 + $0x32] sm:$0xff] %v61_v6   ;;  %v67_v9 = vld [vmem:[%s158_s0 + $0x48] sm:$0xff]   ;;  %v69_v10 = vld [vmem:[%s158_s0 + $0x50] sm:$0xff]  }
   0x6   :  { %64 = vst [vmem:[%s159_s1 + $0x3a] sm:$0xff] %v63_v7   ;;  %66 = vst [vmem:[%s159_s1 + $0x42] sm:$0xff] %v65_v8   ;;  %v71_v11 = vld [vmem:[%s158_s0 + $0x58] sm:$0xf]  }
   0x7   :  { %68 = vst [vmem:[%s159_s1 + $0x4a] sm:$0xff] %v67_v9   ;;  %70 = vst [vmem:[%s159_s1 + $0x52] sm:$0xff] %v69_v10  }
   0x8   :  { %72 = vst [vmem:[%s159_s1 + $0x5a] sm:$0xf] %v71_v11  }

// kernel: cdn_forward.6
= control target key start
LH: loop header
LB: loop body
LE: loop exit
PB: predicated region body
PF: predicated region fallthrough
CT: control target
= control target key end

     0   :  { %s1221_s12 = smov 0   ;;  %s1474_s0 = inlined_call_operand.vmem [shape: f32[4,96,768], index: 0, kind: input, shape index: {}]   ;;  %s1475_s1 = inlined_call_operand.vmem [shape: f32[4,768,128], index: 1, kind: input, shape index: {}]   ;;  %s1476_s2 = inlined_call_operand.vmem [shape: f32[4,1,128], index: 2, kind: input, shape index: {}]   ;;  %s1477_s3 = inlined_call_operand.vmem [shape: f32[4,96,128], index: 3, kind: output, shape index: {}]  }
   0x1 LB: > { %s855_s13 = sadd.s32 4294967295, %s1199_s12   ;;  %p859_p0 = scmp.ge.s32.totalorder %s1199_s12, 1  ;;  %s1199_s12 = sphi %s1221_s12, %s13_s12  }
   0x2   : > { %p155_p1 = scmp.lt.s32.totalorder %s1199_s12, 5 }
   0x4   : > { %p156_p2 = pnand %p859_p0, %p155_p1 }
   0x5   : > { %p187_p3 = scmp.lt.s32.totalorder (!%p156_p2), %s855_s13, 3 }
   0x6   : > { %159 = sbr.rel (%p156_p2) target bundleno = 342 (0x156), region = 32 }
   0xd   : > { %s1479_s13 = smov (!%p187_p3, %s855_s13), 3 }
   0xe   : > { %s1183_s14 = smul.u32 768, %s1479_s13  ;;  %s199_s24 = scalar_lea.vmem %s1476_s2, %s1479_s13 }
   0xf   : > { %s1182_s18 = smul.u32 576, %s1479_s13 }
  0x10   : > { %s1235_s17 = scalar_lea.vmem %s1475_s1, %s1183_s14  ;;  %s1184_s25 = smul.u32 96, %s1479_s13 }
  0x11   : > { %v293_v0 = vld [vmem:[%s1235_s17 + $0x80] sm:$0xff]  ;;  %v294_v1 = vld [vmem:[%s1235_s17 + $0x88] sm:$0xff]  ;;  %v295_v11 = vld [vmem:[%s1235_s17 + $0x90] sm:$0xff]  ;;  %s1291_s21 = scalar_lea.vmem %s1474_s0, %s1182_s18 }
  0x12   : > { %v325_v2 = vld [vmem:[%s1235_s17 + $0x180] sm:$0xff]  ;;  %v1070_v3 = vpack.c.bf16 %v294_v1, %v293_v0  ;;  %v326_v4 = vld [vmem:[%s1235_s17 + $0x188] sm:$0xff]  ;;  %v296_v13 = vld [vmem:[%s1235_s17 + $0x98] sm:$0xff]  ;;  %s1450_s28 = scalar_lea.vmem %s1477_s3, %s1184_s25 }
  0x13   : > { %v277_v5 = vld [vmem:[%s1235_s17] sm:$0xff]  ;;  %v278_v6 = vld [vmem:[%s1235_s17 + $0x8] sm:$0xff]  ;;  %v1102_v7 = vpack.c.bf16 %v326_v4, %v325_v2  ;;  %v327_v14 = vld [vmem:[%s1235_s17 + $0x190] sm:$0xff]  ;;  %v1074_v16 = vpack.c.bf16 %v296_v13, %v295_v11 }
  0x14   : > { %v1072_v8 = vpack.c.bf16 %v278_v6, %v277_v5  ;;  %v309_v9 = vld [vmem:[%s1235_s17 + $0x100] sm:$0xff]  ;;  %v310_v10 = vld [vmem:[%s1235_s17 + $0x108] sm:$0xff]  ;;  %1071 = vmatprep.subr.bf16.mxu0 %v1070_v3  ;;  %v328_v15 = vld [vmem:[%s1235_s17 + $0x198] sm:$0xff] }
  0x15   : > { %v1104_v12 = vpack.c.bf16 %v310_v10, %v309_v9  ;;  %1103 = vmatprep.subr.bf16.mxu1 %v1102_v7  ;;  %v1106_v17 = vpack.c.bf16 %v328_v15, %v327_v14  ;;  %v279_v18 = vld [vmem:[%s1235_s17 + $0x10] sm:$0xff]  ;;  %v280_v19 = vld [vmem:[%s1235_s17 + $0x18] sm:$0xff]  ;;  %v297_v23 = vld [vmem:[%s1235_s17 + $0xa0] sm:$0xff] }
  0x16   : > { %1073 = vmatpush3.bf16.msra.mxu0 %v1072_v8  ;;  %v311_v20 = vld [vmem:[%s1235_s17 + $0x110] sm:$0xff]  ;;  %v1076_v21 = vpack.c.bf16 %v280_v19, %v279_v18  ;;  %v312_v22 = vld [vmem:[%s1235_s17 + $0x118] sm:$0xff]  ;;  %v298_v24 = vld [vmem:[%s1235_s17 + $0xa8] sm:$0xff] }
  0x17   : > { %1105 = vmatpush3.bf16.msra.mxu1 %v1104_v12  ;;  %1075 = vmatprep.subr.bf16.mxu0 %v1074_v16  ;;  %v1108_v25 = vpack.c.bf16 %v312_v22, %v311_v20  ;;  %v1078_v26 = vpack.c.bf16 %v298_v24, %v297_v23  ;;  %v329_v27 = vld [vmem:[%s1235_s17 + $0x1a0] sm:$0xff]  ;;  %v330_v28 = vld [vmem:[%s1235_s17 + $0x1a8] sm:$0xff]  ;;  %v299_v35 = vld [vmem:[%s1235_s17 + $0xb0] sm:$0xff] }
  0x18   : > { %1107 = vmatprep.subr.bf16.mxu1 %v1106_v17  ;;  %v281_v29 = vld [vmem:[%s1235_s17 + $0x20] sm:$0xff]  ;;  %v1110_v30 = vpack.c.bf16 %v330_v28, %v329_v27  ;;  %v282_v31 = vld [vmem:[%s1235_s17 + $0x28] sm:$0xff]  ;;  %v300_v36 = vld [vmem:[%s1235_s17 + $0xb8] sm:$0xff] }
  0x19   : > { %v313_v32 = vld [vmem:[%s1235_s17 + $0x120] sm:$0xff]  ;;  %v314_v33 = vld [vmem:[%s1235_s17 + $0x128] sm:$0xff]  ;;  %v1080_v34 = vpack.c.bf16 %v282_v31, %v281_v29  ;;  %v331_v37 = vld [vmem:[%s1235_s17 + $0x1b0] sm:$0xff]  ;;  %v1082_v39 = vpack.c.bf16 %v300_v36, %v299_v35 }
  0x1a   : > { %1077 = vmatpush3.bf16.msra.mxu0 %v1076_v21  ;;  %v1112_v38 = vpack.c.bf16 %v314_v33, %v313_v32  ;;  %v332_v40 = vld [vmem:[%s1235_s17 + $0x1b8] sm:$0xff]  ;;  %v283_v41 = vld [vmem:[%s1235_s17 + $0x30] sm:$0xff]  ;;  %v301_v46 = vld [vmem:[%s1235_s17 + $0xc0] sm:$0xff] }
  0x1b   : > { %1109 = vmatpush3.bf16.msra.mxu1 %v1108_v25  ;;  %1079 = vmatprep.subr.bf16.mxu0 %v1078_v26  ;;  %v284_v42 = vld [vmem:[%s1235_s17 + $0x38] sm:$0xff]  ;;  %v1114_v43 = vpack.c.bf16 %v332_v40, %v331_v37  ;;  %v315_v44 = vld [vmem:[%s1235_s17 + $0x130] sm:$0xff]  ;;  %v302_v47 = vld [vmem:[%s1235_s17 + $0xc8] sm:$0xff] }
  0x1c   : > { %1111 = vmatprep.subr.bf16.mxu1 %v1110_v30  ;;  %v316_v45 = vld [vmem:[%s1235_s17 + $0x138] sm:$0xff]  ;;  %v333_v48 = vld [vmem:[%s1235_s17 + $0x1c0] sm:$0xff]  ;;  %v334_v49 = vld [vmem:[%s1235_s17 + $0x1c8] sm:$0xff]  ;;  %v1084_v50 = vpack.c.bf16 %v284_v42, %v283_v41  ;;  %v1086_v52 = vpack.c.bf16 %v302_v47, %v301_v46 }
  0x1d   : > { %v1116_v51 = vpack.c.bf16 %v316_v45, %v315_v44  ;;  %v285_v53 = vld [vmem:[%s1235_s17 + $0x40] sm:$0xff]  ;;  %v286_v54 = vld [vmem:[%s1235_s17 + $0x48] sm:$0xff]  ;;  %v1118_v56 = vpack.c.bf16 %v334_v49, %v333_v48  ;;  %v303_v58 = vld [vmem:[%s1235_s17 + $0xd0] sm:$0xff] }
  0x1e   : > { %1081 = vmatpush3.bf16.msra.mxu0 %v1080_v34  ;;  %v317_v55 = vld [vmem:[%s1235_s17 + $0x140] sm:$0xff]  ;;  %v318_v57 = vld [vmem:[%s1235_s17 + $0x148] sm:$0xff]  ;;  %v304_v59 = vld [vmem:[%s1235_s17 + $0xd8] sm:$0xff]  ;;  %v1088_v62 = vpack.c.bf16 %v286_v54, %v285_v53 }
  0x1f   : > { %1113 = vmatpush3.bf16.msra.mxu1 %v1112_v38  ;;  %1083 = vmatprep.subr.bf16.mxu0 %v1082_v39  ;;  %v335_v60 = vld [vmem:[%s1235_s17 + $0x1d0] sm:$0xff]  ;;  %v336_v61 = vld [vmem:[%s1235_s17 + $0x1d8] sm:$0xff]  ;;  %v1120_v63 = vpack.c.bf16 %v318_v57, %v317_v55  ;;  %v1090_v0 = vpack.c.bf16 %v304_v59, %v303_v58  ;;  %v305_v6 = vld [vmem:[%s1235_s17 + $0xe0] sm:$0xff] }
  0x20   : > { %1115 = vmatprep.subr.bf16.mxu1 %v1114_v43  ;;  %v287_v1 = vld [vmem:[%s1235_s17 + $0x50] sm:$0xff]  ;;  %v288_v2 = vld [vmem:[%s1235_s17 + $0x58] sm:$0xff]  ;;  %v1122_v4 = vpack.c.bf16 %v336_v61, %v335_v60  ;;  %v306_v7 = vld [vmem:[%s1235_s17 + $0xe8] sm:$0xff] }
  0x21   : > { %v319_v3 = vld [vmem:[%s1235_s17 + $0x150] sm:$0xff]  ;;  %v320_v5 = vld [vmem:[%s1235_s17 + $0x158] sm:$0xff]  ;;  %v337_v8 = vld [vmem:[%s1235_s17 + $0x1e0] sm:$0xff]  ;;  %v1092_v10 = vpack.c.bf16 %v288_v2, %v287_v1  ;;  %v1094_v14 = vpack.c.bf16 %v306_v7, %v305_v6 }
  0x22   : > { %1085 = vmatpush3.bf16.msra.mxu0 %v1084_v50  ;;  %v338_v9 = vld [vmem:[%s1235_s17 + $0x1e8] sm:$0xff]  ;;  %v289_v11 = vld [vmem:[%s1235_s17 + $0x60] sm:$0xff]  ;;  %v1124_v13 = vpack.c.bf16 %v320_v5, %v319_v3  ;;  %v208_v17 = vld [vmem:[%s1291_s21 + $0x18] sm:$0xff] }
  0x23   : > { %1117 = vmatpush3.bf16.msra.mxu1 %v1116_v51  ;;  %1087 = vmatprep.subr.bf16.mxu0 %v1086_v52  ;;  %v290_v12 = vld [vmem:[%s1235_s17 + $0x68] sm:$0xff]  ;;  %v321_v15 = vld [vmem:[%s1235_s17 + $0x160] sm:$0xff]  ;;  %v1126_v18 = vpack.c.bf16 %v338_v9, %v337_v8  ;;  %v307_v20 = vld [vmem:[%s1235_s17 + $0xf0] sm:$0xff] }
  0x24   : > { %1119 = vmatprep.subr.bf16.mxu1 %v1118_v56  ;;  %v206_v16 = vld [vmem:[%s1291_s21 + $0x8] sm:$0xff]  ;;  %v308_v21 = vld [vmem:[%s1235_s17 + $0xf8] sm:$0xff]  ;;  %v339_v22 = vld [vmem:[%s1235_s17 + $0x1f0] sm:$0xff]  ;;  %569 = vmatprep.mubr.f32.mxu1 %v208_v17  ;;  %v1096_v24 = vpack.c.bf16 %v290_v12, %v289_v11 }
  0x25   : > { %v322_v19 = vld [vmem:[%s1235_s17 + $0x168] sm:$0xff]  ;;  %444 = vmatprep.mubr.f32.mxu0 %v206_v16  ;;  %v340_v23 = vld [vmem:[%s1235_s17 + $0x1f8] sm:$0xff]  ;;  %v1098_v26 = vpack.c.bf16 %v308_v21, %v307_v20  ;;  %v291_v27 = vld [vmem:[%s1235_s17 + $0x70] sm:$0xff] }
  0x26   : > { %1089 = vmatpush3.bf16.msra.mxu0 %v1088_v62  ;;  %v1128_v25 = vpack.c.bf16 %v322_v19, %v321_v15  ;;  %v292_v28 = vld [vmem:[%s1235_s17 + $0x78] sm:$0xff]  ;;  %v323_v29 = vld [vmem:[%s1235_s17 + $0x170] sm:$0xff]  ;;  %v1130_v30 = vpack.c.bf16 %v340_v23, %v339_v22  ;;  %v357_v32 = vld [vmem:[%s1235_s17 + $0x280] sm:$0xff] }
  0x27   : > { %1121 = vmatpush3.bf16.msra.mxu1 %v1120_v63  ;;  %1091 = vmatprep.subr.bf16.mxu0 %v1090_v0  ;;  %v324_v31 = vld [vmem:[%s1235_s17 + $0x178] sm:$0xff]  ;;  %v358_v33 = vld [vmem:[%s1235_s17 + $0x288] sm:$0xff]  ;;  %v1100_v34 = vpack.c.bf16 %v292_v28, %v291_v27  ;;  %v341_v37 = vld [vmem:[%s1235_s17 + $0x200] sm:$0xff] }
  0x28   : > { %1123 = vmatprep.subr.bf16.mxu1 %v1122_v4  ;;  %v1132_v35 = vpack.c.bf16 %v324_v31, %v323_v29  ;;  %v1134_v36 = vpack.c.bf16 %v358_v33, %v357_v32  ;;  %v342_v38 = vld [vmem:[%s1235_s17 + $0x208] sm:$0xff]  ;;  %v359_v39 = vld [vmem:[%s1235_s17 + $0x290] sm:$0xff]  ;;  %v360_v40 = vld [vmem:[%s1235_s17 + $0x298] sm:$0xff] }
  0x29   : > { %v205_v41 = vld [vmem:[%s1291_s21] sm:$0xff]  ;;  %v1136_v42 = vpack.c.bf16 %v342_v38, %v341_v37  ;;  %v207_v43 = vld [vmem:[%s1291_s21 + $0x10] sm:$0xff]  ;;  %v212_v44 = vld [vmem:[%s1291_s21 + $0x38] sm:$0xff]  ;;  %v1138_v45 = vpack.c.bf16 %v360_v40, %v359_v39 }
  0x2a   : > { %1093 = vmatpush3.bf16.msra.mxu0 %v1092_v10  ;;  %v343_v46 = vld [vmem:[%s1235_s17 + $0x210] sm:$0xff]  ;;  %v344_v47 = vld [vmem:[%s1235_s17 + $0x218] sm:$0xff]  ;;  %v214_v48 = vld [vmem:[%s1291_s21 + $0x48] sm:$0xff] }
  0x2b   : > { %1125 = vmatpush3.bf16.msra.mxu1 %v1124_v13  ;;  %1095 = vmatprep.subr.bf16.mxu0 %v1094_v14  ;;  %v361_v49 = vld [vmem:[%s1235_s17 + $0x2a0] sm:$0xff]  ;;  %v362_v50 = vld [vmem:[%s1235_s17 + $0x2a8] sm:$0xff]  ;;  %v211_v51 = vld [vmem:[%s1291_s21 + $0x30] sm:$0xff]  ;;  %v1140_v54 = vpack.c.bf16 %v344_v47, %v343_v46 }
  0x2c   : > { %1127 = vmatprep.subr.bf16.mxu1 %v1126_v18  ;;  %v213_v52 = vld [vmem:[%s1291_s21 + $0x40] sm:$0xff]  ;;  %v218_v53 = vld [vmem:[%s1291_s21 + $0x68] sm:$0xff]  ;;  %v220_v55 = vld [vmem:[%s1291_s21 + $0x78] sm:$0xff]  ;;  %v1142_v56 = vpack.c.bf16 %v362_v50, %v361_v49 }
  0x2d   : > { %v345_v57 = vld [vmem:[%s1235_s17 + $0x220] sm:$0xff]  ;;  %v346_v58 = vld [vmem:[%s1235_s17 + $0x228] sm:$0xff]  ;;  %v363_v59 = vld [vmem:[%s1235_s17 + $0x2b0] sm:$0xff] }
  0x2e   : > { %1097 = vmatpush3.bf16.msra.mxu0 %v1096_v24  ;;  %v364_v60 = vld [vmem:[%s1235_s17 + $0x2b8] sm:$0xff]  ;;  %v217_v61 = vld [vmem:[%s1291_s21 + $0x60] sm:$0xff]  ;;  %v219_v62 = vld [vmem:[%s1291_s21 + $0x70] sm:$0xff]  ;;  %v1144_v0 = vpack.c.bf16 %v346_v58, %v345_v57 }
  0x2f   : > { %1129 = vmatpush3.bf16.msra.mxu1 %v1128_v25  ;;  %1099 = vmatprep.subr.bf16.mxu0 %v1098_v26  ;;  %v224_v63 = vld [vmem:[%s1291_s21 + $0x98] sm:$0xff]  ;;  %v226_v1 = vld [vmem:[%s1291_s21 + $0xa8] sm:$0xff]  ;;  %v1146_v2 = vpack.c.bf16 %v364_v60, %v363_v59  ;;  %v347_v3 = vld [vmem:[%s1235_s17 + $0x230] sm:$0xff] }
  0x30   : > { %1131 = vmatprep.subr.bf16.mxu1 %v1130_v30  ;;  %v348_v4 = vld [vmem:[%s1235_s17 + $0x238] sm:$0xff]  ;;  %v365_v5 = vld [vmem:[%s1235_s17 + $0x2c0] sm:$0xff]  ;;  %v366_v6 = vld [vmem:[%s1235_s17 + $0x2c8] sm:$0xff] }
  0x31   : > { %v223_v7 = vld [vmem:[%s1291_s21 + $0x90] sm:$0xff]  ;;  %v225_v8 = vld [vmem:[%s1291_s21 + $0xa0] sm:$0xff]  ;;  %v230_v9 = vld [vmem:[%s1291_s21 + $0xc8] sm:$0xff]  ;;  %v1148_v10 = vpack.c.bf16 %v348_v4, %v347_v3  ;;  %v1150_v12 = vpack.c.bf16 %v366_v6, %v365_v5 }
  0x32   : > { %1101 = vmatpush3.bf16.msra.mxu0 %v1100_v34  ;;  %v232_v11 = vld [vmem:[%s1291_s21 + $0xd8] sm:$0xff]  ;;  %v349_v13 = vld [vmem:[%s1235_s17 + $0x240] sm:$0xff]  ;;  %v350_v14 = vld [vmem:[%s1235_s17 + $0x248] sm:$0xff] }
  0x33   : > { %1133 = vmatpush3.bf16.msra.mxu1 %v1132_v35  ;;  %1135 = vmatprep.subr.bf16.mxu0 %v1134_v36  ;;  %v367_v15 = vld [vmem:[%s1235_s17 + $0x2d0] sm:$0xff]  ;;  %v368_v16 = vld [vmem:[%s1235_s17 + $0x2d8] sm:$0xff]  ;;  %v229_v17 = vld [vmem:[%s1291_s21 + $0xc0] sm:$0xff]  ;;  %v1152_v20 = vpack.c.bf16 %v350_v14, %v349_v13 }
  0x34   : > { %1166 = vmatprep.subr.bf16.mxu1 %v1134_v36  ;;  %v231_v18 = vld [vmem:[%s1291_s21 + $0xd0] sm:$0xff]  ;;  %v236_v19 = vld [vmem:[%s1291_s21 + $0xf8] sm:$0xff]  ;;  %v238_v21 = vld [vmem:[%s1291_s21 + $0x108] sm:$0xff]  ;;  %v1154_v22 = vpack.c.bf16 %v368_v16, %v367_v15 }
  0x35   : > { %445 = vmatmul.mubr.f32.vlgmr.msra.gmra.mrb[0].mxu0 %v205_v41  ;;  %v351_v23 = vld [vmem:[%s1235_s17 + $0x250] sm:$0xff]  ;;  %v352_v24 = vld [vmem:[%s1235_s17 + $0x258] sm:$0xff]  ;;  %v369_v25 = vld [vmem:[%s1235_s17 + $0x2e0] sm:$0xff] }
  0x36   : > { %570 = vmatmul.mubr.f32.vlgmr.msra.gmra.mrb[0].mxu1 %v207_v43  ;;  %1137 = vmatpush3.bf16.msra.mxu0 %v1136_v42  ;;  %v370_v26 = vld [vmem:[%s1235_s17 + $0x2e8] sm:$0xff]  ;;  %v235_v27 = vld [vmem:[%s1291_s21 + $0xf0] sm:$0xff]  ;;  %v237_v28 = vld [vmem:[%s1291_s21 + $0x100] sm:$0xff]  ;;  %v1156_v30 = vpack.c.bf16 %v352_v24, %v351_v23 }
  0x37   : > { %1174 = vmatpush3.bf16.msra.mxu1 %v1136_v42  ;;  %449 = vmatprep.mubr.f32.mxu0 %v212_v44  ;;  %v242_v29 = vld [vmem:[%s1291_s21 + $0x128] sm:$0xff]  ;;  %v244_v31 = vld [vmem:[%s1291_s21 + $0x138] sm:$0xff]  ;;  %v1158_v32 = vpack.c.bf16 %v370_v26, %v369_v25  ;;  %v353_v33 = vld [vmem:[%s1235_s17 + $0x260] sm:$0xff] }
  0x38   : > { %574 = vmatprep.mubr.f32.mxu1 %v214_v48  ;;  %1139 = vmatprep.subr.bf16.mxu0 %v1138_v45  ;;  %v354_v34 = vld [vmem:[%s1235_s17 + $0x268] sm:$0xff]  ;;  %v371_v35 = vld [vmem:[%s1235_s17 + $0x2f0] sm:$0xff]  ;;  %v372_v36 = vld [vmem:[%s1235_s17 + $0x2f8] sm:$0xff] }
  0x39   : > { %450 = vmatmul.mubr.f32.gmra.mrb[2].mxu0 %v211_v51  ;;  %1167 = vmatprep.subr.bf16.mxu1 %v1138_v45  ;;  %v241_v37 = vld [vmem:[%s1291_s21 + $0x120] sm:$0xff]  ;;  %v243_v38 = vld [vmem:[%s1291_s21 + $0x130] sm:$0xff]  ;;  %v248_v39 = vld [vmem:[%s1291_s21 + $0x158] sm:$0xff]  ;;  %v1160_v40 = vpack.c.bf16 %v354_v34, %v353_v33  ;;  %v1162_v42 = vpack.c.bf16 %v372_v36, %v371_v35 }
  0x3a   : > { %575 = vmatmul.mubr.f32.gmra.mrb[2].mxu1 %v213_v52  ;;  %454 = vmatprep.mubr.f32.mxu0 %v218_v53  ;;  %v250_v41 = vld [vmem:[%s1291_s21 + $0x168] sm:$0xff]  ;;  %v355_v43 = vld [vmem:[%s1235_s17 + $0x270] sm:$0xff]  ;;  %v356_v44 = vld [vmem:[%s1235_s17 + $0x278] sm:$0xff] }
  0x3b   : > { %579 = vmatprep.mubr.f32.mxu1 %v220_v55  ;;  %1141 = vmatpush3.bf16.msra.mxu0 %v1140_v54  ;;  %v247_v45 = vld [vmem:[%s1291_s21 + $0x150] sm:$0xff]  ;;  %v249_v46 = vld [vmem:[%s1291_s21 + $0x160] sm:$0xff]  ;;  %v254_v47 = vld [vmem:[%s1291_s21 + $0x188] sm:$0xff]  ;;  %v1164_v48 = vpack.c.bf16 %v356_v44, %v355_v43 }
  0x3c   : > { %1175 = vmatpush3.bf16.msra.mxu1 %v1140_v54  ;;  %1143 = vmatprep.subr.bf16.mxu0 %v1142_v56  ;;  %v256_v49 = vld [vmem:[%s1291_s21 + $0x198] sm:$0xff]  ;;  %v253_v50 = vld [vmem:[%s1291_s21 + $0x180] sm:$0xff]  ;;  %v255_v51 = vld [vmem:[%s1291_s21 + $0x190] sm:$0xff] }
  0x3d   : > { %455 = vmatmul.mubr.f32.gmra.mrb[4].mxu0 %v217_v61  ;;  %1168 = vmatprep.subr.bf16.mxu1 %v1142_v56  ;;  %v260_v52 = vld [vmem:[%s1291_s21 + $0x1b8] sm:$0xff]  ;;  %v262_v53 = vld [vmem:[%s1291_s21 + $0x1c8] sm:$0xff]  ;;  %v259_v54 = vld [vmem:[%s1291_s21 + $0x1b0] sm:$0xff] }
  0x3e   : > { %580 = vmatmul.mubr.f32.gmra.mrb[4].mxu1 %v219_v62  ;;  %459 = vmatprep.mubr.f32.mxu0 %v224_v63  ;;  %v261_v55 = vld [vmem:[%s1291_s21 + $0x1c0] sm:$0xff]  ;;  %v266_v56 = vld [vmem:[%s1291_s21 + $0x1e8] sm:$0xff]  ;;  %v268_v57 = vld [vmem:[%s1291_s21 + $0x1f8] sm:$0xff] }
  0x3f   : > { %584 = vmatprep.mubr.f32.mxu1 %v226_v1  ;;  %1145 = vmatpush3.bf16.msra.mxu0 %v1144_v0  ;;  %v265_v58 = vld [vmem:[%s1291_s21 + $0x1e0] sm:$0xff]  ;;  %v267_v59 = vld [vmem:[%s1291_s21 + $0x1f0] sm:$0xff]  ;;  %v272_v60 = vld [vmem:[%s1291_s21 + $0x218] sm:$0xff] }
  0x40   : > { %1176 = vmatpush3.bf16.msra.mxu1 %v1144_v0  ;;  %1147 = vmatprep.subr.bf16.mxu0 %v1146_v2  ;;  %v274_v61 = vld [vmem:[%s1291_s21 + $0x228] sm:$0xff]  ;;  %v271_v62 = vld [vmem:[%s1291_s21 + $0x210] sm:$0xff]  ;;  %v273_v63 = vld [vmem:[%s1291_s21 + $0x220] sm:$0xff] }
  0x41   : > { %460 = vmatmul.mubr.f32.gmra.mrb[6].mxu0 %v223_v7  ;;  %1169 = vmatprep.subr.bf16.mxu1 %v1146_v2  ;;  %v210_v0 = vld [vmem:[%s1291_s21 + $0x28] sm:$0xff]  ;;  %v209_v2 = vld [vmem:[%s1291_s21 + $0x20] sm:$0xff]  ;;  %v216_v4 = vld [vmem:[%s1291_s21 + $0x58] sm:$0xff] }
  0x42   : > { %585 = vmatmul.mubr.f32.gmra.mrb[6].mxu1 %v225_v8  ;;  %464 = vmatprep.mubr.f32.mxu0 %v230_v9  ;;  %v246_v1 = vld [vmem:[%s1291_s21 + $0x148] sm:$0xff]  ;;  %v245_v3 = vld [vmem:[%s1291_s21 + $0x140] sm:$0xff]  ;;  %v252_v5 = vld [vmem:[%s1291_s21 + $0x178] sm:$0xff] }
  0x43   : > { %589 = vmatprep.mubr.f32.mxu1 %v232_v11  ;;  %1149 = vmatpush3.bf16.msra.mxu0 %v1148_v10  ;;  %v215_v6 = vld [vmem:[%s1291_s21 + $0x50] sm:$0xff]  ;;  %v222_v8 = vld [vmem:[%s1291_s21 + $0x88] sm:$0xff]  ;;  %v257_v11 = vld [vmem:[%s1291_s21 + $0x1a0] sm:$0xff] }
  0x44   : > { %1177 = vmatpush3.bf16.msra.mxu1 %v1148_v10  ;;  %1151 = vmatprep.subr.bf16.mxu0 %v1150_v12  ;;  %v251_v7 = vld [vmem:[%s1291_s21 + $0x170] sm:$0xff]  ;;  %v258_v9 = vld [vmem:[%s1291_s21 + $0x1a8] sm:$0xff]  ;;  %v221_v10 = vld [vmem:[%s1291_s21 + $0x80] sm:$0xff] }
  0x45   : > { %465 = vmatmul.mubr.f32.gmra.mrb[8].mxu0 %v229_v17  ;;  %1170 = vmatprep.subr.bf16.mxu1 %v1150_v12  ;;  %v228_v12 = vld [vmem:[%s1291_s21 + $0xb8] sm:$0xff]  ;;  %v227_v14 = vld [vmem:[%s1291_s21 + $0xb0] sm:$0xff]  ;;  %v234_v16 = vld [vmem:[%s1291_s21 + $0xe8] sm:$0xff] }
  0x46   : > { %590 = vmatmul.mubr.f32.gmra.mrb[8].mxu1 %v231_v18  ;;  %469 = vmatprep.mubr.f32.mxu0 %v236_v19  ;;  %v264_v13 = vld [vmem:[%s1291_s21 + $0x1d8] sm:$0xff]  ;;  %v263_v15 = vld [vmem:[%s1291_s21 + $0x1d0] sm:$0xff]  ;;  %v270_v17 = vld [vmem:[%s1291_s21 + $0x208] sm:$0xff] }
  0x47   : > { %594 = vmatprep.mubr.f32.mxu1 %v238_v21  ;;  %1153 = vmatpush3.bf16.msra.mxu0 %v1152_v20  ;;  %v233_v18 = vld [vmem:[%s1291_s21 + $0xe0] sm:$0xff]  ;;  %v276_v21 = vld [vmem:[%s1291_s21 + $0x238] sm:$0xff]  ;;  %v275_v23 = vld [vmem:[%s1291_s21 + $0x230] sm:$0xff] }
  0x48   : > { %1178 = vmatpush3.bf16.msra.mxu1 %v1152_v20  ;;  %1155 = vmatprep.subr.bf16.mxu0 %v1154_v22  ;;  %v269_v19 = vld [vmem:[%s1291_s21 + $0x200] sm:$0xff]  ;;  %v240_v20 = vld [vmem:[%s1291_s21 + $0x118] sm:$0xff] }
  0x49   : > { %470 = vmatmul.mubr.f32.gmra.mrb[10].mxu0 %v235_v27  ;;  %1171 = vmatprep.subr.bf16.mxu1 %v1154_v22  ;;  %v239_v22 = vld [vmem:[%s1291_s21 + $0x110] sm:$0xff]  ;;  %v1415_v26 = vld [vmem:[%s199_s24] ss:$0 sm:$0xff] }
  0x4a   : > { %595 = vmatmul.mubr.f32.gmra.mrb[10].mxu1 %v237_v28  ;;  %474 = vmatprep.mubr.f32.mxu0 %v242_v29 }
  0x4b   : > { %599 = vmatprep.mubr.f32.mxu1 %v244_v31  ;;  %1157 = vmatpush3.bf16.msra.mxu0 %v1156_v30 }
  0x4c   : > { %1179 = vmatpush3.bf16.msra.mxu1 %v1156_v30  ;;  %1159 = vmatprep.subr.bf16.mxu0 %v1158_v32 }
  0x4d   : > { %475 = vmatmul.mubr.f32.gmra.mrb[12].mxu0 %v241_v37  ;;  %1172 = vmatprep.subr.bf16.mxu1 %v1158_v32 }
  0x4e   : > { %600 = vmatmul.mubr.f32.gmra.mrb[12].mxu1 %v243_v38  ;;  %479 = vmatprep.mubr.f32.mxu0 %v248_v39 }
  0x4f   : > { %604 = vmatprep.mubr.f32.mxu1 %v250_v41  ;;  %1161 = vmatpush3.bf16.msra.mxu0 %v1160_v40 }
  0x50   : > { %1180 = vmatpush3.bf16.msra.mxu1 %v1160_v40  ;;  %1163 = vmatprep.subr.bf16.mxu0 %v1162_v42 }
  0x51   : > { %480 = vmatmul.mubr.f32.gmra.mrb[14].mxu0 %v247_v45  ;;  %1173 = vmatprep.subr.bf16.mxu1 %v1162_v42 }
  0x52   : > { %605 = vmatmul.mubr.f32.gmra.mrb[14].mxu1 %v249_v46  ;;  %484 = vmatprep.mubr.f32.mxu0 %v254_v47 }
  0x53   : > { %609 = vmatprep.mubr.f32.mxu1 %v256_v49  ;;  %1165 = vmatpush3.bf16.msra.mxu0 %v1164_v48 }
  0x54   : > { %1181 = vmatpush3.bf16.msra.mxu1 %v1164_v48 }
  0x55   : > { %485 = vmatmul.mubr.f32.gmra.mrb[16].mxu0 %v253_v50 }
  0x56   : > { %610 = vmatmul.mubr.f32.gmra.mrb[16].mxu1 %v255_v51  ;;  %489 = vmatprep.mubr.f32.mxu0 %v260_v52 }
  0x57   : > { %614 = vmatprep.mubr.f32.mxu1 %v262_v53 }
  0x59   : > { %490 = vmatmul.mubr.f32.gmra.mrb[18].mxu0 %v259_v54 }
  0x5a   : > { %615 = vmatmul.mubr.f32.gmra.mrb[18].mxu1 %v261_v55  ;;  %494 = vmatprep.mubr.f32.mxu0 %v266_v56 }
  0x5b   : > { %619 = vmatprep.mubr.f32.mxu1 %v268_v57 }
  0x5d   : > { %495 = vmatmul.mubr.f32.gmra.mrb[20].mxu0 %v265_v58 }
  0x5e   : > { %620 = vmatmul.mubr.f32.gmra.mrb[20].mxu1 %v267_v59  ;;  %499 = vmatprep.mubr.f32.mxu0 %v272_v60 }
  0x5f   : > { %624 = vmatprep.mubr.f32.mxu1 %v274_v61 }
  0x61   : > { %500 = vmatmul.mubr.f32.gmra.mrb[22].mxu0 %v271_v62 }
  0x62   : > { %625 = vmatmul.mubr.f32.gmra.mrb[22].mxu1 %v273_v63  ;;  %694 = vmatprep.mubr.f32.mxu0 %v210_v0 }
  0x63   : > { %724 = vmatprep.mubr.f32.mxu1 %v246_v1 }
  0x65   : > { %695 = vmatmul.mubr.f32.vlgmr.msra.gmra.mrb[24].mxu0 %v209_v2 }
  0x66   : > { %725 = vmatmul.mubr.f32.vlgmr.msra.gmra.mrb[24].mxu1 %v245_v3  ;;  %699 = vmatprep.mubr.f32.mxu0 %v216_v4 }
  0x67   : > { %729 = vmatprep.mubr.f32.mxu1 %v252_v5 }
  0x69   : > { %700 = vmatmul.mubr.f32.gmra.mrb[26].mxu0 %v215_v6 }
  0x6a   : > { %730 = vmatmul.mubr.f32.gmra.mrb[26].mxu1 %v251_v7  ;;  %704 = vmatprep.mubr.f32.mxu0 %v222_v8 }
  0x6b   : > { %734 = vmatprep.mubr.f32.mxu1 %v258_v9 }
  0x6d   : > { %705 = vmatmul.mubr.f32.gmra.mrb[28].mxu0 %v221_v10 }
  0x6e   : > { %735 = vmatmul.mubr.f32.gmra.mrb[28].mxu1 %v257_v11  ;;  %709 = vmatprep.mubr.f32.mxu0 %v228_v12 }
  0x6f   : > { %739 = vmatprep.mubr.f32.mxu1 %v264_v13 }
  0x71   : > { %710 = vmatmul.mubr.f32.gmra.mrb[30].mxu0 %v227_v14 }
  0x72   : > { %740 = vmatmul.mubr.f32.gmra.mrb[30].mxu1 %v263_v15  ;;  %714 = vmatprep.mubr.f32.mxu0 %v234_v16 }
  0x73   : > { %744 = vmatprep.mubr.f32.mxu1 %v270_v17 }
  0x75   : > { %715 = vmatmul.mubr.f32.gmra.mrb[32].mxu0 %v233_v18 }
  0x76   : > { %745 = vmatmul.mubr.f32.gmra.mrb[32].mxu1 %v269_v19  ;;  %719 = vmatprep.mubr.f32.mxu0 %v240_v20 }
  0x77   : > { %749 = vmatprep.mubr.f32.mxu1 %v276_v21 }
  0x79   : > { %720 = vmatmul.mubr.f32.gmra.mrb[34].mxu0 %v239_v22 }
  0x7a   : > { %750 = vmatmul.mubr.f32.gmra.mrb[34].mxu1 %v275_v23 }
 0x108   : > { %v898_v24 = vpop.f32.mrb[0].mxu0 }
 0x109   : > { %v966_v25 = vpop.f32.mrb[0].mxu1  ;;  %v899_v27 = vpop.f32.mrb[1].mxu0 }
 0x10a   : > { %v900_v28 = vadd.f32 %v899_v27, %v898_v24  ;;  %v967_v29 = vpop.f32.mrb[1].mxu1 }
 0x10b   : > { %v968_v30 = vadd.f32 %v967_v29, %v966_v25 }
 0x10c   : > { %v447_v31 = vadd.f32 %v900_v28, %v1415_v26  ;;  %v901_v32 = vpop.f32.mrb[2].mxu0 }
 0x10d   : > { %v969_v33 = vpop.f32.mrb[2].mxu1  ;;  %v902_v34 = vpop.f32.mrb[3].mxu0 }
 0x10e   : > { %v1418_v35 = vadd.f32 %v968_v30, %v447_v31  ;;  %v903_v36 = vadd.f32 %v902_v34, %v901_v32  ;;  %v970_v37 = vpop.f32.mrb[3].mxu1 }
 0x10f   : > { %v971_v38 = vadd.f32 %v970_v37, %v969_v33 }
 0x110   : > { %v452_v39 = vadd.f32 %v903_v36, %v1415_v26  ;;  %v904_v40 = vpop.f32.mrb[4].mxu0 }
 0x111   : > { %v972_v41 = vpop.f32.mrb[4].mxu1  ;;  %v905_v42 = vpop.f32.mrb[5].mxu0 }
 0x112   : > { %v1421_v43 = vadd.f32 %v971_v38, %v452_v39  ;;  %v906_v44 = vadd.f32 %v905_v42, %v904_v40  ;;  %v973_v45 = vpop.f32.mrb[5].mxu1 }
 0x113   : > { %v974_v46 = vadd.f32 %v973_v45, %v972_v41 }
 0x114   : > { %v457_v47 = vadd.f32 %v906_v44, %v1415_v26  ;;  %v907_v48 = vpop.f32.mrb[6].mxu0 }
 0x115   : > { %v975_v49 = vpop.f32.mrb[6].mxu1  ;;  %v908_v50 = vpop.f32.mrb[7].mxu0 }
 0x116   : > { %v1424_v51 = vadd.f32 %v974_v46, %v457_v47  ;;  %v909_v52 = vadd.f32 %v908_v50, %v907_v48  ;;  %v976_v53 = vpop.f32.mrb[7].mxu1 }
 0x117   : > { %v977_v54 = vadd.f32 %v976_v53, %v975_v49 }
 0x118   : > { %v462_v55 = vadd.f32 %v909_v52, %v1415_v26  ;;  %v910_v56 = vpop.f32.mrb[8].mxu0 }
 0x119   : > { %v978_v57 = vpop.f32.mrb[8].mxu1  ;;  %v911_v58 = vpop.f32.mrb[9].mxu0 }
 0x11a   : > { %v1427_v59 = vadd.f32 %v977_v54, %v462_v55  ;;  %v912_v60 = vadd.f32 %v911_v58, %v910_v56  ;;  %v979_v61 = vpop.f32.mrb[9].mxu1 }
 0x11b   : > { %v980_v62 = vadd.f32 %v979_v61, %v978_v57 }
 0x11c   : > { %v467_v63 = vadd.f32 %v912_v60, %v1415_v26  ;;  %v913_v0 = vpop.f32.mrb[10].mxu0 }
 0x11d   : > { %v981_v1 = vpop.f32.mrb[10].mxu1  ;;  %v914_v2 = vpop.f32.mrb[11].mxu0 }
 0x11e   : > { %v1430_v3 = vadd.f32 %v980_v62, %v467_v63  ;;  %v915_v4 = vadd.f32 %v914_v2, %v913_v0  ;;  %v982_v5 = vpop.f32.mrb[11].mxu1 }
 0x11f   : > { %v983_v6 = vadd.f32 %v982_v5, %v981_v1 }
 0x120   : > { %v472_v7 = vadd.f32 %v915_v4, %v1415_v26  ;;  %v916_v8 = vpop.f32.mrb[12].mxu0 }
 0x121   : > { %v984_v9 = vpop.f32.mrb[12].mxu1  ;;  %v917_v10 = vpop.f32.mrb[13].mxu0 }
 0x122   : > { %v1433_v11 = vadd.f32 %v983_v6, %v472_v7  ;;  %v918_v12 = vadd.f32 %v917_v10, %v916_v8  ;;  %v985_v13 = vpop.f32.mrb[13].mxu1 }
 0x123   : > { %v986_v14 = vadd.f32 %v985_v13, %v984_v9 }
 0x124   : > { %v477_v15 = vadd.f32 %v918_v12, %v1415_v26  ;;  %v919_v16 = vpop.f32.mrb[14].mxu0 }
 0x125   : > { %v987_v17 = vpop.f32.mrb[14].mxu1  ;;  %v920_v18 = vpop.f32.mrb[15].mxu0 }
 0x126   : > { %v602_v19 = vadd.f32 %v986_v14, %v477_v15  ;;  %v921_v20 = vadd.f32 %v920_v18, %v919_v16  ;;  %v988_v21 = vpop.f32.mrb[15].mxu1 }
 0x127   : > { %v989_v22 = vadd.f32 %v988_v21, %v987_v17 }
 0x128   : > { %v482_v23 = vadd.f32 %v921_v20, %v1415_v26  ;;  %v922_v24 = vpop.f32.mrb[16].mxu0 }
 0x129   : > { %v990_v25 = vpop.f32.mrb[16].mxu1  ;;  %v923_v27 = vpop.f32.mrb[17].mxu0 }
 0x12a   : > { %v607_v28 = vadd.f32 %v989_v22, %v482_v23  ;;  %v924_v29 = vadd.f32 %v923_v27, %v922_v24  ;;  %v991_v30 = vpop.f32.mrb[17].mxu1 }
 0x12b   : > { %v992_v31 = vadd.f32 %v991_v30, %v990_v25 }
 0x12c   : > { %v487_v32 = vadd.f32 %v924_v29, %v1415_v26  ;;  %v925_v33 = vpop.f32.mrb[18].mxu0 }
 0x12d   : > { %v993_v34 = vpop.f32.mrb[18].mxu1  ;;  %v926_v36 = vpop.f32.mrb[19].mxu0 }
 0x12e   : > { %v612_v37 = vadd.f32 %v992_v31, %v487_v32  ;;  %v927_v38 = vadd.f32 %v926_v36, %v925_v33  ;;  %v994_v39 = vpop.f32.mrb[19].mxu1 }
 0x12f   : > { %v995_v40 = vadd.f32 %v994_v39, %v993_v34 }
 0x130   : > { %v492_v41 = vadd.f32 %v927_v38, %v1415_v26  ;;  %v928_v42 = vpop.f32.mrb[20].mxu0 }
 0x131   : > { %v996_v44 = vpop.f32.mrb[20].mxu1  ;;  %v929_v45 = vpop.f32.mrb[21].mxu0 }
 0x132   : > { %v617_v46 = vadd.f32 %v995_v40, %v492_v41  ;;  %v930_v47 = vadd.f32 %v929_v45, %v928_v42  ;;  %v997_v48 = vpop.f32.mrb[21].mxu1 }
 0x133   : > { %v998_v49 = vadd.f32 %v997_v48, %v996_v44 }
 0x134   : > { %v497_v50 = vadd.f32 %v930_v47, %v1415_v26  ;;  %v931_v52 = vpop.f32.mrb[22].mxu0 }
 0x135   : > { %v999_v53 = vpop.f32.mrb[22].mxu1  ;;  %v932_v54 = vpop.f32.mrb[23].mxu0 }
 0x136   : > { %v1440_v55 = vadd.f32 %v998_v49, %v497_v50  ;;  %v933_v56 = vadd.f32 %v932_v54, %v931_v52  ;;  %v1000_v57 = vpop.f32.mrb[23].mxu1 }
 0x137   : > { %v1001_v58 = vadd.f32 %v1000_v57, %v999_v53 }
 0x138   : > { %v502_v60 = vadd.f32 %v933_v56, %v1415_v26  ;;  %v1034_v61 = vpop.f32.mrb[24].mxu0 }
 0x139   : > { %v1052_v62 = vpop.f32.mrb[24].mxu1  ;;  %v1035_v63 = vpop.f32.mrb[25].mxu0 }
 0x13a   : > { %v1444_v0 = vadd.f32 %v1001_v58, %v502_v60  ;;  %v1036_v1 = vadd.f32 %v1035_v63, %v1034_v61  ;;  %v1053_v2 = vpop.f32.mrb[25].mxu1 }
 0x13b   : > { %v1054_v4 = vadd.f32 %v1053_v2, %v1052_v62 }
 0x13c   : > { %v697_v5 = vadd.f32 %v1036_v1, %v1418_v35  ;;  %v1037_v6 = vpop.f32.mrb[26].mxu0 }
 0x13d   : > { %v727_v26 = vadd.f32 %v1054_v4, %v602_v19  ;;  %v1055_v7 = vpop.f32.mrb[26].mxu1  ;;  %v1038_v8 = vpop.f32.mrb[27].mxu0 }
 0x13e   : > { %v755_v9 = vmax.f32 %v697_v5, 0.0  ;;  %v1039_v10 = vadd.f32 %v1038_v8, %v1037_v6  ;;  %v1056_v12 = vpop.f32.mrb[27].mxu1 }
 0x13f   : > { %v761_v13 = vmax.f32 %v727_v26, 0.0  ;;  %v1057_v14 = vadd.f32 %v1056_v12, %v1055_v7 }
 0x140   : > { %767 = vst [vmem:[%s1450_s28] sm:$0xff] %v755_v9  ;;  %v702_v35 = vadd.f32 %v1039_v10, %v1421_v43  ;;  %v1040_v15 = vpop.f32.mrb[28].mxu0 }
 0x141   : > { %773 = vst [vmem:[%s1450_s28 + $0x30] sm:$0xff] %v761_v13  ;;  %v732_v16 = vadd.f32 %v1057_v14, %v607_v28  ;;  %v1058_v17 = vpop.f32.mrb[28].mxu1  ;;  %v1041_v18 = vpop.f32.mrb[29].mxu0 }
 0x142   : > { %v756_v20 = vmax.f32 %v702_v35, 0.0  ;;  %v1042_v21 = vadd.f32 %v1041_v18, %v1040_v15  ;;  %v1059_v19 = vpop.f32.mrb[29].mxu1 }
 0x143   : > { %v762_v22 = vmax.f32 %v732_v16, 0.0  ;;  %v1060_v23 = vadd.f32 %v1059_v19, %v1058_v17 }
 0x144   : > { %768 = vst [vmem:[%s1450_s28 + $0x8] sm:$0xff] %v756_v20  ;;  %v707_v24 = vadd.f32 %v1042_v21, %v1424_v51  ;;  %v1043_v25 = vpop.f32.mrb[30].mxu0 }
 0x145   : > { %774 = vst [vmem:[%s1450_s28 + $0x38] sm:$0xff] %v762_v22  ;;  %v737_v27 = vadd.f32 %v1060_v23, %v612_v37  ;;  %v1061_v29 = vpop.f32.mrb[30].mxu1  ;;  %v1044_v43 = vpop.f32.mrb[31].mxu0 }
 0x146   : > { %v757_v30 = vmax.f32 %v707_v24, 0.0  ;;  %v1045_v31 = vadd.f32 %v1044_v43, %v1043_v25  ;;  %v1062_v28 = vpop.f32.mrb[31].mxu1 }
 0x147   : > { %v763_v32 = vmax.f32 %v737_v27, 0.0  ;;  %v1063_v33 = vadd.f32 %v1062_v28, %v1061_v29 }
 0x148   : > { %769 = vst [vmem:[%s1450_s28 + $0x10] sm:$0xff] %v757_v30  ;;  %v712_v34 = vadd.f32 %v1045_v31, %v1427_v59  ;;  %v1046_v36 = vpop.f32.mrb[32].mxu0 }
 0x149   : > { %775 = vst [vmem:[%s1450_s28 + $0x40] sm:$0xff] %v763_v32  ;;  %v742_v38 = vadd.f32 %v1063_v33, %v617_v46  ;;  %v1064_v39 = vpop.f32.mrb[32].mxu1  ;;  %v1047_v51 = vpop.f32.mrb[33].mxu0 }
 0x14a   : > { %v758_v40 = vmax.f32 %v712_v34, 0.0  ;;  %v1048_v41 = vadd.f32 %v1047_v51, %v1046_v36  ;;  %v1065_v37 = vpop.f32.mrb[33].mxu1 }
 0x14b   : > { %v764_v42 = vmax.f32 %v742_v38, 0.0  ;;  %v1066_v44 = vadd.f32 %v1065_v37, %v1064_v39 }
 0x14c   : > { %770 = vst [vmem:[%s1450_s28 + $0x18] sm:$0xff] %v758_v40  ;;  %v717_v45 = vadd.f32 %v1048_v41, %v1430_v3  ;;  %v1049_v47 = vpop.f32.mrb[34].mxu0 }
 0x14d   : > { %776 = vst [vmem:[%s1450_s28 + $0x48] sm:$0xff] %v764_v42  ;;  %v747_v59 = vadd.f32 %v1066_v44, %v1440_v55  ;;  %v1067_v48 = vpop.f32.mrb[34].mxu1  ;;  %v1050_v46 = vpop.f32.mrb[35].mxu0 }
 0x14e   : > { %v759_v49 = vmax.f32 %v717_v45, 0.0  ;;  %v1051_v50 = vadd.f32 %v1050_v46, %v1049_v47  ;;  %v1068_v52 = vpop.f32.mrb[35].mxu1 }
 0x14f   : > { %v765_v53 = vmax.f32 %v747_v59, 0.0  ;;  %v1069_v54 = vadd.f32 %v1068_v52, %v1067_v48 }
 0x150   : > { %771 = vst [vmem:[%s1450_s28 + $0x20] sm:$0xff] %v759_v49  ;;  %v722_v56 = vadd.f32 %v1051_v50, %v1433_v11 }
 0x151   : > { %777 = vst [vmem:[%s1450_s28 + $0x50] sm:$0xff] %v765_v53  ;;  %v752_v57 = vadd.f32 %v1069_v54, %v1444_v0 }
 0x152   : > { %v760_v3 = vmax.f32 %v722_v56, 0.0 }
 0x153   : > { %v766_v58 = vmax.f32 %v752_v57, 0.0 }
 0x154   : > { %772 = vst [vmem:[%s1450_s28 + $0x28] sm:$0xff] %v760_v3 }
 0x155   : > { %778 = vst [vmem:[%s1450_s28 + $0x58] sm:$0xff] %v766_v58 }
 0x156 PF: > { %s13_s12 = sadd.s32 1, %s1199_s12  }
 0x157   : > { %p10_p4 = scmp.ge.s32.totalorder %s13_s12, 6  }
 0x159   :  { %12 = sbr.rel (!%p10_p4) target bundleno = 1 (0x1), region = 68 }

// kernel: squeeze.8
= control target key start
LH: loop header
LB: loop body
LE: loop exit
PB: predicated region body
PF: predicated region fallthrough
CT: control target
= control target key end

     0   :  { %s158_s0 = inlined_call_operand.vmem [shape: f32[1,90,128], index: 0, kind: input, shape index: {}]   ;;  %s159_s1 = inlined_call_operand.vmem [shape: f32[2,45,128], index: 1, kind: output, shape index: {}]  }
   0x1   :  { %v2_v0 = vld [vmem:[%s158_s0] sm:$0xff]   ;;  %v50_v1 = vld [vmem:[%s158_s0 + $0x8] sm:$0xff]   ;;  %v52_v2 = vld [vmem:[%s158_s0 + $0x10] sm:$0xff]  }
   0x2   :  { %3 = vst [vmem:[%s159_s1] sm:$0xff] %v2_v0   ;;  %51 = vst [vmem:[%s159_s1 + $0x8] sm:$0xff] %v50_v1   ;;  %v54_v3 = vld [vmem:[%s158_s0 + $0x18] sm:$0xff]   ;;  %v56_v4 = vld [vmem:[%s158_s0 + $0x20] sm:$0xff]  }
   0x3   :  { %53 = vst [vmem:[%s159_s1 + $0x10] sm:$0xff] %v52_v2   ;;  %v58_v5 = vld [vmem:[%s158_s0 + $0x28] sm:$0xff]   ;;  %55 = vst [vmem:[%s159_s1 + $0x18] sm:$0xff] %v54_v3   ;;  %v61_v6 = vld [vmem:[%s158_s0 + $0x30] sm:$0xff]  }
   0x4   :  { %57 = vst [vmem:[%s159_s1 + $0x20] sm:$0xff] %v56_v4   ;;  %59 = vst [vmem:[%s159_s1 + $0x28] sm:$0x1f] %v58_v5   ;;  %v63_v7 = vld [vmem:[%s158_s0 + $0x38] sm:$0xff]   ;;  %v65_v8 = vld [vmem:[%s158_s0 + $0x40] sm:$0xff]  }
   0x5   :  { %60 = vst [vmem:[%s159_s1 + $0x2b] sm:$0xe0] %v58_v5   ;;  %62 = vst [vmem:[%s159_s1 + $0x33] sm:$0xff] %v61_v6   ;;  %v67_v9 = vld [vmem:[%s158_s0 + $0x48] sm:$0xff]   ;;  %v69_v10 = vld [vmem:[%s158_s0 + $0x50] sm:$0xff]  }
   0x6   :  { %64 = vst [vmem:[%s159_s1 + $0x3b] sm:$0xff] %v63_v7   ;;  %66 = vst [vmem:[%s159_s1 + $0x43] sm:$0xff] %v65_v8   ;;  %v71_v11 = vld [vmem:[%s158_s0 + $0x58] sm:$0x3]  }
   0x7   :  { %68 = vst [vmem:[%s159_s1 + $0x4b] sm:$0xff] %v67_v9   ;;  %70 = vst [vmem:[%s159_s1 + $0x53] sm:$0xff] %v69_v10  }
   0x8   :  { %72 = vst [vmem:[%s159_s1 + $0x5b] sm:$0x3] %v71_v11  }

// kernel: cdn_forward.9
= control target key start
LH: loop header
LB: loop body
LE: loop exit
PB: predicated region body
PF: predicated region fallthrough
CT: control target
= control target key end

     0   :  { %v17_v0 = vlaneseq  ;;  %s201_s0 = inlined_call_operand.vmem [shape: f32[8,768], index: 0, kind: input, shape index: {}]   ;;  %s202_s1 = inlined_call_operand.hbm [shape: f32[1,1], index: 1, kind: output, shape index: {0}]   ;;  %s203_s2 = inlined_call_operand.vmem [shape: f32[8,384], index: 2, kind: output, shape index: {1}]  }
   0x1   :  { %v14_v1 = vld [vmem:[%s201_s0 + $0x18] sm:$0xff]  ;;  %v15_v2 = vld [vmem:[%s201_s0 + $0x20] sm:$0xff]  ;;  %v16_v3 = vld [vmem:[%s201_s0 + $0x28] sm:$0xff] }
   0x2   :  { %v18_v4 = vshrl.u32 %v17_v0, 7  ;;  %v20_v5 = vand.u32 127, %v17_v0  ;;  %v30_v6 = vmul.f32 %v14_v1, %v14_v1  ;;  %v31_v7 = vmul.f32 %v15_v2, %v15_v2 }
   0x3   :  { %8 = vsyncpa [#allocation3], 0  ;;  %v72_v8 = vmul.f32 300.0, %v14_v1  ;;  %v73_v9 = vmul.f32 300.0, %v15_v2  ;;  %v74_v10 = vmul.f32 300.0, %v16_v3  ;;  %v11_v11 = vld [vmem:[%s201_s0] sm:$0xff]  ;;  %v32_v13 = vmul.f32 %v16_v3, %v16_v3 }
   0x4   :  { %v22_v12 = vadd.s32 256, %v20_v5  ;;  %vm23_vm0 = vcmp.lt.s32.totalorder %v18_v4, 2  ;;  %v12_v14 = vld [vmem:[%s201_s0 + $0x8] sm:$0xff]  ;;  %v13_v15 = vld [vmem:[%s201_s0 + $0x10] sm:$0xff]  ;;  %v33_v23 = vmul.f32 %v11_v11, %v11_v11  ;;  %vm70_vm3 = vcmask 0  }
   0x5   :  { %v39_v16 = vsel %vm23_vm0, %v30_v6, 1.0  ;;  %v40_v17 = vsel %vm23_vm0, %v31_v7, 1.0  ;;  %v75_v18 = vadd.f32 %v72_v8, %v11_v11  ;;  %v76_v19 = vadd.f32 %v73_v9, %v12_v14 }
   0x6   :  { %vm26_vm1 = vcmp.lt.s32.totalorder %v22_v12, 300  ;;  %103 = vlog2.f32 %v39_v16  ;;  %v77_v20 = vadd.f32 %v74_v10, %v13_v15  ;;  %v34_v24 = vmul.f32 %v12_v14, %v12_v14 }
   0x7   :  { %vm170_vm2 = vmand %vm23_vm0, %vm26_vm1  ;;  %105 = vlog2.f32 %v40_v17  ;;  %78 = vst [vmem:[%s203_s2] sm:$0xff] %v75_v18  ;;  %v35_v25 = vmul.f32 %v13_v15, %v13_v15  ;;  %v36_v26 = vadd.f32 %v33_v23, %v30_v6 }
   0x8   :  { %v41_v22 = vsel %vm170_vm2, %v32_v13, 1.0  ;;  %79 = vst [vmem:[%s203_s2 + $0x8] sm:$0xff] %v76_v19  ;;  %80 = vst [vmem:[%s203_s2 + $0x10] sm:$0xff] %v77_v20  ;;  %v37_v28 = vadd.f32 %v34_v24, %v31_v7  ;;  %s133_s2 = smov [#allocation2]  }
   0x9   :  { %107 = vlog2.f32 %v41_v22  ;;  %v38_v31 = vadd.f32 %v35_v25, %v32_v13  ;;  %s87_s26 = sshll.u32 %s133_s2, 4  ;;  %s88_s26 = int_to_ptr.vmem [resolvable:$true] %s87_s26 }
   0xa   :  { %s109_s27 = scalar_lea.vmem %s88_s26, 16  ;;  %s113_s28 = scalar_lea.vmem %s88_s26, 32 }
   0xb   :  { %p110_p0 = scmp.ne.s32.totalorder %s88_s26, %s109_s27  ;;  %p114_p1 = scmp.lt.s32.totalorder %s88_s26, %s88_s26 }
   0xc   :  { %p115_p2 = scmp.lt.s32.totalorder %s113_s28, %s109_s27 }
   0xe   :  { %p116_p3 = por %p115_p2, %p114_p1 }
  0x10   :  { %v104_v27 = vpop.eup %103  ;;  %p117_p4 = pnand %p116_p3, %p110_p0 }
  0x11   :  { %v106_v29 = vpop.eup %105  ;;  %v43_v30 = vmul.f32 0.6931472, %v104_v27 }
  0x12   :  { %v45_v32 = vmul.f32 0.6931472, %v106_v29 }
  0x13   :  { %v108_v33 = vpop.eup %107  ;;  %v48_v34 = vsub.f32 %v36_v26, %v43_v30 }
  0x14   :  { %v47_v35 = vmul.f32 0.6931472, %v108_v33  ;;  %v49_v36 = vsub.f32 %v37_v28, %v45_v32 }
  0x15   :  { %v99_v37 = vadd.f32 -1.0, %v48_v34 }
  0x16   :  { %v50_v38 = vsub.f32 %v38_v31, %v47_v35  ;;  %v100_v39 = vadd.f32 -1.0, %v49_v36 }
  0x17   :  { %v54_v40 = vsel %vm23_vm0, %v99_v37, 0.0 }
  0x18   :  { %v101_v41 = vadd.f32 -1.0, %v50_v38  ;;  %v55_v42 = vsel %vm23_vm0, %v100_v39, 0.0 }
  0x19   :  { %v57_v43 = vadd.f32 %v55_v42, %v54_v40 }
  0x1a   :  { %v56_v44 = vsel %vm170_vm2, %v101_v41, 0.0 }
  0x1b   :  { %v58_v45 = vadd.f32 %v57_v43, %v56_v44 }
  0x1d   :  { %59 = vadd.xlane.f32.xlu0 %v58_v45 }
  0xaa   :  { %v60_v46 = vpop.xlane.xlu0 %59 }
  0xab   :  { %v61_v47 = vmul.f32 0.5, %v60_v46 }
  0xad   :  { %v62_v48 = vrot.slane %v61_v47, 4 }
  0xaf   :  { %v63_v49 = vadd.f32 %v62_v48, %v61_v47 }
  0xb1   :  { %v64_v50 = vrot.slane %v63_v49, 2 }
  0xb3   :  { %v65_v51 = vadd.f32 %v64_v50, %v63_v49 }
  0xb5   :  { %v66_v52 = vrot.slane %v65_v51, 1 }
  0xb7   :  { %v67_v53 = vadd.f32 %v66_v52, %v65_v51 }
  0xb9   :  { %v69_v54 = vmul.f32 0.5, %v67_v53 }
  0xbb   :  { %71 = vst.msk [vmem:[#allocation2] sm:$0x1] %vm70_vm3, %v69_v54 }
  0xbc   :  { %120 = shalt.err (!%p117_p4)
}
  0xbd   :  { %s121_s3 = scalar_lea.hbm %s202_s1, 16 }
  0xbe   :  { %p122_p5 = scmp.ne.s32.totalorder %s202_s1, %s121_s3  ;;  %p125_p6 = scmp.lt.u32.totalorder %s121_s3, %s202_s1 }
  0xc0   :  { %p127_p7 = pnand %p125_p6, %p122_p5 }
  0xc2   :  { %130 = shalt.err (!%p127_p7)
}
  0xc3   :  { %90 = dma.vmem_to_hbm [thread:$0]  %s88_s26, 16, %s202_s1, [#allocation3]  }
  0xc4   :  { %131 = dma.done.wait [#allocation3], 16  }
  0xc5   :  { %132 = vsyncadd [#allocation3], 4294967280 }
  0xc6   :  { %98 = vsyncpa [#allocation3], 1 }

// kernel: cdn_forward.7
= control target key start
LH: loop header
LB: loop body
LE: loop exit
PB: predicated region body
PF: predicated region fallthrough
CT: control target
= control target key end

     0   :  { %8 = vsyncpa [#allocation3], 0  ;;  %s2942_s0 = inlined_call_operand.vmem [shape: f32[8,24576], index: 0, kind: input, shape index: {}]   ;;  %s2943_s1 = inlined_call_operand.hbm [shape: f32[24576,512], index: 1, kind: input, shape index: {}]   ;;  %s2944_s2 = inlined_call_operand.vmem [shape: f32[1,512], index: 2, kind: input, shape index: {}]   ;;  %s2945_s3 = inlined_call_operand.vmem [shape: f32[8,512], index: 3, kind: output, shape index: {}]  }
   0x1   :  { %10 = vsyncpa [#allocation3 + $0x1], 0  ;;  %s2232_s12 = smov 0   ;;  %s2234_s13 = smov 0  }
   0x2   :  { %s2236_s14 = smov 0   ;;  %s2238_s15 = smov 0  }
   0x3   :  { %s2240_s16 = smov 0   ;;  %s2242_s17 = smov 0  }
   0x4   :  { %s2244_s18 = smov 0   ;;  %s2246_s19 = smov 0  }
   0x5 LB: > { %s1487_s20 = sadd.s32 4294967295, %s2205_s19   ;;  %s25_s21 = sadd.s32 1, %s2197_s17  ;;  %s2205_s19 = sphi %s2246_s19, %s16_s19   ;;  %s2201_s18 = sphi %s2244_s18, %s2955_s18   ;;  %s2197_s17 = sphi %s2242_s17, %s2954_s17   ;;  %s2193_s16 = sphi %s2240_s16, %s2953_s16   ;;  %s2189_s15 = sphi %s2238_s15, %s2952_s15   ;;  %s2185_s14 = sphi %s2236_s14, %s2951_s14   ;;  %s2181_s13 = sphi %s2234_s13, %s2950_s13   ;;  %s2177_s12 = sphi %s2232_s12, %s2949_s12  }
   0x6   : > { %p26_p0 = scmp.ge.s32.totalorder %s25_s21, 12  ;;  %s28_s22 = sadd.s32 1, %s2201_s18 }
   0x7   : > { %s63_s23 = sadd.s32 1, %s2185_s14  ;;  %p70_p1 = scmp.ne.s32.totalorder %s2185_s14, %s2181_s13 }
   0x8   : > { %s2957_s21 = smov (%p26_p0, %s25_s21), 0  ;;  %s2959_s22 = smov (!%p26_p0, %s28_s22), %s2201_s18 }
   0x9   : > { %s58_s24 = ssub.s32 %s2197_s17, %s2957_s21  ;;  %p71_p2 = scmp.eq.s32.totalorder %s2205_s19, 0 }
   0xa   : > { %p30_p3 = scmp.ge.s32.totalorder %s2959_s22, 2  ;;  %p76_p4 = scmp.ne.s32.totalorder %s2181_s13, %s2177_s12 }
   0xb   : > { %p2283_p5 = por %p71_p2, %p70_p1  ;;  %p77_p6 = scmp.eq.s32.totalorder %s1487_s20, 0 }
   0xc   : > { %s2961_s22 = smov (%p30_p3, %s2959_s22), 0  ;;  %p2040_p8 = scmp.lt.s32.totalorder %s2205_s19, 24 }
   0xd   : > { %p2289_p7 = por %p77_p6, %p76_p4  ;;  %s59_s27 = ssub.s32 %s2201_s18, %s2961_s22 }
   0xe   : > { %s60_s28 = sor.u32 %s59_s27, %s58_s24  ;;  %s161_s29 = sand.u32 1, %s2185_s14  }
   0xf   : > { %p61_p9 = scmp.eq.s32.totalorder %s60_s28, 0  ;;  %s1491_s30 = sshll.u32 %s161_s29, 12 }
  0x10   : > { %s1493_s4 = sshll.u32 %s2201_s18, 1  ;;  %s1507_s6 = sshll.u32 %s2197_s17, 10 }
  0x11   : > { %s2299_s5 = scalar_select %p61_p9, %s2185_s14, %s63_s23  }
  0x12   : > { %s172_s7 = sadd.s32 %s1507_s6, %s1493_s4  ;;  %s165_s8 = scalar_lea.vmem [#allocation2], %s1491_s30 }
  0x13   : > { %s175_s9 = sshll.u32 %s165_s8, 4  ;;  %s1495_s10 = sshll.u32 %s172_s7, 7  ;;  %s2302_s9 = int_to_ptr.vmem [resolvable:$true] %s175_s9 }
  0x14   : > { %s2307_s20 = scalar_lea.hbm %s2943_s1, %s1495_s10  ;;  %p2313_p10 = pnand %p2040_p8, %p2283_p5 }
  0x15   : > { %s2317_s24 = scalar_lea.sflag [#allocation3], %s161_s29  ;;  %s2109_s27 = scalar_lea.hbm %s2307_s20, 65536 }
  0x16   : > { %p2110_p11 = scmp.ne.s32.totalorder %s2307_s20, %s2109_s27  ;;  %p2111_p12 = pneg %p2313_p10 }
  0x17   : > { %s2114_s30 = scalar_lea.hbm %s2943_s1, 1572864  ;;  %p2115_p1 = scmp.lt.u32.totalorder %s2307_s20, %s2943_s1 }
  0x18   : > { %p2112_p13 = pnand %p2111_p12, %p2110_p11  ;;  %p2116_p2 = scmp.lt.u32.totalorder %s2114_s30, %s2109_s27 }
  0x19   : > { %p2118_p4 = scmp.lt.u32.totalorder %s2109_s27, %s2307_s20 }
  0x1a   : > { %p2113_p0 = pneg %p2112_p13  ;;  %p2117_p3 = por %p2116_p2, %p2115_p1 }
  0x1c   : > { %p2119_p5 = por %p2118_p4, %p2117_p3 }
  0x1e   : > { %p2120_p6 = pnand %p2119_p5, %p2113_p0 }
  0x20   : > { %2123 = shalt.err (!%p2120_p6)
}
  0x21   : > { %s2124_s29 = scalar_lea.vmem %s2302_s9, 65536  ;;  %s2207_s7 = smov [#allocation2]  }
  0x22   : > { %p2125_p8 = scmp.ne.s32.totalorder %s2302_s9, %s2124_s29  ;;  %s2129_s8 = sshll.u32 %s2207_s7, 4  ;;  %s2130_s8 = int_to_ptr.vmem [resolvable:$false] %s2129_s8 }
  0x23   : > { %s2131_s10 = scalar_lea.vmem %s2130_s8, 131072  ;;  %p2132_p13 = scmp.lt.s32.totalorder %s2302_s9, %s2130_s8 }
  0x24   : > { %p2127_p9 = pnand %p2125_p8, %p2111_p12  ;;  %p2133_p1 = scmp.lt.s32.totalorder %s2131_s10, %s2124_s29 }
  0x26   : > { %p2128_p11 = pneg %p2127_p9  ;;  %p2134_p2 = por %p2133_p1, %p2132_p13 }
  0x28   : > { %p2135_p3 = pnand %p2134_p2, %p2128_p11 }
  0x2a   : > { %2138 = shalt.err (!%p2135_p3)
}
  0x2b   : > { %s2208_s11 = smov 512   ;;  %s2209_s12 = smov 256  }
  0x2c   : > { %s2210_s27 = smov 16   ;;  %p1496_p12 = scmp.ge.s32.totalorder %s2205_s19, 1 }
  0x2d   : > { %2039 = dma.hbm_to_vmem [thread:$0]  (!%p2313_p10), %s2307_s20, 65536, %s2302_s9, %s2317_s24, %s2208_s11, %s2209_s12, %s2210_s27  }
  0x2e   : > { %p191_p0 = scmp.lt.s32.totalorder %s2205_s19, 25 }
  0x30   : > { %p192_p4 = pnand %p1496_p12, %p191_p0 }
  0x31   : > { %s197_s25 = sand.u32 (!%p192_p4), 1, %s2181_s13  }
  0x32   : > { %195 = sbr.rel (%p192_p4) target bundleno = 561 (0x231), region = 32  ;;  %s1497_s28 = sshll.u32 (!%p192_p4), %s197_s25, 12 }
  0x33   : > { %s198_s30 = scalar_lea.sflag (!%p192_p4), [#allocation3], %s197_s25  ;;  %s2348_s4 = scalar_lea.vmem (!%p192_p4), [#allocation2], %s1497_s28 }
  0x39   : > { %2172 = dma.done.wait (%p2289_p7), %s198_s30, 65536  }
  0x3a   : > { %2174 = vsyncadd (%p2289_p7), %s198_s30, 4294901760  ;;  %s1498_s23 = sshll.u32 %s2189_s15, 4  ;;  %s1500_s9 = sshll.u32 %s2193_s16, 1 }
  0x3b   : > { %p234_p10 = scmp.lt.s32.totalorder %s1498_s23, 191  ;;  %p242_p5 = scmp.lt.s32.totalorder %s1500_s9, 3 }
  0x3c   : > { %p1503_p7 = scmp.ne.s32.totalorder %s2189_s15, 0 }
  0x3d   : > { %s2963_s23 = smov (!%p234_p10, %s1498_s23), 191  ;;  %s2965_s9 = smov (!%p242_p5, %s1500_s9), 3 }
  0x3e   : > { %s1499_s20 = sshll.u32 %s2963_s23, 3  ;;  %s244_s8 = scalar_lea.vmem %s2944_s2, %s2965_s9  ;;  %v2211_v0 = vmov (!%p1503_p7), 0.0  }
  0x3f   : > { %s2361_s29 = scalar_lea.vmem %s2942_s0, %s1499_s20  ;;  %s1502_s10 = sshll.u32 %s2965_s9, 3 }
  0x40   : > { %s2371_s12 = scalar_lea.vmem %s2945_s3, %s1502_s10  ;;  %255 = sbr.rel (%p1503_p7) target bundleno = 71 (0x47), region = 40 }
  0x41   : > { %256 = vst [vmem:[%s2371_s12] sm:$0xff] (!%p1503_p7), %v2211_v0  ;;  %257 = vst [vmem:[%s2371_s12 + $0x8] sm:$0xff] (!%p1503_p7), %v2211_v0 }
  0x47 PF: > { %v277_v1 = vld [vmem:[%s2348_s4 + $0x8] sm:$0xff]  ;;  %v279_v2 = vld [vmem:[%s2348_s4 + $0x18] sm:$0xff]  ;;  %v276_v6 = vld [vmem:[%s2348_s4] sm:$0xff]  ;;  %p1504_p6 = scmp.ne.s32.totalorder %s2189_s15, 11 }
  0x48   : > { %v533_v3 = vld [vmem:[%s2348_s4 + $0x808] sm:$0xff]  ;;  %v1508_v4 = vpack.c.bf16 %v279_v2, %v277_v1  ;;  %v535_v5 = vld [vmem:[%s2348_s4 + $0x818] sm:$0xff]  ;;  %v278_v7 = vld [vmem:[%s2348_s4 + $0x10] sm:$0xff] }
  0x49   : > { %v1764_v8 = vpack.c.bf16 %v535_v5, %v533_v3  ;;  %v1510_v9 = vpack.c.bf16 %v278_v7, %v276_v6  ;;  %v532_v10 = vld [vmem:[%s2348_s4 + $0x800] sm:$0xff]  ;;  %v534_v11 = vld [vmem:[%s2348_s4 + $0x810] sm:$0xff]  ;;  %v281_v12 = vld [vmem:[%s2348_s4 + $0x28] sm:$0xff] }
  0x4a   : > { %1509 = vmatprep.subr.bf16.mxu1 %v1508_v4  ;;  %v1766_v13 = vpack.c.bf16 %v534_v11, %v532_v10  ;;  %v283_v14 = vld [vmem:[%s2348_s4 + $0x38] sm:$0xff]  ;;  %v537_v15 = vld [vmem:[%s2348_s4 + $0x828] sm:$0xff]  ;;  %v280_v19 = vld [vmem:[%s2348_s4 + $0x20] sm:$0xff] }
  0x4b   : > { %v539_v16 = vld [vmem:[%s2348_s4 + $0x838] sm:$0xff]  ;;  %1765 = vmatprep.subr.bf16.mxu0 %v1764_v8  ;;  %1511 = vmatpush1.bf16.msra.mxu1 %v1510_v9  ;;  %v1512_v17 = vpack.c.bf16 %v283_v14, %v281_v12  ;;  %v282_v20 = vld [vmem:[%s2348_s4 + $0x30] sm:$0xff]  ;;  %v536_v21 = vld [vmem:[%s2348_s4 + $0x820] sm:$0xff] }
  0x4c   : > { %v1768_v18 = vpack.c.bf16 %v539_v16, %v537_v15  ;;  %1767 = vmatpush1.bf16.msra.mxu0 %v1766_v13  ;;  %v1514_v22 = vpack.c.bf16 %v282_v20, %v280_v19  ;;  %v538_v23 = vld [vmem:[%s2348_s4 + $0x830] sm:$0xff]  ;;  %v285_v24 = vld [vmem:[%s2348_s4 + $0x48] sm:$0xff]  ;;  %v287_v25 = vld [vmem:[%s2348_s4 + $0x58] sm:$0xff] }
  0x4d   : > { %1513 = vmatprep.subr.bf16.mxu1 %v1512_v17  ;;  %v1770_v26 = vpack.c.bf16 %v538_v23, %v536_v21  ;;  %v1516_v27 = vpack.c.bf16 %v287_v25, %v285_v24  ;;  %v541_v28 = vld [vmem:[%s2348_s4 + $0x848] sm:$0xff]  ;;  %v543_v29 = vld [vmem:[%s2348_s4 + $0x858] sm:$0xff]  ;;  %v284_v30 = vld [vmem:[%s2348_s4 + $0x40] sm:$0xff] }
  0x4e   : > { %1769 = vmatprep.subr.bf16.mxu0 %v1768_v18  ;;  %v1772_v31 = vpack.c.bf16 %v543_v29, %v541_v28  ;;  %v286_v32 = vld [vmem:[%s2348_s4 + $0x50] sm:$0xff]  ;;  %v540_v33 = vld [vmem:[%s2348_s4 + $0x840] sm:$0xff]  ;;  %v289_v36 = vld [vmem:[%s2348_s4 + $0x68] sm:$0xff] }
  0x4f   : > { %v542_v34 = vld [vmem:[%s2348_s4 + $0x850] sm:$0xff]  ;;  %1515 = vmatpush1.bf16.msra.mxu1 %v1514_v22  ;;  %v1518_v35 = vpack.c.bf16 %v286_v32, %v284_v30  ;;  %v291_v37 = vld [vmem:[%s2348_s4 + $0x78] sm:$0xff]  ;;  %v545_v38 = vld [vmem:[%s2348_s4 + $0x868] sm:$0xff] }
  0x50   : > { %1771 = vmatpush1.bf16.msra.mxu0 %v1770_v26  ;;  %1517 = vmatprep.subr.bf16.mxu1 %v1516_v27  ;;  %v1774_v39 = vpack.c.bf16 %v542_v34, %v540_v33  ;;  %v1520_v40 = vpack.c.bf16 %v291_v37, %v289_v36  ;;  %v547_v41 = vld [vmem:[%s2348_s4 + $0x878] sm:$0xff]  ;;  %v288_v42 = vld [vmem:[%s2348_s4 + $0x60] sm:$0xff]  ;;  %v290_v43 = vld [vmem:[%s2348_s4 + $0x70] sm:$0xff] }
  0x51   : > { %1773 = vmatprep.subr.bf16.mxu0 %v1772_v31  ;;  %v1776_v44 = vpack.c.bf16 %v547_v41, %v545_v38  ;;  %v544_v45 = vld [vmem:[%s2348_s4 + $0x860] sm:$0xff]  ;;  %v546_v46 = vld [vmem:[%s2348_s4 + $0x870] sm:$0xff]  ;;  %v293_v47 = vld [vmem:[%s2348_s4 + $0x88] sm:$0xff]  ;;  %v1522_v51 = vpack.c.bf16 %v290_v43, %v288_v42 }
  0x52   : > { %v295_v48 = vld [vmem:[%s2348_s4 + $0x98] sm:$0xff]  ;;  %v549_v49 = vld [vmem:[%s2348_s4 + $0x888] sm:$0xff]  ;;  %v1778_v52 = vpack.c.bf16 %v546_v46, %v544_v45  ;;  %v292_v54 = vld [vmem:[%s2348_s4 + $0x80] sm:$0xff] }
  0x53   : > { %v551_v50 = vld [vmem:[%s2348_s4 + $0x898] sm:$0xff]  ;;  %1519 = vmatpush1.bf16.msra.mxu1 %v1518_v35  ;;  %v1524_v53 = vpack.c.bf16 %v295_v48, %v293_v47  ;;  %v294_v55 = vld [vmem:[%s2348_s4 + $0x90] sm:$0xff]  ;;  %v548_v56 = vld [vmem:[%s2348_s4 + $0x880] sm:$0xff] }
  0x54   : > { %1775 = vmatpush1.bf16.msra.mxu0 %v1774_v39  ;;  %1521 = vmatprep.subr.bf16.mxu1 %v1520_v40  ;;  %v1780_v57 = vpack.c.bf16 %v551_v50, %v549_v49  ;;  %v550_v58 = vld [vmem:[%s2348_s4 + $0x890] sm:$0xff]  ;;  %v297_v59 = vld [vmem:[%s2348_s4 + $0xa8] sm:$0xff]  ;;  %v299_v60 = vld [vmem:[%s2348_s4 + $0xb8] sm:$0xff]  ;;  %v1526_v63 = vpack.c.bf16 %v294_v55, %v292_v54 }
  0x55   : > { %1777 = vmatprep.subr.bf16.mxu0 %v1776_v44  ;;  %v553_v61 = vld [vmem:[%s2348_s4 + $0x8a8] sm:$0xff]  ;;  %v555_v62 = vld [vmem:[%s2348_s4 + $0x8b8] sm:$0xff]  ;;  %v1782_v0 = vpack.c.bf16 %v550_v58, %v548_v56  ;;  %v1528_v1 = vpack.c.bf16 %v299_v60, %v297_v59  ;;  %v296_v2 = vld [vmem:[%s2348_s4 + $0xa0] sm:$0xff] }
  0x56   : > { %v298_v3 = vld [vmem:[%s2348_s4 + $0xb0] sm:$0xff]  ;;  %v552_v4 = vld [vmem:[%s2348_s4 + $0x8a0] sm:$0xff]  ;;  %v1784_v5 = vpack.c.bf16 %v555_v62, %v553_v61  ;;  %v301_v7 = vld [vmem:[%s2348_s4 + $0xc8] sm:$0xff] }
  0x57   : > { %1523 = vmatpush1.bf16.msra.mxu1 %v1522_v51  ;;  %v554_v6 = vld [vmem:[%s2348_s4 + $0x8b0] sm:$0xff]  ;;  %v303_v8 = vld [vmem:[%s2348_s4 + $0xd8] sm:$0xff]  ;;  %v557_v9 = vld [vmem:[%s2348_s4 + $0x8c8] sm:$0xff]  ;;  %v1530_v11 = vpack.c.bf16 %v298_v3, %v296_v2 }
  0x58   : > { %1779 = vmatpush1.bf16.msra.mxu0 %v1778_v52  ;;  %1525 = vmatprep.subr.bf16.mxu1 %v1524_v53  ;;  %v559_v10 = vld [vmem:[%s2348_s4 + $0x8d8] sm:$0xff]  ;;  %v1786_v12 = vpack.c.bf16 %v554_v6, %v552_v4  ;;  %v1532_v13 = vpack.c.bf16 %v303_v8, %v301_v7  ;;  %v300_v14 = vld [vmem:[%s2348_s4 + $0xc0] sm:$0xff]  ;;  %v302_v15 = vld [vmem:[%s2348_s4 + $0xd0] sm:$0xff] }
  0x59   : > { %1781 = vmatprep.subr.bf16.mxu0 %v1780_v57  ;;  %v556_v16 = vld [vmem:[%s2348_s4 + $0x8c0] sm:$0xff]  ;;  %v1788_v17 = vpack.c.bf16 %v559_v10, %v557_v9  ;;  %v558_v18 = vld [vmem:[%s2348_s4 + $0x8d0] sm:$0xff]  ;;  %v305_v19 = vld [vmem:[%s2348_s4 + $0xe8] sm:$0xff]  ;;  %v1534_v23 = vpack.c.bf16 %v302_v15, %v300_v14 }
  0x5a   : > { %v307_v20 = vld [vmem:[%s2348_s4 + $0xf8] sm:$0xff]  ;;  %v561_v21 = vld [vmem:[%s2348_s4 + $0x8e8] sm:$0xff]  ;;  %v1790_v24 = vpack.c.bf16 %v558_v18, %v556_v16  ;;  %v304_v26 = vld [vmem:[%s2348_s4 + $0xe0] sm:$0xff] }
  0x5b   : > { %1527 = vmatpush1.bf16.msra.mxu1 %v1526_v63  ;;  %v563_v22 = vld [vmem:[%s2348_s4 + $0x8f8] sm:$0xff]  ;;  %v1536_v25 = vpack.c.bf16 %v307_v20, %v305_v19  ;;  %v306_v27 = vld [vmem:[%s2348_s4 + $0xf0] sm:$0xff]  ;;  %v560_v28 = vld [vmem:[%s2348_s4 + $0x8e0] sm:$0xff] }
  0x5c   : > { %1783 = vmatpush1.bf16.msra.mxu0 %v1782_v0  ;;  %1529 = vmatprep.subr.bf16.mxu1 %v1528_v1  ;;  %v1792_v29 = vpack.c.bf16 %v563_v22, %v561_v21  ;;  %v562_v30 = vld [vmem:[%s2348_s4 + $0x8f0] sm:$0xff]  ;;  %v309_v31 = vld [vmem:[%s2348_s4 + $0x108] sm:$0xff]  ;;  %v311_v32 = vld [vmem:[%s2348_s4 + $0x118] sm:$0xff]  ;;  %v1538_v35 = vpack.c.bf16 %v306_v27, %v304_v26 }
  0x5d   : > { %1785 = vmatprep.subr.bf16.mxu0 %v1784_v5  ;;  %v565_v33 = vld [vmem:[%s2348_s4 + $0x908] sm:$0xff]  ;;  %v567_v34 = vld [vmem:[%s2348_s4 + $0x918] sm:$0xff]  ;;  %v1794_v36 = vpack.c.bf16 %v562_v30, %v560_v28  ;;  %v1540_v37 = vpack.c.bf16 %v311_v32, %v309_v31  ;;  %v308_v38 = vld [vmem:[%s2348_s4 + $0x100] sm:$0xff] }
  0x5e   : > { %v310_v39 = vld [vmem:[%s2348_s4 + $0x110] sm:$0xff]  ;;  %v564_v40 = vld [vmem:[%s2348_s4 + $0x900] sm:$0xff]  ;;  %v1796_v41 = vpack.c.bf16 %v567_v34, %v565_v33  ;;  %v313_v43 = vld [vmem:[%s2348_s4 + $0x128] sm:$0xff] }
  0x5f   : > { %1531 = vmatpush1.bf16.msra.mxu1 %v1530_v11  ;;  %v566_v42 = vld [vmem:[%s2348_s4 + $0x910] sm:$0xff]  ;;  %v315_v44 = vld [vmem:[%s2348_s4 + $0x138] sm:$0xff]  ;;  %v569_v45 = vld [vmem:[%s2348_s4 + $0x928] sm:$0xff]  ;;  %v1542_v47 = vpack.c.bf16 %v310_v39, %v308_v38 }
  0x60   : > { %1787 = vmatpush1.bf16.msra.mxu0 %v1786_v12  ;;  %1533 = vmatprep.subr.bf16.mxu1 %v1532_v13  ;;  %v571_v46 = vld [vmem:[%s2348_s4 + $0x938] sm:$0xff]  ;;  %v1798_v48 = vpack.c.bf16 %v566_v42, %v564_v40  ;;  %v1544_v49 = vpack.c.bf16 %v315_v44, %v313_v43  ;;  %v312_v50 = vld [vmem:[%s2348_s4 + $0x120] sm:$0xff]  ;;  %v314_v51 = vld [vmem:[%s2348_s4 + $0x130] sm:$0xff] }
  0x61   : > { %1789 = vmatprep.subr.bf16.mxu0 %v1788_v17  ;;  %v568_v52 = vld [vmem:[%s2348_s4 + $0x920] sm:$0xff]  ;;  %v1800_v53 = vpack.c.bf16 %v571_v46, %v569_v45  ;;  %v570_v54 = vld [vmem:[%s2348_s4 + $0x930] sm:$0xff]  ;;  %v317_v55 = vld [vmem:[%s2348_s4 + $0x148] sm:$0xff]  ;;  %v1546_v59 = vpack.c.bf16 %v314_v51, %v312_v50 }
  0x62   : > { %v319_v56 = vld [vmem:[%s2348_s4 + $0x158] sm:$0xff]  ;;  %v573_v57 = vld [vmem:[%s2348_s4 + $0x948] sm:$0xff]  ;;  %v1802_v60 = vpack.c.bf16 %v570_v54, %v568_v52  ;;  %v316_v62 = vld [vmem:[%s2348_s4 + $0x140] sm:$0xff] }
  0x63   : > { %1535 = vmatpush1.bf16.msra.mxu1 %v1534_v23  ;;  %v575_v58 = vld [vmem:[%s2348_s4 + $0x958] sm:$0xff]  ;;  %v1548_v61 = vpack.c.bf16 %v319_v56, %v317_v55  ;;  %v318_v63 = vld [vmem:[%s2348_s4 + $0x150] sm:$0xff]  ;;  %v572_v0 = vld [vmem:[%s2348_s4 + $0x940] sm:$0xff] }
  0x64   : > { %1791 = vmatpush1.bf16.msra.mxu0 %v1790_v24  ;;  %1537 = vmatprep.subr.bf16.mxu1 %v1536_v25  ;;  %v1804_v1 = vpack.c.bf16 %v575_v58, %v573_v57  ;;  %v574_v2 = vld [vmem:[%s2348_s4 + $0x950] sm:$0xff]  ;;  %v321_v3 = vld [vmem:[%s2348_s4 + $0x168] sm:$0xff]  ;;  %v323_v4 = vld [vmem:[%s2348_s4 + $0x178] sm:$0xff]  ;;  %v1550_v7 = vpack.c.bf16 %v318_v63, %v316_v62 }
  0x65   : > { %1793 = vmatprep.subr.bf16.mxu0 %v1792_v29  ;;  %v577_v5 = vld [vmem:[%s2348_s4 + $0x968] sm:$0xff]  ;;  %v579_v6 = vld [vmem:[%s2348_s4 + $0x978] sm:$0xff]  ;;  %v320_v8 = vld [vmem:[%s2348_s4 + $0x160] sm:$0xff]  ;;  %v1806_v9 = vpack.c.bf16 %v574_v2, %v572_v0  ;;  %v1552_v10 = vpack.c.bf16 %v323_v4, %v321_v3 }
  0x66   : > { %v322_v11 = vld [vmem:[%s2348_s4 + $0x170] sm:$0xff]  ;;  %v576_v12 = vld [vmem:[%s2348_s4 + $0x960] sm:$0xff]  ;;  %v1808_v14 = vpack.c.bf16 %v579_v6, %v577_v5  ;;  %v325_v15 = vld [vmem:[%s2348_s4 + $0x188] sm:$0xff] }
  0x67   : > { %1539 = vmatpush1.bf16.msra.mxu1 %v1538_v35  ;;  %v578_v13 = vld [vmem:[%s2348_s4 + $0x970] sm:$0xff]  ;;  %v327_v16 = vld [vmem:[%s2348_s4 + $0x198] sm:$0xff]  ;;  %v581_v18 = vld [vmem:[%s2348_s4 + $0x988] sm:$0xff]  ;;  %v1554_v21 = vpack.c.bf16 %v322_v11, %v320_v8 }
  0x68   : > { %1795 = vmatpush1.bf16.msra.mxu0 %v1794_v36  ;;  %1541 = vmatprep.subr.bf16.mxu1 %v1540_v37  ;;  %v261_v17 = vld [vmem:[%s2361_s29 + $0x8] sm:$0xff]  ;;  %v583_v19 = vld [vmem:[%s2348_s4 + $0x998] sm:$0xff]  ;;  %v1810_v22 = vpack.c.bf16 %v578_v13, %v576_v12  ;;  %v1556_v23 = vpack.c.bf16 %v327_v16, %v325_v15  ;;  %v324_v24 = vld [vmem:[%s2348_s4 + $0x180] sm:$0xff] }
  0x69   : > { %1797 = vmatprep.subr.bf16.mxu0 %v1796_v41  ;;  %852 = vmatprep.mubr.f32.mxu1 %v261_v17  ;;  %v269_v20 = vld [vmem:[%s2361_s29 + $0x48] sm:$0xff]  ;;  %v580_v26 = vld [vmem:[%s2348_s4 + $0x980] sm:$0xff]  ;;  %v1812_v27 = vpack.c.bf16 %v583_v19, %v581_v18  ;;  %v329_v29 = vld [vmem:[%s2348_s4 + $0x1a8] sm:$0xff] }
  0x6a   : > { %1136 = vmatprep.mubr.f32.mxu0 %v269_v20  ;;  %v326_v25 = vld [vmem:[%s2348_s4 + $0x190] sm:$0xff]  ;;  %v331_v30 = vld [vmem:[%s2348_s4 + $0x1b8] sm:$0xff]  ;;  %v585_v31 = vld [vmem:[%s2348_s4 + $0x9a8] sm:$0xff] }
  0x6b   : > { %1543 = vmatpush1.bf16.msra.mxu1 %v1542_v47  ;;  %v582_v28 = vld [vmem:[%s2348_s4 + $0x990] sm:$0xff]  ;;  %v587_v32 = vld [vmem:[%s2348_s4 + $0x9b8] sm:$0xff]  ;;  %v1558_v33 = vpack.c.bf16 %v326_v25, %v324_v24  ;;  %v1560_v35 = vpack.c.bf16 %v331_v30, %v329_v29  ;;  %v328_v36 = vld [vmem:[%s2348_s4 + $0x1a0] sm:$0xff] }
  0x6c   : > { %1799 = vmatpush1.bf16.msra.mxu0 %v1798_v48  ;;  %1545 = vmatprep.subr.bf16.mxu1 %v1544_v49  ;;  %v1814_v34 = vpack.c.bf16 %v582_v28, %v580_v26  ;;  %v330_v37 = vld [vmem:[%s2348_s4 + $0x1b0] sm:$0xff]  ;;  %v584_v38 = vld [vmem:[%s2348_s4 + $0x9a0] sm:$0xff]  ;;  %v1816_v39 = vpack.c.bf16 %v587_v32, %v585_v31  ;;  %v333_v41 = vld [vmem:[%s2348_s4 + $0x1c8] sm:$0xff] }
  0x6d   : > { %1801 = vmatprep.subr.bf16.mxu0 %v1800_v53  ;;  %v586_v40 = vld [vmem:[%s2348_s4 + $0x9b0] sm:$0xff]  ;;  %v335_v42 = vld [vmem:[%s2348_s4 + $0x1d8] sm:$0xff]  ;;  %v589_v43 = vld [vmem:[%s2348_s4 + $0x9c8] sm:$0xff]  ;;  %v1562_v45 = vpack.c.bf16 %v330_v37, %v328_v36 }
  0x6e   : > { %v591_v44 = vld [vmem:[%s2348_s4 + $0x9d8] sm:$0xff]  ;;  %v1818_v46 = vpack.c.bf16 %v586_v40, %v584_v38  ;;  %v1564_v47 = vpack.c.bf16 %v335_v42, %v333_v41  ;;  %v332_v48 = vld [vmem:[%s2348_s4 + $0x1c0] sm:$0xff]  ;;  %v334_v49 = vld [vmem:[%s2348_s4 + $0x1d0] sm:$0xff] }
  0x6f   : > { %1547 = vmatpush1.bf16.msra.mxu1 %v1546_v59  ;;  %v588_v50 = vld [vmem:[%s2348_s4 + $0x9c0] sm:$0xff]  ;;  %v1820_v51 = vpack.c.bf16 %v591_v44, %v589_v43  ;;  %v590_v52 = vld [vmem:[%s2348_s4 + $0x9d0] sm:$0xff]  ;;  %v337_v53 = vld [vmem:[%s2348_s4 + $0x1e8] sm:$0xff]  ;;  %v1566_v57 = vpack.c.bf16 %v334_v49, %v332_v48 }
  0x70   : > { %1803 = vmatpush1.bf16.msra.mxu0 %v1802_v60  ;;  %1549 = vmatprep.subr.bf16.mxu1 %v1548_v61  ;;  %v339_v54 = vld [vmem:[%s2348_s4 + $0x1f8] sm:$0xff]  ;;  %v593_v55 = vld [vmem:[%s2348_s4 + $0x9e8] sm:$0xff]  ;;  %v1822_v58 = vpack.c.bf16 %v590_v52, %v588_v50  ;;  %v336_v60 = vld [vmem:[%s2348_s4 + $0x1e0] sm:$0xff] }
  0x71   : > { %1805 = vmatprep.subr.bf16.mxu0 %v1804_v1  ;;  %v595_v56 = vld [vmem:[%s2348_s4 + $0x9f8] sm:$0xff]  ;;  %v1568_v59 = vpack.c.bf16 %v339_v54, %v337_v53  ;;  %v338_v61 = vld [vmem:[%s2348_s4 + $0x1f0] sm:$0xff]  ;;  %v592_v62 = vld [vmem:[%s2348_s4 + $0x9e0] sm:$0xff] }
  0x72   : > { %v1824_v63 = vpack.c.bf16 %v595_v56, %v593_v55  ;;  %v594_v0 = vld [vmem:[%s2348_s4 + $0x9f0] sm:$0xff]  ;;  %v341_v1 = vld [vmem:[%s2348_s4 + $0x208] sm:$0xff]  ;;  %v343_v2 = vld [vmem:[%s2348_s4 + $0x218] sm:$0xff]  ;;  %v1570_v5 = vpack.c.bf16 %v338_v61, %v336_v60 }
  0x73   : > { %1551 = vmatpush1.bf16.msra.mxu1 %v1550_v7  ;;  %v597_v3 = vld [vmem:[%s2348_s4 + $0xa08] sm:$0xff]  ;;  %v599_v4 = vld [vmem:[%s2348_s4 + $0xa18] sm:$0xff]  ;;  %v1826_v6 = vpack.c.bf16 %v594_v0, %v592_v62  ;;  %v1572_v7 = vpack.c.bf16 %v343_v2, %v341_v1  ;;  %v340_v8 = vld [vmem:[%s2348_s4 + $0x200] sm:$0xff] }
  0x74   : > { %1807 = vmatpush1.bf16.msra.mxu0 %v1806_v9  ;;  %1553 = vmatprep.subr.bf16.mxu1 %v1552_v10  ;;  %v342_v9 = vld [vmem:[%s2348_s4 + $0x210] sm:$0xff]  ;;  %v596_v10 = vld [vmem:[%s2348_s4 + $0xa00] sm:$0xff]  ;;  %v1828_v11 = vpack.c.bf16 %v599_v4, %v597_v3  ;;  %v345_v13 = vld [vmem:[%s2348_s4 + $0x228] sm:$0xff] }
  0x75   : > { %1809 = vmatprep.subr.bf16.mxu0 %v1808_v14  ;;  %v598_v12 = vld [vmem:[%s2348_s4 + $0xa10] sm:$0xff]  ;;  %v347_v14 = vld [vmem:[%s2348_s4 + $0x238] sm:$0xff]  ;;  %v601_v15 = vld [vmem:[%s2348_s4 + $0xa28] sm:$0xff]  ;;  %v1574_v18 = vpack.c.bf16 %v342_v9, %v340_v8 }
  0x76   : > { %v603_v16 = vld [vmem:[%s2348_s4 + $0xa38] sm:$0xff]  ;;  %v260_v17 = vld [vmem:[%s2361_s29] sm:$0xff]  ;;  %v1830_v20 = vpack.c.bf16 %v598_v12, %v596_v10  ;;  %v600_v24 = vld [vmem:[%s2348_s4 + $0xa20] sm:$0xff] }
  0x77   : > { %1555 = vmatpush1.bf16.msra.mxu1 %v1554_v21  ;;  %v268_v19 = vld [vmem:[%s2361_s29 + $0x40] sm:$0xff]  ;;  %v1576_v21 = vpack.c.bf16 %v347_v14, %v345_v13  ;;  %v1832_v25 = vpack.c.bf16 %v603_v16, %v601_v15  ;;  %v602_v26 = vld [vmem:[%s2348_s4 + $0xa30] sm:$0xff]  ;;  %v351_v28 = vld [vmem:[%s2348_s4 + $0x258] sm:$0xff] }
  0x78   : > { %1811 = vmatpush1.bf16.msra.mxu0 %v1810_v22  ;;  %1557 = vmatprep.subr.bf16.mxu1 %v1556_v23  ;;  %v344_v22 = vld [vmem:[%s2348_s4 + $0x220] sm:$0xff]  ;;  %v346_v23 = vld [vmem:[%s2348_s4 + $0x230] sm:$0xff]  ;;  %v605_v29 = vld [vmem:[%s2348_s4 + $0xa48] sm:$0xff]  ;;  %v1834_v32 = vpack.c.bf16 %v602_v26, %v600_v24 }
  0x79   : > { %1813 = vmatprep.subr.bf16.mxu0 %v1812_v27  ;;  %v349_v27 = vld [vmem:[%s2348_s4 + $0x248] sm:$0xff]  ;;  %v607_v30 = vld [vmem:[%s2348_s4 + $0xa58] sm:$0xff]  ;;  %v1578_v31 = vpack.c.bf16 %v346_v23, %v344_v22  ;;  %v604_v36 = vld [vmem:[%s2348_s4 + $0xa40] sm:$0xff] }
  0x7a   : > { %v1836_v37 = vpack.c.bf16 %v607_v30, %v605_v29  ;;  %v606_v38 = vld [vmem:[%s2348_s4 + $0xa50] sm:$0xff]  ;;  %v355_v40 = vld [vmem:[%s2348_s4 + $0x278] sm:$0xff]  ;;  %v609_v41 = vld [vmem:[%s2348_s4 + $0xa68] sm:$0xff] }
  0x7b   : > { %1559 = vmatpush1.bf16.msra.mxu1 %v1558_v33  ;;  %v1580_v33 = vpack.c.bf16 %v351_v28, %v349_v27  ;;  %v611_v42 = vld [vmem:[%s2348_s4 + $0xa78] sm:$0xff]  ;;  %v1838_v44 = vpack.c.bf16 %v606_v38, %v604_v36  ;;  %v608_v48 = vld [vmem:[%s2348_s4 + $0xa60] sm:$0xff]  ;;  %v610_v50 = vld [vmem:[%s2348_s4 + $0xa70] sm:$0xff] }
  0x7c   : > { %1815 = vmatpush1.bf16.msra.mxu0 %v1814_v34  ;;  %1561 = vmatprep.subr.bf16.mxu1 %v1560_v35  ;;  %v348_v34 = vld [vmem:[%s2348_s4 + $0x240] sm:$0xff]  ;;  %v350_v35 = vld [vmem:[%s2348_s4 + $0x250] sm:$0xff]  ;;  %v1840_v49 = vpack.c.bf16 %v611_v42, %v609_v41  ;;  %v359_v52 = vld [vmem:[%s2348_s4 + $0x298] sm:$0xff]  ;;  %v1842_v56 = vpack.c.bf16 %v610_v50, %v608_v48 }
  0x7d   : > { %1817 = vmatprep.subr.bf16.mxu0 %v1816_v39  ;;  %v353_v39 = vld [vmem:[%s2348_s4 + $0x268] sm:$0xff]  ;;  %v1582_v43 = vpack.c.bf16 %v350_v35, %v348_v34  ;;  %v615_v54 = vld [vmem:[%s2348_s4 + $0xa98] sm:$0xff]  ;;  %v612_v60 = vld [vmem:[%s2348_s4 + $0xa80] sm:$0xff] }
  0x7e   : > { %v613_v53 = vld [vmem:[%s2348_s4 + $0xa88] sm:$0xff]  ;;  %v614_v62 = vld [vmem:[%s2348_s4 + $0xa90] sm:$0xff]  ;;  %v363_v0 = vld [vmem:[%s2348_s4 + $0x2b8] sm:$0xff] }
  0x7f   : > { %1563 = vmatpush1.bf16.msra.mxu1 %v1562_v45  ;;  %v1584_v45 = vpack.c.bf16 %v355_v40, %v353_v39  ;;  %v1844_v61 = vpack.c.bf16 %v615_v54, %v613_v53  ;;  %v617_v1 = vld [vmem:[%s2348_s4 + $0xaa8] sm:$0xff]  ;;  %v619_v2 = vld [vmem:[%s2348_s4 + $0xab8] sm:$0xff]  ;;  %v1846_v4 = vpack.c.bf16 %v614_v62, %v612_v60  ;;  %v616_v8 = vld [vmem:[%s2348_s4 + $0xaa0] sm:$0xff] }
  0x80   : > { %1819 = vmatpush1.bf16.msra.mxu0 %v1818_v46  ;;  %1565 = vmatprep.subr.bf16.mxu1 %v1564_v47  ;;  %v352_v46 = vld [vmem:[%s2348_s4 + $0x260] sm:$0xff]  ;;  %v354_v47 = vld [vmem:[%s2348_s4 + $0x270] sm:$0xff]  ;;  %v1848_v9 = vpack.c.bf16 %v619_v2, %v617_v1  ;;  %v367_v12 = vld [vmem:[%s2348_s4 + $0x2d8] sm:$0xff] }
  0x81   : > { %1821 = vmatprep.subr.bf16.mxu0 %v1820_v51  ;;  %v357_v51 = vld [vmem:[%s2348_s4 + $0x288] sm:$0xff]  ;;  %v1586_v55 = vpack.c.bf16 %v354_v47, %v352_v46  ;;  %v618_v10 = vld [vmem:[%s2348_s4 + $0xab0] sm:$0xff]  ;;  %v623_v14 = vld [vmem:[%s2348_s4 + $0xad8] sm:$0xff] }
  0x82   : > { %v621_v13 = vld [vmem:[%s2348_s4 + $0xac8] sm:$0xff]  ;;  %v364_v16 = vld [vmem:[%s2348_s4 + $0x2c0] sm:$0xff]  ;;  %v371_v24 = vld [vmem:[%s2348_s4 + $0x2f8] sm:$0xff] }
  0x83   : > { %1567 = vmatpush1.bf16.msra.mxu1 %v1566_v57  ;;  %v1588_v57 = vpack.c.bf16 %v359_v52, %v357_v51  ;;  %v1852_v22 = vpack.c.bf16 %v623_v14, %v621_v13  ;;  %v369_v23 = vld [vmem:[%s2348_s4 + $0x2e8] sm:$0xff]  ;;  %v627_v27 = vld [vmem:[%s2348_s4 + $0xaf8] sm:$0xff]  ;;  %v271_v28 = vld [vmem:[%s2361_s29 + $0x58] sm:$0xff] }
  0x84   : > { %1823 = vmatpush1.bf16.msra.mxu0 %v1822_v58  ;;  %1569 = vmatprep.subr.bf16.mxu1 %v1568_v59  ;;  %v356_v58 = vld [vmem:[%s2348_s4 + $0x280] sm:$0xff]  ;;  %v358_v59 = vld [vmem:[%s2348_s4 + $0x290] sm:$0xff]  ;;  %v625_v26 = vld [vmem:[%s2348_s4 + $0xae8] sm:$0xff] }
  0x85   : > { %1825 = vmatprep.subr.bf16.mxu0 %v1824_v63  ;;  %v361_v63 = vld [vmem:[%s2348_s4 + $0x2a8] sm:$0xff]  ;;  %v1590_v3 = vpack.c.bf16 %v358_v59, %v356_v58  ;;  %v624_v34 = vld [vmem:[%s2348_s4 + $0xae0] sm:$0xff]  ;;  %v1856_v35 = vpack.c.bf16 %v627_v27, %v625_v26  ;;  %v626_v36 = vld [vmem:[%s2348_s4 + $0xaf0] sm:$0xff] }
  0x86   : > { %v375_v38 = vld [vmem:[%s2348_s4 + $0x318] sm:$0xff]  ;;  %v629_v39 = vld [vmem:[%s2348_s4 + $0xb08] sm:$0xff]  ;;  %v1858_v42 = vpack.c.bf16 %v626_v36, %v624_v34  ;;  %v628_v46 = vld [vmem:[%s2348_s4 + $0xb00] sm:$0xff] }
  0x87   : > { %1571 = vmatpush1.bf16.msra.mxu1 %v1570_v5  ;;  %v1592_v5 = vpack.c.bf16 %v363_v0, %v361_v63  ;;  %v631_v40 = vld [vmem:[%s2348_s4 + $0xb18] sm:$0xff]  ;;  %v630_v48 = vld [vmem:[%s2348_s4 + $0xb10] sm:$0xff]  ;;  %v633_v51 = vld [vmem:[%s2348_s4 + $0xb28] sm:$0xff] }
  0x88   : > { %1827 = vmatpush1.bf16.msra.mxu0 %v1826_v6  ;;  %1573 = vmatprep.subr.bf16.mxu1 %v1572_v7  ;;  %v360_v6 = vld [vmem:[%s2348_s4 + $0x2a0] sm:$0xff]  ;;  %v362_v7 = vld [vmem:[%s2348_s4 + $0x2b0] sm:$0xff]  ;;  %v1860_v47 = vpack.c.bf16 %v631_v40, %v629_v39  ;;  %v379_v50 = vld [vmem:[%s2348_s4 + $0x338] sm:$0xff]  ;;  %v1862_v54 = vpack.c.bf16 %v630_v48, %v628_v46 }
  0x89   : > { %1829 = vmatprep.subr.bf16.mxu0 %v1828_v11  ;;  %v365_v11 = vld [vmem:[%s2348_s4 + $0x2c8] sm:$0xff]  ;;  %v1594_v15 = vpack.c.bf16 %v362_v7, %v360_v6  ;;  %v635_v52 = vld [vmem:[%s2348_s4 + $0xb38] sm:$0xff]  ;;  %v632_v58 = vld [vmem:[%s2348_s4 + $0xb20] sm:$0xff] }
  0x8a   : > { %853 = vmatmul.mubr.f32.vlgmr.msra.gmra.mrb[0].mxu1 %v260_v17  ;;  %v1850_v17 = vpack.c.bf16 %v618_v10, %v616_v8  ;;  %v1864_v59 = vpack.c.bf16 %v635_v52, %v633_v51  ;;  %v634_v60 = vld [vmem:[%s2348_s4 + $0xb30] sm:$0xff]  ;;  %v383_v62 = vld [vmem:[%s2348_s4 + $0x358] sm:$0xff]  ;;  %v637_v63 = vld [vmem:[%s2348_s4 + $0xb48] sm:$0xff] }
  0x8b   : > { %1575 = vmatpush1.bf16.msra.mxu1 %v1574_v18  ;;  %1137 = vmatmul.mubr.f32.vlgmr.msra.gmra.mrb[0].mxu0 %v268_v19  ;;  %v1596_v18 = vpack.c.bf16 %v367_v12, %v365_v11  ;;  %v366_v19 = vld [vmem:[%s2348_s4 + $0x2d0] sm:$0xff]  ;;  %v639_v0 = vld [vmem:[%s2348_s4 + $0xb58] sm:$0xff]  ;;  %v1866_v2 = vpack.c.bf16 %v634_v60, %v632_v58  ;;  %v636_v6 = vld [vmem:[%s2348_s4 + $0xb40] sm:$0xff] }
  0x8c   : > { %1831 = vmatpush1.bf16.msra.mxu0 %v1830_v20  ;;  %1577 = vmatprep.subr.bf16.mxu1 %v1576_v21  ;;  %v620_v20 = vld [vmem:[%s2348_s4 + $0xac0] sm:$0xff]  ;;  %v622_v21 = vld [vmem:[%s2348_s4 + $0xad0] sm:$0xff]  ;;  %v1598_v29 = vpack.c.bf16 %v366_v19, %v364_v16  ;;  %v1868_v7 = vpack.c.bf16 %v639_v0, %v637_v63  ;;  %v387_v10 = vld [vmem:[%s2348_s4 + $0x378] sm:$0xff] }
  0x8d   : > { %1833 = vmatprep.subr.bf16.mxu0 %v1832_v25  ;;  %v263_v25 = vld [vmem:[%s2361_s29 + $0x18] sm:$0xff]  ;;  %1207 = vmatprep.mubr.f32.mxu0 %v271_v28  ;;  %v1854_v30 = vpack.c.bf16 %v622_v21, %v620_v20  ;;  %v638_v8 = vld [vmem:[%s2348_s4 + $0xb50] sm:$0xff]  ;;  %v641_v11 = vld [vmem:[%s2348_s4 + $0xb68] sm:$0xff] }
  0x8e   : > { %923 = vmatprep.mubr.f32.mxu1 %v263_v25  ;;  %v643_v12 = vld [vmem:[%s2348_s4 + $0xb78] sm:$0xff]  ;;  %v1870_v14 = vpack.c.bf16 %v638_v8, %v636_v6  ;;  %v384_v16 = vld [vmem:[%s2348_s4 + $0x360] sm:$0xff]  ;;  %v642_v20 = vld [vmem:[%s2348_s4 + $0xb70] sm:$0xff] }
  0x8f   : > { %1579 = vmatpush1.bf16.msra.mxu1 %v1578_v31  ;;  %v1600_v31 = vpack.c.bf16 %v371_v24, %v369_v23  ;;  %v1872_v19 = vpack.c.bf16 %v643_v12, %v641_v11  ;;  %v389_v21 = vld [vmem:[%s2348_s4 + $0x388] sm:$0xff]  ;;  %v647_v24 = vld [vmem:[%s2348_s4 + $0xb98] sm:$0xff]  ;;  %v388_v28 = vld [vmem:[%s2348_s4 + $0x380] sm:$0xff] }
  0x90   : > { %1835 = vmatpush1.bf16.msra.mxu0 %v1834_v32  ;;  %1581 = vmatprep.subr.bf16.mxu1 %v1580_v33  ;;  %v368_v32 = vld [vmem:[%s2348_s4 + $0x2e0] sm:$0xff]  ;;  %v370_v33 = vld [vmem:[%s2348_s4 + $0x2f0] sm:$0xff]  ;;  %v645_v23 = vld [vmem:[%s2348_s4 + $0xb88] sm:$0xff] }
  0x91   : > { %1837 = vmatprep.subr.bf16.mxu0 %v1836_v37  ;;  %v373_v37 = vld [vmem:[%s2348_s4 + $0x308] sm:$0xff]  ;;  %v1602_v41 = vpack.c.bf16 %v370_v33, %v368_v32  ;;  %v646_v32 = vld [vmem:[%s2348_s4 + $0xb90] sm:$0xff]  ;;  %v395_v34 = vld [vmem:[%s2348_s4 + $0x3b8] sm:$0xff] }
  0x92   : > { %v393_v33 = vld [vmem:[%s2348_s4 + $0x3a8] sm:$0xff]  ;;  %v651_v36 = vld [vmem:[%s2348_s4 + $0xbb8] sm:$0xff]  ;;  %v392_v40 = vld [vmem:[%s2348_s4 + $0x3a0] sm:$0xff] }
  0x93   : > { %1583 = vmatpush1.bf16.msra.mxu1 %v1582_v43  ;;  %v1604_v43 = vpack.c.bf16 %v375_v38, %v373_v37  ;;  %v1624_v39 = vpack.c.bf16 %v395_v34, %v393_v33  ;;  %v399_v46 = vld [vmem:[%s2348_s4 + $0x3d8] sm:$0xff]  ;;  %v396_v52 = vld [vmem:[%s2348_s4 + $0x3c0] sm:$0xff]  ;;  %v669_v33 = vld [vmem:[%s2348_s4 + $0xc48] sm:$0xff] }
  0x94   : > { %1839 = vmatpush1.bf16.msra.mxu0 %v1838_v44  ;;  %1585 = vmatprep.subr.bf16.mxu1 %v1584_v45  ;;  %v372_v44 = vld [vmem:[%s2348_s4 + $0x300] sm:$0xff]  ;;  %v374_v45 = vld [vmem:[%s2348_s4 + $0x310] sm:$0xff]  ;;  %v655_v48 = vld [vmem:[%s2348_s4 + $0xbd8] sm:$0xff] }
  0x95   : > { %1841 = vmatprep.subr.bf16.mxu0 %v1840_v49  ;;  %v377_v49 = vld [vmem:[%s2348_s4 + $0x328] sm:$0xff]  ;;  %v1606_v53 = vpack.c.bf16 %v374_v45, %v372_v44  ;;  %v650_v44 = vld [vmem:[%s2348_s4 + $0xbb0] sm:$0xff]  ;;  %v403_v58 = vld [vmem:[%s2348_s4 + $0x3f8] sm:$0xff] }
  0x96   : > { %v397_v45 = vld [vmem:[%s2348_s4 + $0x3c8] sm:$0xff]  ;;  %v659_v60 = vld [vmem:[%s2348_s4 + $0xbf8] sm:$0xff]  ;;  %v400_v0 = vld [vmem:[%s2348_s4 + $0x3e0] sm:$0xff] }
  0x97   : > { %1587 = vmatpush1.bf16.msra.mxu1 %v1586_v55  ;;  %v1608_v55 = vpack.c.bf16 %v379_v50, %v377_v49  ;;  %v1628_v51 = vpack.c.bf16 %v399_v46, %v397_v45  ;;  %v407_v6 = vld [vmem:[%s2348_s4 + $0x418] sm:$0xff]  ;;  %v404_v12 = vld [vmem:[%s2348_s4 + $0x400] sm:$0xff]  ;;  %v417_v45 = vld [vmem:[%s2348_s4 + $0x468] sm:$0xff] }
  0x98   : > { %1843 = vmatpush1.bf16.msra.mxu0 %v1842_v56  ;;  %1589 = vmatprep.subr.bf16.mxu1 %v1588_v57  ;;  %v376_v56 = vld [vmem:[%s2348_s4 + $0x320] sm:$0xff]  ;;  %v378_v57 = vld [vmem:[%s2348_s4 + $0x330] sm:$0xff]  ;;  %v663_v8 = vld [vmem:[%s2348_s4 + $0xc18] sm:$0xff] }
  0x99   : > { %1845 = vmatprep.subr.bf16.mxu0 %v1844_v61  ;;  %v381_v61 = vld [vmem:[%s2348_s4 + $0x348] sm:$0xff]  ;;  %v1610_v1 = vpack.c.bf16 %v378_v57, %v376_v56  ;;  %v654_v56 = vld [vmem:[%s2348_s4 + $0xbd0] sm:$0xff]  ;;  %v671_v34 = vld [vmem:[%s2348_s4 + $0xc58] sm:$0xff] }
  0x9a   : > { %v401_v57 = vld [vmem:[%s2348_s4 + $0x3e8] sm:$0xff]  ;;  %v419_v46 = vld [vmem:[%s2348_s4 + $0x478] sm:$0xff] }
  0x9b   : > { %1591 = vmatpush1.bf16.msra.mxu1 %v1590_v3  ;;  %v1612_v3 = vpack.c.bf16 %v383_v62, %v381_v61  ;;  %v1632_v63 = vpack.c.bf16 %v403_v58, %v401_v57  ;;  %v421_v57 = vld [vmem:[%s2348_s4 + $0x488] sm:$0xff]  ;;  %v423_v58 = vld [vmem:[%s2348_s4 + $0x498] sm:$0xff] }
  0x9c   : > { %1847 = vmatpush1.bf16.msra.mxu0 %v1846_v4  ;;  %1593 = vmatprep.subr.bf16.mxu1 %v1592_v5  ;;  %v380_v4 = vld [vmem:[%s2348_s4 + $0x340] sm:$0xff]  ;;  %v382_v5 = vld [vmem:[%s2348_s4 + $0x350] sm:$0xff] }
  0x9d   : > { %1849 = vmatprep.subr.bf16.mxu0 %v1848_v9  ;;  %v385_v9 = vld [vmem:[%s2348_s4 + $0x368] sm:$0xff]  ;;  %v1614_v13 = vpack.c.bf16 %v382_v5, %v380_v4  ;;  %v658_v4 = vld [vmem:[%s2348_s4 + $0xbf0] sm:$0xff] }
  0x9e   : > { %v405_v5 = vld [vmem:[%s2348_s4 + $0x408] sm:$0xff] }
  0x9f   : > { %1595 = vmatpush1.bf16.msra.mxu1 %v1594_v15  ;;  %v1616_v15 = vpack.c.bf16 %v387_v10, %v385_v9  ;;  %v1636_v11 = vpack.c.bf16 %v407_v6, %v405_v5  ;;  %v425_v5 = vld [vmem:[%s2348_s4 + $0x4a8] sm:$0xff]  ;;  %v427_v6 = vld [vmem:[%s2348_s4 + $0x4b8] sm:$0xff] }
  0xa0   : > { %1851 = vmatpush1.bf16.msra.mxu0 %v1850_v17  ;;  %1597 = vmatprep.subr.bf16.mxu1 %v1596_v18  ;;  %v386_v17 = vld [vmem:[%s2348_s4 + $0x370] sm:$0xff]  ;;  %v640_v18 = vld [vmem:[%s2348_s4 + $0xb60] sm:$0xff] }
  0xa1   : > { %1853 = vmatprep.subr.bf16.mxu0 %v1852_v22  ;;  %v391_v22 = vld [vmem:[%s2348_s4 + $0x398] sm:$0xff]  ;;  %v1618_v25 = vpack.c.bf16 %v386_v17, %v384_v16  ;;  %v1874_v26 = vpack.c.bf16 %v642_v20, %v640_v18  ;;  %v662_v16 = vld [vmem:[%s2348_s4 + $0xc10] sm:$0xff]  ;;  %v409_v17 = vld [vmem:[%s2348_s4 + $0x428] sm:$0xff] }
  0xa2   : > { %v1620_v27 = vpack.c.bf16 %v391_v22, %v389_v21  ;;  %v411_v18 = vld [vmem:[%s2348_s4 + $0x438] sm:$0xff] }
  0xa3   : > { %1599 = vmatpush1.bf16.msra.mxu1 %v1598_v29  ;;  %v390_v29 = vld [vmem:[%s2348_s4 + $0x390] sm:$0xff]  ;;  %v667_v20 = vld [vmem:[%s2348_s4 + $0xc38] sm:$0xff] }
  0xa4   : > { %1855 = vmatpush1.bf16.msra.mxu0 %v1854_v30  ;;  %1601 = vmatprep.subr.bf16.mxu1 %v1600_v31  ;;  %v644_v30 = vld [vmem:[%s2348_s4 + $0xb80] sm:$0xff]  ;;  %v1876_v31 = vpack.c.bf16 %v647_v24, %v645_v23  ;;  %v1622_v37 = vpack.c.bf16 %v390_v29, %v388_v28  ;;  %v262_v21 = vld [vmem:[%s2361_s29 + $0x10] sm:$0xff] }
  0xa5   : > { %1857 = vmatprep.subr.bf16.mxu0 %v1856_v35  ;;  %v649_v35 = vld [vmem:[%s2348_s4 + $0xba8] sm:$0xff]  ;;  %v1878_v38 = vpack.c.bf16 %v646_v32, %v644_v30  ;;  %v270_v23 = vld [vmem:[%s2361_s29 + $0x50] sm:$0xff]  ;;  %v664_v28 = vld [vmem:[%s2348_s4 + $0xc20] sm:$0xff] }
  0xa6   : > { %v666_v30 = vld [vmem:[%s2348_s4 + $0xc30] sm:$0xff]  ;;  %v415_v32 = vld [vmem:[%s2348_s4 + $0x458] sm:$0xff] }
  0xa7   : > { %1603 = vmatpush1.bf16.msra.mxu1 %v1602_v41  ;;  %v394_v41 = vld [vmem:[%s2348_s4 + $0x3b0] sm:$0xff] }
  0xa8   : > { %1859 = vmatpush1.bf16.msra.mxu0 %v1858_v42  ;;  %1605 = vmatprep.subr.bf16.mxu1 %v1604_v43  ;;  %v648_v42 = vld [vmem:[%s2348_s4 + $0xba0] sm:$0xff]  ;;  %v1880_v43 = vpack.c.bf16 %v651_v36, %v649_v35  ;;  %v1626_v49 = vpack.c.bf16 %v394_v41, %v392_v40  ;;  %v265_v35 = vld [vmem:[%s2361_s29 + $0x28] sm:$0xff] }
  0xa9   : > { %1861 = vmatprep.subr.bf16.mxu0 %v1860_v47  ;;  %v653_v47 = vld [vmem:[%s2348_s4 + $0xbc8] sm:$0xff]  ;;  %v1882_v50 = vpack.c.bf16 %v650_v44, %v648_v42  ;;  %v412_v40 = vld [vmem:[%s2348_s4 + $0x440] sm:$0xff]  ;;  %v414_v41 = vld [vmem:[%s2348_s4 + $0x450] sm:$0xff] }
  0xaa   : > { %v668_v42 = vld [vmem:[%s2348_s4 + $0xc40] sm:$0xff]  ;;  %v670_v44 = vld [vmem:[%s2348_s4 + $0xc50] sm:$0xff] }
  0xab   : > { %1607 = vmatpush1.bf16.msra.mxu1 %v1606_v53  ;;  %v398_v53 = vld [vmem:[%s2348_s4 + $0x3d0] sm:$0xff] }
  0xac   : > { %1863 = vmatpush1.bf16.msra.mxu0 %v1862_v54  ;;  %1609 = vmatprep.subr.bf16.mxu1 %v1608_v55  ;;  %v652_v54 = vld [vmem:[%s2348_s4 + $0xbc0] sm:$0xff]  ;;  %v1884_v55 = vpack.c.bf16 %v655_v48, %v653_v47  ;;  %v1630_v61 = vpack.c.bf16 %v398_v53, %v396_v52  ;;  %v673_v47 = vld [vmem:[%s2348_s4 + $0xc68] sm:$0xff]  ;;  %v675_v48 = vld [vmem:[%s2348_s4 + $0xc78] sm:$0xff] }
  0xad   : > { %1865 = vmatprep.subr.bf16.mxu0 %v1864_v59  ;;  %v657_v59 = vld [vmem:[%s2348_s4 + $0xbe8] sm:$0xff]  ;;  %v1886_v62 = vpack.c.bf16 %v654_v56, %v652_v54  ;;  %v416_v52 = vld [vmem:[%s2348_s4 + $0x460] sm:$0xff]  ;;  %v418_v53 = vld [vmem:[%s2348_s4 + $0x470] sm:$0xff] }
  0xae   : > { %v672_v54 = vld [vmem:[%s2348_s4 + $0xc60] sm:$0xff]  ;;  %v674_v56 = vld [vmem:[%s2348_s4 + $0xc70] sm:$0xff] }
  0xaf   : > { %1611 = vmatpush1.bf16.msra.mxu1 %v1610_v1  ;;  %v402_v1 = vld [vmem:[%s2348_s4 + $0x3f0] sm:$0xff] }
  0xb0   : > { %1867 = vmatpush1.bf16.msra.mxu0 %v1866_v2  ;;  %1613 = vmatprep.subr.bf16.mxu1 %v1612_v3  ;;  %v656_v2 = vld [vmem:[%s2348_s4 + $0xbe0] sm:$0xff]  ;;  %v1888_v3 = vpack.c.bf16 %v659_v60, %v657_v59  ;;  %v1634_v9 = vpack.c.bf16 %v402_v1, %v400_v0  ;;  %v677_v59 = vld [vmem:[%s2348_s4 + $0xc88] sm:$0xff]  ;;  %v679_v60 = vld [vmem:[%s2348_s4 + $0xc98] sm:$0xff] }
  0xb1   : > { %1869 = vmatprep.subr.bf16.mxu0 %v1868_v7  ;;  %v661_v7 = vld [vmem:[%s2348_s4 + $0xc08] sm:$0xff]  ;;  %v1890_v10 = vpack.c.bf16 %v658_v4, %v656_v2  ;;  %v420_v0 = vld [vmem:[%s2348_s4 + $0x480] sm:$0xff]  ;;  %v422_v1 = vld [vmem:[%s2348_s4 + $0x490] sm:$0xff] }
  0xb2   : > { %v676_v2 = vld [vmem:[%s2348_s4 + $0xc80] sm:$0xff]  ;;  %v678_v4 = vld [vmem:[%s2348_s4 + $0xc90] sm:$0xff] }
  0xb3   : > { %1615 = vmatpush1.bf16.msra.mxu1 %v1614_v13  ;;  %v406_v13 = vld [vmem:[%s2348_s4 + $0x410] sm:$0xff] }
  0xb4   : > { %1871 = vmatpush1.bf16.msra.mxu0 %v1870_v14  ;;  %1617 = vmatprep.subr.bf16.mxu1 %v1616_v15  ;;  %v660_v14 = vld [vmem:[%s2348_s4 + $0xc00] sm:$0xff]  ;;  %v1892_v15 = vpack.c.bf16 %v663_v8, %v661_v7  ;;  %v1638_v22 = vpack.c.bf16 %v406_v13, %v404_v12  ;;  %v681_v7 = vld [vmem:[%s2348_s4 + $0xca8] sm:$0xff]  ;;  %v683_v8 = vld [vmem:[%s2348_s4 + $0xcb8] sm:$0xff] }
  0xb5   : > { %1873 = vmatprep.subr.bf16.mxu0 %v1872_v19  ;;  %v665_v19 = vld [vmem:[%s2348_s4 + $0xc28] sm:$0xff]  ;;  %v1894_v24 = vpack.c.bf16 %v662_v16, %v660_v14  ;;  %v424_v12 = vld [vmem:[%s2348_s4 + $0x4a0] sm:$0xff]  ;;  %v426_v13 = vld [vmem:[%s2348_s4 + $0x4b0] sm:$0xff] }
  0xb6   : > { %v1896_v29 = vpack.c.bf16 %v667_v20, %v665_v19  ;;  %v680_v14 = vld [vmem:[%s2348_s4 + $0xca0] sm:$0xff]  ;;  %v682_v16 = vld [vmem:[%s2348_s4 + $0xcb0] sm:$0xff]  ;;  %v685_v19 = vld [vmem:[%s2348_s4 + $0xcc8] sm:$0xff] }
  0xb7   : > { %1619 = vmatpush1.bf16.msra.mxu1 %v1618_v25  ;;  %v1640_v25 = vpack.c.bf16 %v411_v18, %v409_v17  ;;  %v429_v17 = vld [vmem:[%s2348_s4 + $0x4c8] sm:$0xff]  ;;  %v431_v18 = vld [vmem:[%s2348_s4 + $0x4d8] sm:$0xff] }
  0xb8   : > { %1875 = vmatpush1.bf16.msra.mxu0 %v1874_v26  ;;  %1621 = vmatprep.subr.bf16.mxu1 %v1620_v27  ;;  %v408_v26 = vld [vmem:[%s2348_s4 + $0x420] sm:$0xff]  ;;  %v410_v27 = vld [vmem:[%s2348_s4 + $0x430] sm:$0xff]  ;;  %v687_v20 = vld [vmem:[%s2348_s4 + $0xcd8] sm:$0xff] }
  0xb9   : > { %1877 = vmatprep.subr.bf16.mxu0 %v1876_v31  ;;  %v413_v31 = vld [vmem:[%s2348_s4 + $0x448] sm:$0xff]  ;;  %v1642_v36 = vpack.c.bf16 %v410_v27, %v408_v26  ;;  %v684_v26 = vld [vmem:[%s2348_s4 + $0xcc0] sm:$0xff]  ;;  %v1916_v27 = vpack.c.bf16 %v687_v20, %v685_v19 }
  0xba   : > { %v448_v20 = vld [vmem:[%s2348_s4 + $0x560] sm:$0xff] }
  0xbb   : > { %1623 = vmatpush1.bf16.msra.mxu1 %v1622_v37  ;;  %v273_v37 = vld [vmem:[%s2361_s29 + $0x68] sm:$0xff] }
  0xbc   : > { %1879 = vmatpush1.bf16.msra.mxu0 %v1878_v38  ;;  %1625 = vmatprep.subr.bf16.mxu1 %v1624_v39  ;;  %v1898_v38 = vpack.c.bf16 %v666_v30, %v664_v28  ;;  %v1644_v39 = vpack.c.bf16 %v415_v32, %v413_v31  ;;  %v686_v28 = vld [vmem:[%s2348_s4 + $0xcd0] sm:$0xff]  ;;  %v435_v30 = vld [vmem:[%s2348_s4 + $0x4f8] sm:$0xff]  ;;  %v689_v31 = vld [vmem:[%s2348_s4 + $0xce8] sm:$0xff] }
  0xbd   : > { %1881 = vmatprep.subr.bf16.mxu0 %v1880_v43  ;;  %v1900_v43 = vpack.c.bf16 %v671_v34, %v669_v33  ;;  %v691_v32 = vld [vmem:[%s2348_s4 + $0xcf8] sm:$0xff]  ;;  %v1918_v34 = vpack.c.bf16 %v686_v28, %v684_v26 }
  0xbe   : > { %v455_v26 = vld [vmem:[%s2348_s4 + $0x598] sm:$0xff] }
  0xbf   : > { %1627 = vmatpush1.bf16.msra.mxu1 %v1626_v49  ;;  %v1646_v49 = vpack.c.bf16 %v414_v41, %v412_v40  ;;  %v690_v40 = vld [vmem:[%s2348_s4 + $0xcf0] sm:$0xff]  ;;  %v437_v41 = vld [vmem:[%s2348_s4 + $0x508] sm:$0xff]  ;;  %v711_v28 = vld [vmem:[%s2348_s4 + $0xd98] sm:$0xff] }
  0xc0   : > { %1883 = vmatpush1.bf16.msra.mxu0 %v1882_v50  ;;  %1629 = vmatprep.subr.bf16.mxu1 %v1628_v51  ;;  %v1902_v50 = vpack.c.bf16 %v670_v44, %v668_v42  ;;  %v1648_v51 = vpack.c.bf16 %v419_v46, %v417_v45  ;;  %v439_v42 = vld [vmem:[%s2348_s4 + $0x518] sm:$0xff] }
  0xc1   : > { %1885 = vmatprep.subr.bf16.mxu0 %v1884_v55  ;;  %v1904_v55 = vpack.c.bf16 %v675_v48, %v673_v47  ;;  %v695_v44 = vld [vmem:[%s2348_s4 + $0xd18] sm:$0xff]  ;;  %v1668_v47 = vpack.c.bf16 %v439_v42, %v437_v41  ;;  %v436_v48 = vld [vmem:[%s2348_s4 + $0x500] sm:$0xff] }
  0xc3   : > { %1631 = vmatpush1.bf16.msra.mxu1 %v1630_v61  ;;  %v1650_v61 = vpack.c.bf16 %v418_v53, %v416_v52  ;;  %v694_v52 = vld [vmem:[%s2348_s4 + $0xd10] sm:$0xff]  ;;  %v441_v53 = vld [vmem:[%s2348_s4 + $0x528] sm:$0xff] }
  0xc4   : > { %1887 = vmatpush1.bf16.msra.mxu0 %v1886_v62  ;;  %1633 = vmatprep.subr.bf16.mxu1 %v1632_v63  ;;  %v1906_v62 = vpack.c.bf16 %v674_v56, %v672_v54  ;;  %v1652_v63 = vpack.c.bf16 %v423_v58, %v421_v57  ;;  %v443_v54 = vld [vmem:[%s2348_s4 + $0x538] sm:$0xff] }
  0xc5   : > { %1889 = vmatprep.subr.bf16.mxu0 %v1888_v3  ;;  %v1908_v3 = vpack.c.bf16 %v679_v60, %v677_v59  ;;  %v699_v56 = vld [vmem:[%s2348_s4 + $0xd38] sm:$0xff]  ;;  %v1672_v59 = vpack.c.bf16 %v443_v54, %v441_v53  ;;  %v440_v60 = vld [vmem:[%s2348_s4 + $0x520] sm:$0xff] }
  0xc7   : > { %1635 = vmatpush1.bf16.msra.mxu1 %v1634_v9  ;;  %v1654_v9 = vpack.c.bf16 %v422_v1, %v420_v0  ;;  %v698_v0 = vld [vmem:[%s2348_s4 + $0xd30] sm:$0xff]  ;;  %v445_v1 = vld [vmem:[%s2348_s4 + $0x548] sm:$0xff] }
  0xc8   : > { %1891 = vmatpush1.bf16.msra.mxu0 %v1890_v10  ;;  %1637 = vmatprep.subr.bf16.mxu1 %v1636_v11  ;;  %v1910_v10 = vpack.c.bf16 %v678_v4, %v676_v2  ;;  %v1656_v11 = vpack.c.bf16 %v427_v6, %v425_v5  ;;  %v447_v2 = vld [vmem:[%s2348_s4 + $0x558] sm:$0xff] }
  0xc9   : > { %1893 = vmatprep.subr.bf16.mxu0 %v1892_v15  ;;  %v1912_v15 = vpack.c.bf16 %v683_v8, %v681_v7  ;;  %v703_v4 = vld [vmem:[%s2348_s4 + $0xd58] sm:$0xff]  ;;  %v1676_v7 = vpack.c.bf16 %v447_v2, %v445_v1  ;;  %v444_v8 = vld [vmem:[%s2348_s4 + $0x540] sm:$0xff] }
  0xca   : > { %924 = vmatmul.mubr.f32.vlgmr.msra.gmra.mrb[0].mxu1 %v262_v21  ;;  %v1658_v21 = vpack.c.bf16 %v426_v13, %v424_v12  ;;  %v702_v12 = vld [vmem:[%s2348_s4 + $0xd50] sm:$0xff]  ;;  %v449_v13 = vld [vmem:[%s2348_s4 + $0x568] sm:$0xff] }
  0xcb   : > { %1639 = vmatpush1.bf16.msra.mxu1 %v1638_v22  ;;  %1208 = vmatmul.mubr.f32.vlgmr.msra.gmra.mrb[0].mxu0 %v270_v23  ;;  %v1914_v22 = vpack.c.bf16 %v682_v16, %v680_v14  ;;  %v1660_v23 = vpack.c.bf16 %v431_v18, %v429_v17  ;;  %v451_v14 = vld [vmem:[%s2348_s4 + $0x578] sm:$0xff] }
  0xcc   : > { %1895 = vmatpush1.bf16.msra.mxu0 %v1894_v24  ;;  %1641 = vmatprep.subr.bf16.mxu1 %v1640_v25  ;;  %v428_v24 = vld [vmem:[%s2348_s4 + $0x4c0] sm:$0xff]  ;;  %v430_v25 = vld [vmem:[%s2348_s4 + $0x4d0] sm:$0xff]  ;;  %v707_v16 = vld [vmem:[%s2348_s4 + $0xd78] sm:$0xff]  ;;  %v1680_v19 = vpack.c.bf16 %v451_v14, %v449_v13 }
  0xcd   : > { %1897 = vmatprep.subr.bf16.mxu0 %v1896_v29  ;;  %994 = vmatprep.mubr.f32.mxu1 %v265_v35  ;;  %v433_v29 = vld [vmem:[%s2348_s4 + $0x4e8] sm:$0xff]  ;;  %v1662_v33 = vpack.c.bf16 %v430_v25, %v428_v24  ;;  %v706_v24 = vld [vmem:[%s2348_s4 + $0xd70] sm:$0xff] }
  0xce   : > { %1278 = vmatprep.mubr.f32.mxu0 %v273_v37  ;;  %v1664_v35 = vpack.c.bf16 %v435_v30, %v433_v29  ;;  %v434_v37 = vld [vmem:[%s2348_s4 + $0x4f0] sm:$0xff]  ;;  %v453_v25 = vld [vmem:[%s2348_s4 + $0x588] sm:$0xff] }
  0xcf   : > { %1643 = vmatpush1.bf16.msra.mxu1 %v1642_v36  ;;  %v432_v36 = vld [vmem:[%s2348_s4 + $0x4e0] sm:$0xff] }
  0xd0   : > { %1899 = vmatpush1.bf16.msra.mxu0 %v1898_v38  ;;  %1645 = vmatprep.subr.bf16.mxu1 %v1644_v39  ;;  %v688_v38 = vld [vmem:[%s2348_s4 + $0xce0] sm:$0xff]  ;;  %v1920_v39 = vpack.c.bf16 %v691_v32, %v689_v31  ;;  %v1666_v45 = vpack.c.bf16 %v434_v37, %v432_v36  ;;  %v1684_v31 = vpack.c.bf16 %v455_v26, %v453_v25  ;;  %v710_v36 = vld [vmem:[%s2348_s4 + $0xd90] sm:$0xff]  ;;  %v457_v37 = vld [vmem:[%s2348_s4 + $0x5a8] sm:$0xff] }
  0xd1   : > { %1901 = vmatprep.subr.bf16.mxu0 %v1900_v43  ;;  %v693_v43 = vld [vmem:[%s2348_s4 + $0xd08] sm:$0xff]  ;;  %v1922_v46 = vpack.c.bf16 %v690_v40, %v688_v38  ;;  %v452_v32 = vld [vmem:[%s2348_s4 + $0x580] sm:$0xff]  ;;  %v459_v38 = vld [vmem:[%s2348_s4 + $0x5b8] sm:$0xff] }
  0xd2   : > { %v715_v40 = vld [vmem:[%s2348_s4 + $0xdb8] sm:$0xff]  ;;  %v264_v25 = vld [vmem:[%s2361_s29 + $0x20] sm:$0xff] }
  0xd3   : > { %1647 = vmatpush1.bf16.msra.mxu1 %v1646_v49  ;;  %v438_v49 = vld [vmem:[%s2348_s4 + $0x510] sm:$0xff] }
  0xd4   : > { %1903 = vmatpush1.bf16.msra.mxu0 %v1902_v50  ;;  %1649 = vmatprep.subr.bf16.mxu1 %v1648_v51  ;;  %v692_v50 = vld [vmem:[%s2348_s4 + $0xd00] sm:$0xff]  ;;  %v1924_v51 = vpack.c.bf16 %v695_v44, %v693_v43  ;;  %v1670_v57 = vpack.c.bf16 %v438_v49, %v436_v48  ;;  %v1688_v43 = vpack.c.bf16 %v459_v38, %v457_v37  ;;  %v714_v48 = vld [vmem:[%s2348_s4 + $0xdb0] sm:$0xff]  ;;  %v461_v49 = vld [vmem:[%s2348_s4 + $0x5c8] sm:$0xff] }
  0xd5   : > { %1905 = vmatprep.subr.bf16.mxu0 %v1904_v55  ;;  %v697_v55 = vld [vmem:[%s2348_s4 + $0xd28] sm:$0xff]  ;;  %v1926_v58 = vpack.c.bf16 %v694_v52, %v692_v50  ;;  %v456_v44 = vld [vmem:[%s2348_s4 + $0x5a0] sm:$0xff]  ;;  %v463_v50 = vld [vmem:[%s2348_s4 + $0x5d8] sm:$0xff] }
  0xd6   : > { %v719_v52 = vld [vmem:[%s2348_s4 + $0xdd8] sm:$0xff]  ;;  %v733_v37 = vld [vmem:[%s2348_s4 + $0xe48] sm:$0xff] }
  0xd7   : > { %1651 = vmatpush1.bf16.msra.mxu1 %v1650_v61  ;;  %v442_v61 = vld [vmem:[%s2348_s4 + $0x530] sm:$0xff]  ;;  %v735_v38 = vld [vmem:[%s2348_s4 + $0xe58] sm:$0xff] }
  0xd8   : > { %1907 = vmatpush1.bf16.msra.mxu0 %v1906_v62  ;;  %1653 = vmatprep.subr.bf16.mxu1 %v1652_v63  ;;  %v696_v62 = vld [vmem:[%s2348_s4 + $0xd20] sm:$0xff]  ;;  %v1928_v63 = vpack.c.bf16 %v699_v56, %v697_v55  ;;  %v1674_v5 = vpack.c.bf16 %v442_v61, %v440_v60  ;;  %v1692_v55 = vpack.c.bf16 %v463_v50, %v461_v49  ;;  %v718_v60 = vld [vmem:[%s2348_s4 + $0xdd0] sm:$0xff]  ;;  %v465_v61 = vld [vmem:[%s2348_s4 + $0x5e8] sm:$0xff] }
  0xd9   : > { %1909 = vmatprep.subr.bf16.mxu0 %v1908_v3  ;;  %v701_v3 = vld [vmem:[%s2348_s4 + $0xd48] sm:$0xff]  ;;  %v1930_v6 = vpack.c.bf16 %v698_v0, %v696_v62  ;;  %v460_v56 = vld [vmem:[%s2348_s4 + $0x5c0] sm:$0xff]  ;;  %v467_v62 = vld [vmem:[%s2348_s4 + $0x5f8] sm:$0xff] }
  0xda   : > { %v723_v0 = vld [vmem:[%s2348_s4 + $0xdf8] sm:$0xff]  ;;  %v481_v49 = vld [vmem:[%s2348_s4 + $0x668] sm:$0xff] }
  0xdb   : > { %1655 = vmatpush1.bf16.msra.mxu1 %v1654_v9  ;;  %v446_v9 = vld [vmem:[%s2348_s4 + $0x550] sm:$0xff]  ;;  %v483_v50 = vld [vmem:[%s2348_s4 + $0x678] sm:$0xff] }
  0xdc   : > { %1911 = vmatpush1.bf16.msra.mxu0 %v1910_v10  ;;  %1657 = vmatprep.subr.bf16.mxu1 %v1656_v11  ;;  %v700_v10 = vld [vmem:[%s2348_s4 + $0xd40] sm:$0xff]  ;;  %v1932_v11 = vpack.c.bf16 %v703_v4, %v701_v3  ;;  %v1678_v17 = vpack.c.bf16 %v446_v9, %v444_v8  ;;  %v1696_v3 = vpack.c.bf16 %v467_v62, %v465_v61  ;;  %v722_v8 = vld [vmem:[%s2348_s4 + $0xdf0] sm:$0xff]  ;;  %v469_v9 = vld [vmem:[%s2348_s4 + $0x608] sm:$0xff] }
  0xdd   : > { %1913 = vmatprep.subr.bf16.mxu0 %v1912_v15  ;;  %v705_v15 = vld [vmem:[%s2348_s4 + $0xd68] sm:$0xff]  ;;  %v1934_v18 = vpack.c.bf16 %v702_v12, %v700_v10  ;;  %v464_v4 = vld [vmem:[%s2348_s4 + $0x5e0] sm:$0xff]  ;;  %v471_v10 = vld [vmem:[%s2348_s4 + $0x618] sm:$0xff] }
  0xde   : > { %v727_v12 = vld [vmem:[%s2348_s4 + $0xe18] sm:$0xff]  ;;  %v485_v61 = vld [vmem:[%s2348_s4 + $0x688] sm:$0xff] }
  0xdf   : > { %1659 = vmatpush1.bf16.msra.mxu1 %v1658_v21  ;;  %v450_v21 = vld [vmem:[%s2348_s4 + $0x570] sm:$0xff]  ;;  %v487_v62 = vld [vmem:[%s2348_s4 + $0x698] sm:$0xff] }
  0xe0   : > { %1915 = vmatpush1.bf16.msra.mxu0 %v1914_v22  ;;  %1661 = vmatprep.subr.bf16.mxu1 %v1660_v23  ;;  %v704_v22 = vld [vmem:[%s2348_s4 + $0xd60] sm:$0xff]  ;;  %v1936_v23 = vpack.c.bf16 %v707_v16, %v705_v15  ;;  %v1682_v29 = vpack.c.bf16 %v450_v21, %v448_v20  ;;  %v1700_v15 = vpack.c.bf16 %v471_v10, %v469_v9  ;;  %v726_v20 = vld [vmem:[%s2348_s4 + $0xe10] sm:$0xff]  ;;  %v473_v21 = vld [vmem:[%s2348_s4 + $0x628] sm:$0xff] }
  0xe1   : > { %1917 = vmatprep.subr.bf16.mxu0 %v1916_v27  ;;  %v709_v27 = vld [vmem:[%s2348_s4 + $0xd88] sm:$0xff]  ;;  %v1938_v30 = vpack.c.bf16 %v706_v24, %v704_v22  ;;  %v468_v16 = vld [vmem:[%s2348_s4 + $0x600] sm:$0xff]  ;;  %v475_v22 = vld [vmem:[%s2348_s4 + $0x638] sm:$0xff] }
  0xe2   : > { %v731_v24 = vld [vmem:[%s2348_s4 + $0xe38] sm:$0xff]  ;;  %v489_v9 = vld [vmem:[%s2348_s4 + $0x6a8] sm:$0xff] }
  0xe3   : > { %1663 = vmatpush1.bf16.msra.mxu1 %v1662_v33  ;;  %v454_v33 = vld [vmem:[%s2348_s4 + $0x590] sm:$0xff]  ;;  %v491_v10 = vld [vmem:[%s2348_s4 + $0x6b8] sm:$0xff] }
  0xe4   : > { %1919 = vmatpush1.bf16.msra.mxu0 %v1918_v34  ;;  %1665 = vmatprep.subr.bf16.mxu1 %v1664_v35  ;;  %v708_v34 = vld [vmem:[%s2348_s4 + $0xd80] sm:$0xff]  ;;  %v1940_v35 = vpack.c.bf16 %v711_v28, %v709_v27  ;;  %v1686_v41 = vpack.c.bf16 %v454_v33, %v452_v32  ;;  %v272_v27 = vld [vmem:[%s2361_s29 + $0x60] sm:$0xff] }
  0xe5   : > { %1921 = vmatprep.subr.bf16.mxu0 %v1920_v39  ;;  %v713_v39 = vld [vmem:[%s2348_s4 + $0xda8] sm:$0xff]  ;;  %v1942_v42 = vpack.c.bf16 %v710_v36, %v708_v34  ;;  %v728_v32 = vld [vmem:[%s2348_s4 + $0xe20] sm:$0xff]  ;;  %v730_v34 = vld [vmem:[%s2348_s4 + $0xe30] sm:$0xff] }
  0xe6   : > { %v479_v36 = vld [vmem:[%s2348_s4 + $0x658] sm:$0xff] }
  0xe7   : > { %1667 = vmatpush1.bf16.msra.mxu1 %v1666_v45  ;;  %v458_v45 = vld [vmem:[%s2348_s4 + $0x5b0] sm:$0xff] }
  0xe8   : > { %1923 = vmatpush1.bf16.msra.mxu0 %v1922_v46  ;;  %1669 = vmatprep.subr.bf16.mxu1 %v1668_v47  ;;  %v712_v46 = vld [vmem:[%s2348_s4 + $0xda0] sm:$0xff]  ;;  %v1944_v47 = vpack.c.bf16 %v715_v40, %v713_v39  ;;  %v1690_v53 = vpack.c.bf16 %v458_v45, %v456_v44  ;;  %v478_v45 = vld [vmem:[%s2348_s4 + $0x650] sm:$0xff] }
  0xe9   : > { %1925 = vmatprep.subr.bf16.mxu0 %v1924_v51  ;;  %v717_v51 = vld [vmem:[%s2348_s4 + $0xdc8] sm:$0xff]  ;;  %v1946_v54 = vpack.c.bf16 %v714_v48, %v712_v46  ;;  %v267_v39 = vld [vmem:[%s2361_s29 + $0x38] sm:$0xff]  ;;  %v734_v48 = vld [vmem:[%s2348_s4 + $0xe50] sm:$0xff] }
  0xea   : > { %v476_v44 = vld [vmem:[%s2348_s4 + $0x640] sm:$0xff] }
  0xeb   : > { %1671 = vmatpush1.bf16.msra.mxu1 %v1670_v57  ;;  %v462_v57 = vld [vmem:[%s2348_s4 + $0x5d0] sm:$0xff]  ;;  %v732_v46 = vld [vmem:[%s2348_s4 + $0xe40] sm:$0xff] }
  0xec   : > { %1927 = vmatpush1.bf16.msra.mxu0 %v1926_v58  ;;  %1673 = vmatprep.subr.bf16.mxu1 %v1672_v59  ;;  %v716_v58 = vld [vmem:[%s2348_s4 + $0xdc0] sm:$0xff]  ;;  %v1948_v59 = vpack.c.bf16 %v719_v52, %v717_v51  ;;  %v1694_v1 = vpack.c.bf16 %v462_v57, %v460_v56  ;;  %v737_v51 = vld [vmem:[%s2348_s4 + $0xe68] sm:$0xff]  ;;  %v739_v52 = vld [vmem:[%s2348_s4 + $0xe78] sm:$0xff] }
  0xed   : > { %1929 = vmatprep.subr.bf16.mxu0 %v1928_v63  ;;  %v721_v63 = vld [vmem:[%s2348_s4 + $0xde8] sm:$0xff]  ;;  %v1950_v2 = vpack.c.bf16 %v718_v60, %v716_v58  ;;  %v480_v56 = vld [vmem:[%s2348_s4 + $0x660] sm:$0xff]  ;;  %v482_v57 = vld [vmem:[%s2348_s4 + $0x670] sm:$0xff] }
  0xee   : > { %v736_v58 = vld [vmem:[%s2348_s4 + $0xe60] sm:$0xff]  ;;  %v738_v60 = vld [vmem:[%s2348_s4 + $0xe70] sm:$0xff] }
  0xef   : > { %1675 = vmatpush1.bf16.msra.mxu1 %v1674_v5  ;;  %v466_v5 = vld [vmem:[%s2348_s4 + $0x5f0] sm:$0xff] }
  0xf0   : > { %1931 = vmatpush1.bf16.msra.mxu0 %v1930_v6  ;;  %1677 = vmatprep.subr.bf16.mxu1 %v1676_v7  ;;  %v720_v6 = vld [vmem:[%s2348_s4 + $0xde0] sm:$0xff]  ;;  %v1952_v7 = vpack.c.bf16 %v723_v0, %v721_v63  ;;  %v1698_v13 = vpack.c.bf16 %v466_v5, %v464_v4  ;;  %v741_v63 = vld [vmem:[%s2348_s4 + $0xe88] sm:$0xff]  ;;  %v743_v0 = vld [vmem:[%s2348_s4 + $0xe98] sm:$0xff] }
  0xf1   : > { %1933 = vmatprep.subr.bf16.mxu0 %v1932_v11  ;;  %v725_v11 = vld [vmem:[%s2348_s4 + $0xe08] sm:$0xff]  ;;  %v1954_v14 = vpack.c.bf16 %v722_v8, %v720_v6  ;;  %v484_v4 = vld [vmem:[%s2348_s4 + $0x680] sm:$0xff]  ;;  %v486_v5 = vld [vmem:[%s2348_s4 + $0x690] sm:$0xff] }
  0xf2   : > { %v740_v6 = vld [vmem:[%s2348_s4 + $0xe80] sm:$0xff]  ;;  %v742_v8 = vld [vmem:[%s2348_s4 + $0xe90] sm:$0xff] }
  0xf3   : > { %1679 = vmatpush1.bf16.msra.mxu1 %v1678_v17  ;;  %v470_v17 = vld [vmem:[%s2348_s4 + $0x610] sm:$0xff] }
  0xf4   : > { %1935 = vmatpush1.bf16.msra.mxu0 %v1934_v18  ;;  %1681 = vmatprep.subr.bf16.mxu1 %v1680_v19  ;;  %v724_v18 = vld [vmem:[%s2348_s4 + $0xe00] sm:$0xff]  ;;  %v1956_v19 = vpack.c.bf16 %v727_v12, %v725_v11  ;;  %v1702_v26 = vpack.c.bf16 %v470_v17, %v468_v16  ;;  %v745_v11 = vld [vmem:[%s2348_s4 + $0xea8] sm:$0xff]  ;;  %v747_v12 = vld [vmem:[%s2348_s4 + $0xeb8] sm:$0xff] }
  0xf5   : > { %1937 = vmatprep.subr.bf16.mxu0 %v1936_v23  ;;  %v729_v23 = vld [vmem:[%s2348_s4 + $0xe28] sm:$0xff]  ;;  %v1958_v28 = vpack.c.bf16 %v726_v20, %v724_v18  ;;  %v488_v16 = vld [vmem:[%s2348_s4 + $0x6a0] sm:$0xff]  ;;  %v490_v17 = vld [vmem:[%s2348_s4 + $0x6b0] sm:$0xff] }
  0xf6   : > { %v1960_v33 = vpack.c.bf16 %v731_v24, %v729_v23  ;;  %v744_v18 = vld [vmem:[%s2348_s4 + $0xea0] sm:$0xff]  ;;  %v746_v20 = vld [vmem:[%s2348_s4 + $0xeb0] sm:$0xff]  ;;  %v749_v23 = vld [vmem:[%s2348_s4 + $0xec8] sm:$0xff] }
  0xf7   : > { %1683 = vmatpush1.bf16.msra.mxu1 %v1682_v29  ;;  %v1704_v29 = vpack.c.bf16 %v475_v22, %v473_v21  ;;  %v493_v21 = vld [vmem:[%s2348_s4 + $0x6c8] sm:$0xff]  ;;  %v495_v22 = vld [vmem:[%s2348_s4 + $0x6d8] sm:$0xff] }
  0xf8   : > { %1939 = vmatpush1.bf16.msra.mxu0 %v1938_v30  ;;  %1685 = vmatprep.subr.bf16.mxu1 %v1684_v31  ;;  %v472_v30 = vld [vmem:[%s2348_s4 + $0x620] sm:$0xff]  ;;  %v474_v31 = vld [vmem:[%s2348_s4 + $0x630] sm:$0xff]  ;;  %v751_v24 = vld [vmem:[%s2348_s4 + $0xed8] sm:$0xff] }
  0xf9   : > { %1941 = vmatprep.subr.bf16.mxu0 %v1940_v35  ;;  %v477_v35 = vld [vmem:[%s2348_s4 + $0x648] sm:$0xff]  ;;  %v1706_v40 = vpack.c.bf16 %v474_v31, %v472_v30  ;;  %v748_v30 = vld [vmem:[%s2348_s4 + $0xec0] sm:$0xff]  ;;  %v1980_v31 = vpack.c.bf16 %v751_v24, %v749_v23 }
  0xfa   : > { %v512_v24 = vld [vmem:[%s2348_s4 + $0x760] sm:$0xff] }
  0xfb   : > { %1687 = vmatpush1.bf16.msra.mxu1 %v1686_v41  ;;  %v275_v41 = vld [vmem:[%s2361_s29 + $0x78] sm:$0xff] }
  0xfc   : > { %1943 = vmatpush1.bf16.msra.mxu0 %v1942_v42  ;;  %1689 = vmatprep.subr.bf16.mxu1 %v1688_v43  ;;  %v1962_v42 = vpack.c.bf16 %v730_v34, %v728_v32  ;;  %v1708_v43 = vpack.c.bf16 %v479_v36, %v477_v35  ;;  %v750_v32 = vld [vmem:[%s2348_s4 + $0xed0] sm:$0xff]  ;;  %v499_v34 = vld [vmem:[%s2348_s4 + $0x6f8] sm:$0xff]  ;;  %v753_v35 = vld [vmem:[%s2348_s4 + $0xee8] sm:$0xff] }
  0xfd   : > { %1945 = vmatprep.subr.bf16.mxu0 %v1944_v47  ;;  %v1964_v47 = vpack.c.bf16 %v735_v38, %v733_v37  ;;  %v755_v36 = vld [vmem:[%s2348_s4 + $0xef8] sm:$0xff]  ;;  %v1982_v38 = vpack.c.bf16 %v750_v32, %v748_v30 }
  0xfe   : > { %v519_v30 = vld [vmem:[%s2348_s4 + $0x798] sm:$0xff] }
  0xff   : > { %1691 = vmatpush1.bf16.msra.mxu1 %v1690_v53  ;;  %v1710_v53 = vpack.c.bf16 %v478_v45, %v476_v44  ;;  %v754_v44 = vld [vmem:[%s2348_s4 + $0xef0] sm:$0xff]  ;;  %v501_v45 = vld [vmem:[%s2348_s4 + $0x708] sm:$0xff]  ;;  %v775_v32 = vld [vmem:[%s2348_s4 + $0xf98] sm:$0xff] }
 0x100   : > { %1947 = vmatpush1.bf16.msra.mxu0 %v1946_v54  ;;  %1693 = vmatprep.subr.bf16.mxu1 %v1692_v55  ;;  %v1966_v54 = vpack.c.bf16 %v734_v48, %v732_v46  ;;  %v1712_v55 = vpack.c.bf16 %v483_v50, %v481_v49  ;;  %v503_v46 = vld [vmem:[%s2348_s4 + $0x718] sm:$0xff] }
 0x101   : > { %1949 = vmatprep.subr.bf16.mxu0 %v1948_v59  ;;  %v1968_v59 = vpack.c.bf16 %v739_v52, %v737_v51  ;;  %v759_v48 = vld [vmem:[%s2348_s4 + $0xf18] sm:$0xff]  ;;  %v1732_v51 = vpack.c.bf16 %v503_v46, %v501_v45  ;;  %v500_v52 = vld [vmem:[%s2348_s4 + $0x700] sm:$0xff] }
 0x103   : > { %1695 = vmatpush1.bf16.msra.mxu1 %v1694_v1  ;;  %v1714_v1 = vpack.c.bf16 %v482_v57, %v480_v56  ;;  %v758_v56 = vld [vmem:[%s2348_s4 + $0xf10] sm:$0xff]  ;;  %v505_v57 = vld [vmem:[%s2348_s4 + $0x728] sm:$0xff] }
 0x104   : > { %1951 = vmatpush1.bf16.msra.mxu0 %v1950_v2  ;;  %1697 = vmatprep.subr.bf16.mxu1 %v1696_v3  ;;  %v1970_v2 = vpack.c.bf16 %v738_v60, %v736_v58  ;;  %v1716_v3 = vpack.c.bf16 %v487_v62, %v485_v61  ;;  %v507_v58 = vld [vmem:[%s2348_s4 + $0x738] sm:$0xff] }
 0x105   : > { %1953 = vmatprep.subr.bf16.mxu0 %v1952_v7  ;;  %v1972_v7 = vpack.c.bf16 %v743_v0, %v741_v63  ;;  %v763_v60 = vld [vmem:[%s2348_s4 + $0xf38] sm:$0xff]  ;;  %v1736_v63 = vpack.c.bf16 %v507_v58, %v505_v57  ;;  %v504_v0 = vld [vmem:[%s2348_s4 + $0x720] sm:$0xff] }
 0x107   : > { %1699 = vmatpush1.bf16.msra.mxu1 %v1698_v13  ;;  %v1718_v13 = vpack.c.bf16 %v486_v5, %v484_v4  ;;  %v762_v4 = vld [vmem:[%s2348_s4 + $0xf30] sm:$0xff]  ;;  %v509_v5 = vld [vmem:[%s2348_s4 + $0x748] sm:$0xff] }
 0x108   : > { %1955 = vmatpush1.bf16.msra.mxu0 %v1954_v14  ;;  %1701 = vmatprep.subr.bf16.mxu1 %v1700_v15  ;;  %v1974_v14 = vpack.c.bf16 %v742_v8, %v740_v6  ;;  %v1720_v15 = vpack.c.bf16 %v491_v10, %v489_v9  ;;  %v511_v6 = vld [vmem:[%s2348_s4 + $0x758] sm:$0xff] }
 0x109   : > { %1957 = vmatprep.subr.bf16.mxu0 %v1956_v19  ;;  %v1976_v19 = vpack.c.bf16 %v747_v12, %v745_v11  ;;  %v767_v8 = vld [vmem:[%s2348_s4 + $0xf58] sm:$0xff]  ;;  %v1740_v11 = vpack.c.bf16 %v511_v6, %v509_v5  ;;  %v508_v12 = vld [vmem:[%s2348_s4 + $0x740] sm:$0xff] }
 0x10a   : > { %995 = vmatmul.mubr.f32.vlgmr.msra.gmra.mrb[0].mxu1 %v264_v25  ;;  %v1722_v25 = vpack.c.bf16 %v490_v17, %v488_v16  ;;  %v766_v16 = vld [vmem:[%s2348_s4 + $0xf50] sm:$0xff]  ;;  %v513_v17 = vld [vmem:[%s2348_s4 + $0x768] sm:$0xff] }
 0x10b   : > { %1703 = vmatpush1.bf16.msra.mxu1 %v1702_v26  ;;  %1279 = vmatmul.mubr.f32.vlgmr.msra.gmra.mrb[0].mxu0 %v272_v27  ;;  %v1978_v26 = vpack.c.bf16 %v746_v20, %v744_v18  ;;  %v1724_v27 = vpack.c.bf16 %v495_v22, %v493_v21  ;;  %v515_v18 = vld [vmem:[%s2348_s4 + $0x778] sm:$0xff] }
 0x10c   : > { %1959 = vmatpush1.bf16.msra.mxu0 %v1958_v28  ;;  %1705 = vmatprep.subr.bf16.mxu1 %v1704_v29  ;;  %v492_v28 = vld [vmem:[%s2348_s4 + $0x6c0] sm:$0xff]  ;;  %v494_v29 = vld [vmem:[%s2348_s4 + $0x6d0] sm:$0xff]  ;;  %v771_v20 = vld [vmem:[%s2348_s4 + $0xf78] sm:$0xff]  ;;  %v1744_v23 = vpack.c.bf16 %v515_v18, %v513_v17 }
 0x10d   : > { %1961 = vmatprep.subr.bf16.mxu0 %v1960_v33  ;;  %1065 = vmatprep.mubr.f32.mxu1 %v267_v39  ;;  %v497_v33 = vld [vmem:[%s2348_s4 + $0x6e8] sm:$0xff]  ;;  %v1726_v37 = vpack.c.bf16 %v494_v29, %v492_v28  ;;  %v770_v28 = vld [vmem:[%s2348_s4 + $0xf70] sm:$0xff] }
 0x10e   : > { %1349 = vmatprep.mubr.f32.mxu0 %v275_v41  ;;  %v1728_v39 = vpack.c.bf16 %v499_v34, %v497_v33  ;;  %v498_v41 = vld [vmem:[%s2348_s4 + $0x6f0] sm:$0xff]  ;;  %v517_v29 = vld [vmem:[%s2348_s4 + $0x788] sm:$0xff] }
 0x10f   : > { %1707 = vmatpush1.bf16.msra.mxu1 %v1706_v40  ;;  %v496_v40 = vld [vmem:[%s2348_s4 + $0x6e0] sm:$0xff]  ;;  %v258_v18 = vld [vmem:[%s2371_s12] sm:$0xff] }
 0x110   : > { %1963 = vmatpush1.bf16.msra.mxu0 %v1962_v42  ;;  %1709 = vmatprep.subr.bf16.mxu1 %v1708_v43  ;;  %v752_v42 = vld [vmem:[%s2348_s4 + $0xee0] sm:$0xff]  ;;  %v1984_v43 = vpack.c.bf16 %v755_v36, %v753_v35  ;;  %v1730_v49 = vpack.c.bf16 %v498_v41, %v496_v40  ;;  %v1748_v35 = vpack.c.bf16 %v519_v30, %v517_v29  ;;  %v774_v40 = vld [vmem:[%s2348_s4 + $0xf90] sm:$0xff]  ;;  %v521_v41 = vld [vmem:[%s2348_s4 + $0x7a8] sm:$0xff] }
 0x111   : > { %1965 = vmatprep.subr.bf16.mxu0 %v1964_v47  ;;  %v757_v47 = vld [vmem:[%s2348_s4 + $0xf08] sm:$0xff]  ;;  %v1986_v50 = vpack.c.bf16 %v754_v44, %v752_v42  ;;  %v516_v36 = vld [vmem:[%s2348_s4 + $0x780] sm:$0xff]  ;;  %v523_v42 = vld [vmem:[%s2348_s4 + $0x7b8] sm:$0xff] }
 0x112   : > { %v779_v44 = vld [vmem:[%s2348_s4 + $0xfb8] sm:$0xff]  ;;  %v1366_v29 = vld [vmem:[%s244_s8] sm:$0x3] (!%p1504_p6) }
 0x113   : > { %1711 = vmatpush1.bf16.msra.mxu1 %v1710_v53  ;;  %v502_v53 = vld [vmem:[%s2348_s4 + $0x710] sm:$0xff] }
 0x114   : > { %1967 = vmatpush1.bf16.msra.mxu0 %v1966_v54  ;;  %1713 = vmatprep.subr.bf16.mxu1 %v1712_v55  ;;  %v756_v54 = vld [vmem:[%s2348_s4 + $0xf00] sm:$0xff]  ;;  %v1988_v55 = vpack.c.bf16 %v759_v48, %v757_v47  ;;  %v1734_v61 = vpack.c.bf16 %v502_v53, %v500_v52  ;;  %v1752_v47 = vpack.c.bf16 %v523_v42, %v521_v41  ;;  %v778_v52 = vld [vmem:[%s2348_s4 + $0xfb0] sm:$0xff]  ;;  %v525_v53 = vld [vmem:[%s2348_s4 + $0x7c8] sm:$0xff] }
 0x115   : > { %1969 = vmatprep.subr.bf16.mxu0 %v1968_v59  ;;  %v761_v59 = vld [vmem:[%s2348_s4 + $0xf28] sm:$0xff]  ;;  %v1990_v62 = vpack.c.bf16 %v758_v56, %v756_v54  ;;  %v520_v48 = vld [vmem:[%s2348_s4 + $0x7a0] sm:$0xff]  ;;  %v527_v54 = vld [vmem:[%s2348_s4 + $0x7d8] sm:$0xff] }
 0x116   : > { %v783_v56 = vld [vmem:[%s2348_s4 + $0xfd8] sm:$0xff] }
 0x117   : > { %1715 = vmatpush1.bf16.msra.mxu1 %v1714_v1  ;;  %v506_v1 = vld [vmem:[%s2348_s4 + $0x730] sm:$0xff] }
 0x118   : > { %1971 = vmatpush1.bf16.msra.mxu0 %v1970_v2  ;;  %1717 = vmatprep.subr.bf16.mxu1 %v1716_v3  ;;  %v760_v2 = vld [vmem:[%s2348_s4 + $0xf20] sm:$0xff]  ;;  %v1992_v3 = vpack.c.bf16 %v763_v60, %v761_v59  ;;  %v1738_v9 = vpack.c.bf16 %v506_v1, %v504_v0  ;;  %v1756_v59 = vpack.c.bf16 %v527_v54, %v525_v53  ;;  %v782_v0 = vld [vmem:[%s2348_s4 + $0xfd0] sm:$0xff]  ;;  %v529_v1 = vld [vmem:[%s2348_s4 + $0x7e8] sm:$0xff] }
 0x119   : > { %1973 = vmatprep.subr.bf16.mxu0 %v1972_v7  ;;  %v765_v7 = vld [vmem:[%s2348_s4 + $0xf48] sm:$0xff]  ;;  %v1994_v10 = vpack.c.bf16 %v762_v4, %v760_v2  ;;  %v524_v60 = vld [vmem:[%s2348_s4 + $0x7c0] sm:$0xff]  ;;  %v531_v2 = vld [vmem:[%s2348_s4 + $0x7f8] sm:$0xff] }
 0x11a   : > { %v787_v4 = vld [vmem:[%s2348_s4 + $0xff8] sm:$0xff] }
 0x11b   : > { %1719 = vmatpush1.bf16.msra.mxu1 %v1718_v13  ;;  %v510_v13 = vld [vmem:[%s2348_s4 + $0x750] sm:$0xff] }
 0x11c   : > { %1975 = vmatpush1.bf16.msra.mxu0 %v1974_v14  ;;  %1721 = vmatprep.subr.bf16.mxu1 %v1720_v15  ;;  %v764_v14 = vld [vmem:[%s2348_s4 + $0xf40] sm:$0xff]  ;;  %v1996_v15 = vpack.c.bf16 %v767_v8, %v765_v7  ;;  %v1742_v21 = vpack.c.bf16 %v510_v13, %v508_v12  ;;  %v1760_v7 = vpack.c.bf16 %v531_v2, %v529_v1  ;;  %v786_v12 = vld [vmem:[%s2348_s4 + $0xff0] sm:$0xff] }
 0x11d   : > { %1977 = vmatprep.subr.bf16.mxu0 %v1976_v19  ;;  %v769_v19 = vld [vmem:[%s2348_s4 + $0xf68] sm:$0xff]  ;;  %v1998_v22 = vpack.c.bf16 %v766_v16, %v764_v14  ;;  %v528_v8 = vld [vmem:[%s2348_s4 + $0x7e0] sm:$0xff]  ;;  %v274_v16 = vld [vmem:[%s2361_s29 + $0x70] sm:$0xff] }
 0x11f   : > { %1723 = vmatpush1.bf16.msra.mxu1 %v1722_v25  ;;  %v514_v25 = vld [vmem:[%s2348_s4 + $0x770] sm:$0xff] }
 0x120   : > { %1979 = vmatpush1.bf16.msra.mxu0 %v1978_v26  ;;  %1725 = vmatprep.subr.bf16.mxu1 %v1724_v27  ;;  %v768_v26 = vld [vmem:[%s2348_s4 + $0xf60] sm:$0xff]  ;;  %v2000_v27 = vpack.c.bf16 %v771_v20, %v769_v19  ;;  %v1746_v33 = vpack.c.bf16 %v514_v25, %v512_v24 }
 0x121   : > { %1981 = vmatprep.subr.bf16.mxu0 %v1980_v31  ;;  %v773_v31 = vld [vmem:[%s2348_s4 + $0xf88] sm:$0xff]  ;;  %v2002_v34 = vpack.c.bf16 %v770_v28, %v768_v26 }
 0x123   : > { %1727 = vmatpush1.bf16.msra.mxu1 %v1726_v37  ;;  %v518_v37 = vld [vmem:[%s2348_s4 + $0x790] sm:$0xff] }
 0x124   : > { %1983 = vmatpush1.bf16.msra.mxu0 %v1982_v38  ;;  %1729 = vmatprep.subr.bf16.mxu1 %v1728_v39  ;;  %v772_v38 = vld [vmem:[%s2348_s4 + $0xf80] sm:$0xff]  ;;  %v2004_v39 = vpack.c.bf16 %v775_v32, %v773_v31  ;;  %v1750_v45 = vpack.c.bf16 %v518_v37, %v516_v36 }
 0x125   : > { %1985 = vmatprep.subr.bf16.mxu0 %v1984_v43  ;;  %v777_v43 = vld [vmem:[%s2348_s4 + $0xfa8] sm:$0xff]  ;;  %v2006_v46 = vpack.c.bf16 %v774_v40, %v772_v38 }
 0x127   : > { %1731 = vmatpush1.bf16.msra.mxu1 %v1730_v49  ;;  %v522_v49 = vld [vmem:[%s2348_s4 + $0x7b0] sm:$0xff] }
 0x128   : > { %1987 = vmatpush1.bf16.msra.mxu0 %v1986_v50  ;;  %1733 = vmatprep.subr.bf16.mxu1 %v1732_v51  ;;  %v776_v50 = vld [vmem:[%s2348_s4 + $0xfa0] sm:$0xff]  ;;  %v2008_v51 = vpack.c.bf16 %v779_v44, %v777_v43  ;;  %v1754_v57 = vpack.c.bf16 %v522_v49, %v520_v48 }
 0x129   : > { %1989 = vmatprep.subr.bf16.mxu0 %v1988_v55  ;;  %v781_v55 = vld [vmem:[%s2348_s4 + $0xfc8] sm:$0xff]  ;;  %v2010_v58 = vpack.c.bf16 %v778_v52, %v776_v50 }
 0x12b   : > { %1735 = vmatpush1.bf16.msra.mxu1 %v1734_v61  ;;  %v526_v61 = vld [vmem:[%s2348_s4 + $0x7d0] sm:$0xff] }
 0x12c   : > { %1991 = vmatpush1.bf16.msra.mxu0 %v1990_v62  ;;  %1737 = vmatprep.subr.bf16.mxu1 %v1736_v63  ;;  %v780_v62 = vld [vmem:[%s2348_s4 + $0xfc0] sm:$0xff]  ;;  %v2012_v63 = vpack.c.bf16 %v783_v56, %v781_v55  ;;  %v1758_v5 = vpack.c.bf16 %v526_v61, %v524_v60 }
 0x12d   : > { %1993 = vmatprep.subr.bf16.mxu0 %v1992_v3  ;;  %v785_v3 = vld [vmem:[%s2348_s4 + $0xfe8] sm:$0xff]  ;;  %v2014_v6 = vpack.c.bf16 %v782_v0, %v780_v62 }
 0x12f   : > { %1739 = vmatpush1.bf16.msra.mxu1 %v1738_v9  ;;  %v530_v9 = vld [vmem:[%s2348_s4 + $0x7f0] sm:$0xff] }
 0x130   : > { %1995 = vmatpush1.bf16.msra.mxu0 %v1994_v10  ;;  %1741 = vmatprep.subr.bf16.mxu1 %v1740_v11  ;;  %v2016_v10 = vpack.c.bf16 %v787_v4, %v785_v3  ;;  %v784_v11 = vld [vmem:[%s2348_s4 + $0xfe0] sm:$0xff]  ;;  %v1762_v13 = vpack.c.bf16 %v530_v9, %v528_v8 }
 0x131   : > { %1997 = vmatprep.subr.bf16.mxu0 %v1996_v15  ;;  %v2018_v14 = vpack.c.bf16 %v786_v12, %v784_v11  ;;  %v266_v15 = vld [vmem:[%s2361_s29 + $0x30] sm:$0xff] }
 0x133   : > { %1743 = vmatpush1.bf16.msra.mxu1 %v1742_v21 }
 0x134   : > { %1999 = vmatpush1.bf16.msra.mxu0 %v1998_v22  ;;  %1745 = vmatprep.subr.bf16.mxu1 %v1744_v23  ;;  %v259_v22 = vld [vmem:[%s2371_s12 + $0x8] sm:$0xff] }
 0x135   : > { %2001 = vmatprep.subr.bf16.mxu0 %v2000_v27  ;;  %v1368_v27 = vlaneseq (!%p1504_p6) }
 0x137   : > { %1747 = vmatpush1.bf16.msra.mxu1 %v1746_v33  ;;  %v1369_v28 = vshrl.u32 (!%p1504_p6), %v1368_v27, 7 }
 0x138   : > { %2003 = vmatpush1.bf16.msra.mxu0 %v2002_v34  ;;  %1749 = vmatprep.subr.bf16.mxu1 %v1748_v35 }
 0x139   : > { %2005 = vmatprep.subr.bf16.mxu0 %v2004_v39  ;;  %v1370_v30 = vsub.s32 (!%p1504_p6), 0, %v1369_v28  ;;  %v1374_v31 = vsub.s32 (!%p1504_p6), 1, %v1369_v28 }
 0x13b   : > { %1751 = vmatpush1.bf16.msra.mxu1 %v1750_v45  ;;  %v1371_v34 = vrot.slane (!%p1504_p6), %v1366_v29, %v1370_v30  ;;  %v1375_v35 = vrot.slane (!%p1504_p6), %v1366_v29, %v1374_v31 }
 0x13c   : > { %2007 = vmatpush1.bf16.msra.mxu0 %v2006_v46  ;;  %1753 = vmatprep.subr.bf16.mxu1 %v1752_v47 }
 0x13d   : > { %2009 = vmatprep.subr.bf16.mxu0 %v2008_v51 }
 0x13f   : > { %1755 = vmatpush1.bf16.msra.mxu1 %v1754_v57 }
 0x140   : > { %2011 = vmatpush1.bf16.msra.mxu0 %v2010_v58  ;;  %1757 = vmatprep.subr.bf16.mxu1 %v1756_v59 }
 0x141   : > { %2013 = vmatprep.subr.bf16.mxu0 %v2012_v63 }
 0x143   : > { %1759 = vmatpush1.bf16.msra.mxu1 %v1758_v5 }
 0x144   : > { %2015 = vmatpush1.bf16.msra.mxu0 %v2014_v6  ;;  %1761 = vmatprep.subr.bf16.mxu1 %v1760_v7 }
 0x145   : > { %2017 = vmatprep.subr.bf16.mxu0 %v2016_v10 }
 0x147   : > { %1763 = vmatpush1.bf16.msra.mxu1 %v1762_v13 }
 0x148   : > { %2019 = vmatpush1.bf16.msra.mxu0 %v2018_v14 }
 0x14a   : > { %1066 = vmatmul.mubr.f32.vlgmr.msra.gmra.mrb[0].mxu1 %v266_v15 }
 0x14b   : > { %1350 = vmatmul.mubr.f32.vlgmr.msra.gmra.mrb[0].mxu0 %v274_v16 }
 0x21d   : > { %v1067_v17 = vpop.f32.mrb[0].mxu1 }
 0x21e   : > { %v1351_v19 = vpop.f32.mrb[0].mxu0  ;;  %v1069_v20 = vpop.f32.mrb[1].mxu1  ;;  %1363 = sbr.rel (%p1504_p6) target bundleno = 561 (0x231), region = 44 }
 0x21f   : > { %v2020_v21 = vadd.f32 %v1351_v19, %v1067_v17  ;;  %v1353_v23 = vpop.f32.mrb[1].mxu0 }
 0x220   : > { %v2021_v24 = vadd.f32 %v1353_v23, %v1069_v20 }
 0x221   : > { %v1356_v25 = vadd.f32 %v2020_v21, %v258_v18 }
 0x222   : > { %v1357_v26 = vadd.f32 %v2021_v24, %v259_v22 }
 0x223   : > { %1358 = vst [vmem:[%s2371_s12] sm:$0xff] %v1356_v25 }
 0x224   : > { %1359 = vst [vmem:[%s2371_s12 + $0x8] sm:$0xff] %v1357_v26 }
 0x22a   : > { %v1364_v32 = vld [vmem:[%s2371_s12] sm:$0xff] }
 0x22b   : > { %v1365_v33 = vld [vmem:[%s2371_s12 + $0x8] sm:$0xff]  ;;  %v1378_v36 = vadd.f32 %v1371_v34, %v1364_v32 }
 0x22c   : > { %v1379_v37 = vadd.f32 %v1375_v35, %v1365_v33 }
 0x22d   : > { %v1380_v38 = vmax.f32 %v1378_v36, 0.0 }
 0x22e   : > { %v1381_v39 = vmax.f32 %v1379_v37, 0.0 }
 0x22f   : > { %1382 = vst [vmem:[%s2371_s12] sm:$0xff] %v1380_v38 }
 0x230   : > { %1383 = vst [vmem:[%s2371_s12 + $0x8] sm:$0xff] %v1381_v39 }
 0x231 PF: > { %s16_s19 = sadd.s32 1, %s2205_s19   ;;  %s2949_s12 = smov %s2181_s13 }
 0x232   : > { %p13_p8 = scmp.ge.s32.totalorder %s16_s19, 26   ;;  %s2950_s13 = smov %s2185_s14 }
 0x233   : > { %s2951_s14 = smov %s2299_s5  ;;  %s2952_s15 = smov %s2197_s17 }
 0x234   : > { %s2953_s16 = smov %s2201_s18  ;;  %s2954_s17 = smov %s2957_s21 }
 0x235   : > { %s2955_s18 = smov %s2961_s22  ;;  %15 = sbr.rel (!%p13_p8) target bundleno = 5 (0x5), region = 86 }
 0x23c   :  { %1406 = vsyncpa [#allocation3], 1 }
 0x23d   :  { %1408 = vsyncpa [#allocation3 + $0x1], 1 }

// kernel: cdn_forward.8
= control target key start
LH: loop header
LB: loop body
LE: loop exit
PB: predicated region body
PF: predicated region fallthrough
CT: control target
= control target key end

     0   :  { %s2529_s1 = inlined_call_operand.vmem [shape: f32[512,768], index: 1, kind: input, shape index: {}]   ;;  %s2530_s0 = inlined_call_operand.vmem [shape: f32[8,512], index: 0, kind: input, shape index: {}]   ;;  %s2531_s2 = inlined_call_operand.vmem [shape: f32[1,768], index: 2, kind: input, shape index: {}]   ;;  %s2532_s3 = inlined_call_operand.vmem [shape: f32[8,768], index: 3, kind: output, shape index: {}]  }
   0x1   :  { %v35_v0 = vld [vmem:[%s2529_s1 + $0x8] sm:$0xff]  ;;  %v41_v1 = vld [vmem:[%s2529_s1 + $0x38] sm:$0xff]  ;;  %v34_v5 = vld [vmem:[%s2529_s1] sm:$0xff] }
   0x2   :  { %v227_v2 = vld [vmem:[%s2529_s1 + $0x608] sm:$0xff]  ;;  %v913_v3 = vpack.c.bf16 %v41_v1, %v35_v0  ;;  %v233_v4 = vld [vmem:[%s2529_s1 + $0x638] sm:$0xff]  ;;  %v40_v6 = vld [vmem:[%s2529_s1 + $0x30] sm:$0xff] }
   0x3   :  { %v977_v7 = vpack.c.bf16 %v233_v4, %v227_v2  ;;  %v915_v8 = vpack.c.bf16 %v40_v6, %v34_v5  ;;  %v226_v9 = vld [vmem:[%s2529_s1 + $0x600] sm:$0xff]  ;;  %v232_v10 = vld [vmem:[%s2529_s1 + $0x630] sm:$0xff]  ;;  %v47_v11 = vld [vmem:[%s2529_s1 + $0x68] sm:$0xff] }
   0x4   :  { %914 = vmatprep.subr.bf16.mxu1 %v913_v3  ;;  %v979_v12 = vpack.c.bf16 %v232_v10, %v226_v9  ;;  %v53_v13 = vld [vmem:[%s2529_s1 + $0x98] sm:$0xff]  ;;  %v239_v14 = vld [vmem:[%s2529_s1 + $0x668] sm:$0xff]  ;;  %v46_v18 = vld [vmem:[%s2529_s1 + $0x60] sm:$0xff] }
   0x5   :  { %v245_v15 = vld [vmem:[%s2529_s1 + $0x698] sm:$0xff]  ;;  %978 = vmatprep.subr.bf16.mxu0 %v977_v7  ;;  %916 = vmatpush1.bf16.msra.mxu1 %v915_v8  ;;  %v917_v16 = vpack.c.bf16 %v53_v13, %v47_v11  ;;  %v52_v19 = vld [vmem:[%s2529_s1 + $0x90] sm:$0xff]  ;;  %v238_v20 = vld [vmem:[%s2529_s1 + $0x660] sm:$0xff] }
   0x6   :  { %v981_v17 = vpack.c.bf16 %v245_v15, %v239_v14  ;;  %980 = vmatpush1.bf16.msra.mxu0 %v979_v12  ;;  %v919_v21 = vpack.c.bf16 %v52_v19, %v46_v18  ;;  %v244_v22 = vld [vmem:[%s2529_s1 + $0x690] sm:$0xff]  ;;  %v59_v23 = vld [vmem:[%s2529_s1 + $0xc8] sm:$0xff]  ;;  %v65_v24 = vld [vmem:[%s2529_s1 + $0xf8] sm:$0xff] }
   0x7   :  { %918 = vmatprep.subr.bf16.mxu1 %v917_v16  ;;  %v983_v25 = vpack.c.bf16 %v244_v22, %v238_v20  ;;  %v921_v26 = vpack.c.bf16 %v65_v24, %v59_v23  ;;  %v251_v27 = vld [vmem:[%s2529_s1 + $0x6c8] sm:$0xff]  ;;  %v257_v28 = vld [vmem:[%s2529_s1 + $0x6f8] sm:$0xff]  ;;  %v58_v29 = vld [vmem:[%s2529_s1 + $0xc0] sm:$0xff] }
   0x8   :  { %982 = vmatprep.subr.bf16.mxu0 %v981_v17  ;;  %v985_v30 = vpack.c.bf16 %v257_v28, %v251_v27  ;;  %v64_v31 = vld [vmem:[%s2529_s1 + $0xf0] sm:$0xff]  ;;  %v250_v32 = vld [vmem:[%s2529_s1 + $0x6c0] sm:$0xff]  ;;  %v71_v35 = vld [vmem:[%s2529_s1 + $0x128] sm:$0xff] }
   0x9   :  { %v256_v33 = vld [vmem:[%s2529_s1 + $0x6f0] sm:$0xff]  ;;  %920 = vmatpush1.bf16.msra.mxu1 %v919_v21  ;;  %v923_v34 = vpack.c.bf16 %v64_v31, %v58_v29  ;;  %v77_v36 = vld [vmem:[%s2529_s1 + $0x158] sm:$0xff]  ;;  %v263_v37 = vld [vmem:[%s2529_s1 + $0x728] sm:$0xff] }
   0xa   :  { %984 = vmatpush1.bf16.msra.mxu0 %v983_v25  ;;  %922 = vmatprep.subr.bf16.mxu1 %v921_v26  ;;  %v987_v38 = vpack.c.bf16 %v256_v33, %v250_v32  ;;  %v925_v39 = vpack.c.bf16 %v77_v36, %v71_v35  ;;  %v269_v40 = vld [vmem:[%s2529_s1 + $0x758] sm:$0xff]  ;;  %v70_v41 = vld [vmem:[%s2529_s1 + $0x120] sm:$0xff]  ;;  %v76_v42 = vld [vmem:[%s2529_s1 + $0x150] sm:$0xff] }
   0xb   :  { %986 = vmatprep.subr.bf16.mxu0 %v985_v30  ;;  %v989_v43 = vpack.c.bf16 %v269_v40, %v263_v37  ;;  %v262_v44 = vld [vmem:[%s2529_s1 + $0x720] sm:$0xff]  ;;  %v268_v45 = vld [vmem:[%s2529_s1 + $0x750] sm:$0xff]  ;;  %v83_v46 = vld [vmem:[%s2529_s1 + $0x188] sm:$0xff]  ;;  %v927_v50 = vpack.c.bf16 %v76_v42, %v70_v41 }
   0xc   :  { %v89_v47 = vld [vmem:[%s2529_s1 + $0x1b8] sm:$0xff]  ;;  %v275_v48 = vld [vmem:[%s2529_s1 + $0x788] sm:$0xff]  ;;  %v991_v51 = vpack.c.bf16 %v268_v45, %v262_v44  ;;  %v82_v53 = vld [vmem:[%s2529_s1 + $0x180] sm:$0xff] }
   0xd   :  { %v281_v49 = vld [vmem:[%s2529_s1 + $0x7b8] sm:$0xff]  ;;  %924 = vmatpush1.bf16.msra.mxu1 %v923_v34  ;;  %v929_v52 = vpack.c.bf16 %v89_v47, %v83_v46  ;;  %v88_v54 = vld [vmem:[%s2529_s1 + $0x1b0] sm:$0xff]  ;;  %v274_v55 = vld [vmem:[%s2529_s1 + $0x780] sm:$0xff] }
   0xe   :  { %988 = vmatpush1.bf16.msra.mxu0 %v987_v38  ;;  %926 = vmatprep.subr.bf16.mxu1 %v925_v39  ;;  %v993_v56 = vpack.c.bf16 %v281_v49, %v275_v48  ;;  %v280_v57 = vld [vmem:[%s2529_s1 + $0x7b0] sm:$0xff]  ;;  %v95_v58 = vld [vmem:[%s2529_s1 + $0x1e8] sm:$0xff]  ;;  %v101_v59 = vld [vmem:[%s2529_s1 + $0x218] sm:$0xff]  ;;  %v931_v62 = vpack.c.bf16 %v88_v54, %v82_v53 }
   0xf   :  { %990 = vmatprep.subr.bf16.mxu0 %v989_v43  ;;  %v287_v60 = vld [vmem:[%s2529_s1 + $0x7e8] sm:$0xff]  ;;  %v293_v61 = vld [vmem:[%s2529_s1 + $0x818] sm:$0xff]  ;;  %v995_v63 = vpack.c.bf16 %v280_v57, %v274_v55  ;;  %v933_v0 = vpack.c.bf16 %v101_v59, %v95_v58  ;;  %v94_v1 = vld [vmem:[%s2529_s1 + $0x1e0] sm:$0xff] }
  0x10   :  { %v100_v2 = vld [vmem:[%s2529_s1 + $0x210] sm:$0xff]  ;;  %v286_v3 = vld [vmem:[%s2529_s1 + $0x7e0] sm:$0xff]  ;;  %v997_v4 = vpack.c.bf16 %v293_v61, %v287_v60  ;;  %v107_v6 = vld [vmem:[%s2529_s1 + $0x248] sm:$0xff] }
  0x11   :  { %928 = vmatpush1.bf16.msra.mxu1 %v927_v50  ;;  %v292_v5 = vld [vmem:[%s2529_s1 + $0x810] sm:$0xff]  ;;  %v113_v7 = vld [vmem:[%s2529_s1 + $0x278] sm:$0xff]  ;;  %v299_v8 = vld [vmem:[%s2529_s1 + $0x848] sm:$0xff]  ;;  %v935_v10 = vpack.c.bf16 %v100_v2, %v94_v1 }
  0x12   :  { %992 = vmatpush1.bf16.msra.mxu0 %v991_v51  ;;  %930 = vmatprep.subr.bf16.mxu1 %v929_v52  ;;  %v305_v9 = vld [vmem:[%s2529_s1 + $0x878] sm:$0xff]  ;;  %v999_v11 = vpack.c.bf16 %v292_v5, %v286_v3  ;;  %v937_v12 = vpack.c.bf16 %v113_v7, %v107_v6  ;;  %v106_v13 = vld [vmem:[%s2529_s1 + $0x240] sm:$0xff]  ;;  %v112_v14 = vld [vmem:[%s2529_s1 + $0x270] sm:$0xff] }
  0x13   :  { %994 = vmatprep.subr.bf16.mxu0 %v993_v56  ;;  %v298_v15 = vld [vmem:[%s2529_s1 + $0x840] sm:$0xff]  ;;  %v1001_v16 = vpack.c.bf16 %v305_v9, %v299_v8  ;;  %v304_v17 = vld [vmem:[%s2529_s1 + $0x870] sm:$0xff]  ;;  %v119_v18 = vld [vmem:[%s2529_s1 + $0x2a8] sm:$0xff]  ;;  %v939_v22 = vpack.c.bf16 %v112_v14, %v106_v13 }
  0x14   :  { %v125_v19 = vld [vmem:[%s2529_s1 + $0x2d8] sm:$0xff]  ;;  %v311_v20 = vld [vmem:[%s2529_s1 + $0x8a8] sm:$0xff]  ;;  %v1003_v23 = vpack.c.bf16 %v304_v17, %v298_v15  ;;  %v118_v25 = vld [vmem:[%s2529_s1 + $0x2a0] sm:$0xff] }
  0x15   :  { %932 = vmatpush1.bf16.msra.mxu1 %v931_v62  ;;  %v317_v21 = vld [vmem:[%s2529_s1 + $0x8d8] sm:$0xff]  ;;  %v941_v24 = vpack.c.bf16 %v125_v19, %v119_v18  ;;  %v124_v26 = vld [vmem:[%s2529_s1 + $0x2d0] sm:$0xff]  ;;  %v310_v27 = vld [vmem:[%s2529_s1 + $0x8a0] sm:$0xff] }
  0x16   :  { %996 = vmatpush1.bf16.msra.mxu0 %v995_v63  ;;  %934 = vmatprep.subr.bf16.mxu1 %v933_v0  ;;  %v1005_v28 = vpack.c.bf16 %v317_v21, %v311_v20  ;;  %v316_v29 = vld [vmem:[%s2529_s1 + $0x8d0] sm:$0xff]  ;;  %v131_v30 = vld [vmem:[%s2529_s1 + $0x308] sm:$0xff]  ;;  %v137_v31 = vld [vmem:[%s2529_s1 + $0x338] sm:$0xff]  ;;  %v943_v34 = vpack.c.bf16 %v124_v26, %v118_v25 }
  0x17   :  { %998 = vmatprep.subr.bf16.mxu0 %v997_v4  ;;  %v323_v32 = vld [vmem:[%s2529_s1 + $0x908] sm:$0xff]  ;;  %v329_v33 = vld [vmem:[%s2529_s1 + $0x938] sm:$0xff]  ;;  %v1007_v35 = vpack.c.bf16 %v316_v29, %v310_v27  ;;  %v945_v36 = vpack.c.bf16 %v137_v31, %v131_v30  ;;  %v130_v37 = vld [vmem:[%s2529_s1 + $0x300] sm:$0xff] }
  0x18   :  { %v136_v38 = vld [vmem:[%s2529_s1 + $0x330] sm:$0xff]  ;;  %v322_v39 = vld [vmem:[%s2529_s1 + $0x900] sm:$0xff]  ;;  %v1009_v40 = vpack.c.bf16 %v329_v33, %v323_v32  ;;  %v143_v42 = vld [vmem:[%s2529_s1 + $0x368] sm:$0xff] }
  0x19   :  { %936 = vmatpush1.bf16.msra.mxu1 %v935_v10  ;;  %v328_v41 = vld [vmem:[%s2529_s1 + $0x930] sm:$0xff]  ;;  %v149_v43 = vld [vmem:[%s2529_s1 + $0x398] sm:$0xff]  ;;  %v335_v44 = vld [vmem:[%s2529_s1 + $0x968] sm:$0xff]  ;;  %v947_v46 = vpack.c.bf16 %v136_v38, %v130_v37 }
  0x1a   :  { %1000 = vmatpush1.bf16.msra.mxu0 %v999_v11  ;;  %938 = vmatprep.subr.bf16.mxu1 %v937_v12  ;;  %v341_v45 = vld [vmem:[%s2529_s1 + $0x998] sm:$0xff]  ;;  %v1011_v47 = vpack.c.bf16 %v328_v41, %v322_v39  ;;  %v949_v48 = vpack.c.bf16 %v149_v43, %v143_v42  ;;  %v142_v49 = vld [vmem:[%s2529_s1 + $0x360] sm:$0xff]  ;;  %v148_v50 = vld [vmem:[%s2529_s1 + $0x390] sm:$0xff] }
  0x1b   :  { %1002 = vmatprep.subr.bf16.mxu0 %v1001_v16  ;;  %v334_v51 = vld [vmem:[%s2529_s1 + $0x960] sm:$0xff]  ;;  %v1013_v52 = vpack.c.bf16 %v341_v45, %v335_v44  ;;  %v340_v53 = vld [vmem:[%s2529_s1 + $0x990] sm:$0xff]  ;;  %v155_v54 = vld [vmem:[%s2529_s1 + $0x3c8] sm:$0xff]  ;;  %v951_v58 = vpack.c.bf16 %v148_v50, %v142_v49 }
  0x1c   :  { %v161_v55 = vld [vmem:[%s2529_s1 + $0x3f8] sm:$0xff]  ;;  %v347_v56 = vld [vmem:[%s2529_s1 + $0x9c8] sm:$0xff]  ;;  %v1015_v59 = vpack.c.bf16 %v340_v53, %v334_v51  ;;  %v154_v61 = vld [vmem:[%s2529_s1 + $0x3c0] sm:$0xff] }
  0x1d   :  { %940 = vmatpush1.bf16.msra.mxu1 %v939_v22  ;;  %v353_v57 = vld [vmem:[%s2529_s1 + $0x9f8] sm:$0xff]  ;;  %v953_v60 = vpack.c.bf16 %v161_v55, %v155_v54  ;;  %v160_v62 = vld [vmem:[%s2529_s1 + $0x3f0] sm:$0xff]  ;;  %v346_v63 = vld [vmem:[%s2529_s1 + $0x9c0] sm:$0xff] }
  0x1e   :  { %1004 = vmatpush1.bf16.msra.mxu0 %v1003_v23  ;;  %942 = vmatprep.subr.bf16.mxu1 %v941_v24  ;;  %v1017_v0 = vpack.c.bf16 %v353_v57, %v347_v56  ;;  %v352_v1 = vld [vmem:[%s2529_s1 + $0x9f0] sm:$0xff]  ;;  %v167_v2 = vld [vmem:[%s2529_s1 + $0x428] sm:$0xff]  ;;  %v173_v3 = vld [vmem:[%s2529_s1 + $0x458] sm:$0xff]  ;;  %v955_v6 = vpack.c.bf16 %v160_v62, %v154_v61 }
  0x1f   :  { %1006 = vmatprep.subr.bf16.mxu0 %v1005_v28  ;;  %v359_v4 = vld [vmem:[%s2529_s1 + $0xa28] sm:$0xff]  ;;  %v365_v5 = vld [vmem:[%s2529_s1 + $0xa58] sm:$0xff]  ;;  %v166_v7 = vld [vmem:[%s2529_s1 + $0x420] sm:$0xff]  ;;  %v1019_v8 = vpack.c.bf16 %v352_v1, %v346_v63  ;;  %v957_v9 = vpack.c.bf16 %v173_v3, %v167_v2 }
  0x20   :  { %v172_v10 = vld [vmem:[%s2529_s1 + $0x450] sm:$0xff]  ;;  %v358_v11 = vld [vmem:[%s2529_s1 + $0xa20] sm:$0xff]  ;;  %v1021_v13 = vpack.c.bf16 %v365_v5, %v359_v4  ;;  %v179_v14 = vld [vmem:[%s2529_s1 + $0x488] sm:$0xff] }
  0x21   :  { %944 = vmatpush1.bf16.msra.mxu1 %v943_v34  ;;  %v364_v12 = vld [vmem:[%s2529_s1 + $0xa50] sm:$0xff]  ;;  %v185_v15 = vld [vmem:[%s2529_s1 + $0x4b8] sm:$0xff]  ;;  %v1621_v16 = vld [vmem:[%s2530_s0 + $0x8] sm:$0xff]  ;;  %v959_v20 = vpack.c.bf16 %v172_v10, %v166_v7 }
  0x22   :  { %1008 = vmatpush1.bf16.msra.mxu0 %v1007_v35  ;;  %946 = vmatprep.subr.bf16.mxu1 %v945_v36  ;;  %v371_v17 = vld [vmem:[%s2529_s1 + $0xa88] sm:$0xff]  ;;  %v377_v18 = vld [vmem:[%s2529_s1 + $0xab8] sm:$0xff]  ;;  %v1023_v21 = vpack.c.bf16 %v364_v12, %v358_v11  ;;  %v961_v22 = vpack.c.bf16 %v185_v15, %v179_v14  ;;  %v178_v23 = vld [vmem:[%s2529_s1 + $0x480] sm:$0xff] }
  0x23   :  { %1010 = vmatprep.subr.bf16.mxu0 %v1009_v40  ;;  %482 = vmatprep.mubr.f32.mxu1 %v1621_v16  ;;  %v1633_v19 = vld [vmem:[%s2530_s0 + $0x18] sm:$0xff]  ;;  %v184_v24 = vld [vmem:[%s2529_s1 + $0x4b0] sm:$0xff]  ;;  %v370_v25 = vld [vmem:[%s2529_s1 + $0xa80] sm:$0xff]  ;;  %v1025_v26 = vpack.c.bf16 %v377_v18, %v371_v17 }
  0x24   :  { %553 = vmatprep.mubr.f32.mxu0 %v1633_v19  ;;  %v376_v27 = vld [vmem:[%s2529_s1 + $0xab0] sm:$0xff]  ;;  %v191_v28 = vld [vmem:[%s2529_s1 + $0x4e8] sm:$0xff]  ;;  %v197_v29 = vld [vmem:[%s2529_s1 + $0x518] sm:$0xff]  ;;  %v963_v32 = vpack.c.bf16 %v184_v24, %v178_v23 }
  0x25   :  { %948 = vmatpush1.bf16.msra.mxu1 %v947_v46  ;;  %v383_v30 = vld [vmem:[%s2529_s1 + $0xae8] sm:$0xff]  ;;  %v389_v31 = vld [vmem:[%s2529_s1 + $0xb18] sm:$0xff]  ;;  %v1027_v33 = vpack.c.bf16 %v376_v27, %v370_v25  ;;  %v965_v34 = vpack.c.bf16 %v197_v29, %v191_v28  ;;  %v190_v35 = vld [vmem:[%s2529_s1 + $0x4e0] sm:$0xff] }
  0x26   :  { %1012 = vmatpush1.bf16.msra.mxu0 %v1011_v47  ;;  %950 = vmatprep.subr.bf16.mxu1 %v949_v48  ;;  %v196_v36 = vld [vmem:[%s2529_s1 + $0x510] sm:$0xff]  ;;  %v382_v37 = vld [vmem:[%s2529_s1 + $0xae0] sm:$0xff]  ;;  %v1029_v38 = vpack.c.bf16 %v389_v31, %v383_v30  ;;  %v203_v40 = vld [vmem:[%s2529_s1 + $0x548] sm:$0xff] }
  0x27   :  { %1014 = vmatprep.subr.bf16.mxu0 %v1013_v52  ;;  %v388_v39 = vld [vmem:[%s2529_s1 + $0xb10] sm:$0xff]  ;;  %v209_v41 = vld [vmem:[%s2529_s1 + $0x578] sm:$0xff]  ;;  %v395_v42 = vld [vmem:[%s2529_s1 + $0xb48] sm:$0xff]  ;;  %v967_v44 = vpack.c.bf16 %v196_v36, %v190_v35 }
  0x28   :  { %v401_v43 = vld [vmem:[%s2529_s1 + $0xb78] sm:$0xff]  ;;  %v1031_v45 = vpack.c.bf16 %v388_v39, %v382_v37  ;;  %v969_v46 = vpack.c.bf16 %v209_v41, %v203_v40  ;;  %v202_v47 = vld [vmem:[%s2529_s1 + $0x540] sm:$0xff]  ;;  %v208_v48 = vld [vmem:[%s2529_s1 + $0x570] sm:$0xff] }
  0x29   :  { %952 = vmatpush1.bf16.msra.mxu1 %v951_v58  ;;  %v394_v49 = vld [vmem:[%s2529_s1 + $0xb40] sm:$0xff]  ;;  %v1033_v50 = vpack.c.bf16 %v401_v43, %v395_v42  ;;  %v400_v51 = vld [vmem:[%s2529_s1 + $0xb70] sm:$0xff]  ;;  %v215_v52 = vld [vmem:[%s2529_s1 + $0x5a8] sm:$0xff]  ;;  %v971_v56 = vpack.c.bf16 %v208_v48, %v202_v47 }
  0x2a   :  { %1016 = vmatpush1.bf16.msra.mxu0 %v1015_v59  ;;  %954 = vmatprep.subr.bf16.mxu1 %v953_v60  ;;  %v221_v53 = vld [vmem:[%s2529_s1 + $0x5d8] sm:$0xff]  ;;  %v407_v54 = vld [vmem:[%s2529_s1 + $0xba8] sm:$0xff]  ;;  %v1035_v57 = vpack.c.bf16 %v400_v51, %v394_v49  ;;  %v214_v59 = vld [vmem:[%s2529_s1 + $0x5a0] sm:$0xff] }
  0x2b   :  { %1018 = vmatprep.subr.bf16.mxu0 %v1017_v0  ;;  %v413_v55 = vld [vmem:[%s2529_s1 + $0xbd8] sm:$0xff]  ;;  %v973_v58 = vpack.c.bf16 %v221_v53, %v215_v52  ;;  %v220_v60 = vld [vmem:[%s2529_s1 + $0x5d0] sm:$0xff]  ;;  %v406_v61 = vld [vmem:[%s2529_s1 + $0xba0] sm:$0xff] }
  0x2c   :  { %v1037_v62 = vpack.c.bf16 %v413_v55, %v407_v54  ;;  %v412_v63 = vld [vmem:[%s2529_s1 + $0xbd0] sm:$0xff]  ;;  %v37_v0 = vld [vmem:[%s2529_s1 + $0x18] sm:$0xff]  ;;  %v43_v1 = vld [vmem:[%s2529_s1 + $0x48] sm:$0xff]  ;;  %v975_v4 = vpack.c.bf16 %v220_v60, %v214_v59 }
  0x2d   :  { %956 = vmatpush1.bf16.msra.mxu1 %v955_v6  ;;  %v39_v2 = vld [vmem:[%s2529_s1 + $0x28] sm:$0xff]  ;;  %v45_v3 = vld [vmem:[%s2529_s1 + $0x58] sm:$0xff]  ;;  %v1039_v5 = vpack.c.bf16 %v412_v63, %v406_v61  ;;  %v1041_v6 = vpack.c.bf16 %v43_v1, %v37_v0  ;;  %v36_v7 = vld [vmem:[%s2529_s1 + $0x10] sm:$0xff] }
  0x2e   :  { %1020 = vmatpush1.bf16.msra.mxu0 %v1019_v8  ;;  %958 = vmatprep.subr.bf16.mxu1 %v957_v9  ;;  %v42_v8 = vld [vmem:[%s2529_s1 + $0x40] sm:$0xff]  ;;  %v1169_v10 = vpack.c.bf16 %v45_v3, %v39_v2  ;;  %v44_v11 = vld [vmem:[%s2529_s1 + $0x50] sm:$0xff]  ;;  %v49_v12 = vld [vmem:[%s2529_s1 + $0x78] sm:$0xff] }
  0x2f   :  { %1022 = vmatprep.subr.bf16.mxu0 %v1021_v13  ;;  %v38_v9 = vld [vmem:[%s2529_s1 + $0x20] sm:$0xff]  ;;  %v55_v13 = vld [vmem:[%s2529_s1 + $0xa8] sm:$0xff]  ;;  %v57_v15 = vld [vmem:[%s2529_s1 + $0xb8] sm:$0xff] }
  0x30   :  { %v51_v14 = vld [vmem:[%s2529_s1 + $0x88] sm:$0xff]  ;;  %v1759_v17 = vld [vmem:[%s2530_s0] sm:$0xff]  ;;  %v1764_v18 = vld [vmem:[%s2530_s0 + $0x10] sm:$0xff] }
  0x31   :  { %960 = vmatpush1.bf16.msra.mxu1 %v959_v20  ;;  %v1043_v20 = vpack.c.bf16 %v42_v8, %v36_v7  ;;  %v48_v23 = vld [vmem:[%s2529_s1 + $0x70] sm:$0xff]  ;;  %v54_v24 = vld [vmem:[%s2529_s1 + $0xa0] sm:$0xff]  ;;  %v61_v28 = vld [vmem:[%s2529_s1 + $0xd8] sm:$0xff] }
  0x32   :  { %1024 = vmatpush1.bf16.msra.mxu0 %v1023_v21  ;;  %962 = vmatprep.subr.bf16.mxu1 %v961_v22  ;;  %v1171_v21 = vpack.c.bf16 %v44_v11, %v38_v9  ;;  %v1045_v22 = vpack.c.bf16 %v55_v13, %v49_v12  ;;  %v50_v25 = vld [vmem:[%s2529_s1 + $0x80] sm:$0xff]  ;;  %v56_v27 = vld [vmem:[%s2529_s1 + $0xb0] sm:$0xff]  ;;  %v67_v29 = vld [vmem:[%s2529_s1 + $0x108] sm:$0xff] }
  0x33   :  { %1026 = vmatprep.subr.bf16.mxu0 %v1025_v26  ;;  %v1173_v26 = vpack.c.bf16 %v57_v15, %v51_v14  ;;  %v63_v30 = vld [vmem:[%s2529_s1 + $0xe8] sm:$0xff]  ;;  %v69_v31 = vld [vmem:[%s2529_s1 + $0x118] sm:$0xff]  ;;  %v60_v35 = vld [vmem:[%s2529_s1 + $0xd0] sm:$0xff] }
  0x34   :  { %v66_v36 = vld [vmem:[%s2529_s1 + $0x100] sm:$0xff]  ;;  %v68_v39 = vld [vmem:[%s2529_s1 + $0x110] sm:$0xff]  ;;  %v73_v40 = vld [vmem:[%s2529_s1 + $0x138] sm:$0xff] }
  0x35   :  { %964 = vmatpush1.bf16.msra.mxu1 %v963_v32  ;;  %v1047_v32 = vpack.c.bf16 %v54_v24, %v48_v23  ;;  %v62_v37 = vld [vmem:[%s2529_s1 + $0xe0] sm:$0xff]  ;;  %v79_v41 = vld [vmem:[%s2529_s1 + $0x168] sm:$0xff]  ;;  %v81_v43 = vld [vmem:[%s2529_s1 + $0x178] sm:$0xff] }
  0x36   :  { %1028 = vmatpush1.bf16.msra.mxu0 %v1027_v33  ;;  %966 = vmatprep.subr.bf16.mxu1 %v965_v34  ;;  %v1175_v33 = vpack.c.bf16 %v56_v27, %v50_v25  ;;  %v1049_v34 = vpack.c.bf16 %v67_v29, %v61_v28  ;;  %v75_v42 = vld [vmem:[%s2529_s1 + $0x148] sm:$0xff]  ;;  %v72_v47 = vld [vmem:[%s2529_s1 + $0x130] sm:$0xff]  ;;  %v78_v48 = vld [vmem:[%s2529_s1 + $0x160] sm:$0xff] }
  0x37   :  { %1030 = vmatprep.subr.bf16.mxu0 %v1029_v38  ;;  %v1177_v38 = vpack.c.bf16 %v69_v31, %v63_v30  ;;  %v74_v49 = vld [vmem:[%s2529_s1 + $0x140] sm:$0xff]  ;;  %v85_v51 = vld [vmem:[%s2529_s1 + $0x198] sm:$0xff]  ;;  %v91_v52 = vld [vmem:[%s2529_s1 + $0x1c8] sm:$0xff]  ;;  %v1055_v55 = vpack.c.bf16 %v78_v48, %v72_v47 }
  0x38   :  { %v87_v53 = vld [vmem:[%s2529_s1 + $0x1a8] sm:$0xff]  ;;  %v93_v54 = vld [vmem:[%s2529_s1 + $0x1d8] sm:$0xff]  ;;  %v90_v59 = vld [vmem:[%s2529_s1 + $0x1c0] sm:$0xff] }
  0x39   :  { %968 = vmatpush1.bf16.msra.mxu1 %v967_v44  ;;  %v1051_v44 = vpack.c.bf16 %v66_v36, %v60_v35  ;;  %v86_v60 = vld [vmem:[%s2529_s1 + $0x1a0] sm:$0xff]  ;;  %v1185_v61 = vpack.c.bf16 %v93_v54, %v87_v53  ;;  %v97_v63 = vld [vmem:[%s2529_s1 + $0x1f8] sm:$0xff]  ;;  %v103_v0 = vld [vmem:[%s2529_s1 + $0x228] sm:$0xff] }
  0x3a   :  { %1032 = vmatpush1.bf16.msra.mxu0 %v1031_v45  ;;  %970 = vmatprep.subr.bf16.mxu1 %v969_v46  ;;  %v1179_v45 = vpack.c.bf16 %v68_v39, %v62_v37  ;;  %v1053_v46 = vpack.c.bf16 %v79_v41, %v73_v40  ;;  %v99_v1 = vld [vmem:[%s2529_s1 + $0x208] sm:$0xff]  ;;  %v105_v2 = vld [vmem:[%s2529_s1 + $0x238] sm:$0xff]  ;;  %v102_v7 = vld [vmem:[%s2529_s1 + $0x220] sm:$0xff] }
  0x3b   :  { %1034 = vmatprep.subr.bf16.mxu0 %v1033_v50  ;;  %v80_v50 = vld [vmem:[%s2529_s1 + $0x170] sm:$0xff]  ;;  %v98_v8 = vld [vmem:[%s2529_s1 + $0x200] sm:$0xff]  ;;  %v1189_v9 = vpack.c.bf16 %v105_v2, %v99_v1  ;;  %v109_v11 = vld [vmem:[%s2529_s1 + $0x258] sm:$0xff] }
  0x3c   :  { %v115_v12 = vld [vmem:[%s2529_s1 + $0x288] sm:$0xff]  ;;  %v117_v14 = vld [vmem:[%s2529_s1 + $0x298] sm:$0xff]  ;;  %v114_v23 = vld [vmem:[%s2529_s1 + $0x280] sm:$0xff] }
  0x3d   :  { %972 = vmatpush1.bf16.msra.mxu1 %v971_v56  ;;  %v1183_v56 = vpack.c.bf16 %v80_v50, %v74_v49  ;;  %v111_v13 = vld [vmem:[%s2529_s1 + $0x268] sm:$0xff]  ;;  %v110_v24 = vld [vmem:[%s2529_s1 + $0x260] sm:$0xff]  ;;  %v121_v27 = vld [vmem:[%s2529_s1 + $0x2b8] sm:$0xff] }
  0x3e   :  { %1036 = vmatpush1.bf16.msra.mxu0 %v1035_v57  ;;  %974 = vmatprep.subr.bf16.mxu1 %v973_v58  ;;  %v1057_v57 = vpack.c.bf16 %v91_v52, %v85_v51  ;;  %v84_v58 = vld [vmem:[%s2529_s1 + $0x190] sm:$0xff]  ;;  %v1193_v25 = vpack.c.bf16 %v117_v14, %v111_v13  ;;  %v127_v28 = vld [vmem:[%s2529_s1 + $0x2e8] sm:$0xff]  ;;  %v129_v30 = vld [vmem:[%s2529_s1 + $0x2f8] sm:$0xff] }
  0x3f   :  { %1038 = vmatprep.subr.bf16.mxu0 %v1037_v62  ;;  %v92_v62 = vld [vmem:[%s2529_s1 + $0x1d0] sm:$0xff]  ;;  %v1059_v3 = vpack.c.bf16 %v90_v59, %v84_v58  ;;  %v123_v29 = vld [vmem:[%s2529_s1 + $0x2c8] sm:$0xff]  ;;  %v126_v35 = vld [vmem:[%s2529_s1 + $0x2e0] sm:$0xff] }
  0x40   :  { %v122_v36 = vld [vmem:[%s2529_s1 + $0x2c0] sm:$0xff]  ;;  %v1197_v37 = vpack.c.bf16 %v129_v30, %v123_v29  ;;  %v133_v39 = vld [vmem:[%s2529_s1 + $0x318] sm:$0xff]  ;;  %v139_v40 = vld [vmem:[%s2529_s1 + $0x348] sm:$0xff] }
  0x41   :  { %976 = vmatpush1.bf16.msra.mxu1 %v975_v4  ;;  %v1187_v4 = vpack.c.bf16 %v92_v62, %v86_v60  ;;  %v135_v41 = vld [vmem:[%s2529_s1 + $0x328] sm:$0xff]  ;;  %v138_v47 = vld [vmem:[%s2529_s1 + $0x340] sm:$0xff]  ;;  %v145_v50 = vld [vmem:[%s2529_s1 + $0x378] sm:$0xff] }
  0x42   :  { %1040 = vmatpush1.bf16.msra.mxu0 %v1039_v5  ;;  %1042 = vmatprep.subr.bf16.mxu1 %v1041_v6  ;;  %v1061_v5 = vpack.c.bf16 %v103_v0, %v97_v63  ;;  %v96_v6 = vld [vmem:[%s2529_s1 + $0x1f0] sm:$0xff]  ;;  %v134_v48 = vld [vmem:[%s2529_s1 + $0x320] sm:$0xff]  ;;  %v151_v51 = vld [vmem:[%s2529_s1 + $0x3a8] sm:$0xff] }
  0x43   :  { %1170 = vmatprep.subr.bf16.mxu0 %v1169_v10  ;;  %v104_v10 = vld [vmem:[%s2529_s1 + $0x230] sm:$0xff]  ;;  %v1063_v15 = vpack.c.bf16 %v102_v7, %v96_v6  ;;  %v147_v52 = vld [vmem:[%s2529_s1 + $0x388] sm:$0xff]  ;;  %v153_v53 = vld [vmem:[%s2529_s1 + $0x3b8] sm:$0xff] }
  0x44   :  { %483 = vmatmul.mubr.f32.vlgmr.msra.gmra.mrb[0].mxu1 %v1759_v17  ;;  %v150_v58 = vld [vmem:[%s2529_s1 + $0x3a0] sm:$0xff]  ;;  %v1205_v60 = vpack.c.bf16 %v153_v53, %v147_v52  ;;  %v157_v62 = vld [vmem:[%s2529_s1 + $0x3d8] sm:$0xff]  ;;  %v163_v63 = vld [vmem:[%s2529_s1 + $0x408] sm:$0xff] }
  0x45   :  { %554 = vmatmul.mubr.f32.vlgmr.msra.gmra.mrb[0].mxu0 %v1764_v18  ;;  %1044 = vmatpush1.bf16.msra.mxu1 %v1043_v20  ;;  %v1191_v20 = vpack.c.bf16 %v104_v10, %v98_v8  ;;  %v146_v59 = vld [vmem:[%s2529_s1 + $0x380] sm:$0xff]  ;;  %v159_v0 = vld [vmem:[%s2529_s1 + $0x3e8] sm:$0xff]  ;;  %v165_v1 = vld [vmem:[%s2529_s1 + $0x418] sm:$0xff] }
  0x46   :  { %1172 = vmatpush1.bf16.msra.mxu0 %v1171_v21  ;;  %1046 = vmatprep.subr.bf16.mxu1 %v1045_v22  ;;  %v1065_v21 = vpack.c.bf16 %v115_v12, %v109_v11  ;;  %v108_v22 = vld [vmem:[%s2529_s1 + $0x250] sm:$0xff]  ;;  %v162_v6 = vld [vmem:[%s2529_s1 + $0x400] sm:$0xff]  ;;  %v1209_v8 = vpack.c.bf16 %v165_v1, %v159_v0  ;;  %v169_v10 = vld [vmem:[%s2529_s1 + $0x438] sm:$0xff] }
  0x47   :  { %1174 = vmatprep.subr.bf16.mxu0 %v1173_v26  ;;  %624 = vmatprep.mubr.f32.mxu1 %v1621_v16  ;;  %v116_v26 = vld [vmem:[%s2529_s1 + $0x290] sm:$0xff]  ;;  %v1067_v31 = vpack.c.bf16 %v114_v23, %v108_v22  ;;  %v158_v7 = vld [vmem:[%s2529_s1 + $0x3e0] sm:$0xff]  ;;  %v175_v11 = vld [vmem:[%s2529_s1 + $0x468] sm:$0xff] }
  0x48   :  { %766 = vmatprep.mubr.f32.mxu0 %v1621_v16  ;;  %v1181_v16 = vpack.c.bf16 %v81_v43, %v75_v42  ;;  %v141_v42 = vld [vmem:[%s2529_s1 + $0x358] sm:$0xff]  ;;  %v171_v12 = vld [vmem:[%s2529_s1 + $0x448] sm:$0xff]  ;;  %v174_v22 = vld [vmem:[%s2529_s1 + $0x460] sm:$0xff] }
  0x49   :  { %1048 = vmatpush1.bf16.msra.mxu1 %v1047_v32  ;;  %v1195_v32 = vpack.c.bf16 %v116_v26, %v110_v24  ;;  %v1201_v49 = vpack.c.bf16 %v141_v42, %v135_v41  ;;  %v177_v13 = vld [vmem:[%s2529_s1 + $0x478] sm:$0xff]  ;;  %v170_v23 = vld [vmem:[%s2529_s1 + $0x440] sm:$0xff] }
  0x4a   :  { %1176 = vmatpush1.bf16.msra.mxu0 %v1175_v33  ;;  %1050 = vmatprep.subr.bf16.mxu1 %v1049_v34  ;;  %v1069_v33 = vpack.c.bf16 %v127_v28, %v121_v27  ;;  %v120_v34 = vld [vmem:[%s2529_s1 + $0x2b0] sm:$0xff]  ;;  %v1213_v24 = vpack.c.bf16 %v177_v13, %v171_v12  ;;  %v181_v26 = vld [vmem:[%s2529_s1 + $0x498] sm:$0xff]  ;;  %v187_v27 = vld [vmem:[%s2529_s1 + $0x4c8] sm:$0xff] }
  0x4b   :  { %1178 = vmatprep.subr.bf16.mxu0 %v1177_v38  ;;  %v128_v38 = vld [vmem:[%s2529_s1 + $0x2f0] sm:$0xff]  ;;  %v1071_v43 = vpack.c.bf16 %v126_v35, %v120_v34  ;;  %v183_v28 = vld [vmem:[%s2529_s1 + $0x4a8] sm:$0xff]  ;;  %v189_v29 = vld [vmem:[%s2529_s1 + $0x4d8] sm:$0xff] }
  0x4c   :  { %v186_v34 = vld [vmem:[%s2529_s1 + $0x4c0] sm:$0xff]  ;;  %v201_v41 = vld [vmem:[%s2529_s1 + $0x538] sm:$0xff] }
  0x4d   :  { %1052 = vmatpush1.bf16.msra.mxu1 %v1051_v44  ;;  %v1199_v44 = vpack.c.bf16 %v128_v38, %v122_v36  ;;  %v182_v35 = vld [vmem:[%s2529_s1 + $0x4a0] sm:$0xff]  ;;  %v1217_v36 = vpack.c.bf16 %v189_v29, %v183_v28  ;;  %v193_v38 = vld [vmem:[%s2529_s1 + $0x4f8] sm:$0xff] }
  0x4e   :  { %1180 = vmatpush1.bf16.msra.mxu0 %v1179_v45  ;;  %1054 = vmatprep.subr.bf16.mxu1 %v1053_v46  ;;  %v1073_v45 = vpack.c.bf16 %v139_v40, %v133_v39  ;;  %v132_v46 = vld [vmem:[%s2529_s1 + $0x310] sm:$0xff]  ;;  %v199_v39 = vld [vmem:[%s2529_s1 + $0x528] sm:$0xff]  ;;  %v213_v52 = vld [vmem:[%s2529_s1 + $0x598] sm:$0xff] }
  0x4f   :  { %1182 = vmatprep.subr.bf16.mxu0 %v1181_v16  ;;  %v140_v16 = vld [vmem:[%s2529_s1 + $0x350] sm:$0xff]  ;;  %v1075_v54 = vpack.c.bf16 %v138_v47, %v132_v46  ;;  %v195_v40 = vld [vmem:[%s2529_s1 + $0x508] sm:$0xff]  ;;  %v198_v46 = vld [vmem:[%s2529_s1 + $0x520] sm:$0xff] }
  0x50   :  { %v194_v47 = vld [vmem:[%s2529_s1 + $0x500] sm:$0xff]  ;;  %v225_v0 = vld [vmem:[%s2529_s1 + $0x5f8] sm:$0xff] }
  0x51   :  { %1056 = vmatpush1.bf16.msra.mxu1 %v1055_v55  ;;  %v1203_v55 = vpack.c.bf16 %v140_v16, %v134_v48  ;;  %v1221_v48 = vpack.c.bf16 %v201_v41, %v195_v40  ;;  %v205_v16 = vld [vmem:[%s2529_s1 + $0x558] sm:$0xff] }
  0x52   :  { %1184 = vmatpush1.bf16.msra.mxu0 %v1183_v56  ;;  %1058 = vmatprep.subr.bf16.mxu1 %v1057_v57  ;;  %v1077_v56 = vpack.c.bf16 %v151_v51, %v145_v50  ;;  %v144_v57 = vld [vmem:[%s2529_s1 + $0x370] sm:$0xff]  ;;  %v211_v50 = vld [vmem:[%s2529_s1 + $0x588] sm:$0xff]  ;;  %v237_v12 = vld [vmem:[%s2529_s1 + $0x658] sm:$0xff] }
  0x53   :  { %1186 = vmatprep.subr.bf16.mxu0 %v1185_v61  ;;  %v152_v61 = vld [vmem:[%s2529_s1 + $0x3b0] sm:$0xff]  ;;  %v1079_v2 = vpack.c.bf16 %v150_v58, %v144_v57  ;;  %v207_v51 = vld [vmem:[%s2529_s1 + $0x568] sm:$0xff]  ;;  %v210_v57 = vld [vmem:[%s2529_s1 + $0x580] sm:$0xff] }
  0x54   :  { %v206_v58 = vld [vmem:[%s2529_s1 + $0x560] sm:$0xff]  ;;  %v249_v28 = vld [vmem:[%s2529_s1 + $0x6b8] sm:$0xff] }
  0x55   :  { %1060 = vmatpush1.bf16.msra.mxu1 %v1059_v3  ;;  %v1207_v3 = vpack.c.bf16 %v152_v61, %v146_v59  ;;  %v1225_v59 = vpack.c.bf16 %v213_v52, %v207_v51  ;;  %v217_v61 = vld [vmem:[%s2529_s1 + $0x5b8] sm:$0xff] }
  0x56   :  { %1188 = vmatpush1.bf16.msra.mxu0 %v1187_v4  ;;  %1062 = vmatprep.subr.bf16.mxu1 %v1061_v5  ;;  %v1081_v4 = vpack.c.bf16 %v163_v63, %v157_v62  ;;  %v156_v5 = vld [vmem:[%s2529_s1 + $0x3d0] sm:$0xff]  ;;  %v223_v62 = vld [vmem:[%s2529_s1 + $0x5e8] sm:$0xff]  ;;  %v261_v40 = vld [vmem:[%s2529_s1 + $0x718] sm:$0xff] }
  0x57   :  { %1190 = vmatprep.subr.bf16.mxu0 %v1189_v9  ;;  %v164_v9 = vld [vmem:[%s2529_s1 + $0x410] sm:$0xff]  ;;  %v1083_v14 = vpack.c.bf16 %v162_v6, %v156_v5  ;;  %v219_v63 = vld [vmem:[%s2529_s1 + $0x5c8] sm:$0xff]  ;;  %v222_v5 = vld [vmem:[%s2529_s1 + $0x5e0] sm:$0xff] }
  0x58   :  { %v218_v6 = vld [vmem:[%s2529_s1 + $0x5c0] sm:$0xff] }
  0x59   :  { %1064 = vmatpush1.bf16.msra.mxu1 %v1063_v15  ;;  %v1211_v15 = vpack.c.bf16 %v164_v9, %v158_v7  ;;  %v1229_v7 = vpack.c.bf16 %v225_v0, %v219_v63  ;;  %v229_v9 = vld [vmem:[%s2529_s1 + $0x618] sm:$0xff] }
  0x5a   :  { %1192 = vmatpush1.bf16.msra.mxu0 %v1191_v20  ;;  %1066 = vmatprep.subr.bf16.mxu1 %v1065_v21  ;;  %v1085_v20 = vpack.c.bf16 %v175_v11, %v169_v10  ;;  %v168_v21 = vld [vmem:[%s2529_s1 + $0x430] sm:$0xff]  ;;  %v235_v10 = vld [vmem:[%s2529_s1 + $0x648] sm:$0xff] }
  0x5b   :  { %1194 = vmatprep.subr.bf16.mxu0 %v1193_v25  ;;  %v176_v25 = vld [vmem:[%s2529_s1 + $0x470] sm:$0xff]  ;;  %v1087_v30 = vpack.c.bf16 %v174_v22, %v168_v21  ;;  %v231_v11 = vld [vmem:[%s2529_s1 + $0x628] sm:$0xff]  ;;  %v234_v21 = vld [vmem:[%s2529_s1 + $0x640] sm:$0xff] }
  0x5c   :  { %v230_v22 = vld [vmem:[%s2529_s1 + $0x620] sm:$0xff] }
  0x5d   :  { %1068 = vmatpush1.bf16.msra.mxu1 %v1067_v31  ;;  %v1215_v31 = vpack.c.bf16 %v176_v25, %v170_v23  ;;  %v1233_v23 = vpack.c.bf16 %v237_v12, %v231_v11  ;;  %v241_v25 = vld [vmem:[%s2529_s1 + $0x678] sm:$0xff] }
  0x5e   :  { %1196 = vmatpush1.bf16.msra.mxu0 %v1195_v32  ;;  %1070 = vmatprep.subr.bf16.mxu1 %v1069_v33  ;;  %v1089_v32 = vpack.c.bf16 %v187_v27, %v181_v26  ;;  %v180_v33 = vld [vmem:[%s2529_s1 + $0x490] sm:$0xff]  ;;  %v247_v26 = vld [vmem:[%s2529_s1 + $0x6a8] sm:$0xff] }
  0x5f   :  { %1198 = vmatprep.subr.bf16.mxu0 %v1197_v37  ;;  %v188_v37 = vld [vmem:[%s2529_s1 + $0x4d0] sm:$0xff]  ;;  %v1091_v42 = vpack.c.bf16 %v186_v34, %v180_v33  ;;  %v243_v27 = vld [vmem:[%s2529_s1 + $0x688] sm:$0xff]  ;;  %v246_v33 = vld [vmem:[%s2529_s1 + $0x6a0] sm:$0xff] }
  0x60   :  { %v242_v34 = vld [vmem:[%s2529_s1 + $0x680] sm:$0xff] }
  0x61   :  { %1072 = vmatpush1.bf16.msra.mxu1 %v1071_v43  ;;  %v1219_v43 = vpack.c.bf16 %v188_v37, %v182_v35  ;;  %v1237_v35 = vpack.c.bf16 %v249_v28, %v243_v27  ;;  %v253_v37 = vld [vmem:[%s2529_s1 + $0x6d8] sm:$0xff] }
  0x62   :  { %1200 = vmatpush1.bf16.msra.mxu0 %v1199_v44  ;;  %1074 = vmatprep.subr.bf16.mxu1 %v1073_v45  ;;  %v1093_v44 = vpack.c.bf16 %v199_v39, %v193_v38  ;;  %v192_v45 = vld [vmem:[%s2529_s1 + $0x4f0] sm:$0xff]  ;;  %v259_v38 = vld [vmem:[%s2529_s1 + $0x708] sm:$0xff] }
  0x63   :  { %1202 = vmatprep.subr.bf16.mxu0 %v1201_v49  ;;  %v200_v49 = vld [vmem:[%s2529_s1 + $0x530] sm:$0xff]  ;;  %v1095_v53 = vpack.c.bf16 %v198_v46, %v192_v45  ;;  %v255_v39 = vld [vmem:[%s2529_s1 + $0x6e8] sm:$0xff]  ;;  %v258_v45 = vld [vmem:[%s2529_s1 + $0x700] sm:$0xff] }
  0x64   :  { %v254_v46 = vld [vmem:[%s2529_s1 + $0x6e0] sm:$0xff] }
  0x65   :  { %1076 = vmatpush1.bf16.msra.mxu1 %v1075_v54  ;;  %v1223_v54 = vpack.c.bf16 %v200_v49, %v194_v47  ;;  %v1241_v47 = vpack.c.bf16 %v261_v40, %v255_v39  ;;  %v271_v49 = vld [vmem:[%s2529_s1 + $0x768] sm:$0xff] }
  0x66   :  { %1204 = vmatpush1.bf16.msra.mxu0 %v1203_v55  ;;  %1078 = vmatprep.subr.bf16.mxu1 %v1077_v56  ;;  %v1097_v55 = vpack.c.bf16 %v211_v50, %v205_v16  ;;  %v204_v56 = vld [vmem:[%s2529_s1 + $0x550] sm:$0xff]  ;;  %v267_v16 = vld [vmem:[%s2529_s1 + $0x748] sm:$0xff]  ;;  %v273_v50 = vld [vmem:[%s2529_s1 + $0x778] sm:$0xff] }
  0x67   :  { %1206 = vmatprep.subr.bf16.mxu0 %v1205_v60  ;;  %v212_v60 = vld [vmem:[%s2529_s1 + $0x590] sm:$0xff]  ;;  %v1099_v1 = vpack.c.bf16 %v210_v57, %v204_v56  ;;  %v266_v56 = vld [vmem:[%s2529_s1 + $0x740] sm:$0xff] }
  0x68   :  { %v272_v57 = vld [vmem:[%s2529_s1 + $0x770] sm:$0xff] }
  0x69   :  { %1080 = vmatpush1.bf16.msra.mxu1 %v1079_v2  ;;  %v1227_v2 = vpack.c.bf16 %v212_v60, %v206_v58  ;;  %v277_v58 = vld [vmem:[%s2529_s1 + $0x798] sm:$0xff]  ;;  %v279_v60 = vld [vmem:[%s2529_s1 + $0x7a8] sm:$0xff]  ;;  %v1247_v63 = vpack.c.bf16 %v272_v57, %v266_v56 }
  0x6a   :  { %1208 = vmatpush1.bf16.msra.mxu0 %v1207_v3  ;;  %1082 = vmatprep.subr.bf16.mxu1 %v1081_v4  ;;  %v1101_v3 = vpack.c.bf16 %v223_v62, %v217_v61  ;;  %v216_v4 = vld [vmem:[%s2529_s1 + $0x5b0] sm:$0xff]  ;;  %v285_v61 = vld [vmem:[%s2529_s1 + $0x7d8] sm:$0xff]  ;;  %v339_v57 = vld [vmem:[%s2529_s1 + $0x988] sm:$0xff] }
  0x6b   :  { %1210 = vmatprep.subr.bf16.mxu0 %v1209_v8  ;;  %v224_v8 = vld [vmem:[%s2529_s1 + $0x5f0] sm:$0xff]  ;;  %v1103_v13 = vpack.c.bf16 %v222_v5, %v216_v4  ;;  %v1249_v4 = vpack.c.bf16 %v285_v61, %v279_v60  ;;  %v337_v56 = vld [vmem:[%s2529_s1 + $0x978] sm:$0xff] }
  0x6c   :  { %v284_v5 = vld [vmem:[%s2529_s1 + $0x7d0] sm:$0xff] }
  0x6d   :  { %1084 = vmatpush1.bf16.msra.mxu1 %v1083_v14  ;;  %v1231_v14 = vpack.c.bf16 %v224_v8, %v218_v6  ;;  %v289_v6 = vld [vmem:[%s2529_s1 + $0x7f8] sm:$0xff]  ;;  %v291_v8 = vld [vmem:[%s2529_s1 + $0x808] sm:$0xff] }
  0x6e   :  { %1212 = vmatpush1.bf16.msra.mxu0 %v1211_v15  ;;  %1086 = vmatprep.subr.bf16.mxu1 %v1085_v20  ;;  %v1105_v15 = vpack.c.bf16 %v235_v10, %v229_v9  ;;  %v228_v20 = vld [vmem:[%s2529_s1 + $0x610] sm:$0xff]  ;;  %v297_v9 = vld [vmem:[%s2529_s1 + $0x838] sm:$0xff] }
  0x6f   :  { %1214 = vmatprep.subr.bf16.mxu0 %v1213_v24  ;;  %v236_v24 = vld [vmem:[%s2529_s1 + $0x650] sm:$0xff]  ;;  %v1107_v29 = vpack.c.bf16 %v234_v21, %v228_v20  ;;  %v1253_v20 = vpack.c.bf16 %v297_v9, %v291_v8 }
  0x70   :  { %v296_v21 = vld [vmem:[%s2529_s1 + $0x830] sm:$0xff] }
  0x71   :  { %1088 = vmatpush1.bf16.msra.mxu1 %v1087_v30  ;;  %v1235_v30 = vpack.c.bf16 %v236_v24, %v230_v22  ;;  %v301_v22 = vld [vmem:[%s2529_s1 + $0x858] sm:$0xff]  ;;  %v303_v24 = vld [vmem:[%s2529_s1 + $0x868] sm:$0xff] }
  0x72   :  { %1216 = vmatpush1.bf16.msra.mxu0 %v1215_v31  ;;  %1090 = vmatprep.subr.bf16.mxu1 %v1089_v32  ;;  %v1109_v31 = vpack.c.bf16 %v247_v26, %v241_v25  ;;  %v240_v32 = vld [vmem:[%s2529_s1 + $0x670] sm:$0xff]  ;;  %v309_v25 = vld [vmem:[%s2529_s1 + $0x898] sm:$0xff] }
  0x73   :  { %1218 = vmatprep.subr.bf16.mxu0 %v1217_v36  ;;  %v248_v36 = vld [vmem:[%s2529_s1 + $0x6b0] sm:$0xff]  ;;  %v1111_v41 = vpack.c.bf16 %v246_v33, %v240_v32  ;;  %v1257_v32 = vpack.c.bf16 %v309_v25, %v303_v24 }
  0x74   :  { %v308_v33 = vld [vmem:[%s2529_s1 + $0x890] sm:$0xff] }
  0x75   :  { %1092 = vmatpush1.bf16.msra.mxu1 %v1091_v42  ;;  %v1239_v42 = vpack.c.bf16 %v248_v36, %v242_v34  ;;  %v313_v34 = vld [vmem:[%s2529_s1 + $0x8b8] sm:$0xff]  ;;  %v315_v36 = vld [vmem:[%s2529_s1 + $0x8c8] sm:$0xff] }
  0x76   :  { %1220 = vmatpush1.bf16.msra.mxu0 %v1219_v43  ;;  %1094 = vmatprep.subr.bf16.mxu1 %v1093_v44  ;;  %v1113_v43 = vpack.c.bf16 %v259_v38, %v253_v37  ;;  %v252_v44 = vld [vmem:[%s2529_s1 + $0x6d0] sm:$0xff]  ;;  %v321_v37 = vld [vmem:[%s2529_s1 + $0x8f8] sm:$0xff] }
  0x77   :  { %1222 = vmatprep.subr.bf16.mxu0 %v1221_v48  ;;  %v265_v48 = vld [vmem:[%s2529_s1 + $0x738] sm:$0xff]  ;;  %v1115_v51 = vpack.c.bf16 %v258_v45, %v252_v44  ;;  %v1261_v44 = vpack.c.bf16 %v321_v37, %v315_v36  ;;  %v320_v45 = vld [vmem:[%s2529_s1 + $0x8f0] sm:$0xff] }
  0x79   :  { %1096 = vmatpush1.bf16.msra.mxu1 %v1095_v53  ;;  %v1117_v53 = vpack.c.bf16 %v271_v49, %v265_v48  ;;  %v333_v48 = vld [vmem:[%s2529_s1 + $0x958] sm:$0xff] }
  0x7a   :  { %1224 = vmatpush1.bf16.msra.mxu0 %v1223_v54  ;;  %1098 = vmatprep.subr.bf16.mxu1 %v1097_v55  ;;  %v264_v54 = vld [vmem:[%s2529_s1 + $0x730] sm:$0xff]  ;;  %v270_v55 = vld [vmem:[%s2529_s1 + $0x760] sm:$0xff] }
  0x7b   :  { %1226 = vmatprep.subr.bf16.mxu0 %v1225_v59  ;;  %v283_v59 = vld [vmem:[%s2529_s1 + $0x7c8] sm:$0xff]  ;;  %v1119_v62 = vpack.c.bf16 %v270_v55, %v264_v54  ;;  %v332_v55 = vld [vmem:[%s2529_s1 + $0x950] sm:$0xff] }
  0x7c   :  { %v1121_v0 = vpack.c.bf16 %v283_v59, %v277_v58  ;;  %v345_v58 = vld [vmem:[%s2529_s1 + $0x9b8] sm:$0xff] }
  0x7d   :  { %1100 = vmatpush1.bf16.msra.mxu1 %v1099_v1  ;;  %v276_v1 = vld [vmem:[%s2529_s1 + $0x790] sm:$0xff] }
  0x7e   :  { %1228 = vmatpush1.bf16.msra.mxu0 %v1227_v2  ;;  %1102 = vmatprep.subr.bf16.mxu1 %v1101_v3  ;;  %v282_v2 = vld [vmem:[%s2529_s1 + $0x7c0] sm:$0xff] }
  0x7f   :  { %1230 = vmatprep.subr.bf16.mxu0 %v1229_v7  ;;  %v278_v3 = vld [vmem:[%s2529_s1 + $0x7a0] sm:$0xff]  ;;  %v295_v7 = vld [vmem:[%s2529_s1 + $0x828] sm:$0xff]  ;;  %v1123_v10 = vpack.c.bf16 %v282_v2, %v276_v1  ;;  %v1269_v1 = vpack.c.bf16 %v345_v58, %v339_v57  ;;  %v344_v2 = vld [vmem:[%s2529_s1 + $0x9b0] sm:$0xff] }
  0x80   :  { %v1251_v11 = vpack.c.bf16 %v284_v5, %v278_v3  ;;  %v1125_v12 = vpack.c.bf16 %v295_v7, %v289_v6  ;;  %v349_v3 = vld [vmem:[%s2529_s1 + $0x9d8] sm:$0xff]  ;;  %v351_v5 = vld [vmem:[%s2529_s1 + $0x9e8] sm:$0xff] }
  0x81   :  { %1104 = vmatpush1.bf16.msra.mxu1 %v1103_v13  ;;  %v288_v13 = vld [vmem:[%s2529_s1 + $0x7f0] sm:$0xff]  ;;  %v357_v6 = vld [vmem:[%s2529_s1 + $0xa18] sm:$0xff] }
  0x82   :  { %1232 = vmatpush1.bf16.msra.mxu0 %v1231_v14  ;;  %1106 = vmatprep.subr.bf16.mxu1 %v1105_v15  ;;  %v294_v14 = vld [vmem:[%s2529_s1 + $0x820] sm:$0xff] }
  0x83   :  { %1234 = vmatprep.subr.bf16.mxu0 %v1233_v23  ;;  %v290_v15 = vld [vmem:[%s2529_s1 + $0x800] sm:$0xff]  ;;  %v307_v23 = vld [vmem:[%s2529_s1 + $0x888] sm:$0xff]  ;;  %v1127_v26 = vpack.c.bf16 %v294_v14, %v288_v13  ;;  %v1273_v13 = vpack.c.bf16 %v357_v6, %v351_v5  ;;  %v356_v14 = vld [vmem:[%s2529_s1 + $0xa10] sm:$0xff] }
  0x84   :  { %625 = vmatmul.mubr.f32.vlgmr.msra.gmra.mrb[2].mxu1 %v1759_v17  ;;  %v1255_v27 = vpack.c.bf16 %v296_v21, %v290_v15  ;;  %v1129_v28 = vpack.c.bf16 %v307_v23, %v301_v22  ;;  %v361_v15 = vld [vmem:[%s2529_s1 + $0xa38] sm:$0xff]  ;;  %v363_v21 = vld [vmem:[%s2529_s1 + $0xa48] sm:$0xff] }
  0x85   :  { %1108 = vmatpush1.bf16.msra.mxu1 %v1107_v29  ;;  %767 = vmatmul.mubr.f32.vlgmr.msra.gmra.mrb[2].mxu0 %v1759_v17  ;;  %v260_v17 = vld [vmem:[%s2529_s1 + $0x710] sm:$0xff]  ;;  %v369_v22 = vld [vmem:[%s2529_s1 + $0xa78] sm:$0xff] }
  0x86   :  { %1236 = vmatpush1.bf16.msra.mxu0 %v1235_v30  ;;  %1110 = vmatprep.subr.bf16.mxu1 %v1109_v31  ;;  %v1243_v52 = vpack.c.bf16 %v260_v17, %v254_v46  ;;  %v300_v29 = vld [vmem:[%s2529_s1 + $0x850] sm:$0xff]  ;;  %v306_v30 = vld [vmem:[%s2529_s1 + $0x880] sm:$0xff]  ;;  %v325_v46 = vld [vmem:[%s2529_s1 + $0x918] sm:$0xff] }
  0x87   :  { %1238 = vmatprep.subr.bf16.mxu0 %v1237_v35  ;;  %695 = vmatprep.mubr.f32.mxu1 %v1633_v19  ;;  %v302_v31 = vld [vmem:[%s2529_s1 + $0x860] sm:$0xff]  ;;  %v319_v35 = vld [vmem:[%s2529_s1 + $0x8e8] sm:$0xff]  ;;  %v1131_v38 = vpack.c.bf16 %v306_v30, %v300_v29  ;;  %v1277_v29 = vpack.c.bf16 %v369_v22, %v363_v21  ;;  %v368_v30 = vld [vmem:[%s2529_s1 + $0xa70] sm:$0xff] }
  0x88   :  { %837 = vmatprep.mubr.f32.mxu0 %v1633_v19  ;;  %v1245_v19 = vpack.c.bf16 %v273_v50, %v267_v16  ;;  %v1259_v39 = vpack.c.bf16 %v308_v33, %v302_v31  ;;  %v1133_v40 = vpack.c.bf16 %v319_v35, %v313_v34  ;;  %v327_v17 = vld [vmem:[%s2529_s1 + $0x928] sm:$0xff]  ;;  %v373_v31 = vld [vmem:[%s2529_s1 + $0xa98] sm:$0xff]  ;;  %v865_v21 = vld [vmem:[%s2531_s2] sm:$0x3f] }
  0x89   :  { %1112 = vmatpush1.bf16.msra.mxu1 %v1111_v41  ;;  %v312_v41 = vld [vmem:[%s2529_s1 + $0x8b0] sm:$0xff]  ;;  %v1265_v54 = vpack.c.bf16 %v333_v48, %v327_v17  ;;  %v375_v33 = vld [vmem:[%s2529_s1 + $0xaa8] sm:$0xff]  ;;  %v381_v34 = vld [vmem:[%s2529_s1 + $0xad8] sm:$0xff] }
  0x8a   :  { %1240 = vmatpush1.bf16.msra.mxu0 %v1239_v42  ;;  %1114 = vmatprep.subr.bf16.mxu1 %v1113_v43  ;;  %v318_v42 = vld [vmem:[%s2529_s1 + $0x8e0] sm:$0xff] }
  0x8b   :  { %1242 = vmatprep.subr.bf16.mxu0 %v1241_v47  ;;  %v314_v43 = vld [vmem:[%s2529_s1 + $0x8c0] sm:$0xff]  ;;  %v331_v47 = vld [vmem:[%s2529_s1 + $0x948] sm:$0xff]  ;;  %v1135_v49 = vpack.c.bf16 %v318_v42, %v312_v41  ;;  %v1281_v41 = vpack.c.bf16 %v381_v34, %v375_v33  ;;  %v380_v42 = vld [vmem:[%s2529_s1 + $0xad0] sm:$0xff] }
  0x8c   :  { %v1263_v16 = vpack.c.bf16 %v320_v45, %v314_v43  ;;  %v1137_v50 = vpack.c.bf16 %v331_v47, %v325_v46  ;;  %v385_v43 = vld [vmem:[%s2529_s1 + $0xaf8] sm:$0xff]  ;;  %v387_v45 = vld [vmem:[%s2529_s1 + $0xb08] sm:$0xff] }
  0x8d   :  { %1116 = vmatpush1.bf16.msra.mxu1 %v1115_v51  ;;  %v324_v51 = vld [vmem:[%s2529_s1 + $0x910] sm:$0xff]  ;;  %v393_v46 = vld [vmem:[%s2529_s1 + $0xb38] sm:$0xff] }
  0x8e   :  { %1244 = vmatpush1.bf16.msra.mxu0 %v1243_v52  ;;  %1118 = vmatprep.subr.bf16.mxu1 %v1117_v53  ;;  %v330_v52 = vld [vmem:[%s2529_s1 + $0x940] sm:$0xff] }
  0x8f   :  { %1246 = vmatprep.subr.bf16.mxu0 %v1245_v19  ;;  %v326_v53 = vld [vmem:[%s2529_s1 + $0x920] sm:$0xff]  ;;  %v343_v19 = vld [vmem:[%s2529_s1 + $0x9a8] sm:$0xff]  ;;  %v1139_v59 = vpack.c.bf16 %v330_v52, %v324_v51  ;;  %v1285_v51 = vpack.c.bf16 %v393_v46, %v387_v45  ;;  %v392_v52 = vld [vmem:[%s2529_s1 + $0xb30] sm:$0xff] }
  0x90   :  { %v1267_v60 = vpack.c.bf16 %v332_v55, %v326_v53  ;;  %v1141_v61 = vpack.c.bf16 %v343_v19, %v337_v56  ;;  %v397_v53 = vld [vmem:[%s2529_s1 + $0xb58] sm:$0xff]  ;;  %v399_v55 = vld [vmem:[%s2529_s1 + $0xb68] sm:$0xff] }
  0x91   :  { %1120 = vmatpush1.bf16.msra.mxu1 %v1119_v62  ;;  %v336_v62 = vld [vmem:[%s2529_s1 + $0x970] sm:$0xff]  ;;  %v405_v56 = vld [vmem:[%s2529_s1 + $0xb98] sm:$0xff] }
  0x92   :  { %1248 = vmatpush1.bf16.msra.mxu0 %v1247_v63  ;;  %1122 = vmatprep.subr.bf16.mxu1 %v1121_v0  ;;  %v342_v63 = vld [vmem:[%s2529_s1 + $0x9a0] sm:$0xff] }
  0x93   :  { %1250 = vmatprep.subr.bf16.mxu0 %v1249_v4  ;;  %v338_v0 = vld [vmem:[%s2529_s1 + $0x980] sm:$0xff]  ;;  %v355_v4 = vld [vmem:[%s2529_s1 + $0xa08] sm:$0xff]  ;;  %v1143_v7 = vpack.c.bf16 %v342_v63, %v336_v62  ;;  %v1289_v62 = vpack.c.bf16 %v405_v56, %v399_v55  ;;  %v404_v63 = vld [vmem:[%s2529_s1 + $0xb90] sm:$0xff] }
  0x94   :  { %v1271_v8 = vpack.c.bf16 %v344_v2, %v338_v0  ;;  %v1145_v9 = vpack.c.bf16 %v355_v4, %v349_v3  ;;  %v409_v0 = vld [vmem:[%s2529_s1 + $0xbb8] sm:$0xff]  ;;  %v411_v2 = vld [vmem:[%s2529_s1 + $0xbc8] sm:$0xff] }
  0x95   :  { %1124 = vmatpush1.bf16.msra.mxu1 %v1123_v10  ;;  %v348_v10 = vld [vmem:[%s2529_s1 + $0x9d0] sm:$0xff]  ;;  %v417_v3 = vld [vmem:[%s2529_s1 + $0xbf8] sm:$0xff] }
  0x96   :  { %1252 = vmatpush1.bf16.msra.mxu0 %v1251_v11  ;;  %1126 = vmatprep.subr.bf16.mxu1 %v1125_v12  ;;  %v354_v11 = vld [vmem:[%s2529_s1 + $0xa00] sm:$0xff] }
  0x97   :  { %1254 = vmatprep.subr.bf16.mxu0 %v1253_v20  ;;  %v350_v12 = vld [vmem:[%s2529_s1 + $0x9e0] sm:$0xff]  ;;  %v367_v20 = vld [vmem:[%s2529_s1 + $0xa68] sm:$0xff]  ;;  %v1147_v23 = vpack.c.bf16 %v354_v11, %v348_v10  ;;  %v416_v11 = vld [vmem:[%s2529_s1 + $0xbf0] sm:$0xff] }
  0x98   :  { %v1275_v24 = vpack.c.bf16 %v356_v14, %v350_v12  ;;  %v1149_v25 = vpack.c.bf16 %v367_v20, %v361_v15  ;;  %v410_v10 = vld [vmem:[%s2529_s1 + $0xbc0] sm:$0xff]  ;;  %v867_v14 = vlaneseq }
  0x99   :  { %1128 = vmatpush1.bf16.msra.mxu1 %v1127_v26  ;;  %v360_v26 = vld [vmem:[%s2529_s1 + $0xa30] sm:$0xff] }
  0x9a   :  { %1256 = vmatpush1.bf16.msra.mxu0 %v1255_v27  ;;  %1130 = vmatprep.subr.bf16.mxu1 %v1129_v28  ;;  %v366_v27 = vld [vmem:[%s2529_s1 + $0xa60] sm:$0xff]  ;;  %v868_v15 = vshrl.u32 %v867_v14, 7 }
  0x9b   :  { %1258 = vmatprep.subr.bf16.mxu0 %v1257_v32  ;;  %v362_v28 = vld [vmem:[%s2529_s1 + $0xa40] sm:$0xff]  ;;  %v379_v32 = vld [vmem:[%s2529_s1 + $0xac8] sm:$0xff]  ;;  %v1151_v35 = vpack.c.bf16 %v366_v27, %v360_v26 }
  0x9c   :  { %v1279_v36 = vpack.c.bf16 %v368_v30, %v362_v28  ;;  %v1153_v37 = vpack.c.bf16 %v379_v32, %v373_v31  ;;  %v869_v20 = vsub.s32 0, %v868_v15  ;;  %v873_v22 = vsub.s32 1, %v868_v15 }
  0x9d   :  { %1132 = vmatpush1.bf16.msra.mxu1 %v1131_v38  ;;  %v372_v38 = vld [vmem:[%s2529_s1 + $0xa90] sm:$0xff]  ;;  %v885_v33 = vsub.s32 4, %v868_v15  ;;  %v881_v34 = vsub.s32 3, %v868_v15 }
  0x9e   :  { %1260 = vmatpush1.bf16.msra.mxu0 %v1259_v39  ;;  %1134 = vmatprep.subr.bf16.mxu1 %v1133_v40  ;;  %v378_v39 = vld [vmem:[%s2529_s1 + $0xac0] sm:$0xff]  ;;  %v870_v27 = vrot.slane %v865_v21, %v869_v20  ;;  %v874_v30 = vrot.slane %v865_v21, %v873_v22 }
  0x9f   :  { %1262 = vmatprep.subr.bf16.mxu0 %v1261_v44  ;;  %v374_v40 = vld [vmem:[%s2529_s1 + $0xaa0] sm:$0xff]  ;;  %v391_v44 = vld [vmem:[%s2529_s1 + $0xb28] sm:$0xff]  ;;  %v1155_v47 = vpack.c.bf16 %v378_v39, %v372_v38  ;;  %v886_v38 = vrot.slane %v865_v21, %v885_v33  ;;  %v882_v39 = vrot.slane %v865_v21, %v881_v34 }
  0xa0   :  { %v1283_v17 = vpack.c.bf16 %v380_v42, %v374_v40  ;;  %v1157_v48 = vpack.c.bf16 %v391_v44, %v385_v43 }
  0xa1   :  { %1136 = vmatpush1.bf16.msra.mxu1 %v1135_v49  ;;  %v384_v49 = vld [vmem:[%s2529_s1 + $0xaf0] sm:$0xff] }
  0xa2   :  { %1264 = vmatpush1.bf16.msra.mxu0 %v1263_v16  ;;  %1138 = vmatprep.subr.bf16.mxu1 %v1137_v50  ;;  %v390_v16 = vld [vmem:[%s2529_s1 + $0xb20] sm:$0xff] }
  0xa3   :  { %1266 = vmatprep.subr.bf16.mxu0 %v1265_v54  ;;  %v386_v50 = vld [vmem:[%s2529_s1 + $0xb00] sm:$0xff]  ;;  %v403_v54 = vld [vmem:[%s2529_s1 + $0xb88] sm:$0xff]  ;;  %v1159_v19 = vpack.c.bf16 %v390_v16, %v384_v49 }
  0xa4   :  { %v1287_v57 = vpack.c.bf16 %v392_v52, %v386_v50  ;;  %v1161_v58 = vpack.c.bf16 %v403_v54, %v397_v53 }
  0xa5   :  { %1140 = vmatpush1.bf16.msra.mxu1 %v1139_v59  ;;  %v396_v59 = vld [vmem:[%s2529_s1 + $0xb50] sm:$0xff] }
  0xa6   :  { %1268 = vmatpush1.bf16.msra.mxu0 %v1267_v60  ;;  %1142 = vmatprep.subr.bf16.mxu1 %v1141_v61  ;;  %v402_v60 = vld [vmem:[%s2529_s1 + $0xb80] sm:$0xff] }
  0xa7   :  { %1270 = vmatprep.subr.bf16.mxu0 %v1269_v1  ;;  %v398_v61 = vld [vmem:[%s2529_s1 + $0xb60] sm:$0xff]  ;;  %v415_v1 = vld [vmem:[%s2529_s1 + $0xbe8] sm:$0xff]  ;;  %v1163_v4 = vpack.c.bf16 %v402_v60, %v396_v59 }
  0xa8   :  { %v1291_v5 = vpack.c.bf16 %v404_v63, %v398_v61  ;;  %v1165_v6 = vpack.c.bf16 %v415_v1, %v409_v0 }
  0xa9   :  { %1144 = vmatpush1.bf16.msra.mxu1 %v1143_v7  ;;  %v408_v7 = vld [vmem:[%s2529_s1 + $0xbb0] sm:$0xff] }
  0xaa   :  { %1272 = vmatpush1.bf16.msra.mxu0 %v1271_v8  ;;  %1146 = vmatprep.subr.bf16.mxu1 %v1145_v9  ;;  %v414_v8 = vld [vmem:[%s2529_s1 + $0xbe0] sm:$0xff]  ;;  %v1293_v9 = vpack.c.bf16 %v417_v3, %v411_v2 }
  0xab   :  { %1274 = vmatprep.subr.bf16.mxu0 %v1273_v13  ;;  %v1167_v12 = vpack.c.bf16 %v414_v8, %v408_v7  ;;  %v1295_v13 = vpack.c.bf16 %v416_v11, %v410_v10 }
  0xad   :  { %1148 = vmatpush1.bf16.msra.mxu1 %v1147_v23 }
  0xae   :  { %1276 = vmatpush1.bf16.msra.mxu0 %v1275_v24  ;;  %1150 = vmatprep.subr.bf16.mxu1 %v1149_v25 }
  0xaf   :  { %1278 = vmatprep.subr.bf16.mxu0 %v1277_v29 }
  0xb1   :  { %1152 = vmatpush1.bf16.msra.mxu1 %v1151_v35  ;;  %v889_v35 = vsub.s32 5, %v868_v15 }
  0xb2   :  { %1280 = vmatpush1.bf16.msra.mxu0 %v1279_v36  ;;  %1154 = vmatprep.subr.bf16.mxu1 %v1153_v37 }
  0xb3   :  { %1282 = vmatprep.subr.bf16.mxu0 %v1281_v41  ;;  %v890_v42 = vrot.slane %v865_v21, %v889_v35 }
  0xb5   :  { %1156 = vmatpush1.bf16.msra.mxu1 %v1155_v47 }
  0xb6   :  { %1284 = vmatpush1.bf16.msra.mxu0 %v1283_v17  ;;  %1158 = vmatprep.subr.bf16.mxu1 %v1157_v48 }
  0xb7   :  { %1286 = vmatprep.subr.bf16.mxu0 %v1285_v51 }
  0xb9   :  { %1160 = vmatpush1.bf16.msra.mxu1 %v1159_v19 }
  0xba   :  { %1288 = vmatpush1.bf16.msra.mxu0 %v1287_v57  ;;  %1162 = vmatprep.subr.bf16.mxu1 %v1161_v58 }
  0xbb   :  { %1290 = vmatprep.subr.bf16.mxu0 %v1289_v62 }
  0xbd   :  { %1164 = vmatpush1.bf16.msra.mxu1 %v1163_v4 }
  0xbe   :  { %1292 = vmatpush1.bf16.msra.mxu0 %v1291_v5  ;;  %1166 = vmatprep.subr.bf16.mxu1 %v1165_v6 }
  0xbf   :  { %1294 = vmatprep.subr.bf16.mxu0 %v1293_v9 }
  0xc1   :  { %1168 = vmatpush1.bf16.msra.mxu1 %v1167_v12 }
  0xc2   :  { %1296 = vmatpush1.bf16.msra.mxu0 %v1295_v13 }
  0xc4   :  { %696 = vmatmul.mubr.f32.vlgmr.msra.gmra.mrb[2].mxu1 %v1764_v18 }
  0xc5   :  { %838 = vmatmul.mubr.f32.vlgmr.msra.gmra.mrb[2].mxu0 %v1764_v18  ;;  %v877_v18 = vsub.s32 2, %v868_v15 }
  0xc7   :  { %v878_v36 = vrot.slane %v865_v21, %v877_v18 }
 0x117   :  { %v484_v23 = vpop.f32.mrb[0].mxu1 }
 0x118   :  { %v555_v24 = vpop.f32.mrb[0].mxu0  ;;  %v486_v25 = vpop.f32.mrb[1].mxu1 }
 0x119   :  { %v556_v26 = vadd.f32 %v555_v24, %v484_v23  ;;  %v557_v28 = vpop.f32.mrb[1].mxu0 }
 0x11a   :  { %v558_v29 = vadd.f32 %v557_v28, %v486_v25 }
 0x11b   :  { %v897_v31 = vadd.f32 %v870_v27, %v556_v26 }
 0x11c   :  { %v898_v32 = vadd.f32 %v874_v30, %v558_v29 }
 0x11d   :  { %903 = vst [vmem:[%s2532_s3] sm:$0xff] %v897_v31 }
 0x11e   :  { %904 = vst [vmem:[%s2532_s3 + $0x8] sm:$0xff] %v898_v32 }
 0x197   :  { %v697_v37 = vpop.f32.mrb[2].mxu1 }
 0x198   :  { %v839_v40 = vpop.f32.mrb[2].mxu0  ;;  %v699_v41 = vpop.f32.mrb[3].mxu1  ;;  %v899_v44 = vadd.f32 %v878_v36, %v697_v37 }
 0x199   :  { %v841_v43 = vpop.f32.mrb[3].mxu0  ;;  %v901_v45 = vadd.f32 %v886_v38, %v839_v40  ;;  %v900_v46 = vadd.f32 %v882_v39, %v699_v41 }
 0x19a   :  { %905 = vst [vmem:[%s2532_s3 + $0x10] sm:$0xff] %v899_v44  ;;  %v902_v47 = vadd.f32 %v890_v42, %v841_v43 }
 0x19b   :  { %907 = vst [vmem:[%s2532_s3 + $0x20] sm:$0xff] %v901_v45  ;;  %906 = vst [vmem:[%s2532_s3 + $0x18] sm:$0xff] %v900_v46 }
 0x19c   :  { %908 = vst [vmem:[%s2532_s3 + $0x28] sm:$0xff] %v902_v47 }

// kernel: cdn_forward.10
= control target key start
LH: loop header
LB: loop body
LE: loop exit
PB: predicated region body
PF: predicated region fallthrough
CT: control target
= control target key end

     0   :  { %v393_v3 = vmov 0.0   ;;  %s720_s1 = inlined_call_operand.vmem [shape: f32[384,256], index: 1, kind: input, shape index: {}]   ;;  %s721_s0 = inlined_call_operand.vmem [shape: f32[8,384], index: 0, kind: input, shape index: {}]   ;;  %s722_s2 = inlined_call_operand.vmem [shape: f32[1,256], index: 2, kind: input, shape index: {}]   ;;  %s723_s3 = inlined_call_operand.vmem [shape: f32[8,256], index: 3, kind: output, shape index: {}]  }
   0x1   :  { %v26_v0 = vld [vmem:[%s720_s1 + $0x8] sm:$0xff]  ;;  %v28_v1 = vld [vmem:[%s720_s1 + $0x18] sm:$0xff]  ;;  %v25_v2 = vld [vmem:[%s720_s1] sm:$0xff]  ;;  %256 = vmatprep.mubr.f32.mxu0 %v393_v3 }
   0x2   :  { %v294_v4 = vpack.c.bf16 %v28_v1, %v26_v0  ;;  %v27_v5 = vld [vmem:[%s720_s1 + $0x10] sm:$0xff]  ;;  %v30_v6 = vld [vmem:[%s720_s1 + $0x28] sm:$0xff]  ;;  %v32_v7 = vld [vmem:[%s720_s1 + $0x38] sm:$0xff] }
   0x3   :  { %v296_v8 = vpack.c.bf16 %v27_v5, %v25_v2  ;;  %v298_v9 = vpack.c.bf16 %v32_v7, %v30_v6  ;;  %v29_v10 = vld [vmem:[%s720_s1 + $0x20] sm:$0xff]  ;;  %v31_v11 = vld [vmem:[%s720_s1 + $0x30] sm:$0xff]  ;;  %v34_v12 = vld [vmem:[%s720_s1 + $0x48] sm:$0xff] }
   0x4   :  { %295 = vmatprep.subr.bf16.mxu1 %v294_v4  ;;  %v36_v13 = vld [vmem:[%s720_s1 + $0x58] sm:$0xff]  ;;  %v300_v14 = vpack.c.bf16 %v31_v11, %v29_v10  ;;  %v33_v16 = vld [vmem:[%s720_s1 + $0x40] sm:$0xff]  ;;  %v35_v17 = vld [vmem:[%s720_s1 + $0x50] sm:$0xff] }
   0x5   :  { %297 = vmatpush1.bf16.msra.mxu1 %v296_v8  ;;  %v302_v15 = vpack.c.bf16 %v36_v13, %v34_v12  ;;  %v38_v18 = vld [vmem:[%s720_s1 + $0x68] sm:$0xff]  ;;  %v40_v19 = vld [vmem:[%s720_s1 + $0x78] sm:$0xff]  ;;  %v304_v20 = vpack.c.bf16 %v35_v17, %v33_v16  ;;  %v37_v22 = vld [vmem:[%s720_s1 + $0x60] sm:$0xff] }
   0x6   :  { %299 = vmatprep.subr.bf16.mxu1 %v298_v9  ;;  %v306_v21 = vpack.c.bf16 %v40_v19, %v38_v18  ;;  %v39_v23 = vld [vmem:[%s720_s1 + $0x70] sm:$0xff]  ;;  %v42_v24 = vld [vmem:[%s720_s1 + $0x88] sm:$0xff]  ;;  %v44_v25 = vld [vmem:[%s720_s1 + $0x98] sm:$0xff] }
   0x7   :  { %v90_v26 = vld [vmem:[%s720_s1 + $0x208] sm:$0xff]  ;;  %v92_v27 = vld [vmem:[%s720_s1 + $0x218] sm:$0xff]  ;;  %v308_v28 = vpack.c.bf16 %v39_v23, %v37_v22  ;;  %v41_v29 = vld [vmem:[%s720_s1 + $0x80] sm:$0xff]  ;;  %v310_v33 = vpack.c.bf16 %v44_v25, %v42_v24 }
   0x8   :  { %v358_v30 = vpack.c.bf16 %v92_v27, %v90_v26  ;;  %v89_v31 = vld [vmem:[%s720_s1 + $0x200] sm:$0xff]  ;;  %v91_v32 = vld [vmem:[%s720_s1 + $0x210] sm:$0xff]  ;;  %v94_v36 = vld [vmem:[%s720_s1 + $0x228] sm:$0xff] }
   0x9   :  { %301 = vmatpush1.bf16.msra.mxu1 %v300_v14  ;;  %v43_v34 = vld [vmem:[%s720_s1 + $0x90] sm:$0xff]  ;;  %v360_v35 = vpack.c.bf16 %v91_v32, %v89_v31  ;;  %v96_v37 = vld [vmem:[%s720_s1 + $0x238] sm:$0xff]  ;;  %v46_v38 = vld [vmem:[%s720_s1 + $0xa8] sm:$0xff] }
   0xa   :  { %303 = vmatprep.subr.bf16.mxu1 %v302_v15  ;;  %v48_v39 = vld [vmem:[%s720_s1 + $0xb8] sm:$0xff]  ;;  %359 = vmatprep.subr.bf16.mxu0 %v358_v30  ;;  %v362_v40 = vpack.c.bf16 %v96_v37, %v94_v36  ;;  %v93_v41 = vld [vmem:[%s720_s1 + $0x220] sm:$0xff]  ;;  %v95_v42 = vld [vmem:[%s720_s1 + $0x230] sm:$0xff]  ;;  %v312_v43 = vpack.c.bf16 %v43_v34, %v41_v29 }
   0xb   :  { %361 = vmatpush1.bf16.msra.mxu0 %v360_v35  ;;  %v45_v44 = vld [vmem:[%s720_s1 + $0xa0] sm:$0xff]  ;;  %v364_v45 = vpack.c.bf16 %v95_v42, %v93_v41  ;;  %v98_v46 = vld [vmem:[%s720_s1 + $0x248] sm:$0xff]  ;;  %v100_v47 = vld [vmem:[%s720_s1 + $0x258] sm:$0xff]  ;;  %v314_v48 = vpack.c.bf16 %v48_v39, %v46_v38 }
   0xc   :  { %363 = vmatprep.subr.bf16.mxu0 %v362_v40  ;;  %v47_v49 = vld [vmem:[%s720_s1 + $0xb0] sm:$0xff]  ;;  %v366_v50 = vpack.c.bf16 %v100_v47, %v98_v46  ;;  %v97_v51 = vld [vmem:[%s720_s1 + $0x240] sm:$0xff]  ;;  %v50_v53 = vld [vmem:[%s720_s1 + $0xc8] sm:$0xff] }
   0xd   :  { %305 = vmatpush1.bf16.msra.mxu1 %v304_v20  ;;  %v99_v52 = vld [vmem:[%s720_s1 + $0x250] sm:$0xff]  ;;  %v52_v54 = vld [vmem:[%s720_s1 + $0xd8] sm:$0xff]  ;;  %v102_v55 = vld [vmem:[%s720_s1 + $0x268] sm:$0xff]  ;;  %v316_v58 = vpack.c.bf16 %v47_v49, %v45_v44 }
   0xe   :  { %307 = vmatprep.subr.bf16.mxu1 %v306_v21  ;;  %v368_v56 = vpack.c.bf16 %v99_v52, %v97_v51  ;;  %v104_v57 = vld [vmem:[%s720_s1 + $0x278] sm:$0xff]  ;;  %v49_v59 = vld [vmem:[%s720_s1 + $0xc0] sm:$0xff]  ;;  %v103_v62 = vld [vmem:[%s720_s1 + $0x270] sm:$0xff]  ;;  %v318_v63 = vpack.c.bf16 %v52_v54, %v50_v53 }
   0xf   :  { %365 = vmatpush1.bf16.msra.mxu0 %v364_v45  ;;  %v370_v60 = vpack.c.bf16 %v104_v57, %v102_v55  ;;  %v101_v61 = vld [vmem:[%s720_s1 + $0x260] sm:$0xff]  ;;  %v51_v0 = vld [vmem:[%s720_s1 + $0xd0] sm:$0xff]  ;;  %v106_v1 = vld [vmem:[%s720_s1 + $0x288] sm:$0xff] }
  0x10   :  { %367 = vmatprep.subr.bf16.mxu0 %v366_v50  ;;  %v108_v2 = vld [vmem:[%s720_s1 + $0x298] sm:$0xff]  ;;  %v54_v3 = vld [vmem:[%s720_s1 + $0xe8] sm:$0xff]  ;;  %v372_v5 = vpack.c.bf16 %v103_v62, %v101_v61  ;;  %v320_v6 = vpack.c.bf16 %v51_v0, %v49_v59  ;;  %v53_v7 = vld [vmem:[%s720_s1 + $0xe0] sm:$0xff] }
  0x11   :  { %309 = vmatpush1.bf16.msra.mxu1 %v308_v28  ;;  %v56_v4 = vld [vmem:[%s720_s1 + $0xf8] sm:$0xff]  ;;  %v374_v8 = vpack.c.bf16 %v108_v2, %v106_v1  ;;  %v105_v9 = vld [vmem:[%s720_s1 + $0x280] sm:$0xff]  ;;  %v107_v10 = vld [vmem:[%s720_s1 + $0x290] sm:$0xff] }
  0x12   :  { %311 = vmatprep.subr.bf16.mxu1 %v310_v33  ;;  %v322_v11 = vpack.c.bf16 %v56_v4, %v54_v3  ;;  %v55_v12 = vld [vmem:[%s720_s1 + $0xf0] sm:$0xff]  ;;  %v110_v13 = vld [vmem:[%s720_s1 + $0x2a8] sm:$0xff]  ;;  %v112_v14 = vld [vmem:[%s720_s1 + $0x2b8] sm:$0xff]  ;;  %v376_v17 = vpack.c.bf16 %v107_v10, %v105_v9 }
  0x13   :  { %369 = vmatpush1.bf16.msra.mxu0 %v368_v56  ;;  %v58_v15 = vld [vmem:[%s720_s1 + $0x108] sm:$0xff]  ;;  %v60_v16 = vld [vmem:[%s720_s1 + $0x118] sm:$0xff]  ;;  %v324_v18 = vpack.c.bf16 %v55_v12, %v53_v7  ;;  %v57_v19 = vld [vmem:[%s720_s1 + $0x100] sm:$0xff]  ;;  %v378_v20 = vpack.c.bf16 %v112_v14, %v110_v13 }
  0x14   :  { %371 = vmatprep.subr.bf16.mxu0 %v370_v60  ;;  %v109_v21 = vld [vmem:[%s720_s1 + $0x2a0] sm:$0xff]  ;;  %v111_v22 = vld [vmem:[%s720_s1 + $0x2b0] sm:$0xff]  ;;  %v326_v23 = vpack.c.bf16 %v60_v16, %v58_v15  ;;  %v114_v25 = vld [vmem:[%s720_s1 + $0x2c8] sm:$0xff] }
  0x15   :  { %313 = vmatpush1.bf16.msra.mxu1 %v312_v43  ;;  %v59_v24 = vld [vmem:[%s720_s1 + $0x110] sm:$0xff]  ;;  %v116_v26 = vld [vmem:[%s720_s1 + $0x2d8] sm:$0xff]  ;;  %v62_v27 = vld [vmem:[%s720_s1 + $0x128] sm:$0xff]  ;;  %v380_v30 = vpack.c.bf16 %v111_v22, %v109_v21  ;;  %v274_v22 = vlaneseq }
  0x16   :  { %315 = vmatprep.subr.bf16.mxu1 %v314_v48  ;;  %v64_v28 = vld [vmem:[%s720_s1 + $0x138] sm:$0xff]  ;;  %v61_v29 = vld [vmem:[%s720_s1 + $0x120] sm:$0xff]  ;;  %v328_v31 = vpack.c.bf16 %v59_v24, %v57_v19  ;;  %v382_v32 = vpack.c.bf16 %v116_v26, %v114_v25  ;;  %v115_v34 = vld [vmem:[%s720_s1 + $0x2d0] sm:$0xff] }
  0x17   :  { %373 = vmatpush1.bf16.msra.mxu0 %v372_v5  ;;  %v113_v33 = vld [vmem:[%s720_s1 + $0x2c0] sm:$0xff]  ;;  %v23_v35 = vld [vmem:[%s721_s0 + $0x8] sm:$0xff]  ;;  %v330_v36 = vpack.c.bf16 %v64_v28, %v62_v27  ;;  %v63_v37 = vld [vmem:[%s720_s1 + $0x130] sm:$0xff] }
  0x18   :  { %375 = vmatprep.subr.bf16.mxu0 %v374_v8  ;;  %v118_v38 = vld [vmem:[%s720_s1 + $0x2e8] sm:$0xff]  ;;  %v120_v39 = vld [vmem:[%s720_s1 + $0x2f8] sm:$0xff]  ;;  %185 = vmatprep.mubr.f32.mxu1 %v23_v35  ;;  %v384_v42 = vpack.c.bf16 %v115_v34, %v113_v33  ;;  %v332_v43 = vpack.c.bf16 %v63_v37, %v61_v29  ;;  %v117_v45 = vld [vmem:[%s720_s1 + $0x2e0] sm:$0xff] }
  0x19   :  { %317 = vmatpush1.bf16.msra.mxu1 %v316_v58  ;;  %v66_v40 = vld [vmem:[%s720_s1 + $0x148] sm:$0xff]  ;;  %v68_v41 = vld [vmem:[%s720_s1 + $0x158] sm:$0xff]  ;;  %v386_v44 = vpack.c.bf16 %v120_v39, %v118_v38  ;;  %v119_v46 = vld [vmem:[%s720_s1 + $0x2f0] sm:$0xff] }
  0x1a   :  { %319 = vmatprep.subr.bf16.mxu1 %v318_v63  ;;  %v334_v47 = vpack.c.bf16 %v68_v41, %v66_v40  ;;  %v65_v48 = vld [vmem:[%s720_s1 + $0x140] sm:$0xff]  ;;  %v67_v49 = vld [vmem:[%s720_s1 + $0x150] sm:$0xff]  ;;  %v70_v50 = vld [vmem:[%s720_s1 + $0x168] sm:$0xff]  ;;  %v388_v52 = vpack.c.bf16 %v119_v46, %v117_v45 }
  0x1b   :  { %377 = vmatpush1.bf16.msra.mxu0 %v376_v17  ;;  %v72_v51 = vld [vmem:[%s720_s1 + $0x178] sm:$0xff]  ;;  %v336_v53 = vpack.c.bf16 %v67_v49, %v65_v48  ;;  %v69_v55 = vld [vmem:[%s720_s1 + $0x160] sm:$0xff]  ;;  %v71_v56 = vld [vmem:[%s720_s1 + $0x170] sm:$0xff] }
  0x1c   :  { %379 = vmatprep.subr.bf16.mxu0 %v378_v20  ;;  %v338_v54 = vpack.c.bf16 %v72_v51, %v70_v50  ;;  %v74_v57 = vld [vmem:[%s720_s1 + $0x188] sm:$0xff]  ;;  %v76_v58 = vld [vmem:[%s720_s1 + $0x198] sm:$0xff]  ;;  %v24_v59 = vld [vmem:[%s721_s0 + $0x10] sm:$0xff]  ;;  %v340_v60 = vpack.c.bf16 %v71_v56, %v69_v55 }
  0x1d   :  { %321 = vmatpush1.bf16.msra.mxu1 %v320_v6  ;;  %v342_v61 = vpack.c.bf16 %v76_v58, %v74_v57  ;;  %v73_v62 = vld [vmem:[%s720_s1 + $0x180] sm:$0xff]  ;;  %v75_v63 = vld [vmem:[%s720_s1 + $0x190] sm:$0xff]  ;;  %v78_v0 = vld [vmem:[%s720_s1 + $0x1a8] sm:$0xff] }
  0x1e   :  { %323 = vmatprep.subr.bf16.mxu1 %v322_v11  ;;  %v80_v1 = vld [vmem:[%s720_s1 + $0x1b8] sm:$0xff]  ;;  %v344_v2 = vpack.c.bf16 %v75_v63, %v73_v62  ;;  %v77_v4 = vld [vmem:[%s720_s1 + $0x1a0] sm:$0xff]  ;;  %v79_v5 = vld [vmem:[%s720_s1 + $0x1b0] sm:$0xff] }
  0x1f   :  { %381 = vmatpush1.bf16.msra.mxu0 %v380_v30  ;;  %v346_v3 = vpack.c.bf16 %v80_v1, %v78_v0  ;;  %v82_v6 = vld [vmem:[%s720_s1 + $0x1c8] sm:$0xff]  ;;  %v84_v7 = vld [vmem:[%s720_s1 + $0x1d8] sm:$0xff]  ;;  %v348_v8 = vpack.c.bf16 %v79_v5, %v77_v4  ;;  %v81_v10 = vld [vmem:[%s720_s1 + $0x1c0] sm:$0xff] }
  0x20   :  { %383 = vmatprep.subr.bf16.mxu0 %v382_v32  ;;  %v350_v9 = vpack.c.bf16 %v84_v7, %v82_v6  ;;  %v83_v11 = vld [vmem:[%s720_s1 + $0x1d0] sm:$0xff]  ;;  %v86_v12 = vld [vmem:[%s720_s1 + $0x1e8] sm:$0xff]  ;;  %v88_v13 = vld [vmem:[%s720_s1 + $0x1f8] sm:$0xff] }
  0x21   :  { %325 = vmatpush1.bf16.msra.mxu1 %v324_v18  ;;  %v352_v14 = vpack.c.bf16 %v83_v11, %v81_v10  ;;  %v354_v15 = vpack.c.bf16 %v88_v13, %v86_v12  ;;  %v85_v16 = vld [vmem:[%s720_s1 + $0x1e0] sm:$0xff]  ;;  %v87_v17 = vld [vmem:[%s720_s1 + $0x1f0] sm:$0xff] }
  0x22   :  { %327 = vmatprep.subr.bf16.mxu1 %v326_v23  ;;  %v356_v18 = vpack.c.bf16 %v87_v17, %v85_v16  ;;  %v22_v19 = vld [vmem:[%s721_s0] sm:$0xff]  ;;  %v275_v23 = vshrl.u32 %v274_v22, 7 }
  0x23   :  { %385 = vmatpush1.bf16.msra.mxu0 %v384_v42  ;;  %v272_v25 = vld [vmem:[%s722_s2] sm:$0x3] }
  0x24   :  { %387 = vmatprep.subr.bf16.mxu0 %v386_v44  ;;  %v276_v24 = vsub.s32 0, %v275_v23  ;;  %v280_v26 = vsub.s32 1, %v275_v23 }
  0x25   :  { %329 = vmatpush1.bf16.msra.mxu1 %v328_v31 }
  0x26   :  { %331 = vmatprep.subr.bf16.mxu1 %v330_v36  ;;  %v277_v29 = vrot.slane %v272_v25, %v276_v24  ;;  %v281_v32 = vrot.slane %v272_v25, %v280_v26 }
  0x27   :  { %389 = vmatpush1.bf16.msra.mxu0 %v388_v52 }
  0x29   :  { %333 = vmatpush1.bf16.msra.mxu1 %v332_v43 }
  0x2a   :  { %335 = vmatprep.subr.bf16.mxu1 %v334_v47  ;;  %257 = vmatmul.mubr.f32.vlgmr.msra.gmra.mrb[0].mxu0 %v24_v59 }
  0x2d   :  { %337 = vmatpush1.bf16.msra.mxu1 %v336_v53 }
  0x2e   :  { %339 = vmatprep.subr.bf16.mxu1 %v338_v54 }
  0x31   :  { %341 = vmatpush1.bf16.msra.mxu1 %v340_v60 }
  0x32   :  { %343 = vmatprep.subr.bf16.mxu1 %v342_v61 }
  0x35   :  { %345 = vmatpush1.bf16.msra.mxu1 %v344_v2 }
  0x36   :  { %347 = vmatprep.subr.bf16.mxu1 %v346_v3 }
  0x39   :  { %349 = vmatpush1.bf16.msra.mxu1 %v348_v8 }
  0x3a   :  { %351 = vmatprep.subr.bf16.mxu1 %v350_v9 }
  0x3d   :  { %353 = vmatpush1.bf16.msra.mxu1 %v352_v14 }
  0x3e   :  { %355 = vmatprep.subr.bf16.mxu1 %v354_v15 }
  0x41   :  { %357 = vmatpush1.bf16.msra.mxu1 %v356_v18 }
  0x44   :  { %186 = vmatmul.mubr.f32.vlgmr.msra.gmra.mrb[0].mxu1 %v22_v19 }
  0xfd   :  { %v258_v20 = vpop.f32.mrb[0].mxu0 }
  0xfe   :  { %v260_v21 = vpop.f32.mrb[1].mxu0 }
 0x117   :  { %v187_v27 = vpop.f32.mrb[0].mxu1 }
 0x118   :  { %v259_v28 = vadd.f32 %v258_v20, %v187_v27  ;;  %v189_v30 = vpop.f32.mrb[1].mxu1 }
 0x119   :  { %v261_v31 = vadd.f32 %v260_v21, %v189_v30 }
 0x11a   :  { %v284_v33 = vadd.f32 %v277_v29, %v259_v28 }
 0x11b   :  { %v285_v34 = vadd.f32 %v281_v32, %v261_v31 }
 0x11c   :  { %v286_v35 = vmax.f32 %v284_v33, 0.0 }
 0x11d   :  { %v287_v36 = vmax.f32 %v285_v34, 0.0 }
 0x11e   :  { %288 = vst [vmem:[%s723_s3] sm:$0xff] %v286_v35 }
 0x11f   :  { %289 = vst [vmem:[%s723_s3 + $0x8] sm:$0xff] %v287_v36 }

// kernel: cdn_forward.11
= control target key start
LH: loop header
LB: loop body
LE: loop exit
PB: predicated region body
PF: predicated region fallthrough
CT: control target
= control target key end

     0   :  { %s2087_s24 = smov 0   ;;  %s3392_s0 = inlined_call_operand.vmem [shape: f32[50,2,128], index: 0, kind: input, shape index: {}]   ;;  %s3393_s1 = inlined_call_operand.vmem [shape: f32[2,256], index: 1, kind: input, shape index: {}]   ;;  %s3394_s2 = inlined_call_operand.vmem [shape: f32[128,1024], index: 2, kind: input, shape index: {}]   ;;  %s3395_s3 = inlined_call_operand.vmem [shape: f32[256,1024], index: 3, kind: input, shape index: {}]   ;;  %s3396_s4 = inlined_call_operand.vmem [shape: f32[1,1024], index: 4, kind: input, shape index: {}]   ;;  %s3397_s5 = inlined_call_operand.vmem [shape: f32[256,128], index: 5, kind: input, shape index: {}]   ;;  %s3398_s6 = inlined_call_operand.vmem [shape: f32[1,128], index: 6, kind: input, shape index: {}]   ;;  %s3399_s7 = inlined_call_operand.vmem [shape: f32[50,2,128], index: 7, kind: output, shape index: {}]  }
   0x1 LB: > { %s1518_s25 = sadd.s32 4294967295, %s2044_s24   ;;  %p1522_p0 = scmp.ge.s32.totalorder %s2044_s24, 1  ;;  %s2044_s24 = sphi %s2087_s24, %s17_s24  }
   0x2   : > { %p236_p1 = scmp.lt.s32.totalorder %s2044_s24, 51 }
   0x4   : > { %p237_p2 = pnand %p1522_p0, %p236_p1 }
   0x5   : > { %p266_p3 = scmp.lt.s32.totalorder (!%p237_p2), %s1518_s25, 49  ;;  %p1525_p4 = scmp.ne.s32.totalorder (!%p237_p2), %s1518_s25, 0 }
   0x6   : > { %240 = sbr.rel (%p237_p2) target bundleno = 681 (0x2a9), region = 48 }
   0xd   : > { %s267_s26 = scalar_select %p266_p3, %s1518_s25, 49 }
   0xe   : > { %277 = sbr.rel (%p1525_p4) target bundleno = 21 (0x15), region = 52  ;;  %v278_v0 = vld [vmem:[%s3393_s1] sm:$0xf] (!%p1525_p4) }
   0xf   : > { %s1523_s27 = sshll.u32 %s267_s26, 1  ;;  %279 = vst [vmem:[#allocation2] sm:$0xf] (!%p1525_p4), %v278_v0 }
  0x10   : > { %s2098_s30 = scalar_lea.vmem %s3392_s0, %s1523_s27  ;;  %s2103_s10 = scalar_lea.vmem %s3399_s7, %s1523_s27 }
  0x15 PF: > { %v411_v1 = vld [vmem:[%s3395_s3 + $0x8] sm:$0xff]  ;;  %v413_v3 = vld [vmem:[%s3395_s3 + $0x18] sm:$0xff]  ;;  %v410_v6 = vld [vmem:[%s3395_s3] sm:$0xff] }
  0x16   : > { %v419_v2 = vld [vmem:[%s3395_s3 + $0x48] sm:$0xff]  ;;  %v421_v5 = vld [vmem:[%s3395_s3 + $0x58] sm:$0xff]  ;;  %v418_v7 = vld [vmem:[%s3395_s3 + $0x40] sm:$0xff] }
  0x17   : > { %v1572_v4 = vpack.c.bf16 %v419_v2, %v411_v1  ;;  %v1636_v8 = vpack.c.bf16 %v421_v5, %v413_v3  ;;  %v1574_v9 = vpack.c.bf16 %v418_v7, %v410_v6  ;;  %v412_v10 = vld [vmem:[%s3395_s3 + $0x10] sm:$0xff]  ;;  %v427_v12 = vld [vmem:[%s3395_s3 + $0x88] sm:$0xff]  ;;  %v429_v15 = vld [vmem:[%s3395_s3 + $0x98] sm:$0xff] }
  0x18   : > { %v420_v11 = vld [vmem:[%s3395_s3 + $0x50] sm:$0xff]  ;;  %v435_v14 = vld [vmem:[%s3395_s3 + $0xc8] sm:$0xff]  ;;  %v437_v16 = vld [vmem:[%s3395_s3 + $0xd8] sm:$0xff] }
  0x19   : > { %1573 = vmatprep.subr.bf16.mxu0 %v1572_v4  ;;  %v1638_v13 = vpack.c.bf16 %v420_v11, %v412_v10  ;;  %1637 = vmatprep.subr.bf16.mxu1 %v1636_v8  ;;  %v1576_v17 = vpack.c.bf16 %v435_v14, %v427_v12  ;;  %v1640_v18 = vpack.c.bf16 %v437_v16, %v429_v15  ;;  %v426_v19 = vld [vmem:[%s3395_s3 + $0x80] sm:$0xff]  ;;  %v428_v21 = vld [vmem:[%s3395_s3 + $0x90] sm:$0xff]  ;;  %v443_v24 = vld [vmem:[%s3395_s3 + $0x108] sm:$0xff] }
  0x1a   : > { %1575 = vmatpush1.bf16.msra.mxu0 %v1574_v9  ;;  %v434_v20 = vld [vmem:[%s3395_s3 + $0xc0] sm:$0xff]  ;;  %v436_v23 = vld [vmem:[%s3395_s3 + $0xd0] sm:$0xff]  ;;  %v451_v25 = vld [vmem:[%s3395_s3 + $0x148] sm:$0xff] }
  0x1b   : > { %1639 = vmatpush1.bf16.msra.mxu1 %v1638_v13  ;;  %v1578_v22 = vpack.c.bf16 %v434_v20, %v426_v19  ;;  %1577 = vmatprep.subr.bf16.mxu0 %v1576_v17  ;;  %v1642_v26 = vpack.c.bf16 %v436_v23, %v428_v21  ;;  %v1580_v27 = vpack.c.bf16 %v451_v25, %v443_v24  ;;  %v445_v28 = vld [vmem:[%s3395_s3 + $0x118] sm:$0xff]  ;;  %v442_v30 = vld [vmem:[%s3395_s3 + $0x100] sm:$0xff]  ;;  %v444_v33 = vld [vmem:[%s3395_s3 + $0x110] sm:$0xff] }
  0x1c   : > { %1641 = vmatprep.subr.bf16.mxu1 %v1640_v18  ;;  %v453_v29 = vld [vmem:[%s3395_s3 + $0x158] sm:$0xff]  ;;  %v450_v32 = vld [vmem:[%s3395_s3 + $0x140] sm:$0xff]  ;;  %v452_v34 = vld [vmem:[%s3395_s3 + $0x150] sm:$0xff] }
  0x1d   : > { %v1644_v31 = vpack.c.bf16 %v453_v29, %v445_v28  ;;  %v1582_v35 = vpack.c.bf16 %v450_v32, %v442_v30  ;;  %v459_v36 = vld [vmem:[%s3395_s3 + $0x188] sm:$0xff]  ;;  %v461_v38 = vld [vmem:[%s3395_s3 + $0x198] sm:$0xff]  ;;  %v1646_v39 = vpack.c.bf16 %v452_v34, %v444_v33  ;;  %v458_v42 = vld [vmem:[%s3395_s3 + $0x180] sm:$0xff] }
  0x1e   : > { %1579 = vmatpush1.bf16.msra.mxu0 %v1578_v22  ;;  %v467_v37 = vld [vmem:[%s3395_s3 + $0x1c8] sm:$0xff]  ;;  %v469_v41 = vld [vmem:[%s3395_s3 + $0x1d8] sm:$0xff]  ;;  %v466_v43 = vld [vmem:[%s3395_s3 + $0x1c0] sm:$0xff] }
  0x1f   : > { %1643 = vmatpush1.bf16.msra.mxu1 %v1642_v26  ;;  %1581 = vmatprep.subr.bf16.mxu0 %v1580_v27  ;;  %v1584_v40 = vpack.c.bf16 %v467_v37, %v459_v36  ;;  %v1648_v44 = vpack.c.bf16 %v469_v41, %v461_v38  ;;  %v460_v45 = vld [vmem:[%s3395_s3 + $0x190] sm:$0xff]  ;;  %v475_v47 = vld [vmem:[%s3395_s3 + $0x208] sm:$0xff]  ;;  %v477_v49 = vld [vmem:[%s3395_s3 + $0x218] sm:$0xff]  ;;  %v1586_v51 = vpack.c.bf16 %v466_v43, %v458_v42 }
  0x20   : > { %1645 = vmatprep.subr.bf16.mxu1 %v1644_v31  ;;  %v468_v46 = vld [vmem:[%s3395_s3 + $0x1d0] sm:$0xff]  ;;  %v483_v48 = vld [vmem:[%s3395_s3 + $0x248] sm:$0xff]  ;;  %v485_v50 = vld [vmem:[%s3395_s3 + $0x258] sm:$0xff] }
  0x21   : > { %v1650_v52 = vpack.c.bf16 %v468_v46, %v460_v45  ;;  %v1588_v53 = vpack.c.bf16 %v483_v48, %v475_v47  ;;  %v474_v54 = vld [vmem:[%s3395_s3 + $0x200] sm:$0xff]  ;;  %v476_v56 = vld [vmem:[%s3395_s3 + $0x210] sm:$0xff]  ;;  %v1652_v57 = vpack.c.bf16 %v485_v50, %v477_v49  ;;  %v491_v59 = vld [vmem:[%s3395_s3 + $0x288] sm:$0xff] }
  0x22   : > { %1583 = vmatpush1.bf16.msra.mxu0 %v1582_v35  ;;  %v482_v55 = vld [vmem:[%s3395_s3 + $0x240] sm:$0xff]  ;;  %v484_v58 = vld [vmem:[%s3395_s3 + $0x250] sm:$0xff]  ;;  %v499_v60 = vld [vmem:[%s3395_s3 + $0x2c8] sm:$0xff] }
  0x23   : > { %1647 = vmatpush1.bf16.msra.mxu1 %v1646_v39  ;;  %1585 = vmatprep.subr.bf16.mxu0 %v1584_v40  ;;  %v493_v61 = vld [vmem:[%s3395_s3 + $0x298] sm:$0xff]  ;;  %v1590_v63 = vpack.c.bf16 %v482_v55, %v474_v54  ;;  %v1654_v0 = vpack.c.bf16 %v484_v58, %v476_v56  ;;  %v1592_v1 = vpack.c.bf16 %v499_v60, %v491_v59  ;;  %v490_v2 = vld [vmem:[%s3395_s3 + $0x280] sm:$0xff]  ;;  %v492_v4 = vld [vmem:[%s3395_s3 + $0x290] sm:$0xff] }
  0x24   : > { %1649 = vmatprep.subr.bf16.mxu1 %v1648_v44  ;;  %v501_v62 = vld [vmem:[%s3395_s3 + $0x2d8] sm:$0xff]  ;;  %v498_v3 = vld [vmem:[%s3395_s3 + $0x2c0] sm:$0xff]  ;;  %v500_v6 = vld [vmem:[%s3395_s3 + $0x2d0] sm:$0xff] }
  0x25   : > { %v1656_v5 = vpack.c.bf16 %v501_v62, %v493_v61  ;;  %v507_v7 = vld [vmem:[%s3395_s3 + $0x308] sm:$0xff]  ;;  %v509_v9 = vld [vmem:[%s3395_s3 + $0x318] sm:$0xff]  ;;  %v1594_v11 = vpack.c.bf16 %v498_v3, %v490_v2  ;;  %v1658_v12 = vpack.c.bf16 %v500_v6, %v492_v4  ;;  %v506_v14 = vld [vmem:[%s3395_s3 + $0x300] sm:$0xff] }
  0x26   : > { %1587 = vmatpush1.bf16.msra.mxu0 %v1586_v51  ;;  %v515_v8 = vld [vmem:[%s3395_s3 + $0x348] sm:$0xff]  ;;  %v517_v10 = vld [vmem:[%s3395_s3 + $0x358] sm:$0xff]  ;;  %v514_v15 = vld [vmem:[%s3395_s3 + $0x340] sm:$0xff] }
  0x27   : > { %1651 = vmatpush1.bf16.msra.mxu1 %v1650_v52  ;;  %1589 = vmatprep.subr.bf16.mxu0 %v1588_v53  ;;  %v1596_v13 = vpack.c.bf16 %v515_v8, %v507_v7  ;;  %v508_v16 = vld [vmem:[%s3395_s3 + $0x310] sm:$0xff]  ;;  %v1660_v17 = vpack.c.bf16 %v517_v10, %v509_v9  ;;  %v523_v19 = vld [vmem:[%s3395_s3 + $0x388] sm:$0xff]  ;;  %v525_v21 = vld [vmem:[%s3395_s3 + $0x398] sm:$0xff]  ;;  %v1598_v23 = vpack.c.bf16 %v514_v15, %v506_v14 }
  0x28   : > { %1653 = vmatprep.subr.bf16.mxu1 %v1652_v57  ;;  %v516_v18 = vld [vmem:[%s3395_s3 + $0x350] sm:$0xff]  ;;  %v531_v20 = vld [vmem:[%s3395_s3 + $0x3c8] sm:$0xff]  ;;  %v533_v22 = vld [vmem:[%s3395_s3 + $0x3d8] sm:$0xff] }
  0x29   : > { %v1662_v24 = vpack.c.bf16 %v516_v18, %v508_v16  ;;  %v1600_v25 = vpack.c.bf16 %v531_v20, %v523_v19  ;;  %v522_v26 = vld [vmem:[%s3395_s3 + $0x380] sm:$0xff]  ;;  %v524_v28 = vld [vmem:[%s3395_s3 + $0x390] sm:$0xff]  ;;  %v1664_v29 = vpack.c.bf16 %v533_v22, %v525_v21  ;;  %v539_v31 = vld [vmem:[%s3395_s3 + $0x408] sm:$0xff] }
  0x2a   : > { %1591 = vmatpush1.bf16.msra.mxu0 %v1590_v63  ;;  %v530_v27 = vld [vmem:[%s3395_s3 + $0x3c0] sm:$0xff]  ;;  %v532_v30 = vld [vmem:[%s3395_s3 + $0x3d0] sm:$0xff]  ;;  %v547_v32 = vld [vmem:[%s3395_s3 + $0x448] sm:$0xff] }
  0x2b   : > { %1655 = vmatpush1.bf16.msra.mxu1 %v1654_v0  ;;  %1593 = vmatprep.subr.bf16.mxu0 %v1592_v1  ;;  %v541_v33 = vld [vmem:[%s3395_s3 + $0x418] sm:$0xff]  ;;  %v1602_v35 = vpack.c.bf16 %v530_v27, %v522_v26  ;;  %v1666_v36 = vpack.c.bf16 %v532_v30, %v524_v28  ;;  %v1604_v37 = vpack.c.bf16 %v547_v32, %v539_v31  ;;  %v538_v38 = vld [vmem:[%s3395_s3 + $0x400] sm:$0xff]  ;;  %v540_v40 = vld [vmem:[%s3395_s3 + $0x410] sm:$0xff] }
  0x2c   : > { %1657 = vmatprep.subr.bf16.mxu1 %v1656_v5  ;;  %v549_v34 = vld [vmem:[%s3395_s3 + $0x458] sm:$0xff]  ;;  %v546_v39 = vld [vmem:[%s3395_s3 + $0x440] sm:$0xff]  ;;  %v548_v42 = vld [vmem:[%s3395_s3 + $0x450] sm:$0xff] }
  0x2d   : > { %v1668_v41 = vpack.c.bf16 %v549_v34, %v541_v33  ;;  %v555_v43 = vld [vmem:[%s3395_s3 + $0x488] sm:$0xff]  ;;  %v557_v45 = vld [vmem:[%s3395_s3 + $0x498] sm:$0xff]  ;;  %v1606_v47 = vpack.c.bf16 %v546_v39, %v538_v38  ;;  %v1670_v48 = vpack.c.bf16 %v548_v42, %v540_v40  ;;  %v554_v50 = vld [vmem:[%s3395_s3 + $0x480] sm:$0xff] }
  0x2e   : > { %1595 = vmatpush1.bf16.msra.mxu0 %v1594_v11  ;;  %v563_v44 = vld [vmem:[%s3395_s3 + $0x4c8] sm:$0xff]  ;;  %v565_v46 = vld [vmem:[%s3395_s3 + $0x4d8] sm:$0xff]  ;;  %v562_v51 = vld [vmem:[%s3395_s3 + $0x4c0] sm:$0xff] }
  0x2f   : > { %1659 = vmatpush1.bf16.msra.mxu1 %v1658_v12  ;;  %1597 = vmatprep.subr.bf16.mxu0 %v1596_v13  ;;  %v1608_v49 = vpack.c.bf16 %v563_v44, %v555_v43  ;;  %v556_v52 = vld [vmem:[%s3395_s3 + $0x490] sm:$0xff]  ;;  %v1672_v53 = vpack.c.bf16 %v565_v46, %v557_v45  ;;  %v571_v55 = vld [vmem:[%s3395_s3 + $0x508] sm:$0xff]  ;;  %v573_v57 = vld [vmem:[%s3395_s3 + $0x518] sm:$0xff]  ;;  %v1610_v59 = vpack.c.bf16 %v562_v51, %v554_v50 }
  0x30   : > { %1661 = vmatprep.subr.bf16.mxu1 %v1660_v17  ;;  %v564_v54 = vld [vmem:[%s3395_s3 + $0x4d0] sm:$0xff]  ;;  %v579_v56 = vld [vmem:[%s3395_s3 + $0x548] sm:$0xff]  ;;  %v581_v58 = vld [vmem:[%s3395_s3 + $0x558] sm:$0xff] }
  0x31   : > { %v1674_v60 = vpack.c.bf16 %v564_v54, %v556_v52  ;;  %v1612_v61 = vpack.c.bf16 %v579_v56, %v571_v55  ;;  %v570_v62 = vld [vmem:[%s3395_s3 + $0x500] sm:$0xff]  ;;  %v572_v0 = vld [vmem:[%s3395_s3 + $0x510] sm:$0xff]  ;;  %v1676_v1 = vpack.c.bf16 %v581_v58, %v573_v57  ;;  %v587_v3 = vld [vmem:[%s3395_s3 + $0x588] sm:$0xff] }
  0x32   : > { %1599 = vmatpush1.bf16.msra.mxu0 %v1598_v23  ;;  %v578_v63 = vld [vmem:[%s3395_s3 + $0x540] sm:$0xff]  ;;  %v580_v2 = vld [vmem:[%s3395_s3 + $0x550] sm:$0xff]  ;;  %v595_v4 = vld [vmem:[%s3395_s3 + $0x5c8] sm:$0xff] }
  0x33   : > { %1663 = vmatpush1.bf16.msra.mxu1 %v1662_v24  ;;  %1601 = vmatprep.subr.bf16.mxu0 %v1600_v25  ;;  %v589_v5 = vld [vmem:[%s3395_s3 + $0x598] sm:$0xff]  ;;  %v1614_v7 = vpack.c.bf16 %v578_v63, %v570_v62  ;;  %v586_v8 = vld [vmem:[%s3395_s3 + $0x580] sm:$0xff]  ;;  %v1678_v9 = vpack.c.bf16 %v580_v2, %v572_v0  ;;  %v1616_v10 = vpack.c.bf16 %v595_v4, %v587_v3  ;;  %v588_v12 = vld [vmem:[%s3395_s3 + $0x590] sm:$0xff] }
  0x34   : > { %1665 = vmatprep.subr.bf16.mxu1 %v1664_v29  ;;  %v597_v6 = vld [vmem:[%s3395_s3 + $0x5d8] sm:$0xff]  ;;  %v594_v11 = vld [vmem:[%s3395_s3 + $0x5c0] sm:$0xff]  ;;  %v596_v13 = vld [vmem:[%s3395_s3 + $0x5d0] sm:$0xff] }
  0x35   : > { %v1680_v14 = vpack.c.bf16 %v597_v6, %v589_v5  ;;  %v603_v15 = vld [vmem:[%s3395_s3 + $0x608] sm:$0xff]  ;;  %v2402_v17 = vld.sshfl [vmem:[#allocation2] sm:$0x33 pattern:$0x76325410]  ;;  %v1618_v21 = vpack.c.bf16 %v594_v11, %v586_v8  ;;  %v1682_v22 = vpack.c.bf16 %v596_v13, %v588_v12  ;;  %v602_v24 = vld [vmem:[%s3395_s3 + $0x600] sm:$0xff] }
  0x36   : > { %1603 = vmatpush1.bf16.msra.mxu0 %v1602_v35  ;;  %v611_v16 = vld [vmem:[%s3395_s3 + $0x648] sm:$0xff]  ;;  %v605_v18 = vld [vmem:[%s3395_s3 + $0x618] sm:$0xff]  ;;  %v2412_v20 = vcombine.high %v2402_v17, %v2402_v17  ;;  %v610_v25 = vld [vmem:[%s3395_s3 + $0x640] sm:$0xff] }
  0x37   : > { %1667 = vmatpush1.bf16.msra.mxu1 %v1666_v36  ;;  %1605 = vmatprep.subr.bf16.mxu0 %v1604_v37  ;;  %v613_v19 = vld [vmem:[%s3395_s3 + $0x658] sm:$0xff]  ;;  %v1620_v23 = vpack.c.bf16 %v611_v16, %v603_v15  ;;  %v604_v26 = vld [vmem:[%s3395_s3 + $0x610] sm:$0xff]  ;;  %v619_v29 = vld [vmem:[%s3395_s3 + $0x688] sm:$0xff]  ;;  %v1622_v33 = vpack.c.bf16 %v610_v25, %v602_v24 }
  0x38   : > { %1669 = vmatprep.subr.bf16.mxu1 %v1668_v41  ;;  %v1684_v27 = vpack.c.bf16 %v613_v19, %v605_v18  ;;  %v612_v28 = vld [vmem:[%s3395_s3 + $0x650] sm:$0xff]  ;;  %v627_v30 = vld [vmem:[%s3395_s3 + $0x6c8] sm:$0xff]  ;;  %741 = vmatprep.mubr.f32.mxu0 %v2412_v20  ;;  %v621_v31 = vld [vmem:[%s3395_s3 + $0x698] sm:$0xff] }
  0x39   : > { %v629_v32 = vld [vmem:[%s3395_s3 + $0x6d8] sm:$0xff]  ;;  %812 = vmatprep.mubr.f32.mxu1 %v2412_v20  ;;  %v1686_v34 = vpack.c.bf16 %v612_v28, %v604_v26  ;;  %v1624_v35 = vpack.c.bf16 %v627_v30, %v619_v29  ;;  %v618_v36 = vld [vmem:[%s3395_s3 + $0x680] sm:$0xff]  ;;  %v620_v38 = vld [vmem:[%s3395_s3 + $0x690] sm:$0xff] }
  0x3a   : > { %1607 = vmatpush1.bf16.msra.mxu0 %v1606_v47  ;;  %v626_v37 = vld [vmem:[%s3395_s3 + $0x6c0] sm:$0xff]  ;;  %v1688_v39 = vpack.c.bf16 %v629_v32, %v621_v31  ;;  %v628_v40 = vld [vmem:[%s3395_s3 + $0x6d0] sm:$0xff]  ;;  %v635_v41 = vld [vmem:[%s3395_s3 + $0x708] sm:$0xff] }
  0x3b   : > { %1671 = vmatpush1.bf16.msra.mxu1 %v1670_v48  ;;  %1609 = vmatprep.subr.bf16.mxu0 %v1608_v49  ;;  %v643_v42 = vld [vmem:[%s3395_s3 + $0x748] sm:$0xff]  ;;  %v637_v43 = vld [vmem:[%s3395_s3 + $0x718] sm:$0xff]  ;;  %v1626_v45 = vpack.c.bf16 %v626_v37, %v618_v36  ;;  %v1690_v46 = vpack.c.bf16 %v628_v40, %v620_v38  ;;  %v634_v48 = vld [vmem:[%s3395_s3 + $0x700] sm:$0xff] }
  0x3c   : > { %1673 = vmatprep.subr.bf16.mxu1 %v1672_v53  ;;  %v645_v44 = vld [vmem:[%s3395_s3 + $0x758] sm:$0xff]  ;;  %v1628_v47 = vpack.c.bf16 %v643_v42, %v635_v41  ;;  %v642_v49 = vld [vmem:[%s3395_s3 + $0x740] sm:$0xff]  ;;  %v636_v50 = vld [vmem:[%s3395_s3 + $0x710] sm:$0xff] }
  0x3d   : > { %v1692_v51 = vpack.c.bf16 %v645_v44, %v637_v43  ;;  %v644_v52 = vld [vmem:[%s3395_s3 + $0x750] sm:$0xff]  ;;  %v651_v53 = vld [vmem:[%s3395_s3 + $0x788] sm:$0xff]  ;;  %v653_v55 = vld [vmem:[%s3395_s3 + $0x798] sm:$0xff]  ;;  %v1630_v57 = vpack.c.bf16 %v642_v49, %v634_v48 }
  0x3e   : > { %1611 = vmatpush1.bf16.msra.mxu0 %v1610_v59  ;;  %v659_v54 = vld [vmem:[%s3395_s3 + $0x7c8] sm:$0xff]  ;;  %v661_v56 = vld [vmem:[%s3395_s3 + $0x7d8] sm:$0xff]  ;;  %v1694_v58 = vpack.c.bf16 %v644_v52, %v636_v50  ;;  %v652_v62 = vld [vmem:[%s3395_s3 + $0x790] sm:$0xff] }
  0x3f   : > { %1675 = vmatpush1.bf16.msra.mxu1 %v1674_v60  ;;  %1613 = vmatprep.subr.bf16.mxu0 %v1612_v61  ;;  %v1632_v59 = vpack.c.bf16 %v659_v54, %v651_v53  ;;  %v650_v60 = vld [vmem:[%s3395_s3 + $0x780] sm:$0xff]  ;;  %v1696_v63 = vpack.c.bf16 %v661_v56, %v653_v55  ;;  %v660_v0 = vld [vmem:[%s3395_s3 + $0x7d0] sm:$0xff]  ;;  %v423_v2 = vld [vmem:[%s3395_s3 + $0x68] sm:$0xff] }
  0x40   : > { %1677 = vmatprep.subr.bf16.mxu1 %v1676_v1  ;;  %v658_v61 = vld [vmem:[%s3395_s3 + $0x7c0] sm:$0xff]  ;;  %v415_v1 = vld [vmem:[%s3395_s3 + $0x28] sm:$0xff]  ;;  %v417_v3 = vld [vmem:[%s3395_s3 + $0x38] sm:$0xff]  ;;  %v1698_v6 = vpack.c.bf16 %v660_v0, %v652_v62 }
  0x41   : > { %v425_v4 = vld [vmem:[%s3395_s3 + $0x78] sm:$0xff]  ;;  %v1634_v5 = vpack.c.bf16 %v658_v61, %v650_v60  ;;  %v414_v8 = vld [vmem:[%s3395_s3 + $0x20] sm:$0xff]  ;;  %v424_v12 = vld [vmem:[%s3395_s3 + $0x70] sm:$0xff] }
  0x42   : > { %1615 = vmatpush1.bf16.msra.mxu0 %v1614_v7  ;;  %v1700_v7 = vpack.c.bf16 %v423_v2, %v415_v1  ;;  %v1764_v11 = vpack.c.bf16 %v425_v4, %v417_v3  ;;  %v431_v13 = vld [vmem:[%s3395_s3 + $0xa8] sm:$0xff]  ;;  %v433_v15 = vld [vmem:[%s3395_s3 + $0xb8] sm:$0xff]  ;;  %v432_v24 = vld [vmem:[%s3395_s3 + $0xb0] sm:$0xff] }
  0x43   : > { %1679 = vmatpush1.bf16.msra.mxu1 %v1678_v9  ;;  %1617 = vmatprep.subr.bf16.mxu0 %v1616_v10  ;;  %v422_v9 = vld [vmem:[%s3395_s3 + $0x60] sm:$0xff]  ;;  %v416_v10 = vld [vmem:[%s3395_s3 + $0x30] sm:$0xff]  ;;  %v441_v16 = vld [vmem:[%s3395_s3 + $0xf8] sm:$0xff] }
  0x44   : > { %1681 = vmatprep.subr.bf16.mxu1 %v1680_v14  ;;  %v439_v14 = vld [vmem:[%s3395_s3 + $0xe8] sm:$0xff]  ;;  %v1702_v18 = vpack.c.bf16 %v422_v9, %v414_v8  ;;  %v1766_v19 = vpack.c.bf16 %v424_v12, %v416_v10  ;;  %v1768_v25 = vpack.c.bf16 %v441_v16, %v433_v15  ;;  %v440_v26 = vld [vmem:[%s3395_s3 + $0xf0] sm:$0xff]  ;;  %v449_v29 = vld [vmem:[%s3395_s3 + $0x138] sm:$0xff] }
  0x45   : > { %v455_v28 = vld [vmem:[%s3395_s3 + $0x168] sm:$0xff]  ;;  %v457_v30 = vld [vmem:[%s3395_s3 + $0x178] sm:$0xff]  ;;  %v1770_v32 = vpack.c.bf16 %v440_v26, %v432_v24  ;;  %v448_v36 = vld [vmem:[%s3395_s3 + $0x130] sm:$0xff] }
  0x46   : > { %1619 = vmatpush1.bf16.msra.mxu0 %v1618_v21  ;;  %v1704_v21 = vpack.c.bf16 %v439_v14, %v431_v13  ;;  %v1772_v37 = vpack.c.bf16 %v457_v30, %v449_v29  ;;  %v456_v38 = vld [vmem:[%s3395_s3 + $0x170] sm:$0xff]  ;;  %v471_v40 = vld [vmem:[%s3395_s3 + $0x1e8] sm:$0xff]  ;;  %v465_v41 = vld [vmem:[%s3395_s3 + $0x1b8] sm:$0xff] }
  0x47   : > { %1683 = vmatpush1.bf16.msra.mxu1 %v1682_v22  ;;  %1621 = vmatprep.subr.bf16.mxu0 %v1620_v23  ;;  %v430_v22 = vld [vmem:[%s3395_s3 + $0xa0] sm:$0xff]  ;;  %v473_v42 = vld [vmem:[%s3395_s3 + $0x1f8] sm:$0xff]  ;;  %v1774_v44 = vpack.c.bf16 %v456_v38, %v448_v36  ;;  %v464_v48 = vld [vmem:[%s3395_s3 + $0x1b0] sm:$0xff] }
  0x48   : > { %1685 = vmatprep.subr.bf16.mxu1 %v1684_v27  ;;  %v438_v23 = vld [vmem:[%s3395_s3 + $0xe0] sm:$0xff]  ;;  %v447_v27 = vld [vmem:[%s3395_s3 + $0x128] sm:$0xff]  ;;  %v1776_v49 = vpack.c.bf16 %v473_v42, %v465_v41  ;;  %v472_v50 = vld [vmem:[%s3395_s3 + $0x1f0] sm:$0xff] }
  0x49   : > { %v1706_v31 = vpack.c.bf16 %v438_v23, %v430_v22  ;;  %v487_v52 = vld [vmem:[%s3395_s3 + $0x268] sm:$0xff]  ;;  %v481_v53 = vld [vmem:[%s3395_s3 + $0x238] sm:$0xff]  ;;  %v1778_v56 = vpack.c.bf16 %v472_v50, %v464_v48  ;;  %v480_v60 = vld [vmem:[%s3395_s3 + $0x230] sm:$0xff] }
  0x4a   : > { %1623 = vmatpush1.bf16.msra.mxu0 %v1622_v33  ;;  %v1708_v33 = vpack.c.bf16 %v455_v28, %v447_v27  ;;  %v489_v54 = vld [vmem:[%s3395_s3 + $0x278] sm:$0xff]  ;;  %v488_v62 = vld [vmem:[%s3395_s3 + $0x270] sm:$0xff]  ;;  %v503_v0 = vld [vmem:[%s3395_s3 + $0x2e8] sm:$0xff] }
  0x4b   : > { %1687 = vmatpush1.bf16.msra.mxu1 %v1686_v34  ;;  %1625 = vmatprep.subr.bf16.mxu0 %v1624_v35  ;;  %v446_v34 = vld [vmem:[%s3395_s3 + $0x120] sm:$0xff]  ;;  %v1780_v61 = vpack.c.bf16 %v489_v54, %v481_v53  ;;  %v497_v1 = vld [vmem:[%s3395_s3 + $0x2b8] sm:$0xff]  ;;  %v1782_v4 = vpack.c.bf16 %v488_v62, %v480_v60  ;;  %v496_v8 = vld [vmem:[%s3395_s3 + $0x2b0] sm:$0xff] }
  0x4c   : > { %1689 = vmatprep.subr.bf16.mxu1 %v1688_v39  ;;  %v454_v35 = vld [vmem:[%s3395_s3 + $0x160] sm:$0xff]  ;;  %v463_v39 = vld [vmem:[%s3395_s3 + $0x1a8] sm:$0xff]  ;;  %v505_v2 = vld [vmem:[%s3395_s3 + $0x2f8] sm:$0xff] }
  0x4d   : > { %v1710_v43 = vpack.c.bf16 %v454_v35, %v446_v34  ;;  %v1784_v9 = vpack.c.bf16 %v505_v2, %v497_v1  ;;  %v504_v10 = vld [vmem:[%s3395_s3 + $0x2f0] sm:$0xff]  ;;  %v519_v12 = vld [vmem:[%s3395_s3 + $0x368] sm:$0xff]  ;;  %v513_v13 = vld [vmem:[%s3395_s3 + $0x338] sm:$0xff] }
  0x4e   : > { %1627 = vmatpush1.bf16.msra.mxu0 %v1626_v45  ;;  %v1712_v45 = vpack.c.bf16 %v471_v40, %v463_v39  ;;  %v521_v14 = vld [vmem:[%s3395_s3 + $0x378] sm:$0xff]  ;;  %v1786_v16 = vpack.c.bf16 %v504_v10, %v496_v8  ;;  %v512_v22 = vld [vmem:[%s3395_s3 + $0x330] sm:$0xff]  ;;  %v535_v26 = vld [vmem:[%s3395_s3 + $0x3e8] sm:$0xff] }
  0x4f   : > { %1691 = vmatpush1.bf16.msra.mxu1 %v1690_v46  ;;  %1629 = vmatprep.subr.bf16.mxu0 %v1628_v47  ;;  %v462_v46 = vld [vmem:[%s3395_s3 + $0x1a0] sm:$0xff]  ;;  %v1788_v23 = vpack.c.bf16 %v521_v14, %v513_v13  ;;  %v520_v24 = vld [vmem:[%s3395_s3 + $0x370] sm:$0xff]  ;;  %v529_v27 = vld [vmem:[%s3395_s3 + $0x3b8] sm:$0xff] }
  0x50   : > { %1693 = vmatprep.subr.bf16.mxu1 %v1692_v51  ;;  %v470_v47 = vld [vmem:[%s3395_s3 + $0x1e0] sm:$0xff]  ;;  %v479_v51 = vld [vmem:[%s3395_s3 + $0x228] sm:$0xff]  ;;  %v537_v28 = vld [vmem:[%s3395_s3 + $0x3f8] sm:$0xff]  ;;  %v1790_v30 = vpack.c.bf16 %v520_v24, %v512_v22 }
  0x51   : > { %v1714_v55 = vpack.c.bf16 %v470_v47, %v462_v46  ;;  %v528_v34 = vld [vmem:[%s3395_s3 + $0x3b0] sm:$0xff]  ;;  %v1792_v35 = vpack.c.bf16 %v537_v28, %v529_v27  ;;  %v551_v38 = vld [vmem:[%s3395_s3 + $0x468] sm:$0xff]  ;;  %v545_v39 = vld [vmem:[%s3395_s3 + $0x438] sm:$0xff] }
  0x52   : > { %1631 = vmatpush1.bf16.msra.mxu0 %v1630_v57  ;;  %v1716_v57 = vpack.c.bf16 %v487_v52, %v479_v51  ;;  %v536_v36 = vld [vmem:[%s3395_s3 + $0x3f0] sm:$0xff]  ;;  %v553_v40 = vld [vmem:[%s3395_s3 + $0x478] sm:$0xff]  ;;  %v567_v50 = vld [vmem:[%s3395_s3 + $0x4e8] sm:$0xff] }
  0x53   : > { %1695 = vmatpush1.bf16.msra.mxu1 %v1694_v58  ;;  %1633 = vmatprep.subr.bf16.mxu0 %v1632_v59  ;;  %v478_v58 = vld [vmem:[%s3395_s3 + $0x220] sm:$0xff]  ;;  %v1794_v42 = vpack.c.bf16 %v536_v36, %v528_v34  ;;  %v544_v46 = vld [vmem:[%s3395_s3 + $0x430] sm:$0xff]  ;;  %v1796_v47 = vpack.c.bf16 %v553_v40, %v545_v39  ;;  %v561_v51 = vld [vmem:[%s3395_s3 + $0x4b8] sm:$0xff] }
  0x54   : > { %1697 = vmatprep.subr.bf16.mxu1 %v1696_v63  ;;  %v486_v59 = vld [vmem:[%s3395_s3 + $0x260] sm:$0xff]  ;;  %v495_v63 = vld [vmem:[%s3395_s3 + $0x2a8] sm:$0xff]  ;;  %v552_v48 = vld [vmem:[%s3395_s3 + $0x470] sm:$0xff] }
  0x55   : > { %v1718_v3 = vpack.c.bf16 %v486_v59, %v478_v58  ;;  %v569_v52 = vld [vmem:[%s3395_s3 + $0x4f8] sm:$0xff]  ;;  %v1798_v54 = vpack.c.bf16 %v552_v48, %v544_v46  ;;  %v560_v58 = vld [vmem:[%s3395_s3 + $0x4b0] sm:$0xff]  ;;  %v583_v62 = vld [vmem:[%s3395_s3 + $0x568] sm:$0xff] }
  0x56   : > { %1635 = vmatpush1.bf16.msra.mxu0 %v1634_v5  ;;  %v1720_v5 = vpack.c.bf16 %v503_v0, %v495_v63  ;;  %v1800_v59 = vpack.c.bf16 %v569_v52, %v561_v51  ;;  %v568_v60 = vld [vmem:[%s3395_s3 + $0x4f0] sm:$0xff]  ;;  %v577_v63 = vld [vmem:[%s3395_s3 + $0x538] sm:$0xff]  ;;  %v599_v10 = vld [vmem:[%s3395_s3 + $0x5e8] sm:$0xff] }
  0x57   : > { %1699 = vmatpush1.bf16.msra.mxu1 %v1698_v6  ;;  %1701 = vmatprep.subr.bf16.mxu0 %v1700_v7  ;;  %v494_v6 = vld [vmem:[%s3395_s3 + $0x2a0] sm:$0xff]  ;;  %v585_v0 = vld [vmem:[%s3395_s3 + $0x578] sm:$0xff]  ;;  %v1802_v2 = vpack.c.bf16 %v568_v60, %v560_v58  ;;  %v584_v8 = vld [vmem:[%s3395_s3 + $0x570] sm:$0xff] }
  0x58   : > { %1765 = vmatprep.subr.bf16.mxu1 %v1764_v11  ;;  %v502_v7 = vld [vmem:[%s3395_s3 + $0x2e0] sm:$0xff]  ;;  %v511_v11 = vld [vmem:[%s3395_s3 + $0x328] sm:$0xff]  ;;  %v600_v22 = vld [vmem:[%s3395_s3 + $0x5f0] sm:$0xff] }
  0x59   : > { %742 = vmatmul.mubr.f32.vlgmr.msra.gmra.mrb[0].mxu0 %v2402_v17  ;;  %v1722_v15 = vpack.c.bf16 %v502_v7, %v494_v6  ;;  %v576_v6 = vld [vmem:[%s3395_s3 + $0x530] sm:$0xff]  ;;  %v1804_v7 = vpack.c.bf16 %v585_v0, %v577_v63  ;;  %v615_v24 = vld [vmem:[%s3395_s3 + $0x668] sm:$0xff] }
  0x5a   : > { %813 = vmatmul.mubr.f32.vlgmr.msra.gmra.mrb[0].mxu1 %v2402_v17  ;;  %1703 = vmatpush1.bf16.msra.mxu0 %v1702_v18  ;;  %v1724_v18 = vpack.c.bf16 %v519_v12, %v511_v11  ;;  %v593_v11 = vld [vmem:[%s3395_s3 + $0x5b8] sm:$0xff]  ;;  %v1806_v14 = vpack.c.bf16 %v584_v8, %v576_v6  ;;  %v616_v34 = vld [vmem:[%s3395_s3 + $0x670] sm:$0xff]  ;;  %v631_v36 = vld [vmem:[%s3395_s3 + $0x6e8] sm:$0xff] }
  0x5b   : > { %1767 = vmatpush1.bf16.msra.mxu1 %v1766_v19  ;;  %1705 = vmatprep.subr.bf16.mxu0 %v1704_v21  ;;  %v510_v19 = vld [vmem:[%s3395_s3 + $0x320] sm:$0xff]  ;;  %v601_v12 = vld [vmem:[%s3395_s3 + $0x5f8] sm:$0xff]  ;;  %v632_v46 = vld [vmem:[%s3395_s3 + $0x6f0] sm:$0xff] }
  0x5c   : > { %1769 = vmatprep.subr.bf16.mxu1 %v1768_v25  ;;  %883 = vmatprep.mubr.f32.mxu0 %v2412_v20  ;;  %v518_v21 = vld [vmem:[%s3395_s3 + $0x360] sm:$0xff]  ;;  %v527_v25 = vld [vmem:[%s3395_s3 + $0x3a8] sm:$0xff]  ;;  %v648_v58 = vld [vmem:[%s3395_s3 + $0x770] sm:$0xff] }
  0x5d   : > { %954 = vmatprep.mubr.f32.mxu1 %v2412_v20  ;;  %v1726_v29 = vpack.c.bf16 %v518_v21, %v510_v19  ;;  %v592_v19 = vld [vmem:[%s3395_s3 + $0x5b0] sm:$0xff]  ;;  %v1808_v21 = vpack.c.bf16 %v601_v12, %v593_v11  ;;  %v647_v48 = vld [vmem:[%s3395_s3 + $0x768] sm:$0xff] }
  0x5e   : > { %1707 = vmatpush1.bf16.msra.mxu0 %v1706_v31  ;;  %v1728_v31 = vpack.c.bf16 %v535_v26, %v527_v25  ;;  %v609_v25 = vld [vmem:[%s3395_s3 + $0x638] sm:$0xff]  ;;  %v1810_v28 = vpack.c.bf16 %v600_v22, %v592_v19  ;;  %v663_v60 = vld [vmem:[%s3395_s3 + $0x7e8] sm:$0xff]  ;;  %v664_v6 = vld [vmem:[%s3395_s3 + $0x7f0] sm:$0xff] }
  0x5f   : > { %1771 = vmatpush1.bf16.msra.mxu1 %v1770_v32  ;;  %1709 = vmatprep.subr.bf16.mxu0 %v1708_v33  ;;  %v526_v32 = vld [vmem:[%s3395_s3 + $0x3a0] sm:$0xff]  ;;  %v617_v26 = vld [vmem:[%s3395_s3 + $0x678] sm:$0xff]  ;;  %v291_v8 = vld [vmem:[%s3394_s2 + $0x48] sm:$0xff] }
  0x60   : > { %1773 = vmatprep.subr.bf16.mxu1 %v1772_v37  ;;  %v534_v33 = vld [vmem:[%s3395_s3 + $0x3e0] sm:$0xff]  ;;  %v543_v37 = vld [vmem:[%s3395_s3 + $0x428] sm:$0xff]  ;;  %v292_v19 = vld [vmem:[%s3394_s2 + $0x50] sm:$0xff] }
  0x61   : > { %v1730_v41 = vpack.c.bf16 %v534_v33, %v526_v32  ;;  %v608_v32 = vld [vmem:[%s3395_s3 + $0x630] sm:$0xff]  ;;  %v1812_v33 = vpack.c.bf16 %v617_v26, %v609_v25  ;;  %v307_v22 = vld [vmem:[%s3394_s2 + $0xc8] sm:$0xff] }
  0x62   : > { %1711 = vmatpush1.bf16.msra.mxu0 %v1710_v43  ;;  %v1732_v43 = vpack.c.bf16 %v551_v38, %v543_v37  ;;  %v625_v37 = vld [vmem:[%s3395_s3 + $0x6b8] sm:$0xff]  ;;  %v1814_v40 = vpack.c.bf16 %v616_v34, %v608_v32  ;;  %v308_v32 = vld [vmem:[%s3394_s2 + $0xd0] sm:$0xff]  ;;  %v323_v34 = vld [vmem:[%s3394_s2 + $0x148] sm:$0xff] }
  0x63   : > { %1775 = vmatpush1.bf16.msra.mxu1 %v1774_v44  ;;  %1713 = vmatprep.subr.bf16.mxu0 %v1712_v45  ;;  %v542_v44 = vld [vmem:[%s3395_s3 + $0x420] sm:$0xff]  ;;  %v633_v38 = vld [vmem:[%s3395_s3 + $0x6f8] sm:$0xff] }
  0x64   : > { %1777 = vmatprep.subr.bf16.mxu1 %v1776_v49  ;;  %v550_v45 = vld [vmem:[%s3395_s3 + $0x460] sm:$0xff]  ;;  %v559_v49 = vld [vmem:[%s3395_s3 + $0x4a8] sm:$0xff] }
  0x65   : > { %v1734_v53 = vpack.c.bf16 %v550_v45, %v542_v44  ;;  %v624_v44 = vld [vmem:[%s3395_s3 + $0x6b0] sm:$0xff]  ;;  %v1816_v45 = vpack.c.bf16 %v633_v38, %v625_v37 }
  0x66   : > { %1715 = vmatpush1.bf16.msra.mxu0 %v1714_v55  ;;  %v1736_v55 = vpack.c.bf16 %v567_v50, %v559_v49  ;;  %v641_v49 = vld [vmem:[%s3395_s3 + $0x738] sm:$0xff]  ;;  %v1818_v52 = vpack.c.bf16 %v632_v46, %v624_v44  ;;  %v331_v44 = vld [vmem:[%s3394_s2 + $0x188] sm:$0xff]  ;;  %v2046_v46 = vmov 0.0  }
  0x67   : > { %1779 = vmatpush1.bf16.msra.mxu1 %v1778_v56  ;;  %1717 = vmatprep.subr.bf16.mxu0 %v1716_v57  ;;  %v558_v56 = vld [vmem:[%s3395_s3 + $0x4a0] sm:$0xff]  ;;  %v649_v50 = vld [vmem:[%s3395_s3 + $0x778] sm:$0xff] }
  0x68   : > { %1781 = vmatprep.subr.bf16.mxu1 %v1780_v61  ;;  %v566_v57 = vld [vmem:[%s3395_s3 + $0x4e0] sm:$0xff]  ;;  %v575_v61 = vld [vmem:[%s3395_s3 + $0x528] sm:$0xff] }
  0x69   : > { %v1738_v1 = vpack.c.bf16 %v566_v57, %v558_v56  ;;  %v640_v56 = vld [vmem:[%s3395_s3 + $0x730] sm:$0xff]  ;;  %v1820_v57 = vpack.c.bf16 %v649_v50, %v641_v49 }
  0x6a   : > { %1719 = vmatpush1.bf16.msra.mxu0 %v1718_v3  ;;  %v1740_v3 = vpack.c.bf16 %v583_v62, %v575_v61  ;;  %v657_v61 = vld [vmem:[%s3395_s3 + $0x7b8] sm:$0xff]  ;;  %v1822_v0 = vpack.c.bf16 %v648_v58, %v640_v56  ;;  %v340_v56 = vld [vmem:[%s3394_s2 + $0x1d0] sm:$0xff]  ;;  %v355_v58 = vld [vmem:[%s3394_s2 + $0x248] sm:$0xff] }
  0x6b   : > { %1783 = vmatpush1.bf16.msra.mxu1 %v1782_v4  ;;  %1721 = vmatprep.subr.bf16.mxu0 %v1720_v5  ;;  %v574_v4 = vld [vmem:[%s3395_s3 + $0x520] sm:$0xff]  ;;  %v665_v62 = vld [vmem:[%s3395_s3 + $0x7f8] sm:$0xff] }
  0x6c   : > { %1785 = vmatprep.subr.bf16.mxu1 %v1784_v9  ;;  %v582_v5 = vld [vmem:[%s3395_s3 + $0x560] sm:$0xff]  ;;  %v591_v9 = vld [vmem:[%s3395_s3 + $0x5a8] sm:$0xff] }
  0x6d   : > { %v1742_v13 = vpack.c.bf16 %v582_v5, %v574_v4  ;;  %v656_v4 = vld [vmem:[%s3395_s3 + $0x7b0] sm:$0xff]  ;;  %v1824_v5 = vpack.c.bf16 %v665_v62, %v657_v61 }
  0x6e   : > { %1723 = vmatpush1.bf16.msra.mxu0 %v1722_v15  ;;  %v1744_v15 = vpack.c.bf16 %v599_v10, %v591_v9  ;;  %v285_v9 = vld [vmem:[%s3394_s2 + $0x18] sm:$0xff]  ;;  %v1826_v12 = vpack.c.bf16 %v664_v6, %v656_v4  ;;  %v356_v4 = vld [vmem:[%s3394_s2 + $0x250] sm:$0xff]  ;;  %v371_v6 = vld [vmem:[%s3394_s2 + $0x2c8] sm:$0xff] }
  0x6f   : > { %1787 = vmatpush1.bf16.msra.mxu1 %v1786_v16  ;;  %1725 = vmatprep.subr.bf16.mxu0 %v1724_v18  ;;  %v590_v16 = vld [vmem:[%s3395_s3 + $0x5a0] sm:$0xff]  ;;  %v293_v10 = vld [vmem:[%s3394_s2 + $0x58] sm:$0xff] }
  0x70   : > { %1789 = vmatprep.subr.bf16.mxu1 %v1788_v23  ;;  %v598_v18 = vld [vmem:[%s3395_s3 + $0x5e0] sm:$0xff]  ;;  %v607_v23 = vld [vmem:[%s3395_s3 + $0x628] sm:$0xff] }
  0x71   : > { %v1746_v27 = vpack.c.bf16 %v598_v18, %v590_v16  ;;  %v284_v16 = vld [vmem:[%s3394_s2 + $0x10] sm:$0xff]  ;;  %v1860_v18 = vpack.c.bf16 %v293_v10, %v285_v9 }
  0x72   : > { %1727 = vmatpush1.bf16.msra.mxu0 %v1726_v29  ;;  %v1748_v29 = vpack.c.bf16 %v615_v24, %v607_v23  ;;  %v301_v23 = vld [vmem:[%s3394_s2 + $0x98] sm:$0xff]  ;;  %v1862_v26 = vpack.c.bf16 %v292_v19, %v284_v16  ;;  %v372_v16 = vld [vmem:[%s3394_s2 + $0x2d0] sm:$0xff]  ;;  %v387_v19 = vld [vmem:[%s3394_s2 + $0x348] sm:$0xff] }
  0x73   : > { %1791 = vmatpush1.bf16.msra.mxu1 %v1790_v30  ;;  %1729 = vmatprep.subr.bf16.mxu0 %v1728_v31  ;;  %v606_v30 = vld [vmem:[%s3395_s3 + $0x620] sm:$0xff]  ;;  %v309_v24 = vld [vmem:[%s3394_s2 + $0xd8] sm:$0xff] }
  0x74   : > { %1793 = vmatprep.subr.bf16.mxu1 %v1792_v35  ;;  %v614_v31 = vld [vmem:[%s3395_s3 + $0x660] sm:$0xff]  ;;  %v623_v35 = vld [vmem:[%s3395_s3 + $0x6a8] sm:$0xff] }
  0x75   : > { %v1750_v39 = vpack.c.bf16 %v614_v31, %v606_v30  ;;  %v300_v30 = vld [vmem:[%s3394_s2 + $0x90] sm:$0xff]  ;;  %v1864_v31 = vpack.c.bf16 %v309_v24, %v301_v23 }
  0x76   : > { %1731 = vmatpush1.bf16.msra.mxu0 %v1730_v41  ;;  %v1752_v41 = vpack.c.bf16 %v631_v36, %v623_v35  ;;  %v317_v35 = vld [vmem:[%s3394_s2 + $0x118] sm:$0xff]  ;;  %v1866_v38 = vpack.c.bf16 %v308_v32, %v300_v30  ;;  %v388_v30 = vld [vmem:[%s3394_s2 + $0x350] sm:$0xff]  ;;  %v403_v32 = vld [vmem:[%s3394_s2 + $0x3c8] sm:$0xff] }
  0x77   : > { %1795 = vmatpush1.bf16.msra.mxu1 %v1794_v42  ;;  %1733 = vmatprep.subr.bf16.mxu0 %v1732_v43  ;;  %v622_v42 = vld [vmem:[%s3395_s3 + $0x6a0] sm:$0xff]  ;;  %v325_v36 = vld [vmem:[%s3394_s2 + $0x158] sm:$0xff] }
  0x78   : > { %1797 = vmatprep.subr.bf16.mxu1 %v1796_v47  ;;  %v630_v43 = vld [vmem:[%s3395_s3 + $0x6e0] sm:$0xff]  ;;  %v639_v47 = vld [vmem:[%s3395_s3 + $0x728] sm:$0xff] }
  0x79   : > { %v1754_v51 = vpack.c.bf16 %v630_v43, %v622_v42  ;;  %v316_v42 = vld [vmem:[%s3394_s2 + $0x110] sm:$0xff] }
  0x7a   : > { %1735 = vmatpush1.bf16.msra.mxu0 %v1734_v53  ;;  %v1756_v53 = vpack.c.bf16 %v647_v48, %v639_v47  ;;  %v324_v43 = vld [vmem:[%s3394_s2 + $0x150] sm:$0xff]  ;;  %v333_v47 = vld [vmem:[%s3394_s2 + $0x198] sm:$0xff] }
  0x7b   : > { %1799 = vmatpush1.bf16.msra.mxu1 %v1798_v54  ;;  %1737 = vmatprep.subr.bf16.mxu0 %v1736_v55  ;;  %v638_v54 = vld [vmem:[%s3395_s3 + $0x720] sm:$0xff]  ;;  %v341_v48 = vld [vmem:[%s3394_s2 + $0x1d8] sm:$0xff]  ;;  %v1870_v50 = vpack.c.bf16 %v324_v43, %v316_v42  ;;  %v404_v42 = vld [vmem:[%s3394_s2 + $0x3d0] sm:$0xff] }
  0x7c   : > { %1801 = vmatprep.subr.bf16.mxu1 %v1800_v59  ;;  %v646_v55 = vld [vmem:[%s3395_s3 + $0x760] sm:$0xff]  ;;  %v655_v59 = vld [vmem:[%s3395_s3 + $0x7a8] sm:$0xff] }
  0x7d   : > { %v1758_v63 = vpack.c.bf16 %v646_v55, %v638_v54  ;;  %v332_v54 = vld [vmem:[%s3394_s2 + $0x190] sm:$0xff]  ;;  %v1872_v55 = vpack.c.bf16 %v341_v48, %v333_v47  ;;  %v295_v43 = vld [vmem:[%s3394_s2 + $0x68] sm:$0xff] }
  0x7e   : > { %1739 = vmatpush1.bf16.msra.mxu0 %v1738_v1  ;;  %v1760_v1 = vpack.c.bf16 %v663_v60, %v655_v59  ;;  %v349_v59 = vld [vmem:[%s3394_s2 + $0x218] sm:$0xff]  ;;  %v1874_v62 = vpack.c.bf16 %v340_v56, %v332_v54  ;;  %v296_v54 = vld [vmem:[%s3394_s2 + $0x70] sm:$0xff]  ;;  %v311_v56 = vld [vmem:[%s3394_s2 + $0xe8] sm:$0xff] }
  0x7f   : > { %1803 = vmatpush1.bf16.msra.mxu1 %v1802_v2  ;;  %1741 = vmatprep.subr.bf16.mxu0 %v1740_v3  ;;  %v654_v2 = vld [vmem:[%s3395_s3 + $0x7a0] sm:$0xff]  ;;  %v357_v60 = vld [vmem:[%s3394_s2 + $0x258] sm:$0xff] }
  0x80   : > { %1805 = vmatprep.subr.bf16.mxu1 %v1804_v7  ;;  %v662_v3 = vld [vmem:[%s3395_s3 + $0x7e0] sm:$0xff]  ;;  %v283_v7 = vld [vmem:[%s3394_s2 + $0x8] sm:$0xff] }
  0x81   : > { %v1762_v11 = vpack.c.bf16 %v662_v3, %v654_v2  ;;  %v348_v2 = vld [vmem:[%s3394_s2 + $0x210] sm:$0xff]  ;;  %v1876_v3 = vpack.c.bf16 %v357_v60, %v349_v59  ;;  %v3121_v59 = vld [vmem:[%s2098_s30] sm:$0x3] }
  0x82   : > { %1743 = vmatpush1.bf16.msra.mxu0 %v1742_v13  ;;  %v1828_v13 = vpack.c.bf16 %v291_v8, %v283_v7  ;;  %v365_v7 = vld [vmem:[%s3394_s2 + $0x298] sm:$0xff]  ;;  %v1878_v10 = vpack.c.bf16 %v356_v4, %v348_v2  ;;  %v319_v4 = vld [vmem:[%s3394_s2 + $0x128] sm:$0xff] }
  0x83   : > { %1807 = vmatpush1.bf16.msra.mxu1 %v1806_v14  ;;  %1745 = vmatprep.subr.bf16.mxu0 %v1744_v15  ;;  %v282_v14 = vld [vmem:[%s3394_s2] sm:$0xff]  ;;  %v373_v8 = vld [vmem:[%s3394_s2 + $0x2d8] sm:$0xff] }
  0x84   : > { %1809 = vmatprep.subr.bf16.mxu1 %v1808_v21  ;;  %v290_v15 = vld [vmem:[%s3394_s2 + $0x40] sm:$0xff]  ;;  %v299_v21 = vld [vmem:[%s3394_s2 + $0x88] sm:$0xff] }
  0x85   : > { %v1830_v25 = vpack.c.bf16 %v290_v15, %v282_v14  ;;  %v364_v14 = vld [vmem:[%s3394_s2 + $0x290] sm:$0xff]  ;;  %v1880_v15 = vpack.c.bf16 %v373_v8, %v365_v7  ;;  %v329_v7 = vld [vmem:[%s3394_s2 + $0x178] sm:$0xff] }
  0x86   : > { %1747 = vmatpush1.bf16.msra.mxu0 %v1746_v27  ;;  %v1832_v27 = vpack.c.bf16 %v307_v22, %v299_v21  ;;  %v381_v21 = vld [vmem:[%s3394_s2 + $0x318] sm:$0xff]  ;;  %v1882_v24 = vpack.c.bf16 %v372_v16, %v364_v14  ;;  %v335_v16 = vld [vmem:[%s3394_s2 + $0x1a8] sm:$0xff] }
  0x87   : > { %1811 = vmatpush1.bf16.msra.mxu1 %v1810_v28  ;;  %1749 = vmatprep.subr.bf16.mxu0 %v1748_v29  ;;  %v298_v28 = vld [vmem:[%s3394_s2 + $0x80] sm:$0xff]  ;;  %v389_v22 = vld [vmem:[%s3394_s2 + $0x358] sm:$0xff] }
  0x88   : > { %1813 = vmatprep.subr.bf16.mxu1 %v1812_v33  ;;  %v306_v29 = vld [vmem:[%s3394_s2 + $0xc0] sm:$0xff]  ;;  %v315_v33 = vld [vmem:[%s3394_s2 + $0x108] sm:$0xff] }
  0x89   : > { %v1834_v37 = vpack.c.bf16 %v306_v29, %v298_v28  ;;  %v380_v28 = vld [vmem:[%s3394_s2 + $0x310] sm:$0xff]  ;;  %v1884_v29 = vpack.c.bf16 %v389_v22, %v381_v21  ;;  %v345_v21 = vld [vmem:[%s3394_s2 + $0x1f8] sm:$0xff] }
  0x8a   : > { %1751 = vmatpush1.bf16.msra.mxu0 %v1750_v39  ;;  %v1836_v39 = vpack.c.bf16 %v323_v34, %v315_v33  ;;  %v397_v33 = vld [vmem:[%s3394_s2 + $0x398] sm:$0xff] }
  0x8b   : > { %1815 = vmatpush1.bf16.msra.mxu1 %v1814_v40  ;;  %1753 = vmatprep.subr.bf16.mxu0 %v1752_v41  ;;  %v314_v40 = vld [vmem:[%s3394_s2 + $0x100] sm:$0xff]  ;;  %v405_v34 = vld [vmem:[%s3394_s2 + $0x3d8] sm:$0xff] }
  0x8c   : > { %1817 = vmatprep.subr.bf16.mxu1 %v1816_v45  ;;  %v322_v41 = vld [vmem:[%s3394_s2 + $0x140] sm:$0xff]  ;;  %v339_v45 = vld [vmem:[%s3394_s2 + $0x1c8] sm:$0xff] }
  0x8d   : > { %v1838_v49 = vpack.c.bf16 %v322_v41, %v314_v40  ;;  %v396_v40 = vld [vmem:[%s3394_s2 + $0x390] sm:$0xff]  ;;  %v1888_v41 = vpack.c.bf16 %v405_v34, %v397_v33 }
  0x8e   : > { %1755 = vmatpush1.bf16.msra.mxu0 %v1754_v51  ;;  %v1840_v51 = vpack.c.bf16 %v339_v45, %v331_v44  ;;  %v289_v44 = vld [vmem:[%s3394_s2 + $0x38] sm:$0xff]  ;;  %v1890_v48 = vpack.c.bf16 %v404_v42, %v396_v40  ;;  %v360_v40 = vld [vmem:[%s3394_s2 + $0x270] sm:$0xff]  ;;  %v375_v42 = vld [vmem:[%s3394_s2 + $0x2e8] sm:$0xff] }
  0x8f   : > { %1819 = vmatpush1.bf16.msra.mxu1 %v1818_v52  ;;  %1757 = vmatprep.subr.bf16.mxu0 %v1756_v53  ;;  %v330_v52 = vld [vmem:[%s3394_s2 + $0x180] sm:$0xff]  ;;  %v297_v45 = vld [vmem:[%s3394_s2 + $0x78] sm:$0xff] }
  0x90   : > { %1821 = vmatprep.subr.bf16.mxu1 %v1820_v57  ;;  %v338_v53 = vld [vmem:[%s3394_s2 + $0x1c0] sm:$0xff]  ;;  %v347_v57 = vld [vmem:[%s3394_s2 + $0x208] sm:$0xff] }
  0x91   : > { %v1842_v61 = vpack.c.bf16 %v338_v53, %v330_v52  ;;  %v288_v52 = vld [vmem:[%s3394_s2 + $0x30] sm:$0xff]  ;;  %v1924_v53 = vpack.c.bf16 %v297_v45, %v289_v44 }
  0x92   : > { %1759 = vmatpush1.bf16.msra.mxu0 %v1758_v63  ;;  %v1844_v63 = vpack.c.bf16 %v355_v58, %v347_v57  ;;  %v305_v57 = vld [vmem:[%s3394_s2 + $0xb8] sm:$0xff] }
  0x93   : > { %1823 = vmatpush1.bf16.msra.mxu1 %v1822_v0  ;;  %1761 = vmatprep.subr.bf16.mxu0 %v1760_v1  ;;  %v346_v0 = vld [vmem:[%s3394_s2 + $0x200] sm:$0xff]  ;;  %v313_v58 = vld [vmem:[%s3394_s2 + $0xf8] sm:$0xff] }
  0x94   : > { %1825 = vmatprep.subr.bf16.mxu1 %v1824_v5  ;;  %v354_v1 = vld [vmem:[%s3394_s2 + $0x240] sm:$0xff]  ;;  %v363_v5 = vld [vmem:[%s3394_s2 + $0x288] sm:$0xff]  ;;  %v1928_v2 = vpack.c.bf16 %v313_v58, %v305_v57 }
  0x95   : > { %v1846_v9 = vpack.c.bf16 %v354_v1, %v346_v0  ;;  %v310_v0 = vld [vmem:[%s3394_s2 + $0xe0] sm:$0xff]  ;;  %v304_v1 = vld [vmem:[%s3394_s2 + $0xb0] sm:$0xff] }
  0x96   : > { %1763 = vmatpush1.bf16.msra.mxu0 %v1762_v11  ;;  %v1848_v11 = vpack.c.bf16 %v371_v6, %v363_v5  ;;  %v327_v5 = vld [vmem:[%s3394_s2 + $0x168] sm:$0xff]  ;;  %v321_v6 = vld [vmem:[%s3394_s2 + $0x138] sm:$0xff] }
  0x97   : > { %1827 = vmatpush1.bf16.msra.mxu1 %v1826_v12  ;;  %1829 = vmatprep.subr.bf16.mxu0 %v1828_v13  ;;  %v362_v12 = vld [vmem:[%s3394_s2 + $0x280] sm:$0xff]  ;;  %v1932_v14 = vpack.c.bf16 %v329_v7, %v321_v6 }
  0x98   : > { %1861 = vmatprep.subr.bf16.mxu1 %v1860_v18  ;;  %v370_v13 = vld [vmem:[%s3394_s2 + $0x2c0] sm:$0xff]  ;;  %v379_v18 = vld [vmem:[%s3394_s2 + $0x308] sm:$0xff] }
  0x99   : > { %884 = vmatmul.mubr.f32.vlgmr.msra.gmra.mrb[2].mxu0 %v2402_v17  ;;  %v1850_v23 = vpack.c.bf16 %v370_v13, %v362_v12  ;;  %v326_v12 = vld [vmem:[%s3394_s2 + $0x160] sm:$0xff]  ;;  %v320_v13 = vld [vmem:[%s3394_s2 + $0x130] sm:$0xff] }
  0x9a   : > { %955 = vmatmul.mubr.f32.vlgmr.msra.gmra.mrb[2].mxu1 %v2402_v17  ;;  %1831 = vmatpush1.bf16.msra.mxu0 %v1830_v25  ;;  %v1868_v17 = vpack.c.bf16 %v325_v36, %v317_v35  ;;  %v1852_v25 = vpack.c.bf16 %v387_v19, %v379_v18  ;;  %v1886_v36 = vpack.c.bf16 %v388_v30, %v380_v28  ;;  %v343_v18 = vld [vmem:[%s3394_s2 + $0x1e8] sm:$0xff]  ;;  %v337_v19 = vld [vmem:[%s3394_s2 + $0x1b8] sm:$0xff]  ;;  %v344_v28 = vld [vmem:[%s3394_s2 + $0x1f0] sm:$0xff] }
  0x9b   : > { %1863 = vmatpush1.bf16.msra.mxu1 %v1862_v26  ;;  %1833 = vmatprep.subr.bf16.mxu0 %v1832_v27  ;;  %v378_v26 = vld [vmem:[%s3394_s2 + $0x300] sm:$0xff]  ;;  %v359_v30 = vld [vmem:[%s3394_s2 + $0x268] sm:$0xff] }
  0x9c   : > { %1865 = vmatprep.subr.bf16.mxu1 %v1864_v31  ;;  %1025 = vmatprep.mubr.f32.mxu0 %v2046_v46  ;;  %v386_v27 = vld [vmem:[%s3394_s2 + $0x340] sm:$0xff]  ;;  %v395_v31 = vld [vmem:[%s3394_s2 + $0x388] sm:$0xff] }
  0x9d   : > { %1096 = vmatprep.mubr.f32.mxu1 %v2046_v46  ;;  %v1854_v35 = vpack.c.bf16 %v386_v27, %v378_v26  ;;  %v342_v26 = vld [vmem:[%s3394_s2 + $0x1e0] sm:$0xff]  ;;  %v336_v27 = vld [vmem:[%s3394_s2 + $0x1b0] sm:$0xff] }
  0x9e   : > { %1835 = vmatpush1.bf16.msra.mxu0 %v1834_v37  ;;  %v1856_v37 = vpack.c.bf16 %v403_v32, %v395_v31  ;;  %v353_v31 = vld [vmem:[%s3394_s2 + $0x238] sm:$0xff]  ;;  %v1938_v34 = vpack.c.bf16 %v344_v28, %v336_v27  ;;  %v1375_v28 = vld [vmem:[%s3397_s5 + $0xa0] sm:$0xff] }
  0x9f   : > { %1867 = vmatpush1.bf16.msra.mxu1 %v1866_v38  ;;  %1837 = vmatprep.subr.bf16.mxu0 %v1836_v39  ;;  %v394_v38 = vld [vmem:[%s3394_s2 + $0x380] sm:$0xff]  ;;  %v361_v32 = vld [vmem:[%s3394_s2 + $0x278] sm:$0xff] }
  0xa0   : > { %1869 = vmatprep.subr.bf16.mxu1 %v1868_v17  ;;  %v402_v39 = vld [vmem:[%s3394_s2 + $0x3c0] sm:$0xff]  ;;  %v287_v17 = vld [vmem:[%s3394_s2 + $0x28] sm:$0xff]  ;;  %v1358_v27 = vld [vmem:[%s3397_s5 + $0x18] sm:$0xff] }
  0xa1   : > { %v1858_v47 = vpack.c.bf16 %v402_v39, %v394_v38  ;;  %v352_v38 = vld [vmem:[%s3394_s2 + $0x230] sm:$0xff]  ;;  %v1940_v39 = vpack.c.bf16 %v361_v32, %v353_v31  ;;  %v1359_v31 = vld [vmem:[%s3397_s5 + $0x20] sm:$0xff]  ;;  %v1360_v32 = vld [vmem:[%s3397_s5 + $0x28] sm:$0xff] }
  0xa2   : > { %1839 = vmatpush1.bf16.msra.mxu0 %v1838_v49  ;;  %v1892_v49 = vpack.c.bf16 %v295_v43, %v287_v17  ;;  %v369_v17 = vld [vmem:[%s3394_s2 + $0x2b8] sm:$0xff]  ;;  %v1942_v45 = vpack.c.bf16 %v360_v40, %v352_v38  ;;  %v1379_v40 = vld [vmem:[%s3397_s5 + $0xc0] sm:$0xff] }
  0xa3   : > { %1871 = vmatpush1.bf16.msra.mxu1 %v1870_v50  ;;  %1841 = vmatprep.subr.bf16.mxu0 %v1840_v51  ;;  %v286_v50 = vld [vmem:[%s3394_s2 + $0x20] sm:$0xff]  ;;  %v377_v43 = vld [vmem:[%s3394_s2 + $0x2f8] sm:$0xff] }
  0xa4   : > { %1873 = vmatprep.subr.bf16.mxu1 %v1872_v55  ;;  %v294_v51 = vld [vmem:[%s3394_s2 + $0x60] sm:$0xff]  ;;  %v303_v55 = vld [vmem:[%s3394_s2 + $0xa8] sm:$0xff]  ;;  %v1362_v38 = vld [vmem:[%s3397_s5 + $0x38] sm:$0xff] }
  0xa5   : > { %v1894_v60 = vpack.c.bf16 %v294_v51, %v286_v50  ;;  %v368_v50 = vld [vmem:[%s3394_s2 + $0x2b0] sm:$0xff]  ;;  %v1944_v51 = vpack.c.bf16 %v377_v43, %v369_v17  ;;  %v1363_v17 = vld [vmem:[%s3397_s5 + $0x40] sm:$0xff]  ;;  %v1364_v43 = vld [vmem:[%s3397_s5 + $0x48] sm:$0xff] }
  0xa6   : > { %1843 = vmatpush1.bf16.msra.mxu0 %v1842_v61  ;;  %v1926_v61 = vpack.c.bf16 %v296_v54, %v288_v52  ;;  %v376_v52 = vld [vmem:[%s3394_s2 + $0x2f0] sm:$0xff]  ;;  %v391_v54 = vld [vmem:[%s3394_s2 + $0x368] sm:$0xff] }
  0xa7   : > { %1875 = vmatpush1.bf16.msra.mxu1 %v1874_v62  ;;  %1845 = vmatprep.subr.bf16.mxu0 %v1844_v63  ;;  %v1896_v62 = vpack.c.bf16 %v311_v56, %v303_v55  ;;  %v302_v63 = vld [vmem:[%s3394_s2 + $0xa0] sm:$0xff]  ;;  %v385_v55 = vld [vmem:[%s3394_s2 + $0x338] sm:$0xff]  ;;  %v1946_v58 = vpack.c.bf16 %v376_v52, %v368_v50 }
  0xa8   : > { %1877 = vmatprep.subr.bf16.mxu1 %v1876_v3  ;;  %v312_v3 = vld [vmem:[%s3394_s2 + $0xf0] sm:$0xff]  ;;  %v1898_v8 = vpack.c.bf16 %v310_v0, %v302_v63  ;;  %v393_v56 = vld [vmem:[%s3394_s2 + $0x378] sm:$0xff] }
  0xa9   : > { %v384_v63 = vld [vmem:[%s3394_s2 + $0x330] sm:$0xff]  ;;  %v1948_v0 = vpack.c.bf16 %v393_v56, %v385_v55  ;;  %v1366_v50 = vld [vmem:[%s3397_s5 + $0x58] sm:$0xff]  ;;  %v1368_v55 = vld [vmem:[%s3397_s5 + $0x68] sm:$0xff] }
  0xaa   : > { %1847 = vmatpush1.bf16.msra.mxu0 %v1846_v9  ;;  %v1930_v9 = vpack.c.bf16 %v312_v3, %v304_v1  ;;  %v392_v1 = vld [vmem:[%s3394_s2 + $0x370] sm:$0xff]  ;;  %v407_v3 = vld [vmem:[%s3394_s2 + $0x3e8] sm:$0xff] }
  0xab   : > { %1879 = vmatpush1.bf16.msra.mxu1 %v1878_v10  ;;  %1849 = vmatprep.subr.bf16.mxu0 %v1848_v11  ;;  %v1900_v10 = vpack.c.bf16 %v327_v5, %v319_v4  ;;  %v318_v11 = vld [vmem:[%s3394_s2 + $0x120] sm:$0xff]  ;;  %v401_v4 = vld [vmem:[%s3394_s2 + $0x3b8] sm:$0xff]  ;;  %v1950_v7 = vpack.c.bf16 %v392_v1, %v384_v63  ;;  %v1247_v1 = vlaneseq }
  0xac   : > { %1881 = vmatprep.subr.bf16.mxu1 %v1880_v15  ;;  %v328_v15 = vld [vmem:[%s3394_s2 + $0x170] sm:$0xff]  ;;  %v1902_v22 = vpack.c.bf16 %v326_v12, %v318_v11  ;;  %v409_v5 = vld [vmem:[%s3394_s2 + $0x3f8] sm:$0xff] }
  0xad   : > { %v1952_v11 = vpack.c.bf16 %v409_v5, %v401_v4  ;;  %v400_v12 = vld [vmem:[%s3394_s2 + $0x3b0] sm:$0xff]  ;;  %v1370_v63 = vld [vmem:[%s3397_s5 + $0x78] sm:$0xff]  ;;  %v1245_v4 = vld [vmem:[%s3396_s4] sm:$0xff] }
  0xae   : > { %1851 = vmatpush1.bf16.msra.mxu0 %v1850_v23  ;;  %v1934_v23 = vpack.c.bf16 %v328_v15, %v320_v13  ;;  %v408_v13 = vld [vmem:[%s3394_s2 + $0x3f0] sm:$0xff] }
  0xaf   : > { %1883 = vmatpush1.bf16.msra.mxu1 %v1882_v24  ;;  %1853 = vmatprep.subr.bf16.mxu0 %v1852_v25  ;;  %v1904_v24 = vpack.c.bf16 %v343_v18, %v335_v16  ;;  %v334_v25 = vld [vmem:[%s3394_s2 + $0x1a0] sm:$0xff]  ;;  %v1954_v15 = vpack.c.bf16 %v408_v13, %v400_v12  ;;  %v1372_v18 = vld [vmem:[%s3397_s5 + $0x88] sm:$0xff] }
  0xb0   : > { %1885 = vmatprep.subr.bf16.mxu1 %v1884_v29  ;;  %v351_v29 = vld [vmem:[%s3394_s2 + $0x228] sm:$0xff]  ;;  %v1906_v33 = vpack.c.bf16 %v342_v26, %v334_v25  ;;  %v1371_v16 = vld [vmem:[%s3397_s5 + $0x80] sm:$0xff]  ;;  %v1357_v26 = vld [vmem:[%s3397_s5 + $0x10] sm:$0xff] }
  0xb2   : > { %1855 = vmatpush1.bf16.msra.mxu0 %v1854_v35  ;;  %v1908_v35 = vpack.c.bf16 %v359_v30, %v351_v29  ;;  %v1376_v29 = vld [vmem:[%s3397_s5 + $0xa8] sm:$0xff] }
  0xb3   : > { %1887 = vmatpush1.bf16.msra.mxu1 %v1886_v36  ;;  %1857 = vmatprep.subr.bf16.mxu0 %v1856_v37  ;;  %v350_v36 = vld [vmem:[%s3394_s2 + $0x220] sm:$0xff]  ;;  %v1964_v30 = vpack.c.bf16 %v1376_v29, %v1375_v28 }
  0xb4   : > { %1889 = vmatprep.subr.bf16.mxu1 %v1888_v41  ;;  %v358_v37 = vld [vmem:[%s3394_s2 + $0x260] sm:$0xff]  ;;  %v367_v41 = vld [vmem:[%s3394_s2 + $0x2a8] sm:$0xff] }
  0xb5   : > { %v1910_v44 = vpack.c.bf16 %v358_v37, %v350_v36  ;;  %v1361_v37 = vld [vmem:[%s3397_s5 + $0x30] sm:$0xff] }
  0xb6   : > { %1859 = vmatpush1.bf16.msra.mxu0 %v1858_v47  ;;  %v1912_v47 = vpack.c.bf16 %v375_v42, %v367_v41  ;;  %v1380_v41 = vld [vmem:[%s3397_s5 + $0xc8] sm:$0xff] }
  0xb7   : > { %1891 = vmatpush1.bf16.msra.mxu1 %v1890_v48  ;;  %1893 = vmatprep.subr.bf16.mxu0 %v1892_v49  ;;  %v366_v48 = vld [vmem:[%s3394_s2 + $0x2a0] sm:$0xff]  ;;  %v1972_v42 = vpack.c.bf16 %v1380_v41, %v1379_v40 }
  0xb8   : > { %1925 = vmatprep.subr.bf16.mxu1 %v1924_v53  ;;  %v374_v49 = vld [vmem:[%s3394_s2 + $0x2e0] sm:$0xff]  ;;  %v383_v53 = vld [vmem:[%s3394_s2 + $0x328] sm:$0xff] }
  0xb9   : > { %1026 = vmatmul.mubr.f32.vlgmr.msra.gmra.mrb[0].mxu0 %v3121_v59  ;;  %v1914_v57 = vpack.c.bf16 %v374_v49, %v366_v48  ;;  %v1365_v49 = vld [vmem:[%s3397_s5 + $0x50] sm:$0xff] }
  0xba   : > { %1097 = vmatmul.mubr.f32.vlgmr.msra.gmra.mrb[0].mxu1 %v3121_v59  ;;  %1895 = vmatpush1.bf16.msra.mxu0 %v1894_v60  ;;  %v1916_v60 = vpack.c.bf16 %v391_v54, %v383_v53  ;;  %v1978_v52 = vpack.c.bf16 %v1366_v50, %v1365_v49  ;;  %v1384_v53 = vld [vmem:[%s3397_s5 + $0xe8] sm:$0xff]  ;;  %v1367_v54 = vld [vmem:[%s3397_s5 + $0x60] sm:$0xff] }
  0xbb   : > { %1927 = vmatpush1.bf16.msra.mxu1 %v1926_v61  ;;  %1897 = vmatprep.subr.bf16.mxu0 %v1896_v62  ;;  %v382_v61 = vld [vmem:[%s3394_s2 + $0x320] sm:$0xff] }
  0xbc   : > { %1929 = vmatprep.subr.bf16.mxu1 %v1928_v2  ;;  %1167 = vmatprep.mubr.f32.mxu0 %v2046_v46  ;;  %v390_v62 = vld [vmem:[%s3394_s2 + $0x360] sm:$0xff]  ;;  %v399_v2 = vld [vmem:[%s3394_s2 + $0x3a8] sm:$0xff] }
  0xbd   : > { %1238 = vmatprep.mubr.f32.mxu1 %v2046_v46  ;;  %v1936_v46 = vpack.c.bf16 %v345_v21, %v337_v19  ;;  %v1918_v6 = vpack.c.bf16 %v390_v62, %v382_v61  ;;  %v1956_v19 = vpack.c.bf16 %v1372_v18, %v1371_v16  ;;  %v1355_v21 = vld [vmem:[%s3397_s5] sm:$0xff]  ;;  %v1369_v62 = vld [vmem:[%s3397_s5 + $0x70] sm:$0xff] }
  0xbe   : > { %1899 = vmatpush1.bf16.msra.mxu0 %v1898_v8  ;;  %v1920_v8 = vpack.c.bf16 %v407_v3, %v399_v2  ;;  %v1248_v2 = vshrl.u32 %v1247_v1, 7 }
  0xbf   : > { %1931 = vmatpush1.bf16.msra.mxu1 %v1930_v9  ;;  %1901 = vmatprep.subr.bf16.mxu0 %v1900_v10  ;;  %v398_v9 = vld [vmem:[%s3394_s2 + $0x3a0] sm:$0xff] }
  0xc0   : > { %1933 = vmatprep.subr.bf16.mxu1 %v1932_v14  ;;  %v406_v10 = vld [vmem:[%s3394_s2 + $0x3e0] sm:$0xff]  ;;  %v1249_v3 = vsub.s32 0, %v1248_v2  ;;  %v1257_v5 = vsub.s32 2, %v1248_v2  ;;  %v1273_v28 = vsub.s32 6, %v1248_v2  ;;  %v1269_v29 = vsub.s32 5, %v1248_v2 }
  0xc1   : > { %v1922_v14 = vpack.c.bf16 %v406_v10, %v398_v9  ;;  %v1261_v10 = vsub.s32 3, %v1248_v2 }
  0xc2   : > { %1903 = vmatpush1.bf16.msra.mxu0 %v1902_v22  ;;  %v1356_v22 = vld [vmem:[%s3397_s5 + $0x8] sm:$0xff]  ;;  %v1258_v13 = vrot.slane %v1245_v4, %v1257_v5 }
  0xc3   : > { %1935 = vmatpush1.bf16.msra.mxu1 %v1934_v23  ;;  %1905 = vmatprep.subr.bf16.mxu0 %v1904_v24  ;;  %v1958_v23 = vpack.c.bf16 %v1356_v22, %v1355_v21  ;;  %v1374_v24 = vld [vmem:[%s3397_s5 + $0x98] sm:$0xff] }
  0xc4   : > { %1937 = vmatprep.subr.bf16.mxu1 %v1936_v46  ;;  %v1962_v46 = vpack.c.bf16 %v1358_v27, %v1357_v26  ;;  %v1265_v27 = vsub.s32 4, %v1248_v2 }
  0xc6   : > { %1907 = vmatpush1.bf16.msra.mxu0 %v1906_v33  ;;  %v1966_v33 = vpack.c.bf16 %v1360_v32, %v1359_v31  ;;  %v1277_v32 = vsub.s32 7, %v1248_v2 }
  0xc7   : > { %1939 = vmatpush1.bf16.msra.mxu1 %v1938_v34  ;;  %1909 = vmatprep.subr.bf16.mxu0 %v1908_v35  ;;  %v1377_v34 = vld [vmem:[%s3397_s5 + $0xb0] sm:$0xff]  ;;  %v1378_v35 = vld [vmem:[%s3397_s5 + $0xb8] sm:$0xff] }
  0xc8   : > { %1941 = vmatprep.subr.bf16.mxu1 %v1940_v39  ;;  %v1968_v36 = vpack.c.bf16 %v1378_v35, %v1377_v34  ;;  %v1970_v39 = vpack.c.bf16 %v1362_v38, %v1361_v37  ;;  %v1266_v35 = vrot.slane %v1245_v4, %v1265_v27  ;;  %v1274_v37 = vrot.slane %v1245_v4, %v1273_v28 }
  0xc9   : > { %v1270_v38 = vrot.slane %v1245_v4, %v1269_v29 }
  0xca   : > { %1911 = vmatpush1.bf16.msra.mxu0 %v1910_v44  ;;  %v1974_v44 = vpack.c.bf16 %v1364_v43, %v1363_v17 }
  0xcb   : > { %1943 = vmatpush1.bf16.msra.mxu1 %v1942_v45  ;;  %1913 = vmatprep.subr.bf16.mxu0 %v1912_v47  ;;  %v1381_v45 = vld [vmem:[%s3397_s5 + $0xd0] sm:$0xff]  ;;  %v1382_v47 = vld [vmem:[%s3397_s5 + $0xd8] sm:$0xff] }
  0xcc   : > { %1945 = vmatprep.subr.bf16.mxu1 %v1944_v51  ;;  %v1976_v48 = vpack.c.bf16 %v1382_v47, %v1381_v45  ;;  %v1383_v51 = vld [vmem:[%s3397_s5 + $0xe0] sm:$0xff] }
  0xcd   : > { %v1980_v56 = vpack.c.bf16 %v1384_v53, %v1383_v51 }
  0xce   : > { %1915 = vmatpush1.bf16.msra.mxu0 %v1914_v57  ;;  %v1385_v57 = vld [vmem:[%s3397_s5 + $0xf0] sm:$0xff] }
  0xcf   : > { %1947 = vmatpush1.bf16.msra.mxu1 %v1946_v58  ;;  %1917 = vmatprep.subr.bf16.mxu0 %v1916_v60  ;;  %v1386_v58 = vld [vmem:[%s3397_s5 + $0xf8] sm:$0xff]  ;;  %v1982_v60 = vpack.c.bf16 %v1368_v55, %v1367_v54 }
  0xd0   : > { %1949 = vmatprep.subr.bf16.mxu1 %v1948_v0  ;;  %v1984_v61 = vpack.c.bf16 %v1386_v58, %v1385_v57  ;;  %v1986_v0 = vpack.c.bf16 %v1370_v63, %v1369_v62 }
  0xd2   : > { %1919 = vmatpush1.bf16.msra.mxu0 %v1918_v6 }
  0xd3   : > { %1951 = vmatpush1.bf16.msra.mxu1 %v1950_v7  ;;  %1921 = vmatprep.subr.bf16.mxu0 %v1920_v8  ;;  %v1253_v7 = vsub.s32 1, %v1248_v2 }
  0xd4   : > { %1953 = vmatprep.subr.bf16.mxu1 %v1952_v11  ;;  %v1250_v11 = vrot.slane %v1245_v4, %v1249_v3 }
  0xd6   : > { %1923 = vmatpush1.bf16.msra.mxu0 %v1922_v14  ;;  %v1254_v14 = vrot.slane %v1245_v4, %v1253_v7 }
  0xd7   : > { %1955 = vmatpush1.bf16.msra.mxu1 %v1954_v15  ;;  %1957 = vmatprep.subr.bf16.mxu0 %v1956_v19  ;;  %v1262_v15 = vrot.slane %v1245_v4, %v1261_v10 }
  0xd9   : > { %1168 = vmatmul.mubr.f32.vlgmr.msra.gmra.mrb[2].mxu0 %v3121_v59 }
  0xda   : > { %1239 = vmatmul.mubr.f32.vlgmr.msra.gmra.mrb[2].mxu1 %v3121_v59  ;;  %1959 = vmatpush3.bf16.msra.mxu0 %v1958_v23  ;;  %v1373_v59 = vld [vmem:[%s3397_s5 + $0x90] sm:$0xff] }
  0xdb   : > { %v1960_v25 = vpack.c.bf16 %v1374_v24, %v1373_v59 }
  0xdd   : > { %1961 = vmatprep.subr.bf16.mxu0 %v1960_v25 }
  0xde   : > { %1963 = vmatpush3.bf16.msra.mxu0 %v1962_v46 }
  0xdf   : > { %1965 = vmatprep.subr.bf16.mxu0 %v1964_v30 }
  0xe2   : > { %1967 = vmatpush3.bf16.msra.mxu0 %v1966_v33 }
  0xe3   : > { %1969 = vmatprep.subr.bf16.mxu0 %v1968_v36 }
  0xe6   : > { %1971 = vmatpush3.bf16.msra.mxu0 %v1970_v39  ;;  %v1278_v39 = vrot.slane %v1245_v4, %v1277_v32 }
  0xe7   : > { %1973 = vmatprep.subr.bf16.mxu0 %v1972_v42 }
  0xea   : > { %1975 = vmatpush3.bf16.msra.mxu0 %v1974_v44 }
  0xeb   : > { %1977 = vmatprep.subr.bf16.mxu0 %v1976_v48 }
  0xee   : > { %1979 = vmatpush3.bf16.msra.mxu0 %v1978_v52 }
  0xef   : > { %1981 = vmatprep.subr.bf16.mxu0 %v1980_v56  ;;  %v2037_v56 = vld.sshfl [vmem:[#allocation2] sm:$0x33 pattern:$0x76325410] }
  0xf2   : > { %1983 = vmatpush3.bf16.msra.mxu0 %v1982_v60 }
  0xf3   : > { %1985 = vmatprep.subr.bf16.mxu0 %v1984_v61 }
  0xf6   : > { %1987 = vmatpush3.bf16.msra.mxu0 %v1986_v0 }
 0x18c   : > { %v1027_v6 = vpop.f32.mrb[0].mxu0 }
 0x18d   : > { %v1098_v8 = vpop.f32.mrb[0].mxu1  ;;  %v1029_v9 = vpop.f32.mrb[1].mxu0  ;;  %v1287_v16 = vadd.f32 %v1250_v11, %v1027_v6  ;;  %v1534_v11 = vld [vmem:[%s3398_s6] ss:$0 sm:$0xff] }
 0x18e   : > { %v1100_v12 = vpop.f32.mrb[1].mxu1  ;;  %v1289_v18 = vadd.f32 %v1258_v13, %v1098_v8  ;;  %v1288_v19 = vadd.f32 %v1254_v14, %v1029_v9 }
 0x18f   : > { %v1290_v21 = vadd.f32 %v1262_v15, %v1100_v12  ;;  %v1527_v22 = vmul.f32 -1.442695, %v1287_v16 }
 0x190   : > { %v1529_v23 = vmul.f32 -1.442695, %v1289_v18  ;;  %v1528_v59 = vmul.f32 -1.442695, %v1288_v19 }
 0x191   : > { %v1530_v24 = vmul.f32 -1.442695, %v1290_v21  ;;  %2005 = vpow2.f32 %v1527_v22 }
 0x192   : > { %2007 = vpow2.f32 %v1529_v23 }
 0x193   : > { %2009 = vpow2.f32 %v1528_v59 }
 0x194   : > { %2011 = vpow2.f32 %v1530_v24 }
 0x19b   : > { %v2006_v25 = vpop.eup %2005 }
 0x19c   : > { %v2008_v26 = vpop.eup %2007  ;;  %v1301_v31 = vadd.f32 1.0, %v2006_v25 }
 0x19d   : > { %v2010_v46 = vpop.eup %2009  ;;  %v1313_v33 = vadd.f32 1.0, %v2008_v26 }
 0x19e   : > { %v2012_v30 = vpop.eup %2011  ;;  %v1302_v34 = vadd.f32 1.0, %v2010_v46  ;;  %2013 = vrcp.f32 %v1301_v31 }
 0x19f   : > { %v1314_v36 = vadd.f32 1.0, %v2012_v30  ;;  %2015 = vrcp.f32 %v1313_v33 }
 0x1a0   : > { %2017 = vrcp.f32 %v1302_v34 }
 0x1a1   : > { %2019 = vrcp.f32 %v1314_v36 }
 0x1a8   : > { %v2014_v50 = vpop.eup %2013 }
 0x1a9   : > { %v2016_v51 = vpop.eup %2015 }
 0x1aa   : > { %v2018_v52 = vpop.eup %2017  ;;  %v1333_v57 = vmul.f32 %v2037_v56, %v2016_v51 }
 0x1ab   : > { %v2020_v53 = vpop.eup %2019 }
 0x1ac   : > { %v1169_v40 = vpop.f32.mrb[2].mxu0  ;;  %v1334_v60 = vmul.f32 %v2020_v53, %v2412_v20 }
 0x1ad   : > { %v1291_v41 = vadd.f32 %v1266_v35, %v1169_v40  ;;  %v1240_v42 = vpop.f32.mrb[2].mxu1  ;;  %v1171_v17 = vpop.f32.mrb[3].mxu0 }
 0x1ae   : > { %v1293_v43 = vadd.f32 %v1274_v37, %v1240_v42  ;;  %v1292_v44 = vadd.f32 %v1270_v38, %v1171_v17  ;;  %v1242_v45 = vpop.f32.mrb[3].mxu1 }
 0x1af   : > { %2021 = vtanh.f32 %v1291_v41  ;;  %v1294_v47 = vadd.f32 %v1278_v39, %v1242_v45 }
 0x1b0   : > { %v1531_v48 = vmul.f32 -1.442695, %v1293_v43  ;;  %2023 = vtanh.f32 %v1292_v44 }
 0x1b1   : > { %v1532_v49 = vmul.f32 -1.442695, %v1294_v47 }
 0x1b2   : > { %2025 = vpow2.f32 %v1531_v48 }
 0x1b3   : > { %2027 = vpow2.f32 %v1532_v49 }
 0x1b9   : > { %v2022_v54 = vpop.eup %2021 }
 0x1ba   : > { %v2024_v55 = vpop.eup %2023  ;;  %v1335_v58 = vmul.f32 %v2022_v54, %v2014_v50 }
 0x1bb   : > { %v1336_v61 = vmul.f32 %v2024_v55, %v2018_v52 }
 0x1bc   : > { %v2026_v62 = vpop.eup %2025  ;;  %v1337_v63 = vadd.f32 %v1335_v58, %v1333_v57 }
 0x1bd   : > { %v2028_v0 = vpop.eup %2027  ;;  %v1327_v1 = vadd.f32 1.0, %v2026_v62  ;;  %v1338_v2 = vadd.f32 %v1336_v61, %v1334_v60 }
 0x1be   : > { %2029 = vtanh.f32 %v1337_v63  ;;  %v1328_v3 = vadd.f32 1.0, %v2028_v0 }
 0x1bf   : > { %2031 = vrcp.f32 %v1327_v1  ;;  %v1345_v4 = vcombine.low %v1337_v63, %v1338_v2 }
 0x1c0   : > { %2033 = vrcp.f32 %v1328_v3 }
 0x1c1   : > { %1533 = vst.sshfl [vmem:[#allocation2] sm:$0x33 pattern:$0x76325410] %v1345_v4  ;;  %2035 = vtanh.f32 %v1338_v2 }
 0x1c8   : > { %v2030_v5 = vpop.eup %2029 }
 0x1c9   : > { %v2032_v6 = vpop.eup %2031 }
 0x1ca   : > { %v2034_v7 = vpop.eup %2033  ;;  %v1341_v8 = vmul.f32 %v2032_v6, %v2030_v5 }
 0x1cb   : > { %v2036_v9 = vpop.eup %2035 }
 0x1cc   : > { %v1342_v20 = vmul.f32 %v2036_v9, %v2034_v7 }
 0x1ce   : > { %1458 = vmatprep.mubr.f32.mxu0 %v1342_v20 }
 0x1cf   : > { %1459 = vmatmul.mubr.f32.vlgmr.msra.gmra.mrb[4].mxu0 %v1341_v8 }
 0x2a2   : > { %v1569_v10 = vpop.f32.mrb[4].mxu0 }
 0x2a3   : > { %v1570_v12 = vpop.f32.mrb[5].mxu0 }
 0x2a4   : > { %v1571_v13 = vadd.f32 %v1570_v12, %v1569_v10 }
 0x2a6   : > { %v1461_v14 = vadd.f32 %v1571_v13, %v1534_v11 }
 0x2a8   : > { %1464 = vst [vmem:[%s2103_s10] sm:$0x3] %v1461_v14 }
 0x2a9 PF: > { %s17_s24 = sadd.s32 1, %s2044_s24  }
 0x2aa   : > { %p14_p5 = scmp.ge.s32.totalorder %s17_s24, 52  }
 0x2ac   :  { %16 = sbr.rel (!%p14_p5) target bundleno = 1 (0x1), region = 82 }

</bundles_post_ra>
